<compile_context>
chip_gen: v5e
topology: v5e:2x2
jax: 0.10.0
libtpu: 0.0.40
codegen_flags: <defaults>
</compile_context>

<pallas_src>
import functools

import numpy as np

import jax
import jax.numpy as jnp
from jax import lax
from jax.experimental import pallas as pl
from jax.experimental.pallas import tpu as pltpu


# ----------------------------- Pallas kernel -------------------------------

def _convt4x2_kernel(w_ref, x_ref, *rest, n_img, wp, out_act, with_stats):
    """One image of a (k=4, s=2, p=1) ConvTranspose2d, phases merged along M.

    w_ref : (9, 4*Cout, Cin) bf16 — per-3x3-tap weights; taps a given output
            parity phase does not use are zero rows.
    x_ref : (1, Cin, Lx)     bf16 — zero-padded post-activation image with the
            padded (Hp, Wp) grid flattened onto the lane axis (+ tail slack).
    m_ref : (1, n_img)       f32  — 1.0 where the flat position is a valid
            window corner (only used for the BN statistics).
    o_ref : (1, 4*Cout, n_img)    — conv output, phase-major, lane-dense.
    s_ref : (1, 4*Cout, 2)   f32  — per-row [sum, sum-of-squares].
    """
    if with_stats:
        m_ref, o_ref, s_ref = rest
    else:
        (o_ref,) = rest

    acc = None
    for dh in range(3):
        for dw in range(3):
            tap = 3 * dh + dw
            off = dh * wp + dw                       # static lane offset
            slab = x_ref[0, :, off:off + n_img]      # (Cin, n_img) bf16
            part = jnp.dot(w_ref[tap], slab,
                           preferred_element_type=jnp.float32)
            acc = part if acc is None else acc + part    # (4*Cout, n_img) f32

    if with_stats:
        # Mask out corners that fall in the padding rows/columns so they do
        # not pollute the batch statistics (they are dropped on the host side
        # of the output anyway).
        ym = acc * m_ref[...]
        s_ref[0] = jnp.concatenate(
            [jnp.sum(ym, axis=-1, keepdims=True),
             jnp.sum(ym * ym, axis=-1, keepdims=True)], axis=-1)

    if out_act == "tanh":
        acc = jnp.tanh(acc)
    o_ref[0] = acc.astype(o_ref.dtype)


# --------------------------- per-layer wrapper ------------------------------

def _merged_tap_weights(w):
    """w: (Cin, Cout, 4, 4) PyTorch ConvTranspose2d -> (9, 4*Cout, Cin) bf16.

    Row block ph*Cout:(ph+1)*Cout holds the weights of output parity phase
    ph = 2*(oh%2) + (ow%2); the shared K axis is the 3x3 tap of the padded
    input window (taps the phase does not touch stay zero).
    """
    Cin, Cout = int(w.shape[0]), int(w.shape[1])
    wm = jnp.zeros((9, 4 * Cout, Cin), jnp.float32)
    for po in (0, 1):
        for pw in (0, 1):
            ph = 2 * po + pw
            for dh in (0, 1):
                for dw in (0, 1):
                    tap = 3 * (dh + po) + (dw + pw)
                    kh = 3 - 2 * dh - po
                    kw = 3 - 2 * dw - pw
                    wm = wm.at[tap, ph * Cout:(ph + 1) * Cout, :].set(
                        w[:, :, kh, kw].T)
    return wm.astype(jnp.bfloat16)


def convt4x2(x, w, *, out_act, with_stats, out_dtype):
    """ConvTranspose2d(Cin, Cout, 4, stride=2, padding=1, bias=False).

    x: (B, Cin, H, W) post-activation input.  w: (Cin, Cout, 4, 4).
    Returns y: (B, Cout, 2H, 2W) in out_dtype and, when requested, the
    per-output-channel (sum, sum_of_squares, count) batch statistics (f32).
    """
    B, Cin, H, W = (int(d) for d in x.shape)
    Cout = int(w.shape[1])
    Hp, Wp = H + 2, W + 2
    n_img = Hp * Wp
    M = 4 * Cout
    lx = 128 * pl.cdiv(n_img + 2 * Wp + 2, 128)      # tap-slack, 128-aligned
    out_itemsize = jnp.dtype(out_dtype).itemsize

    # Zero-pad the post-activation image (zero halo is now correct because
    # BN + ReLU were already applied), flatten its padded grid onto lanes.
    xp = jnp.pad(x, ((0, 0), (0, 0), (1, 1), (1, 1)))
    xf = jnp.pad(xp.reshape(B, Cin, n_img),
                 ((0, 0), (0, 0), (0, lx - n_img))).astype(jnp.bfloat16)
    wm = _merged_tap_weights(w)

    in_specs = [
        pl.BlockSpec((9, M, Cin), lambda b: (0, 0, 0)),
        pl.BlockSpec((1, Cin, lx), lambda b: (b, 0, 0)),
    ]
    inputs = [wm, xf]
    out_shape = [jax.ShapeDtypeStruct((B, M, n_img), out_dtype)]
    out_specs = [pl.BlockSpec((1, M, n_img), lambda b: (b, 0, 0))]
    if with_stats:
        p = np.arange(n_img)
        valid = ((p % Wp) < W) & ((p // Wp) < H)
        mask = jnp.asarray(valid.reshape(1, n_img), dtype=jnp.float32)
        in_specs.append(pl.BlockSpec((1, n_img), lambda b: (0, 0)))
        inputs.append(mask)
        out_shape.append(jax.ShapeDtypeStruct((B, M, 2), jnp.float32))
        out_specs.append(pl.BlockSpec((1, M, 2), lambda b: (b, 0, 0)))

    # VMEM limit derived from the actual block footprint (review: a fixed
    # 48 MiB is 75% of v7x's 64 MiB/TC); generous headroom, tiny in practice.
    blk_bytes = (9 * M * Cin * 2          # merged tap weights (bf16)
                 + Cin * lx * 2           # padded image slab (bf16)
                 + n_img * 4              # validity mask (f32)
                 + M * n_img * out_itemsize
                 + M * 2 * 4              # stats tile
                 + 2 * M * n_img * 4)     # in-kernel f32 accumulator / temps
    vmem = int(min(64 * 1024 * 1024, max(8 * 1024 * 1024, 4 * blk_bytes)))

    kernel = functools.partial(_convt4x2_kernel, n_img=n_img, wp=Wp,
                               out_act=out_act, with_stats=with_stats)

    res = pl.pallas_call(
        kernel,
        grid=(B,),
        in_specs=in_specs,
        out_specs=out_specs,
        out_shape=out_shape,
        compiler_params=pltpu.CompilerParams(
            dimension_semantics=("parallel",),
            vmem_limit_bytes=vmem),
    )(*inputs)

    # De-phase: row ph*Cout+co of phase ph = 2*po + pw at padded corner (h, w)
    # is output pixel (co, 2h+po, 2w+pw).  Crop the padding rows/columns and
    # interleave the parities.
    y = res[0].reshape(B, 2, 2, Cout, Hp, Wp)[:, :, :, :, :H, :W]
    y = jnp.transpose(y, (0, 3, 4, 1, 5, 2)).reshape(B, Cout, 2 * H, 2 * W)

    if not with_stats:
        return y, None
    st = res[1].sum(axis=0).reshape(4, Cout, 2).sum(axis=0)   # (Cout, 2)
    total, totsq = st[:, 0], st[:, 1]
    count = 4 * B * H * W
    return y, (total, totsq, count)


# ------------------------------- glue code ----------------------------------

def _bn_affine(total, totsq, count, gamma, beta, eps):
    """Training-mode BatchNorm2d scale/shift from in-kernel f32 partial sums."""
    mean = total / count
    var = jnp.maximum(totsq / count - mean * mean, 0.0)
    scale = gamma * lax.rsqrt(var + eps)
    shift = beta - mean * scale
    return scale, shift


def _bn_relu(y, gamma, beta, eps):
    """Two-pass training-mode BatchNorm2d + ReLU on a compact activation."""
    mean = jnp.mean(y, axis=(0, 2, 3))
    var = jnp.var(y, axis=(0, 2, 3))
    scale = gamma * lax.rsqrt(var + eps)
    shift = beta - mean * scale
    return jnp.maximum(y * scale[None, :, None, None]
                       + shift[None, :, None, None], 0.0)


def decoder_forward(z, params):
    zs = params["z_size"]
    eps = 1e-5
    B = z.shape[0]
    z = z.reshape(B, zs)                  # mirrors ten.view(-1, z_size, 1, 1)

    # --- layer 1: ConvTranspose2d(zs, 8zs, 7, 1, 0) on a 1x1 input is a tiny
    # matmul; per the review it stays in plain JAX (a kernel was overhead).
    y1 = jnp.einsum("bc,cokl->bokl", z, params["w1"])       # (B, 8zs, 7, 7)
    x = _bn_relu(y1, params["g1"], params["b1"], eps)

    # --- layers 2-4: ConvT(4,2,1) kernel; this layer's BN stats come from the
    # kernel, BN + ReLU are applied once on the compact activation in JAX.
    for wn, gn, bn in (("w2", "g2", "b2"),
                       ("w3", "g3", "b3"),
                       ("w4", "g4", "b4")):
        y, (total, totsq, count) = convt4x2(
            x, params[wn], out_act="id", with_stats=True,
            out_dtype=jnp.bfloat16)
        scale, shift = _bn_affine(total, totsq, count,
                                  params[gn], params[bn], eps)
        x = jnp.maximum(y.astype(jnp.float32) * scale[None, :, None, None]
                        + shift[None, :, None, None], 0.0)

    # --- layer 5: ConvTranspose2d(zs, 3, 4, 2, 1) + tanh (fused in-kernel).
    out, _ = convt4x2(x, params["w5"], out_act="tanh", with_stats=False,
                      out_dtype=jnp.float32)
    return out                                              # (B, 3, 112, 112)


def init_params(key, z_size):
    ks = jax.random.split(key, 13)

    def w(k, shape):
        return (0.05 * jax.random.normal(k, shape)).astype(jnp.float32)

    def bn(kg, kb, c):
        g = (1.0 + 0.1 * jax.random.normal(kg, (c,))).astype(jnp.float32)
        b = (0.1 * jax.random.normal(kb, (c,))).astype(jnp.float32)
        return g, b

    c8, c4, c2, c1 = 8 * z_size, 4 * z_size, 2 * z_size, z_size
    g1, b1 = bn(ks[5], ks[6], c8)
    g2, b2 = bn(ks[7], ks[8], c4)
    g3, b3 = bn(ks[9], ks[10], c2)
    g4, b4 = bn(ks[11], ks[12], c1)
    return {
        "z_size": z_size,
        "w1": w(ks[0], (z_size, c8, 7, 7)),
        "w2": w(ks[1], (c8, c4, 4, 4)),
        "w3": w(ks[2], (c4, c2, 4, 4)),
        "w4": w(ks[3], (c2, c1, 4, 4)),
        "w5": w(ks[4], (c1, 3, 4, 4)),
        "g1": g1, "b1": b1, "g2": g2, "b2": b2,
        "g3": g3, "b3": b3, "g4": g4, "b4": b4,
    }


if __name__ == "__main__":
    z_size = 4
    batch = 2
    key = jax.random.PRNGKey(0)
    k_param, k_in = jax.random.split(key)
    params = init_params(k_param, z_size)
    z = jax.random.normal(k_in, (batch, z_size), dtype=jnp.float32)

    out = jax.jit(lambda zz: decoder_forward(zz, params))(z)
    out = jax.block_until_ready(out)

    assert out.shape == (batch, 3, 112, 112), out.shape
    assert bool(jnp.all(jnp.isfinite(out)))
    assert bool(jnp.all(jnp.abs(out) <= 1.0 + 1e-6))  # tanh range
    print("KERNEL_OK")
</pallas_src>

<mosaic_0001>
module attributes {stable_mosaic.version = 11 : i64} {
  func.func @_convt4x2_kernel(%arg0: i32, %arg1: memref<9x64x32xbf16, #tpu.memory_space<vmem>>, %arg2: memref<1x32x128xbf16, #tpu.memory_space<vmem>>, %arg3: memref<1x81xf32, #tpu.memory_space<vmem>>, %arg4: memref<1x64x81xbf16, #tpu.memory_space<vmem>>, %arg5: memref<1x64x2xf32, #tpu.memory_space<vmem>>) attributes {dimension_semantics = [#tpu.dimension_semantics<parallel>], iteration_bounds = array<i64: 2>, scalar_prefetch = 0 : i64, scratch_operands = 0 : i64, tpu.core_type = #tpu.core_type<tc>, window_params = [{pipeline_mode = #tpu.pipeline_mode<synchronous>, transform_indices = @transform_0, window_bounds = array<i64: 9, 64, 32>}, {transform_indices = @transform_1, window_bounds = array<i64: 1, 32, 128>}, {pipeline_mode = #tpu.pipeline_mode<synchronous>, transform_indices = @transform_2, window_bounds = array<i64: 1, 81>}, {transform_indices = @transform_3, window_bounds = array<i64: 1, 64, 81>}, {transform_indices = @transform_4, window_bounds = array<i64: 1, 64, 2>}]} {
    %c0 = arith.constant 0 : index
    %c0_0 = arith.constant 0 : index
    %c0_1 = arith.constant 0 : index
    %0 = vector.load %arg2[%c0, %c0_0, %c0_1] : memref<1x32x128xbf16, #tpu.memory_space<vmem>>, vector<1x32x81xbf16>
    %1 = vector.shape_cast %0 : vector<1x32x81xbf16> to vector<32x81xbf16>
    %c0_2 = arith.constant 0 : index
    %c0_3 = arith.constant 0 : index
    %c0_4 = arith.constant 0 : index
    %2 = vector.load %arg1[%c0_2, %c0_3, %c0_4] : memref<9x64x32xbf16, #tpu.memory_space<vmem>>, vector<1x64x32xbf16>
    %3 = vector.shape_cast %2 : vector<1x64x32xbf16> to vector<64x32xbf16>
    %cst = arith.constant dense<0.000000e+00> : vector<64x81xf32>
    %4 = tpu.matmul %3, %1, %cst {dimension_numbers = #tpu.dot_dimension_numbers<[1], [0], [0], [1], [0, 0, 1, 1], [], []>} : vector<64x32xbf16>, vector<32x81xbf16>, vector<64x81xf32> -> vector<64x81xf32>
    %c0_5 = arith.constant 0 : index
    %c0_6 = arith.constant 0 : index
    %c1 = arith.constant 1 : index
    %5 = vector.load %arg2[%c0_5, %c0_6, %c1] : memref<1x32x128xbf16, #tpu.memory_space<vmem>>, vector<1x32x81xbf16>
    %6 = vector.shape_cast %5 : vector<1x32x81xbf16> to vector<32x81xbf16>
    %c1_7 = arith.constant 1 : index
    %c0_8 = arith.constant 0 : index
    %c0_9 = arith.constant 0 : index
    %7 = vector.load %arg1[%c1_7, %c0_8, %c0_9] : memref<9x64x32xbf16, #tpu.memory_space<vmem>>, vector<1x64x32xbf16>
    %8 = vector.shape_cast %7 : vector<1x64x32xbf16> to vector<64x32xbf16>
    %cst_10 = arith.constant dense<0.000000e+00> : vector<64x81xf32>
    %9 = tpu.matmul %8, %6, %cst_10 {dimension_numbers = #tpu.dot_dimension_numbers<[1], [0], [0], [1], [0, 0, 1, 1], [], []>} : vector<64x32xbf16>, vector<32x81xbf16>, vector<64x81xf32> -> vector<64x81xf32>
    %10 = arith.addf %4, %9 : vector<64x81xf32>
    %c0_11 = arith.constant 0 : index
    %c0_12 = arith.constant 0 : index
    %c2 = arith.constant 2 : index
    %11 = vector.load %arg2[%c0_11, %c0_12, %c2] : memref<1x32x128xbf16, #tpu.memory_space<vmem>>, vector<1x32x81xbf16>
    %12 = vector.shape_cast %11 : vector<1x32x81xbf16> to vector<32x81xbf16>
    %c2_13 = arith.constant 2 : index
    %c0_14 = arith.constant 0 : index
    %c0_15 = arith.constant 0 : index
    %13 = vector.load %arg1[%c2_13, %c0_14, %c0_15] : memref<9x64x32xbf16, #tpu.memory_space<vmem>>, vector<1x64x32xbf16>
    %14 = vector.shape_cast %13 : vector<1x64x32xbf16> to vector<64x32xbf16>
    %cst_16 = arith.constant dense<0.000000e+00> : vector<64x81xf32>
    %15 = tpu.matmul %14, %12, %cst_16 {dimension_numbers = #tpu.dot_dimension_numbers<[1], [0], [0], [1], [0, 0, 1, 1], [], []>} : vector<64x32xbf16>, vector<32x81xbf16>, vector<64x81xf32> -> vector<64x81xf32>
    %16 = arith.addf %10, %15 : vector<64x81xf32>
    %c0_17 = arith.constant 0 : index
    %c0_18 = arith.constant 0 : index
    %c9 = arith.constant 9 : index
    %17 = vector.load %arg2[%c0_17, %c0_18, %c9] : memref<1x32x128xbf16, #tpu.memory_space<vmem>>, vector<1x32x81xbf16>
    %18 = vector.shape_cast %17 : vector<1x32x81xbf16> to vector<32x81xbf16>
    %c3 = arith.constant 3 : index
    %c0_19 = arith.constant 0 : index
    %c0_20 = arith.constant 0 : index
    %19 = vector.load %arg1[%c3, %c0_19, %c0_20] : memref<9x64x32xbf16, #tpu.memory_space<vmem>>, vector<1x64x32xbf16>
    %20 = vector.shape_cast %19 : vector<1x64x32xbf16> to vector<64x32xbf16>
    %cst_21 = arith.constant dense<0.000000e+00> : vector<64x81xf32>
    %21 = tpu.matmul %20, %18, %cst_21 {dimension_numbers = #tpu.dot_dimension_numbers<[1], [0], [0], [1], [0, 0, 1, 1], [], []>} : vector<64x32xbf16>, vector<32x81xbf16>, vector<64x81xf32> -> vector<64x81xf32>
    %22 = arith.addf %16, %21 : vector<64x81xf32>
    %c0_22 = arith.constant 0 : index
    %c0_23 = arith.constant 0 : index
    %c10 = arith.constant 10 : index
    %23 = vector.load %arg2[%c0_22, %c0_23, %c10] : memref<1x32x128xbf16, #tpu.memory_space<vmem>>, vector<1x32x81xbf16>
    %24 = vector.shape_cast %23 : vector<1x32x81xbf16> to vector<32x81xbf16>
    %c4 = arith.constant 4 : index
    %c0_24 = arith.constant 0 : index
    %c0_25 = arith.constant 0 : index
    %25 = vector.load %arg1[%c4, %c0_24, %c0_25] : memref<9x64x32xbf16, #tpu.memory_space<vmem>>, vector<1x64x32xbf16>
    %26 = vector.shape_cast %25 : vector<1x64x32xbf16> to vector<64x32xbf16>
    %cst_26 = arith.constant dense<0.000000e+00> : vector<64x81xf32>
    %27 = tpu.matmul %26, %24, %cst_26 {dimension_numbers = #tpu.dot_dimension_numbers<[1], [0], [0], [1], [0, 0, 1, 1], [], []>} : vector<64x32xbf16>, vector<32x81xbf16>, vector<64x81xf32> -> vector<64x81xf32>
    %28 = arith.addf %22, %27 : vector<64x81xf32>
    %c0_27 = arith.constant 0 : index
    %c0_28 = arith.constant 0 : index
    %c11 = arith.constant 11 : index
    %29 = vector.load %arg2[%c0_27, %c0_28, %c11] : memref<1x32x128xbf16, #tpu.memory_space<vmem>>, vector<1x32x81xbf16>
    %30 = vector.shape_cast %29 : vector<1x32x81xbf16> to vector<32x81xbf16>
    %c5 = arith.constant 5 : index
    %c0_29 = arith.constant 0 : index
    %c0_30 = arith.constant 0 : index
    %31 = vector.load %arg1[%c5, %c0_29, %c0_30] : memref<9x64x32xbf16, #tpu.memory_space<vmem>>, vector<1x64x32xbf16>
    %32 = vector.shape_cast %31 : vector<1x64x32xbf16> to vector<64x32xbf16>
    %cst_31 = arith.constant dense<0.000000e+00> : vector<64x81xf32>
    %33 = tpu.matmul %32, %30, %cst_31 {dimension_numbers = #tpu.dot_dimension_numbers<[1], [0], [0], [1], [0, 0, 1, 1], [], []>} : vector<64x32xbf16>, vector<32x81xbf16>, vector<64x81xf32> -> vector<64x81xf32>
    %34 = arith.addf %28, %33 : vector<64x81xf32>
    %c0_32 = arith.constant 0 : index
    %c0_33 = arith.constant 0 : index
    %c18 = arith.constant 18 : index
    %35 = vector.load %arg2[%c0_32, %c0_33, %c18] : memref<1x32x128xbf16, #tpu.memory_space<vmem>>, vector<1x32x81xbf16>
    %36 = vector.shape_cast %35 : vector<1x32x81xbf16> to vector<32x81xbf16>
    %c6 = arith.constant 6 : index
    %c0_34 = arith.constant 0 : index
    %c0_35 = arith.constant 0 : index
    %37 = vector.load %arg1[%c6, %c0_34, %c0_35] : memref<9x64x32xbf16, #tpu.memory_space<vmem>>, vector<1x64x32xbf16>
    %38 = vector.shape_cast %37 : vector<1x64x32xbf16> to vector<64x32xbf16>
    %cst_36 = arith.constant dense<0.000000e+00> : vector<64x81xf32>
    %39 = tpu.matmul %38, %36, %cst_36 {dimension_numbers = #tpu.dot_dimension_numbers<[1], [0], [0], [1], [0, 0, 1, 1], [], []>} : vector<64x32xbf16>, vector<32x81xbf16>, vector<64x81xf32> -> vector<64x81xf32>
    %40 = arith.addf %34, %39 : vector<64x81xf32>
    %c0_37 = arith.constant 0 : index
    %c0_38 = arith.constant 0 : index
    %c19 = arith.constant 19 : index
    %41 = vector.load %arg2[%c0_37, %c0_38, %c19] : memref<1x32x128xbf16, #tpu.memory_space<vmem>>, vector<1x32x81xbf16>
    %42 = vector.shape_cast %41 : vector<1x32x81xbf16> to vector<32x81xbf16>
    %c7 = arith.constant 7 : index
    %c0_39 = arith.constant 0 : index
    %c0_40 = arith.constant 0 : index
    %43 = vector.load %arg1[%c7, %c0_39, %c0_40] : memref<9x64x32xbf16, #tpu.memory_space<vmem>>, vector<1x64x32xbf16>
    %44 = vector.shape_cast %43 : vector<1x64x32xbf16> to vector<64x32xbf16>
    %cst_41 = arith.constant dense<0.000000e+00> : vector<64x81xf32>
    %45 = tpu.matmul %44, %42, %cst_41 {dimension_numbers = #tpu.dot_dimension_numbers<[1], [0], [0], [1], [0, 0, 1, 1], [], []>} : vector<64x32xbf16>, vector<32x81xbf16>, vector<64x81xf32> -> vector<64x81xf32>
    %46 = arith.addf %40, %45 : vector<64x81xf32>
    %c0_42 = arith.constant 0 : index
    %c0_43 = arith.constant 0 : index
    %c20 = arith.constant 20 : index
    %47 = vector.load %arg2[%c0_42, %c0_43, %c20] : memref<1x32x128xbf16, #tpu.memory_space<vmem>>, vector<1x32x81xbf16>
    %48 = vector.shape_cast %47 : vector<1x32x81xbf16> to vector<32x81xbf16>
    %c8 = arith.constant 8 : index
    %c0_44 = arith.constant 0 : index
    %c0_45 = arith.constant 0 : index
    %49 = vector.load %arg1[%c8, %c0_44, %c0_45] : memref<9x64x32xbf16, #tpu.memory_space<vmem>>, vector<1x64x32xbf16>
    %50 = vector.shape_cast %49 : vector<1x64x32xbf16> to vector<64x32xbf16>
    %cst_46 = arith.constant dense<0.000000e+00> : vector<64x81xf32>
    %51 = tpu.matmul %50, %48, %cst_46 {dimension_numbers = #tpu.dot_dimension_numbers<[1], [0], [0], [1], [0, 0, 1, 1], [], []>} : vector<64x32xbf16>, vector<32x81xbf16>, vector<64x81xf32> -> vector<64x81xf32>
    %52 = arith.addf %46, %51 : vector<64x81xf32>
    %c0_47 = arith.constant 0 : index
    %c0_48 = arith.constant 0 : index
    %53 = vector.load %arg3[%c0_47, %c0_48] : memref<1x81xf32, #tpu.memory_space<vmem>>, vector<1x81xf32>
    %54 = vector.broadcast %53 : vector<1x81xf32> to vector<64x81xf32>
    %55 = arith.mulf %52, %54 : vector<64x81xf32>
    %cst_49 = arith.constant dense<0.000000e+00> : vector<64xf32>
    %56 = vector.multi_reduction <add>, %55, %cst_49 [1] : vector<64x81xf32> to vector<64xf32>
    %57 = vector.shape_cast %56 : vector<64xf32> to vector<64x1xf32>
    %58 = arith.mulf %55, %55 : vector<64x81xf32>
    %cst_50 = arith.constant dense<0.000000e+00> : vector<64xf32>
    %59 = vector.multi_reduction <add>, %58, %cst_50 [1] : vector<64x81xf32> to vector<64xf32>
    %60 = vector.shape_cast %59 : vector<64xf32> to vector<64x1xf32>
    %61 = tpu.concatenate %57, %60 in 1 : vector<64x1xf32>, vector<64x1xf32> -> vector<64x2xf32>
    %c0_51 = arith.constant 0 : index
    %c0_52 = arith.constant 0 : index
    %c0_53 = arith.constant 0 : index
    %62 = vector.load %arg5[%c0_51, %c0_52, %c0_53] : memref<1x64x2xf32, #tpu.memory_space<vmem>>, vector<1x64x2xf32>
    %63 = vector.shape_cast %62 : vector<1x64x2xf32> to vector<64x2xf32>
    %64 = vector.shape_cast %61 : vector<64x2xf32> to vector<1x64x2xf32>
    tpu.vector_store %arg5[%c0_51, %c0_52, %c0_53], %64 {strides = array<i32>} : memref<1x64x2xf32, #tpu.memory_space<vmem>>, vector<1x64x2xf32>,
    %65 = arith.truncf %52 : vector<64x81xf32> to vector<64x81xbf16>
    %c0_54 = arith.constant 0 : index
    %c0_55 = arith.constant 0 : index
    %c0_56 = arith.constant 0 : index
    %66 = vector.load %arg4[%c0_54, %c0_55, %c0_56] : memref<1x64x81xbf16, #tpu.memory_space<vmem>>, vector<1x64x81xbf16>
    %67 = vector.shape_cast %66 : vector<1x64x81xbf16> to vector<64x81xbf16>
    %68 = vector.shape_cast %65 : vector<64x81xbf16> to vector<1x64x81xbf16>
    tpu.vector_store %arg4[%c0_54, %c0_55, %c0_56], %68 {strides = array<i32>} : memref<1x64x81xbf16, #tpu.memory_space<vmem>>, vector<1x64x81xbf16>,
    return
  }
  func.func @transform_0(%arg0: i32) -> (i32, i32, i32) {
    %c0_i32 = arith.constant 0 : i32
    %c0_i32_0 = arith.constant 0 : i32
    %c0_i32_1 = arith.constant 0 : i32
    %c0_i32_2 = arith.constant 0 : i32
    return %c0_i32, %c0_i32_0, %c0_i32_1 : i32, i32, i32
  }
  func.func @transform_1(%arg0: i32) -> (i32, i32, i32) {
    %c0_i32 = arith.constant 0 : i32
    %c0_i32_0 = arith.constant 0 : i32
    %c0_i32_1 = arith.constant 0 : i32
    return %arg0, %c0_i32, %c0_i32_0 : i32, i32, i32
  }
  func.func @transform_2(%arg0: i32) -> (i32, i32) {
    %c0_i32 = arith.constant 0 : i32
    %c0_i32_0 = arith.constant 0 : i32
    %c0_i32_1 = arith.constant 0 : i32
    return %c0_i32, %c0_i32_0 : i32, i32
  }
  func.func @transform_3(%arg0: i32) -> (i32, i32, i32) {
    %c0_i32 = arith.constant 0 : i32
    %c0_i32_0 = arith.constant 0 : i32
    %c0_i32_1 = arith.constant 0 : i32
    return %arg0, %c0_i32, %c0_i32_0 : i32, i32, i32
  }
  func.func @transform_4(%arg0: i32) -> (i32, i32, i32) {
    %c0_i32 = arith.constant 0 : i32
    %c0_i32_0 = arith.constant 0 : i32
    %c0_i32_1 = arith.constant 0 : i32
    return %arg0, %c0_i32, %c0_i32_0 : i32, i32, i32
  }
}

module attributes {stable_mosaic.version = 11 : i64} {
  func.func @_convt4x2_kernel(%arg0: i32, %arg1: memref<9x32x16xbf16, #tpu.memory_space<vmem>>, %arg2: memref<1x16x384xbf16, #tpu.memory_space<vmem>>, %arg3: memref<1x256xf32, #tpu.memory_space<vmem>>, %arg4: memref<1x32x256xbf16, #tpu.memory_space<vmem>>, %arg5: memref<1x32x2xf32, #tpu.memory_space<vmem>>) attributes {dimension_semantics = [#tpu.dimension_semantics<parallel>], iteration_bounds = array<i64: 2>, scalar_prefetch = 0 : i64, scratch_operands = 0 : i64, tpu.core_type = #tpu.core_type<tc>, window_params = [{pipeline_mode = #tpu.pipeline_mode<synchronous>, transform_indices = @transform_0, window_bounds = array<i64: 9, 32, 16>}, {transform_indices = @transform_1, window_bounds = array<i64: 1, 16, 384>}, {pipeline_mode = #tpu.pipeline_mode<synchronous>, transform_indices = @transform_2, window_bounds = array<i64: 1, 256>}, {transform_indices = @transform_3, window_bounds = array<i64: 1, 32, 256>}, {transform_indices = @transform_4, window_bounds = array<i64: 1, 32, 2>}]} {
    %c0 = arith.constant 0 : index
    %c0_0 = arith.constant 0 : index
    %c0_1 = arith.constant 0 : index
    %0 = vector.load %arg2[%c0, %c0_0, %c0_1] : memref<1x16x384xbf16, #tpu.memory_space<vmem>>, vector<1x16x256xbf16>
    %1 = vector.shape_cast %0 : vector<1x16x256xbf16> to vector<16x256xbf16>
    %c0_2 = arith.constant 0 : index
    %c0_3 = arith.constant 0 : index
    %c0_4 = arith.constant 0 : index
    %2 = vector.load %arg1[%c0_2, %c0_3, %c0_4] : memref<9x32x16xbf16, #tpu.memory_space<vmem>>, vector<1x32x16xbf16>
    %3 = vector.shape_cast %2 : vector<1x32x16xbf16> to vector<32x16xbf16>
    %cst = arith.constant dense<0.000000e+00> : vector<32x256xf32>
    %4 = tpu.matmul %3, %1, %cst {dimension_numbers = #tpu.dot_dimension_numbers<[1], [0], [0], [1], [0, 0, 1, 1], [], []>} : vector<32x16xbf16>, vector<16x256xbf16>, vector<32x256xf32> -> vector<32x256xf32>
    %c0_5 = arith.constant 0 : index
    %c0_6 = arith.constant 0 : index
    %c1 = arith.constant 1 : index
    %5 = vector.load %arg2[%c0_5, %c0_6, %c1] : memref<1x16x384xbf16, #tpu.memory_space<vmem>>, vector<1x16x256xbf16>
    %6 = vector.shape_cast %5 : vector<1x16x256xbf16> to vector<16x256xbf16>
    %c1_7 = arith.constant 1 : index
    %c0_8 = arith.constant 0 : index
    %c0_9 = arith.constant 0 : index
    %7 = vector.load %arg1[%c1_7, %c0_8, %c0_9] : memref<9x32x16xbf16, #tpu.memory_space<vmem>>, vector<1x32x16xbf16>
    %8 = vector.shape_cast %7 : vector<1x32x16xbf16> to vector<32x16xbf16>
    %cst_10 = arith.constant dense<0.000000e+00> : vector<32x256xf32>
    %9 = tpu.matmul %8, %6, %cst_10 {dimension_numbers = #tpu.dot_dimension_numbers<[1], [0], [0], [1], [0, 0, 1, 1], [], []>} : vector<32x16xbf16>, vector<16x256xbf16>, vector<32x256xf32> -> vector<32x256xf32>
    %10 = arith.addf %4, %9 : vector<32x256xf32>
    %c0_11 = arith.constant 0 : index
    %c0_12 = arith.constant 0 : index
    %c2 = arith.constant 2 : index
    %11 = vector.load %arg2[%c0_11, %c0_12, %c2] : memref<1x16x384xbf16, #tpu.memory_space<vmem>>, vector<1x16x256xbf16>
    %12 = vector.shape_cast %11 : vector<1x16x256xbf16> to vector<16x256xbf16>
    %c2_13 = arith.constant 2 : index
    %c0_14 = arith.constant 0 : index
    %c0_15 = arith.constant 0 : index
    %13 = vector.load %arg1[%c2_13, %c0_14, %c0_15] : memref<9x32x16xbf16, #tpu.memory_space<vmem>>, vector<1x32x16xbf16>
    %14 = vector.shape_cast %13 : vector<1x32x16xbf16> to vector<32x16xbf16>
    %cst_16 = arith.constant dense<0.000000e+00> : vector<32x256xf32>
    %15 = tpu.matmul %14, %12, %cst_16 {dimension_numbers = #tpu.dot_dimension_numbers<[1], [0], [0], [1], [0, 0, 1, 1], [], []>} : vector<32x16xbf16>, vector<16x256xbf16>, vector<32x256xf32> -> vector<32x256xf32>
    %16 = arith.addf %10, %15 : vector<32x256xf32>
    %c0_17 = arith.constant 0 : index
    %c0_18 = arith.constant 0 : index
    %c16 = arith.constant 16 : index
    %17 = vector.load %arg2[%c0_17, %c0_18, %c16] : memref<1x16x384xbf16, #tpu.memory_space<vmem>>, vector<1x16x256xbf16>
    %18 = vector.shape_cast %17 : vector<1x16x256xbf16> to vector<16x256xbf16>
    %c3 = arith.constant 3 : index
    %c0_19 = arith.constant 0 : index
    %c0_20 = arith.constant 0 : index
    %19 = vector.load %arg1[%c3, %c0_19, %c0_20] : memref<9x32x16xbf16, #tpu.memory_space<vmem>>, vector<1x32x16xbf16>
    %20 = vector.shape_cast %19 : vector<1x32x16xbf16> to vector<32x16xbf16>
    %cst_21 = arith.constant dense<0.000000e+00> : vector<32x256xf32>
    %21 = tpu.matmul %20, %18, %cst_21 {dimension_numbers = #tpu.dot_dimension_numbers<[1], [0], [0], [1], [0, 0, 1, 1], [], []>} : vector<32x16xbf16>, vector<16x256xbf16>, vector<32x256xf32> -> vector<32x256xf32>
    %22 = arith.addf %16, %21 : vector<32x256xf32>
    %c0_22 = arith.constant 0 : index
    %c0_23 = arith.constant 0 : index
    %c17 = arith.constant 17 : index
    %23 = vector.load %arg2[%c0_22, %c0_23, %c17] : memref<1x16x384xbf16, #tpu.memory_space<vmem>>, vector<1x16x256xbf16>
    %24 = vector.shape_cast %23 : vector<1x16x256xbf16> to vector<16x256xbf16>
    %c4 = arith.constant 4 : index
    %c0_24 = arith.constant 0 : index
    %c0_25 = arith.constant 0 : index
    %25 = vector.load %arg1[%c4, %c0_24, %c0_25] : memref<9x32x16xbf16, #tpu.memory_space<vmem>>, vector<1x32x16xbf16>
    %26 = vector.shape_cast %25 : vector<1x32x16xbf16> to vector<32x16xbf16>
    %cst_26 = arith.constant dense<0.000000e+00> : vector<32x256xf32>
    %27 = tpu.matmul %26, %24, %cst_26 {dimension_numbers = #tpu.dot_dimension_numbers<[1], [0], [0], [1], [0, 0, 1, 1], [], []>} : vector<32x16xbf16>, vector<16x256xbf16>, vector<32x256xf32> -> vector<32x256xf32>
    %28 = arith.addf %22, %27 : vector<32x256xf32>
    %c0_27 = arith.constant 0 : index
    %c0_28 = arith.constant 0 : index
    %c18 = arith.constant 18 : index
    %29 = vector.load %arg2[%c0_27, %c0_28, %c18] : memref<1x16x384xbf16, #tpu.memory_space<vmem>>, vector<1x16x256xbf16>
    %30 = vector.shape_cast %29 : vector<1x16x256xbf16> to vector<16x256xbf16>
    %c5 = arith.constant 5 : index
    %c0_29 = arith.constant 0 : index
    %c0_30 = arith.constant 0 : index
    %31 = vector.load %arg1[%c5, %c0_29, %c0_30] : memref<9x32x16xbf16, #tpu.memory_space<vmem>>, vector<1x32x16xbf16>
    %32 = vector.shape_cast %31 : vector<1x32x16xbf16> to vector<32x16xbf16>
    %cst_31 = arith.constant dense<0.000000e+00> : vector<32x256xf32>
    %33 = tpu.matmul %32, %30, %cst_31 {dimension_numbers = #tpu.dot_dimension_numbers<[1], [0], [0], [1], [0, 0, 1, 1], [], []>} : vector<32x16xbf16>, vector<16x256xbf16>, vector<32x256xf32> -> vector<32x256xf32>
    %34 = arith.addf %28, %33 : vector<32x256xf32>
    %c0_32 = arith.constant 0 : index
    %c0_33 = arith.constant 0 : index
    %c32 = arith.constant 32 : index
    %35 = vector.load %arg2[%c0_32, %c0_33, %c32] : memref<1x16x384xbf16, #tpu.memory_space<vmem>>, vector<1x16x256xbf16>
    %36 = vector.shape_cast %35 : vector<1x16x256xbf16> to vector<16x256xbf16>
    %c6 = arith.constant 6 : index
    %c0_34 = arith.constant 0 : index
    %c0_35 = arith.constant 0 : index
    %37 = vector.load %arg1[%c6, %c0_34, %c0_35] : memref<9x32x16xbf16, #tpu.memory_space<vmem>>, vector<1x32x16xbf16>
    %38 = vector.shape_cast %37 : vector<1x32x16xbf16> to vector<32x16xbf16>
    %cst_36 = arith.constant dense<0.000000e+00> : vector<32x256xf32>
    %39 = tpu.matmul %38, %36, %cst_36 {dimension_numbers = #tpu.dot_dimension_numbers<[1], [0], [0], [1], [0, 0, 1, 1], [], []>} : vector<32x16xbf16>, vector<16x256xbf16>, vector<32x256xf32> -> vector<32x256xf32>
    %40 = arith.addf %34, %39 : vector<32x256xf32>
    %c0_37 = arith.constant 0 : index
    %c0_38 = arith.constant 0 : index
    %c33 = arith.constant 33 : index
    %41 = vector.load %arg2[%c0_37, %c0_38, %c33] : memref<1x16x384xbf16, #tpu.memory_space<vmem>>, vector<1x16x256xbf16>
    %42 = vector.shape_cast %41 : vector<1x16x256xbf16> to vector<16x256xbf16>
    %c7 = arith.constant 7 : index
    %c0_39 = arith.constant 0 : index
    %c0_40 = arith.constant 0 : index
    %43 = vector.load %arg1[%c7, %c0_39, %c0_40] : memref<9x32x16xbf16, #tpu.memory_space<vmem>>, vector<1x32x16xbf16>
    %44 = vector.shape_cast %43 : vector<1x32x16xbf16> to vector<32x16xbf16>
    %cst_41 = arith.constant dense<0.000000e+00> : vector<32x256xf32>
    %45 = tpu.matmul %44, %42, %cst_41 {dimension_numbers = #tpu.dot_dimension_numbers<[1], [0], [0], [1], [0, 0, 1, 1], [], []>} : vector<32x16xbf16>, vector<16x256xbf16>, vector<32x256xf32> -> vector<32x256xf32>
    %46 = arith.addf %40, %45 : vector<32x256xf32>
    %c0_42 = arith.constant 0 : index
    %c0_43 = arith.constant 0 : index
    %c34 = arith.constant 34 : index
    %47 = vector.load %arg2[%c0_42, %c0_43, %c34] : memref<1x16x384xbf16, #tpu.memory_space<vmem>>, vector<1x16x256xbf16>
    %48 = vector.shape_cast %47 : vector<1x16x256xbf16> to vector<16x256xbf16>
    %c8 = arith.constant 8 : index
    %c0_44 = arith.constant 0 : index
    %c0_45 = arith.constant 0 : index
    %49 = vector.load %arg1[%c8, %c0_44, %c0_45] : memref<9x32x16xbf16, #tpu.memory_space<vmem>>, vector<1x32x16xbf16>
    %50 = vector.shape_cast %49 : vector<1x32x16xbf16> to vector<32x16xbf16>
    %cst_46 = arith.constant dense<0.000000e+00> : vector<32x256xf32>
    %51 = tpu.matmul %50, %48, %cst_46 {dimension_numbers = #tpu.dot_dimension_numbers<[1], [0], [0], [1], [0, 0, 1, 1], [], []>} : vector<32x16xbf16>, vector<16x256xbf16>, vector<32x256xf32> -> vector<32x256xf32>
    %52 = arith.addf %46, %51 : vector<32x256xf32>
    %c0_47 = arith.constant 0 : index
    %c0_48 = arith.constant 0 : index
    %53 = vector.load %arg3[%c0_47, %c0_48] : memref<1x256xf32, #tpu.memory_space<vmem>>, vector<1x256xf32>
    %54 = vector.broadcast %53 : vector<1x256xf32> to vector<32x256xf32>
    %55 = arith.mulf %52, %54 : vector<32x256xf32>
    %cst_49 = arith.constant dense<0.000000e+00> : vector<32xf32>
    %56 = vector.multi_reduction <add>, %55, %cst_49 [1] : vector<32x256xf32> to vector<32xf32>
    %57 = vector.shape_cast %56 : vector<32xf32> to vector<32x1xf32>
    %58 = arith.mulf %55, %55 : vector<32x256xf32>
    %cst_50 = arith.constant dense<0.000000e+00> : vector<32xf32>
    %59 = vector.multi_reduction <add>, %58, %cst_50 [1] : vector<32x256xf32> to vector<32xf32>
    %60 = vector.shape_cast %59 : vector<32xf32> to vector<32x1xf32>
    %61 = tpu.concatenate %57, %60 in 1 : vector<32x1xf32>, vector<32x1xf32> -> vector<32x2xf32>
    %c0_51 = arith.constant 0 : index
    %c0_52 = arith.constant 0 : index
    %c0_53 = arith.constant 0 : index
    %62 = vector.load %arg5[%c0_51, %c0_52, %c0_53] : memref<1x32x2xf32, #tpu.memory_space<vmem>>, vector<1x32x2xf32>
    %63 = vector.shape_cast %62 : vector<1x32x2xf32> to vector<32x2xf32>
    %64 = vector.shape_cast %61 : vector<32x2xf32> to vector<1x32x2xf32>
    tpu.vector_store %arg5[%c0_51, %c0_52, %c0_53], %64 {strides = array<i32>} : memref<1x32x2xf32, #tpu.memory_space<vmem>>, vector<1x32x2xf32>,
    %65 = arith.truncf %52 : vector<32x256xf32> to vector<32x256xbf16>
    %c0_54 = arith.constant 0 : index
    %c0_55 = arith.constant 0 : index
    %c0_56 = arith.constant 0 : index
    %66 = vector.load %arg4[%c0_54, %c0_55, %c0_56] : memref<1x32x256xbf16, #tpu.memory_space<vmem>>, vector<1x32x256xbf16>
    %67 = vector.shape_cast %66 : vector<1x32x256xbf16> to vector<32x256xbf16>
    %68 = vector.shape_cast %65 : vector<32x256xbf16> to vector<1x32x256xbf16>
    tpu.vector_store %arg4[%c0_54, %c0_55, %c0_56], %68 {strides = array<i32>} : memref<1x32x256xbf16, #tpu.memory_space<vmem>>, vector<1x32x256xbf16>,
    return
  }
  func.func @transform_0(%arg0: i32) -> (i32, i32, i32) {
    %c0_i32 = arith.constant 0 : i32
    %c0_i32_0 = arith.constant 0 : i32
    %c0_i32_1 = arith.constant 0 : i32
    %c0_i32_2 = arith.constant 0 : i32
    return %c0_i32, %c0_i32_0, %c0_i32_1 : i32, i32, i32
  }
  func.func @transform_1(%arg0: i32) -> (i32, i32, i32) {
    %c0_i32 = arith.constant 0 : i32
    %c0_i32_0 = arith.constant 0 : i32
    %c0_i32_1 = arith.constant 0 : i32
    return %arg0, %c0_i32, %c0_i32_0 : i32, i32, i32
  }
  func.func @transform_2(%arg0: i32) -> (i32, i32) {
    %c0_i32 = arith.constant 0 : i32
    %c0_i32_0 = arith.constant 0 : i32
    %c0_i32_1 = arith.constant 0 : i32
    return %c0_i32, %c0_i32_0 : i32, i32
  }
  func.func @transform_3(%arg0: i32) -> (i32, i32, i32) {
    %c0_i32 = arith.constant 0 : i32
    %c0_i32_0 = arith.constant 0 : i32
    %c0_i32_1 = arith.constant 0 : i32
    return %arg0, %c0_i32, %c0_i32_0 : i32, i32, i32
  }
  func.func @transform_4(%arg0: i32) -> (i32, i32, i32) {
    %c0_i32 = arith.constant 0 : i32
    %c0_i32_0 = arith.constant 0 : i32
    %c0_i32_1 = arith.constant 0 : i32
    return %arg0, %c0_i32, %c0_i32_0 : i32, i32, i32
  }
}

module attributes {stable_mosaic.version = 11 : i64} {
  func.func @_convt4x2_kernel(%arg0: i32, %arg1: memref<9x16x8xbf16, #tpu.memory_space<vmem>>, %arg2: memref<1x8x1024xbf16, #tpu.memory_space<vmem>>, %arg3: memref<1x900xf32, #tpu.memory_space<vmem>>, %arg4: memref<1x16x900xbf16, #tpu.memory_space<vmem>>, %arg5: memref<1x16x2xf32, #tpu.memory_space<vmem>>) attributes {dimension_semantics = [#tpu.dimension_semantics<parallel>], iteration_bounds = array<i64: 2>, scalar_prefetch = 0 : i64, scratch_operands = 0 : i64, tpu.core_type = #tpu.core_type<tc>, window_params = [{pipeline_mode = #tpu.pipeline_mode<synchronous>, transform_indices = @transform_0, window_bounds = array<i64: 9, 16, 8>}, {transform_indices = @transform_1, window_bounds = array<i64: 1, 8, 1024>}, {pipeline_mode = #tpu.pipeline_mode<synchronous>, transform_indices = @transform_2, window_bounds = array<i64: 1, 900>}, {transform_indices = @transform_3, window_bounds = array<i64: 1, 16, 900>}, {transform_indices = @transform_4, window_bounds = array<i64: 1, 16, 2>}]} {
    %c0 = arith.constant 0 : index
    %c0_0 = arith.constant 0 : index
    %c0_1 = arith.constant 0 : index
    %0 = vector.load %arg2[%c0, %c0_0, %c0_1] : memref<1x8x1024xbf16, #tpu.memory_space<vmem>>, vector<1x8x900xbf16>
    %1 = vector.shape_cast %0 : vector<1x8x900xbf16> to vector<8x900xbf16>
    %c0_2 = arith.constant 0 : index
    %c0_3 = arith.constant 0 : index
    %c0_4 = arith.constant 0 : index
    %2 = vector.load %arg1[%c0_2, %c0_3, %c0_4] : memref<9x16x8xbf16, #tpu.memory_space<vmem>>, vector<1x16x8xbf16>
    %3 = vector.shape_cast %2 : vector<1x16x8xbf16> to vector<16x8xbf16>
    %cst = arith.constant dense<0.000000e+00> : vector<16x900xf32>
    %4 = tpu.matmul %3, %1, %cst {dimension_numbers = #tpu.dot_dimension_numbers<[1], [0], [0], [1], [0, 0, 1, 1], [], []>} : vector<16x8xbf16>, vector<8x900xbf16>, vector<16x900xf32> -> vector<16x900xf32>
    %c0_5 = arith.constant 0 : index
    %c0_6 = arith.constant 0 : index
    %c1 = arith.constant 1 : index
    %5 = vector.load %arg2[%c0_5, %c0_6, %c1] : memref<1x8x1024xbf16, #tpu.memory_space<vmem>>, vector<1x8x900xbf16>
    %6 = vector.shape_cast %5 : vector<1x8x900xbf16> to vector<8x900xbf16>
    %c1_7 = arith.constant 1 : index
    %c0_8 = arith.constant 0 : index
    %c0_9 = arith.constant 0 : index
    %7 = vector.load %arg1[%c1_7, %c0_8, %c0_9] : memref<9x16x8xbf16, #tpu.memory_space<vmem>>, vector<1x16x8xbf16>
    %8 = vector.shape_cast %7 : vector<1x16x8xbf16> to vector<16x8xbf16>
    %cst_10 = arith.constant dense<0.000000e+00> : vector<16x900xf32>
    %9 = tpu.matmul %8, %6, %cst_10 {dimension_numbers = #tpu.dot_dimension_numbers<[1], [0], [0], [1], [0, 0, 1, 1], [], []>} : vector<16x8xbf16>, vector<8x900xbf16>, vector<16x900xf32> -> vector<16x900xf32>
    %10 = arith.addf %4, %9 : vector<16x900xf32>
    %c0_11 = arith.constant 0 : index
    %c0_12 = arith.constant 0 : index
    %c2 = arith.constant 2 : index
    %11 = vector.load %arg2[%c0_11, %c0_12, %c2] : memref<1x8x1024xbf16, #tpu.memory_space<vmem>>, vector<1x8x900xbf16>
    %12 = vector.shape_cast %11 : vector<1x8x900xbf16> to vector<8x900xbf16>
    %c2_13 = arith.constant 2 : index
    %c0_14 = arith.constant 0 : index
    %c0_15 = arith.constant 0 : index
    %13 = vector.load %arg1[%c2_13, %c0_14, %c0_15] : memref<9x16x8xbf16, #tpu.memory_space<vmem>>, vector<1x16x8xbf16>
    %14 = vector.shape_cast %13 : vector<1x16x8xbf16> to vector<16x8xbf16>
    %cst_16 = arith.constant dense<0.000000e+00> : vector<16x900xf32>
    %15 = tpu.matmul %14, %12, %cst_16 {dimension_numbers = #tpu.dot_dimension_numbers<[1], [0], [0], [1], [0, 0, 1, 1], [], []>} : vector<16x8xbf16>, vector<8x900xbf16>, vector<16x900xf32> -> vector<16x900xf32>
    %16 = arith.addf %10, %15 : vector<16x900xf32>
    %c0_17 = arith.constant 0 : index
    %c0_18 = arith.constant 0 : index
    %c30 = arith.constant 30 : index
    %17 = vector.load %arg2[%c0_17, %c0_18, %c30] : memref<1x8x1024xbf16, #tpu.memory_space<vmem>>, vector<1x8x900xbf16>
    %18 = vector.shape_cast %17 : vector<1x8x900xbf16> to vector<8x900xbf16>
    %c3 = arith.constant 3 : index
    %c0_19 = arith.constant 0 : index
    %c0_20 = arith.constant 0 : index
    %19 = vector.load %arg1[%c3, %c0_19, %c0_20] : memref<9x16x8xbf16, #tpu.memory_space<vmem>>, vector<1x16x8xbf16>
    %20 = vector.shape_cast %19 : vector<1x16x8xbf16> to vector<16x8xbf16>
    %cst_21 = arith.constant dense<0.000000e+00> : vector<16x900xf32>
    %21 = tpu.matmul %20, %18, %cst_21 {dimension_numbers = #tpu.dot_dimension_numbers<[1], [0], [0], [1], [0, 0, 1, 1], [], []>} : vector<16x8xbf16>, vector<8x900xbf16>, vector<16x900xf32> -> vector<16x900xf32>
    %22 = arith.addf %16, %21 : vector<16x900xf32>
    %c0_22 = arith.constant 0 : index
    %c0_23 = arith.constant 0 : index
    %c31 = arith.constant 31 : index
    %23 = vector.load %arg2[%c0_22, %c0_23, %c31] : memref<1x8x1024xbf16, #tpu.memory_space<vmem>>, vector<1x8x900xbf16>
    %24 = vector.shape_cast %23 : vector<1x8x900xbf16> to vector<8x900xbf16>
    %c4 = arith.constant 4 : index
    %c0_24 = arith.constant 0 : index
    %c0_25 = arith.constant 0 : index
    %25 = vector.load %arg1[%c4, %c0_24, %c0_25] : memref<9x16x8xbf16, #tpu.memory_space<vmem>>, vector<1x16x8xbf16>
    %26 = vector.shape_cast %25 : vector<1x16x8xbf16> to vector<16x8xbf16>
    %cst_26 = arith.constant dense<0.000000e+00> : vector<16x900xf32>
    %27 = tpu.matmul %26, %24, %cst_26 {dimension_numbers = #tpu.dot_dimension_numbers<[1], [0], [0], [1], [0, 0, 1, 1], [], []>} : vector<16x8xbf16>, vector<8x900xbf16>, vector<16x900xf32> -> vector<16x900xf32>
    %28 = arith.addf %22, %27 : vector<16x900xf32>
    %c0_27 = arith.constant 0 : index
    %c0_28 = arith.constant 0 : index
    %c32 = arith.constant 32 : index
    %29 = vector.load %arg2[%c0_27, %c0_28, %c32] : memref<1x8x1024xbf16, #tpu.memory_space<vmem>>, vector<1x8x900xbf16>
    %30 = vector.shape_cast %29 : vector<1x8x900xbf16> to vector<8x900xbf16>
    %c5 = arith.constant 5 : index
    %c0_29 = arith.constant 0 : index
    %c0_30 = arith.constant 0 : index
    %31 = vector.load %arg1[%c5, %c0_29, %c0_30] : memref<9x16x8xbf16, #tpu.memory_space<vmem>>, vector<1x16x8xbf16>
    %32 = vector.shape_cast %31 : vector<1x16x8xbf16> to vector<16x8xbf16>
    %cst_31 = arith.constant dense<0.000000e+00> : vector<16x900xf32>
    %33 = tpu.matmul %32, %30, %cst_31 {dimension_numbers = #tpu.dot_dimension_numbers<[1], [0], [0], [1], [0, 0, 1, 1], [], []>} : vector<16x8xbf16>, vector<8x900xbf16>, vector<16x900xf32> -> vector<16x900xf32>
    %34 = arith.addf %28, %33 : vector<16x900xf32>
    %c0_32 = arith.constant 0 : index
    %c0_33 = arith.constant 0 : index
    %c60 = arith.constant 60 : index
    %35 = vector.load %arg2[%c0_32, %c0_33, %c60] : memref<1x8x1024xbf16, #tpu.memory_space<vmem>>, vector<1x8x900xbf16>
    %36 = vector.shape_cast %35 : vector<1x8x900xbf16> to vector<8x900xbf16>
    %c6 = arith.constant 6 : index
    %c0_34 = arith.constant 0 : index
    %c0_35 = arith.constant 0 : index
    %37 = vector.load %arg1[%c6, %c0_34, %c0_35] : memref<9x16x8xbf16, #tpu.memory_space<vmem>>, vector<1x16x8xbf16>
    %38 = vector.shape_cast %37 : vector<1x16x8xbf16> to vector<16x8xbf16>
    %cst_36 = arith.constant dense<0.000000e+00> : vector<16x900xf32>
    %39 = tpu.matmul %38, %36, %cst_36 {dimension_numbers = #tpu.dot_dimension_numbers<[1], [0], [0], [1], [0, 0, 1, 1], [], []>} : vector<16x8xbf16>, vector<8x900xbf16>, vector<16x900xf32> -> vector<16x900xf32>
    %40 = arith.addf %34, %39 : vector<16x900xf32>
    %c0_37 = arith.constant 0 : index
    %c0_38 = arith.constant 0 : index
    %c61 = arith.constant 61 : index
    %41 = vector.load %arg2[%c0_37, %c0_38, %c61] : memref<1x8x1024xbf16, #tpu.memory_space<vmem>>, vector<1x8x900xbf16>
    %42 = vector.shape_cast %41 : vector<1x8x900xbf16> to vector<8x900xbf16>
    %c7 = arith.constant 7 : index
    %c0_39 = arith.constant 0 : index
    %c0_40 = arith.constant 0 : index
    %43 = vector.load %arg1[%c7, %c0_39, %c0_40] : memref<9x16x8xbf16, #tpu.memory_space<vmem>>, vector<1x16x8xbf16>
    %44 = vector.shape_cast %43 : vector<1x16x8xbf16> to vector<16x8xbf16>
    %cst_41 = arith.constant dense<0.000000e+00> : vector<16x900xf32>
    %45 = tpu.matmul %44, %42, %cst_41 {dimension_numbers = #tpu.dot_dimension_numbers<[1], [0], [0], [1], [0, 0, 1, 1], [], []>} : vector<16x8xbf16>, vector<8x900xbf16>, vector<16x900xf32> -> vector<16x900xf32>
    %46 = arith.addf %40, %45 : vector<16x900xf32>
    %c0_42 = arith.constant 0 : index
    %c0_43 = arith.constant 0 : index
    %c62 = arith.constant 62 : index
    %47 = vector.load %arg2[%c0_42, %c0_43, %c62] : memref<1x8x1024xbf16, #tpu.memory_space<vmem>>, vector<1x8x900xbf16>
    %48 = vector.shape_cast %47 : vector<1x8x900xbf16> to vector<8x900xbf16>
    %c8 = arith.constant 8 : index
    %c0_44 = arith.constant 0 : index
    %c0_45 = arith.constant 0 : index
    %49 = vector.load %arg1[%c8, %c0_44, %c0_45] : memref<9x16x8xbf16, #tpu.memory_space<vmem>>, vector<1x16x8xbf16>
    %50 = vector.shape_cast %49 : vector<1x16x8xbf16> to vector<16x8xbf16>
    %cst_46 = arith.constant dense<0.000000e+00> : vector<16x900xf32>
    %51 = tpu.matmul %50, %48, %cst_46 {dimension_numbers = #tpu.dot_dimension_numbers<[1], [0], [0], [1], [0, 0, 1, 1], [], []>} : vector<16x8xbf16>, vector<8x900xbf16>, vector<16x900xf32> -> vector<16x900xf32>
    %52 = arith.addf %46, %51 : vector<16x900xf32>
    %c0_47 = arith.constant 0 : index
    %c0_48 = arith.constant 0 : index
    %53 = vector.load %arg3[%c0_47, %c0_48] : memref<1x900xf32, #tpu.memory_space<vmem>>, vector<1x900xf32>
    %54 = vector.broadcast %53 : vector<1x900xf32> to vector<16x900xf32>
    %55 = arith.mulf %52, %54 : vector<16x900xf32>
    %cst_49 = arith.constant dense<0.000000e+00> : vector<16xf32>
    %56 = vector.multi_reduction <add>, %55, %cst_49 [1] : vector<16x900xf32> to vector<16xf32>
    %57 = vector.shape_cast %56 : vector<16xf32> to vector<16x1xf32>
    %58 = arith.mulf %55, %55 : vector<16x900xf32>
    %cst_50 = arith.constant dense<0.000000e+00> : vector<16xf32>
    %59 = vector.multi_reduction <add>, %58, %cst_50 [1] : vector<16x900xf32> to vector<16xf32>
    %60 = vector.shape_cast %59 : vector<16xf32> to vector<16x1xf32>
    %61 = tpu.concatenate %57, %60 in 1 : vector<16x1xf32>, vector<16x1xf32> -> vector<16x2xf32>
    %c0_51 = arith.constant 0 : index
    %c0_52 = arith.constant 0 : index
    %c0_53 = arith.constant 0 : index
    %62 = vector.load %arg5[%c0_51, %c0_52, %c0_53] : memref<1x16x2xf32, #tpu.memory_space<vmem>>, vector<1x16x2xf32>
    %63 = vector.shape_cast %62 : vector<1x16x2xf32> to vector<16x2xf32>
    %64 = vector.shape_cast %61 : vector<16x2xf32> to vector<1x16x2xf32>
    tpu.vector_store %arg5[%c0_51, %c0_52, %c0_53], %64 {strides = array<i32>} : memref<1x16x2xf32, #tpu.memory_space<vmem>>, vector<1x16x2xf32>,
    %65 = arith.truncf %52 : vector<16x900xf32> to vector<16x900xbf16>
    %c0_54 = arith.constant 0 : index
    %c0_55 = arith.constant 0 : index
    %c0_56 = arith.constant 0 : index
    %66 = vector.load %arg4[%c0_54, %c0_55, %c0_56] : memref<1x16x900xbf16, #tpu.memory_space<vmem>>, vector<1x16x900xbf16>
    %67 = vector.shape_cast %66 : vector<1x16x900xbf16> to vector<16x900xbf16>
    %68 = vector.shape_cast %65 : vector<16x900xbf16> to vector<1x16x900xbf16>
    tpu.vector_store %arg4[%c0_54, %c0_55, %c0_56], %68 {strides = array<i32>} : memref<1x16x900xbf16, #tpu.memory_space<vmem>>, vector<1x16x900xbf16>,
    return
  }
  func.func @transform_0(%arg0: i32) -> (i32, i32, i32) {
    %c0_i32 = arith.constant 0 : i32
    %c0_i32_0 = arith.constant 0 : i32
    %c0_i32_1 = arith.constant 0 : i32
    %c0_i32_2 = arith.constant 0 : i32
    return %c0_i32, %c0_i32_0, %c0_i32_1 : i32, i32, i32
  }
  func.func @transform_1(%arg0: i32) -> (i32, i32, i32) {
    %c0_i32 = arith.constant 0 : i32
    %c0_i32_0 = arith.constant 0 : i32
    %c0_i32_1 = arith.constant 0 : i32
    return %arg0, %c0_i32, %c0_i32_0 : i32, i32, i32
  }
  func.func @transform_2(%arg0: i32) -> (i32, i32) {
    %c0_i32 = arith.constant 0 : i32
    %c0_i32_0 = arith.constant 0 : i32
    %c0_i32_1 = arith.constant 0 : i32
    return %c0_i32, %c0_i32_0 : i32, i32
  }
  func.func @transform_3(%arg0: i32) -> (i32, i32, i32) {
    %c0_i32 = arith.constant 0 : i32
    %c0_i32_0 = arith.constant 0 : i32
    %c0_i32_1 = arith.constant 0 : i32
    return %arg0, %c0_i32, %c0_i32_0 : i32, i32, i32
  }
  func.func @transform_4(%arg0: i32) -> (i32, i32, i32) {
    %c0_i32 = arith.constant 0 : i32
    %c0_i32_0 = arith.constant 0 : i32
    %c0_i32_1 = arith.constant 0 : i32
    return %arg0, %c0_i32, %c0_i32_0 : i32, i32, i32
  }
}

module attributes {stable_mosaic.version = 11 : i64} {
  func.func @_convt4x2_kernel(%arg0: i32, %arg1: memref<9x12x4xbf16, #tpu.memory_space<vmem>>, %arg2: memref<1x4x3584xbf16, #tpu.memory_space<vmem>>, %arg3: memref<1x12x3364xf32, #tpu.memory_space<vmem>>) attributes {dimension_semantics = [#tpu.dimension_semantics<parallel>], iteration_bounds = array<i64: 2>, scalar_prefetch = 0 : i64, scratch_operands = 0 : i64, tpu.core_type = #tpu.core_type<tc>, window_params = [{pipeline_mode = #tpu.pipeline_mode<synchronous>, transform_indices = @transform_0, window_bounds = array<i64: 9, 12, 4>}, {transform_indices = @transform_1, window_bounds = array<i64: 1, 4, 3584>}, {transform_indices = @transform_2, window_bounds = array<i64: 1, 12, 3364>}]} {
    %c0 = arith.constant 0 : index
    %c0_0 = arith.constant 0 : index
    %c0_1 = arith.constant 0 : index
    %0 = vector.load %arg2[%c0, %c0_0, %c0_1] : memref<1x4x3584xbf16, #tpu.memory_space<vmem>>, vector<1x4x3364xbf16>
    %1 = vector.shape_cast %0 : vector<1x4x3364xbf16> to vector<4x3364xbf16>
    %c0_2 = arith.constant 0 : index
    %c0_3 = arith.constant 0 : index
    %c0_4 = arith.constant 0 : index
    %2 = vector.load %arg1[%c0_2, %c0_3, %c0_4] : memref<9x12x4xbf16, #tpu.memory_space<vmem>>, vector<1x12x4xbf16>
    %3 = vector.shape_cast %2 : vector<1x12x4xbf16> to vector<12x4xbf16>
    %cst = arith.constant dense<0.000000e+00> : vector<12x3364xf32>
    %4 = tpu.matmul %3, %1, %cst {dimension_numbers = #tpu.dot_dimension_numbers<[1], [0], [0], [1], [0, 0, 1, 1], [], []>} : vector<12x4xbf16>, vector<4x3364xbf16>, vector<12x3364xf32> -> vector<12x3364xf32>
    %c0_5 = arith.constant 0 : index
    %c0_6 = arith.constant 0 : index
    %c1 = arith.constant 1 : index
    %5 = vector.load %arg2[%c0_5, %c0_6, %c1] : memref<1x4x3584xbf16, #tpu.memory_space<vmem>>, vector<1x4x3364xbf16>
    %6 = vector.shape_cast %5 : vector<1x4x3364xbf16> to vector<4x3364xbf16>
    %c1_7 = arith.constant 1 : index
    %c0_8 = arith.constant 0 : index
    %c0_9 = arith.constant 0 : index
    %7 = vector.load %arg1[%c1_7, %c0_8, %c0_9] : memref<9x12x4xbf16, #tpu.memory_space<vmem>>, vector<1x12x4xbf16>
    %8 = vector.shape_cast %7 : vector<1x12x4xbf16> to vector<12x4xbf16>
    %cst_10 = arith.constant dense<0.000000e+00> : vector<12x3364xf32>
    %9 = tpu.matmul %8, %6, %cst_10 {dimension_numbers = #tpu.dot_dimension_numbers<[1], [0], [0], [1], [0, 0, 1, 1], [], []>} : vector<12x4xbf16>, vector<4x3364xbf16>, vector<12x3364xf32> -> vector<12x3364xf32>
    %10 = arith.addf %4, %9 : vector<12x3364xf32>
    %c0_11 = arith.constant 0 : index
    %c0_12 = arith.constant 0 : index
    %c2 = arith.constant 2 : index
    %11 = vector.load %arg2[%c0_11, %c0_12, %c2] : memref<1x4x3584xbf16, #tpu.memory_space<vmem>>, vector<1x4x3364xbf16>
    %12 = vector.shape_cast %11 : vector<1x4x3364xbf16> to vector<4x3364xbf16>
    %c2_13 = arith.constant 2 : index
    %c0_14 = arith.constant 0 : index
    %c0_15 = arith.constant 0 : index
    %13 = vector.load %arg1[%c2_13, %c0_14, %c0_15] : memref<9x12x4xbf16, #tpu.memory_space<vmem>>, vector<1x12x4xbf16>
    %14 = vector.shape_cast %13 : vector<1x12x4xbf16> to vector<12x4xbf16>
    %cst_16 = arith.constant dense<0.000000e+00> : vector<12x3364xf32>
    %15 = tpu.matmul %14, %12, %cst_16 {dimension_numbers = #tpu.dot_dimension_numbers<[1], [0], [0], [1], [0, 0, 1, 1], [], []>} : vector<12x4xbf16>, vector<4x3364xbf16>, vector<12x3364xf32> -> vector<12x3364xf32>
    %16 = arith.addf %10, %15 : vector<12x3364xf32>
    %c0_17 = arith.constant 0 : index
    %c0_18 = arith.constant 0 : index
    %c58 = arith.constant 58 : index
    %17 = vector.load %arg2[%c0_17, %c0_18, %c58] : memref<1x4x3584xbf16, #tpu.memory_space<vmem>>, vector<1x4x3364xbf16>
    %18 = vector.shape_cast %17 : vector<1x4x3364xbf16> to vector<4x3364xbf16>
    %c3 = arith.constant 3 : index
    %c0_19 = arith.constant 0 : index
    %c0_20 = arith.constant 0 : index
    %19 = vector.load %arg1[%c3, %c0_19, %c0_20] : memref<9x12x4xbf16, #tpu.memory_space<vmem>>, vector<1x12x4xbf16>
    %20 = vector.shape_cast %19 : vector<1x12x4xbf16> to vector<12x4xbf16>
    %cst_21 = arith.constant dense<0.000000e+00> : vector<12x3364xf32>
    %21 = tpu.matmul %20, %18, %cst_21 {dimension_numbers = #tpu.dot_dimension_numbers<[1], [0], [0], [1], [0, 0, 1, 1], [], []>} : vector<12x4xbf16>, vector<4x3364xbf16>, vector<12x3364xf32> -> vector<12x3364xf32>
    %22 = arith.addf %16, %21 : vector<12x3364xf32>
    %c0_22 = arith.constant 0 : index
    %c0_23 = arith.constant 0 : index
    %c59 = arith.constant 59 : index
    %23 = vector.load %arg2[%c0_22, %c0_23, %c59] : memref<1x4x3584xbf16, #tpu.memory_space<vmem>>, vector<1x4x3364xbf16>
    %24 = vector.shape_cast %23 : vector<1x4x3364xbf16> to vector<4x3364xbf16>
    %c4 = arith.constant 4 : index
    %c0_24 = arith.constant 0 : index
    %c0_25 = arith.constant 0 : index
    %25 = vector.load %arg1[%c4, %c0_24, %c0_25] : memref<9x12x4xbf16, #tpu.memory_space<vmem>>, vector<1x12x4xbf16>
    %26 = vector.shape_cast %25 : vector<1x12x4xbf16> to vector<12x4xbf16>
    %cst_26 = arith.constant dense<0.000000e+00> : vector<12x3364xf32>
    %27 = tpu.matmul %26, %24, %cst_26 {dimension_numbers = #tpu.dot_dimension_numbers<[1], [0], [0], [1], [0, 0, 1, 1], [], []>} : vector<12x4xbf16>, vector<4x3364xbf16>, vector<12x3364xf32> -> vector<12x3364xf32>
    %28 = arith.addf %22, %27 : vector<12x3364xf32>
    %c0_27 = arith.constant 0 : index
    %c0_28 = arith.constant 0 : index
    %c60 = arith.constant 60 : index
    %29 = vector.load %arg2[%c0_27, %c0_28, %c60] : memref<1x4x3584xbf16, #tpu.memory_space<vmem>>, vector<1x4x3364xbf16>
    %30 = vector.shape_cast %29 : vector<1x4x3364xbf16> to vector<4x3364xbf16>
    %c5 = arith.constant 5 : index
    %c0_29 = arith.constant 0 : index
    %c0_30 = arith.constant 0 : index
    %31 = vector.load %arg1[%c5, %c0_29, %c0_30] : memref<9x12x4xbf16, #tpu.memory_space<vmem>>, vector<1x12x4xbf16>
    %32 = vector.shape_cast %31 : vector<1x12x4xbf16> to vector<12x4xbf16>
    %cst_31 = arith.constant dense<0.000000e+00> : vector<12x3364xf32>
    %33 = tpu.matmul %32, %30, %cst_31 {dimension_numbers = #tpu.dot_dimension_numbers<[1], [0], [0], [1], [0, 0, 1, 1], [], []>} : vector<12x4xbf16>, vector<4x3364xbf16>, vector<12x3364xf32> -> vector<12x3364xf32>
    %34 = arith.addf %28, %33 : vector<12x3364xf32>
    %c0_32 = arith.constant 0 : index
    %c0_33 = arith.constant 0 : index
    %c116 = arith.constant 116 : index
    %35 = vector.load %arg2[%c0_32, %c0_33, %c116] : memref<1x4x3584xbf16, #tpu.memory_space<vmem>>, vector<1x4x3364xbf16>
    %36 = vector.shape_cast %35 : vector<1x4x3364xbf16> to vector<4x3364xbf16>
    %c6 = arith.constant 6 : index
    %c0_34 = arith.constant 0 : index
    %c0_35 = arith.constant 0 : index
    %37 = vector.load %arg1[%c6, %c0_34, %c0_35] : memref<9x12x4xbf16, #tpu.memory_space<vmem>>, vector<1x12x4xbf16>
    %38 = vector.shape_cast %37 : vector<1x12x4xbf16> to vector<12x4xbf16>
    %cst_36 = arith.constant dense<0.000000e+00> : vector<12x3364xf32>
    %39 = tpu.matmul %38, %36, %cst_36 {dimension_numbers = #tpu.dot_dimension_numbers<[1], [0], [0], [1], [0, 0, 1, 1], [], []>} : vector<12x4xbf16>, vector<4x3364xbf16>, vector<12x3364xf32> -> vector<12x3364xf32>
    %40 = arith.addf %34, %39 : vector<12x3364xf32>
    %c0_37 = arith.constant 0 : index
    %c0_38 = arith.constant 0 : index
    %c117 = arith.constant 117 : index
    %41 = vector.load %arg2[%c0_37, %c0_38, %c117] : memref<1x4x3584xbf16, #tpu.memory_space<vmem>>, vector<1x4x3364xbf16>
    %42 = vector.shape_cast %41 : vector<1x4x3364xbf16> to vector<4x3364xbf16>
    %c7 = arith.constant 7 : index
    %c0_39 = arith.constant 0 : index
    %c0_40 = arith.constant 0 : index
    %43 = vector.load %arg1[%c7, %c0_39, %c0_40] : memref<9x12x4xbf16, #tpu.memory_space<vmem>>, vector<1x12x4xbf16>
    %44 = vector.shape_cast %43 : vector<1x12x4xbf16> to vector<12x4xbf16>
    %cst_41 = arith.constant dense<0.000000e+00> : vector<12x3364xf32>
    %45 = tpu.matmul %44, %42, %cst_41 {dimension_numbers = #tpu.dot_dimension_numbers<[1], [0], [0], [1], [0, 0, 1, 1], [], []>} : vector<12x4xbf16>, vector<4x3364xbf16>, vector<12x3364xf32> -> vector<12x3364xf32>
    %46 = arith.addf %40, %45 : vector<12x3364xf32>
    %c0_42 = arith.constant 0 : index
    %c0_43 = arith.constant 0 : index
    %c118 = arith.constant 118 : index
    %47 = vector.load %arg2[%c0_42, %c0_43, %c118] : memref<1x4x3584xbf16, #tpu.memory_space<vmem>>, vector<1x4x3364xbf16>
    %48 = vector.shape_cast %47 : vector<1x4x3364xbf16> to vector<4x3364xbf16>
    %c8 = arith.constant 8 : index
    %c0_44 = arith.constant 0 : index
    %c0_45 = arith.constant 0 : index
    %49 = vector.load %arg1[%c8, %c0_44, %c0_45] : memref<9x12x4xbf16, #tpu.memory_space<vmem>>, vector<1x12x4xbf16>
    %50 = vector.shape_cast %49 : vector<1x12x4xbf16> to vector<12x4xbf16>
    %cst_46 = arith.constant dense<0.000000e+00> : vector<12x3364xf32>
    %51 = tpu.matmul %50, %48, %cst_46 {dimension_numbers = #tpu.dot_dimension_numbers<[1], [0], [0], [1], [0, 0, 1, 1], [], []>} : vector<12x4xbf16>, vector<4x3364xbf16>, vector<12x3364xf32> -> vector<12x3364xf32>
    %52 = arith.addf %46, %51 : vector<12x3364xf32>
    %53 = math.tanh %52 : vector<12x3364xf32>
    %c0_47 = arith.constant 0 : index
    %c0_48 = arith.constant 0 : index
    %c0_49 = arith.constant 0 : index
    %54 = vector.load %arg3[%c0_47, %c0_48, %c0_49] : memref<1x12x3364xf32, #tpu.memory_space<vmem>>, vector<1x12x3364xf32>
    %55 = vector.shape_cast %54 : vector<1x12x3364xf32> to vector<12x3364xf32>
    %56 = vector.shape_cast %53 : vector<12x3364xf32> to vector<1x12x3364xf32>
    tpu.vector_store %arg3[%c0_47, %c0_48, %c0_49], %56 {strides = array<i32>} : memref<1x12x3364xf32, #tpu.memory_space<vmem>>, vector<1x12x3364xf32>,
    return
  }
  func.func @transform_0(%arg0: i32) -> (i32, i32, i32) {
    %c0_i32 = arith.constant 0 : i32
    %c0_i32_0 = arith.constant 0 : i32
    %c0_i32_1 = arith.constant 0 : i32
    %c0_i32_2 = arith.constant 0 : i32
    return %c0_i32, %c0_i32_0, %c0_i32_1 : i32, i32, i32
  }
  func.func @transform_1(%arg0: i32) -> (i32, i32, i32) {
    %c0_i32 = arith.constant 0 : i32
    %c0_i32_0 = arith.constant 0 : i32
    %c0_i32_1 = arith.constant 0 : i32
    return %arg0, %c0_i32, %c0_i32_0 : i32, i32, i32
  }
  func.func @transform_2(%arg0: i32) -> (i32, i32, i32) {
    %c0_i32 = arith.constant 0 : i32
    %c0_i32_0 = arith.constant 0 : i32
    %c0_i32_1 = arith.constant 0 : i32
    return %arg0, %c0_i32, %c0_i32_0 : i32, i32, i32
  }
}

</mosaic_0001>

<bundles_post_ra>
// kernel: _lambda_.4
= control target key start
LH: loop header
LB: loop body
LE: loop exit
PB: predicated region body
PF: predicated region fallthrough
CT: control target
= control target key end

     0   :  { %10 = vsyncpa [#allocation3], 0  ;;  %s1835_s0 = inlined_call_operand.hbm [shape: bf16[9,64,32], index: 0, kind: input, shape index: {}]   ;;  %s1836_s1 = inlined_call_operand.vmem [shape: bf16[2,32,128], index: 1, kind: input, shape index: {}]   ;;  %s1837_s2 = inlined_call_operand.hbm [shape: f32[1,81], index: 2, kind: input, shape index: {}]   ;;  %s1838_s3 = inlined_call_operand.vmem [shape: bf16[2,64,81], index: 3, kind: output, shape index: {0}]   ;;  %s1839_s4 = inlined_call_operand.vmem [shape: f32[2,64,2], index: 4, kind: output, shape index: {1}]  }
   0x1   :  { %11 = vsyncpa [#allocation5], 0  ;;  %s1613_s15 = smov 0  }
   0x2 LB: > { %s153_s18 = sshll.u32 %s1835_s0, 4  ;;  %s1208_s19 = sadd.s32 4294967295, %s1574_s15   ;;  %s1574_s15 = sphi %s1613_s15, %s17_s15   ;;  %s154_s18 = int_to_ptr.hbm [resolvable:$true] %s153_s18 }
   0x3   : > { %p1210_p0 = scmp.ge.s32.totalorder %s1574_s15, 1  ;;  %p142_p1 = scmp.lt.s32.totalorder %s1574_s15, 3 }
   0x4   : > { %p1475_p2 = scmp.eq.s32.totalorder %s1208_s19, 0  ;;  %s1576_s21 = smov [#allocation2]  }
   0x5   : > { %p1624_p3 = pnand %p1210_p0, %p142_p1  ;;  %s155_s22 = sshll.u32 %s1576_s21, 4  ;;  %s156_s22 = int_to_ptr.vmem [resolvable:$true] %s155_s22 }
   0x6   : > { %s168_s25 = sshll.u32 %s1837_s2, 4  ;;  %s1577_s26 = smov [#allocation4]   ;;  %s169_s25 = int_to_ptr.hbm [resolvable:$true] %s168_s25 }
   0x7   : > { %p1468_p4 = pneg %p1624_p3  ;;  %s170_s27 = sshll.u32 %s1577_s26, 4  ;;  %s171_s27 = int_to_ptr.vmem [resolvable:$true] %s170_s27 }
   0x8   : > { %s1578_s28 = smov 64   ;;  %s1579_s29 = smov 4  }
   0x9   : > { %p1469_p5 = pnand %p1475_p2, %p1468_p4  ;;  %191 = sbr.rel (%p1624_p3) target bundleno = 553 (0x229), region = 32 }
   0xb   : > { %1471 = dma.hbm_to_vmem [thread:$0]  (!%p1469_p5), %s154_s18, 4608, %s156_s22, [#allocation3], %s1578_s28, %s1578_s28, %s1579_s29  }
   0xc   : > { %1474 = dma.hbm_to_vmem [thread:$0]  (!%p1469_p5), %s169_s25, 16, %s171_s27, [#allocation5]  }
   0xe   : > { %1565 = dma.done.wait (%p1475_p2), [#allocation3], 4608  }
   0xf   : > { %1567 = vsyncadd (%p1475_p2), [#allocation3], 4294962688 }
  0x10   : > { %1569 = dma.done.wait (%p1475_p2), [#allocation5], 16  }
  0x11   : > { %1571 = vsyncadd (%p1475_p2), [#allocation5], 4294967280  ;;  %p228_p6 = scmp.lt.s32.totalorder %s1208_s19, 1  ;;  %s1580_s8 = smov 127   ;;  %v1423_v9 = vld [vmem:[#allocation2 + $0x28] sm:$0xff]  ;;  %v1422_v10 = vld [vmem:[#allocation2 + $0x20] sm:$0xff] }
  0x12   : > { %s1581_s9 = smov 126   ;;  %s1582_s10 = smov 119   ;;  %vm301_vm0 = vcmask 261120   ;;  %v1424_v11 = vld [vmem:[#allocation2 + $0x30] sm:$0xff]  ;;  %v1425_v12 = vld [vmem:[#allocation2 + $0x38] sm:$0xff]  ;;  %v1418_v17 = vld [vmem:[#allocation2] sm:$0xff] }
  0x13   : > { %s1842_s19 = smov (!%p228_p6, %s1208_s19), 1  ;;  %s1583_s11 = smov 118   ;;  %v1434_v19 = vld [vmem:[#allocation2 + $0x80] sm:$0xff]  ;;  %v1419_v25 = vld [vmem:[#allocation2 + $0x8] sm:$0xff]  ;;  %v1420_v30 = vld [vmem:[#allocation2 + $0x10] sm:$0xff]  ;;  %vm1089_vm1 = vcmask 658432  }
  0x14   : > { %s1413_s30 = sshll.u32 %s1842_s19, 4  ;;  %s1584_s12 = smov 110   ;;  %v1426_v21 = vld [vmem:[#allocation2 + $0x40] sm:$0xff]  ;;  %v1435_v26 = vld [vmem:[#allocation2 + $0x88] sm:$0xff]  ;;  %v1436_v31 = vld [vmem:[#allocation2 + $0x90] sm:$0xff]  ;;  %vm1006_vm2 = vcmask 662528  }
  0x15   : > { %s232_s7 = scalar_lea.vmem %s1836_s1, %s1413_s30  ;;  %s1585_s13 = smov 109   ;;  %v1430_v22 = vld [vmem:[#allocation2 + $0x60] sm:$0xff]  ;;  %v1427_v28 = vld [vmem:[#allocation2 + $0x48] sm:$0xff]  ;;  %v1428_v32 = vld [vmem:[#allocation2 + $0x50] sm:$0xff]  ;;  %vm1063_vm3 = vcmask 7168   ;;  %vm1072_vm4 = vcmask 15360  }
  0x16   : > { %v1417_v0 = vld [vmem:[%s232_s7 + $0x8] sm:$0xff]  ;;  %v1416_v1 = vld [vmem:[%s232_s7] sm:$0xff]  ;;  %s1586_s14 = smov 117   ;;  %s1587_s16 = smov 108   ;;  %v1432_v33 = vld [vmem:[#allocation2 + $0x70] sm:$0xff] }
  0x17   : > { %297 = vrot.lane.b32.xlu0 %v1417_v0, %s1580_s8  ;;  %437 = vrot.lane.b32.xlu1 %v1417_v0, %s1581_s9  ;;  %v1431_v29 = vld [vmem:[#allocation2 + $0x68] sm:$0xff]  ;;  %v1421_v34 = vld [vmem:[#allocation2 + $0x18] sm:$0xff]  ;;  %v1438_v38 = vld [vmem:[#allocation2 + $0xa0] sm:$0xff]  ;;  %s1414_s17 = sshll.u32 %s1842_s19, 5  ;;  %s1415_s22 = sshll.u32 %s1842_s19, 6 }
  0x18   : > { %435 = vrot.lane.b32.xlu2 %v1416_v1, %s1581_s9  ;;  %v1437_v35 = vld [vmem:[#allocation2 + $0x98] sm:$0xff]  ;;  %v1450_v39 = vld [vmem:[#allocation2 + $0x100] sm:$0xff]  ;;  %v1439_v42 = vld [vmem:[#allocation2 + $0xa8] sm:$0xff]  ;;  %s1736_s21 = scalar_lea.vmem %s1838_s3, %s1414_s17  ;;  %s1806_s25 = scalar_lea.vmem %s1839_s4, %s1415_s22 }
  0x19   : > { %v1429_v36 = vld [vmem:[#allocation2 + $0x58] sm:$0xff]  ;;  %v1442_v40 = vld [vmem:[#allocation2 + $0xc0] sm:$0xff]  ;;  %v1451_v43 = vld [vmem:[#allocation2 + $0x108] sm:$0xff] }
  0x1a   : > { %v1433_v37 = vld [vmem:[#allocation2 + $0x78] sm:$0xff]  ;;  %v1446_v41 = vld [vmem:[#allocation2 + $0xe0] sm:$0xff]  ;;  %v1443_v44 = vld [vmem:[#allocation2 + $0xc8] sm:$0xff] }
  0x1b   : > { %v1447_v45 = vld [vmem:[#allocation2 + $0xe8] sm:$0xff]  ;;  %v1440_v46 = vld [vmem:[#allocation2 + $0xb0] sm:$0xff]  ;;  %v1441_v50 = vld [vmem:[#allocation2 + $0xb8] sm:$0xff] }
  0x1c   : > { %v1452_v47 = vld [vmem:[#allocation2 + $0x110] sm:$0xff]  ;;  %v1453_v51 = vld [vmem:[#allocation2 + $0x118] sm:$0xff] }
  0x1d   : > { %v1444_v48 = vld [vmem:[#allocation2 + $0xd0] sm:$0xff]  ;;  %v1445_v54 = vld [vmem:[#allocation2 + $0xd8] sm:$0xff] }
  0x1e   : > { %v1448_v49 = vld [vmem:[#allocation2 + $0xf0] sm:$0xff]  ;;  %v1449_v55 = vld [vmem:[#allocation2 + $0xf8] sm:$0xff] }
  0x1f   : > { %295 = vrot.lane.b32.xlu0 %v1416_v1, %s1580_s8  ;;  %521 = vrot.lane.b32.xlu1 %v1417_v0, %s1582_s10 }
  0x20   : > { %519 = vrot.lane.b32.xlu2 %v1416_v1, %s1582_s10 }
  0x27   : > { %605 = vrot.lane.b32.xlu0 %v1417_v0, %s1583_s11  ;;  %603 = vrot.lane.b32.xlu1 %v1416_v1, %s1583_s11 }
  0x28   : > { %773 = vrot.lane.b32.xlu2 %v1417_v0, %s1584_s12 }
  0x2f   : > { %857 = vrot.lane.b32.xlu0 %v1417_v0, %s1585_s13  ;;  %689 = vrot.lane.b32.xlu1 %v1417_v0, %s1586_s14 }
  0x30   : > { %771 = vrot.lane.b32.xlu2 %v1416_v1, %s1584_s12 }
  0x37   : > { %855 = vrot.lane.b32.xlu0 %v1416_v1, %s1585_s13  ;;  %687 = vrot.lane.b32.xlu1 %v1416_v1, %s1586_s14 }
  0x38   : > { %941 = vrot.lane.b32.xlu2 %v1417_v0, %s1587_s16 }
  0x3f   : > { %939 = vrot.lane.b32.xlu0 %v1416_v1, %s1587_s16 }
  0x72   : > { %v436_v2 = vpop.permute.xlu2 %435 }
  0x7a   : > { %v520_v3 = vpop.permute.xlu2 %519 }
  0x82   : > { %v774_v4 = vpop.permute.xlu2 %773 }
  0x89   : > { %v298_v5 = vpop.permute.xlu0 %297  ;;  %v438_v6 = vpop.permute.xlu1 %437 }
  0x8a   : > { %320 = vmatpush.bf16.msra.mxu0 %v298_v5  ;;  %1454 = vmatpush.bf16.msra.mxu1 %v298_v5  ;;  %v772_v13 = vpop.permute.xlu2 %771 }
  0x8b   : > { %1455 = vmatpush.bf16.msra.mxu2 %v298_v5  ;;  %1456 = vmatpush.bf16.msra.mxu3 %v298_v5 }
  0x91   : > { %v296_v7 = vpop.permute.xlu0 %295  ;;  %v522_v8 = vpop.permute.xlu1 %521 }
  0x92   : > { %321 = vmatpush.bf16.msra.mxu0 %v296_v7  ;;  %1457 = vmatpush.bf16.msra.mxu1 %v296_v7  ;;  %v942_v16 = vpop.permute.xlu2 %941 }
  0x93   : > { %1458 = vmatpush.bf16.msra.mxu2 %v296_v7  ;;  %1459 = vmatpush.bf16.msra.mxu3 %v296_v7 }
  0x95   : > { %1248 = vmatmul.msk.bf16.vlgmr.msra.gmra.mxu1 %vm301_vm0, %v1423_v9  ;;  %1247 = vmatmul.msk.bf16.vlgmr.msra.gmra.mxu0 %vm301_vm0, %v1422_v10 }
  0x96   : > { %1249 = vmatmul.msk.bf16.vlgmr.msra.gmra.mxu2 %vm301_vm0, %v1424_v11  ;;  %1250 = vmatmul.msk.bf16.vlgmr.msra.gmra.mxu3 %vm301_vm0, %v1425_v12 }
  0x97   : > { %459 = vmatpush.bf16.msrb.mxu2 %v438_v6  ;;  %543 = vmatpush.bf16.msrb.mxu3 %v522_v8 }
  0x98   : > { %383 = vmatpush.bf16.msrb.mxu1 %v1417_v0 }
  0x99   : > { %v606_v14 = vpop.permute.xlu0 %605  ;;  %v604_v15 = vpop.permute.xlu1 %603 }
  0x9a   : > { %627 = vmatpush.bf16.msrb.mxu0 %v606_v14 }
  0x9b   : > { %460 = vmatpush.bf16.msrb.mxu2 %v436_v2  ;;  %544 = vmatpush.bf16.msrb.mxu3 %v520_v3 }
  0x9c   : > { %384 = vmatpush.bf16.msrb.mxu1 %v1416_v1 }
  0x9e   : > { %628 = vmatpush.bf16.msrb.mxu0 %v604_v15 }
  0x9f   : > { %795 = vmatpush.bf16.msra.mxu2 %v774_v4 }
  0xa1   : > { %v858_v18 = vpop.permute.xlu0 %857  ;;  %v690_v20 = vpop.permute.xlu1 %689 }
  0xa2   : > { %963 = vmatpush.bf16.msra.mxu0 %v942_v16  ;;  %879 = vmatpush.bf16.msra.mxu3 %v858_v18 }
  0xa3   : > { %796 = vmatpush.bf16.msra.mxu2 %v772_v13  ;;  %711 = vmatpush.bf16.msra.mxu1 %v690_v20 }
  0xa5   : > { %1267 = vmatmul.msk.bf16.vlgmr.msrb.gmra.mxu1 %vm301_vm0, %v1418_v17  ;;  %1327 = vmatmul.msk.bf16.vlgmr.msrb.gmra.mxu0 %vm301_vm0, %v1434_v19 }
  0xa6   : > { %1287 = vmatmul.msk.bf16.vlgmr.msrb.gmra.mxu2 %vm301_vm0, %v1426_v21  ;;  %1307 = vmatmul.msk.bf16.vlgmr.msrb.gmra.mxu3 %vm301_vm0, %v1430_v22 }
  0xa9   : > { %v856_v23 = vpop.permute.xlu0 %855  ;;  %v688_v24 = vpop.permute.xlu1 %687 }
  0xaa   : > { %880 = vmatpush.bf16.msra.mxu3 %v856_v23  ;;  %712 = vmatpush.bf16.msra.mxu1 %v688_v24 }
  0xb1   : > { %v940_v27 = vpop.permute.xlu0 %939 }
  0xb2   : > { %964 = vmatpush.bf16.msra.mxu0 %v940_v27 }
  0xb5   : > { %1268 = vmatmul.msk.bf16.gmra.mxu1 %vm301_vm0, %v1419_v25  ;;  %1328 = vmatmul.msk.bf16.gmra.mxu0 %vm301_vm0, %v1435_v26 }
  0xb6   : > { %1288 = vmatmul.msk.bf16.gmra.mxu2 %vm301_vm0, %v1427_v28  ;;  %1308 = vmatmul.msk.bf16.gmra.mxu3 %vm301_vm0, %v1431_v29 }
  0xc5   : > { %1269 = vmatmul.msk.bf16.gmra.mxu1 %vm301_vm0, %v1420_v30  ;;  %1329 = vmatmul.msk.bf16.gmra.mxu0 %vm301_vm0, %v1436_v31 }
  0xc6   : > { %1289 = vmatmul.msk.bf16.gmra.mxu2 %vm301_vm0, %v1428_v32  ;;  %1309 = vmatmul.msk.bf16.gmra.mxu3 %vm301_vm0, %v1432_v33 }
  0xd5   : > { %1270 = vmatmul.msk.bf16.gmra.mxu1 %vm301_vm0, %v1421_v34  ;;  %1330 = vmatmul.msk.bf16.gmra.mxu0 %vm301_vm0, %v1437_v35 }
  0xd6   : > { %1290 = vmatmul.msk.bf16.gmra.mxu2 %vm301_vm0, %v1429_v36  ;;  %1310 = vmatmul.msk.bf16.gmra.mxu3 %vm301_vm0, %v1433_v37 }
  0xe5   : > { %1347 = vmatmul.msk.bf16.vlgmr.msra.gmra.mxu1 %vm301_vm0, %v1438_v38  ;;  %1407 = vmatmul.msk.bf16.vlgmr.msra.gmra.mxu0 %vm301_vm0, %v1450_v39 }
  0xe6   : > { %1367 = vmatmul.msk.bf16.vlgmr.msra.gmra.mxu2 %vm301_vm0, %v1442_v40  ;;  %1387 = vmatmul.msk.bf16.vlgmr.msra.gmra.mxu3 %vm301_vm0, %v1446_v41 }
  0xf5   : > { %1348 = vmatmul.msk.bf16.gmra.mxu1 %vm301_vm0, %v1439_v42  ;;  %1408 = vmatmul.msk.bf16.gmra.mxu0 %vm301_vm0, %v1451_v43 }
  0xf6   : > { %1368 = vmatmul.msk.bf16.gmra.mxu2 %vm301_vm0, %v1443_v44  ;;  %1388 = vmatmul.msk.bf16.gmra.mxu3 %vm301_vm0, %v1447_v45 }
 0x105   : > { %1349 = vmatmul.msk.bf16.gmra.mxu1 %vm301_vm0, %v1440_v46  ;;  %1409 = vmatmul.msk.bf16.gmra.mxu0 %vm301_vm0, %v1452_v47  ;;  %v1731_v47 = vld [vmem:[#allocation4] ss:$0 sm:$0xff] }
 0x106   : > { %1369 = vmatmul.msk.bf16.gmra.mxu2 %vm301_vm0, %v1444_v48  ;;  %1389 = vmatmul.msk.bf16.gmra.mxu3 %vm301_vm0, %v1448_v49 }
 0x112   : > { %v328_v52 = vpop.f32.mrf.mxu1  ;;  %v323_v53 = vpop.f32.mrf.mxu0 }
 0x115   : > { %1350 = vmatmul.msk.bf16.gmra.mxu1 %vm301_vm0, %v1441_v50  ;;  %1410 = vmatmul.msk.bf16.gmra.mxu0 %vm301_vm0, %v1453_v51 }
 0x116   : > { %1370 = vmatmul.msk.bf16.gmra.mxu2 %vm301_vm0, %v1445_v54  ;;  %1390 = vmatmul.msk.bf16.gmra.mxu3 %vm301_vm0, %v1449_v55 }
 0x119   : > { %v1682_v56 = vpop.f32.mrf.mxu2  ;;  %v1684_v57 = vpop.f32.mrf.mxu3 }
 0x11a   : > { %v1686_v58 = vpop.f32.mrf.mxu1  ;;  %v325_v59 = vpop.f32.mrf.mxu0 }
 0x121   : > { %v1688_v60 = vpop.f32.mrf.mxu2  ;;  %v1690_v61 = vpop.f32.mrf.mxu3 }
 0x122   : > { %v386_v62 = vpop.f32.mrf.mxu1  ;;  %v630_v63 = vpop.f32.mrf.mxu0 }
 0x123   : > { %v387_v28 = vadd.f32 %v386_v62, %v323_v53 }
 0x129   : > { %v462_v0 = vpop.f32.mrf.mxu2  ;;  %v546_v1 = vpop.f32.mrf.mxu3 }
 0x12a   : > { %v388_v2 = vpop.f32.mrf.mxu1  ;;  %v632_v3 = vpop.f32.mrf.mxu0  ;;  %v482_v29 = vadd.f32 %v462_v0, %v387_v28 }
 0x12b   : > { %v389_v35 = vadd.f32 %v388_v2, %v325_v59 }
 0x12c   : > { %v566_v32 = vadd.f32 %v546_v1, %v482_v29 }
 0x12e   : > { %v650_v37 = vadd.f32 %v630_v63, %v566_v32 }
 0x131   : > { %v464_v4 = vpop.f32.mrf.mxu2  ;;  %v548_v5 = vpop.f32.mrf.mxu3 }
 0x132   : > { %v391_v6 = vpop.f32.mrf.mxu1  ;;  %v1692_v7 = vpop.f32.mrf.mxu0  ;;  %v483_v36 = vadd.f32 %v464_v4, %v389_v35 }
 0x133   : > { %v392_v45 = vadd.f32 %v391_v6, %v328_v52 }
 0x134   : > { %v567_v41 = vadd.f32 %v548_v5, %v483_v36 }
 0x136   : > { %v651_v50 = vadd.f32 %v632_v3, %v567_v41 }
 0x139   : > { %v467_v8 = vpop.f32.mrf.mxu2  ;;  %v551_v9 = vpop.f32.mrf.mxu3 }
 0x13a   : > { %v393_v10 = vpop.f32.mrf.mxu1  ;;  %v1694_v11 = vpop.f32.mrf.mxu0  ;;  %v484_v48 = vadd.f32 %v467_v8, %v392_v45 }
 0x13b   : > { %v394_v3 = vadd.f32 %v393_v10, %v1686_v58 }
 0x13c   : > { %v568_v59 = vadd.f32 %v551_v9, %v484_v48 }
 0x13e   : > { %v652_v9 = vadd.f32 %v1692_v7, %v568_v59 }
 0x141   : > { %v469_v12 = vpop.f32.mrf.mxu2  ;;  %v1696_v13 = vpop.f32.mrf.mxu3 }
 0x142   : > { %v1698_v14 = vpop.f32.mrf.mxu1  ;;  %v1700_v15 = vpop.f32.mrf.mxu0  ;;  %v485_v6 = vadd.f32 %v469_v12, %v394_v3 }
 0x144   : > { %v569_v35 = vadd.f32 %v1696_v13, %v485_v6 }
 0x146   : > { %v653_v41 = vadd.f32 %v1694_v11, %v569_v35 }
 0x149   : > { %v1702_v16 = vpop.f32.mrf.mxu2  ;;  %v1704_v17 = vpop.f32.mrf.mxu3 }
 0x14a   : > { %v1706_v18 = vpop.f32.mrf.mxu1  ;;  %v1708_v19 = vpop.f32.mrf.mxu0 }
 0x151   : > { %v1710_v20 = vpop.f32.mrf.mxu2  ;;  %v1712_v21 = vpop.f32.mrf.mxu3 }
 0x152   : > { %v1714_v22 = vpop.f32.mrf.mxu1  ;;  %v1716_v23 = vpop.f32.mrf.mxu0 }
 0x159   : > { %v1718_v24 = vpop.f32.mrf.mxu2  ;;  %v1720_v25 = vpop.f32.mrf.mxu3 }
 0x15a   : > { %v1722_v26 = vpop.f32.mrf.mxu1  ;;  %v1724_v27 = vpop.f32.mrf.mxu0 }
 0x161   : > { %v1726_v30 = vpop.f32.mrf.mxu2  ;;  %v1728_v31 = vpop.f32.mrf.mxu3 }
 0x162   : > { %v714_v33 = vpop.f32.mrf.mxu1  ;;  %v966_v34 = vpop.f32.mrf.mxu0 }
 0x163   : > { %v734_v38 = vadd.f32 %v714_v33, %v650_v37  ;;  %v397_v37 = vadd.f32 %v1698_v14, %v1682_v56 }
 0x169   : > { %v798_v39 = vpop.f32.mrf.mxu2  ;;  %v882_v40 = vpop.f32.mrf.mxu3 }
 0x16a   : > { %v818_v42 = vadd.f32 %v798_v39, %v734_v38  ;;  %v716_v43 = vpop.f32.mrf.mxu1  ;;  %v968_v44 = vpop.f32.mrf.mxu0 }
 0x16b   : > { %v735_v53 = vadd.f32 %v716_v43, %v651_v50  ;;  %v399_v50 = vadd.f32 %v1706_v18, %v1688_v60 }
 0x16c   : > { %v902_v46 = vadd.f32 %v882_v40, %v818_v42  ;;  %v486_v40 = vadd.f32 %v1702_v16, %v397_v37 }
 0x16e   : > { %v986_v49 = vadd.f32 %v966_v34, %v902_v46  ;;  %v570_v14 = vadd.f32 %v1704_v17, %v486_v40 }
 0x170   : > { %v1081_v51 = vpack.c.bf16 %v986_v49, %v986_v49  ;;  %v998_v54 = vmul.f32 %v1731_v47, %v986_v49  ;;  %v654_v17 = vadd.f32 %v1700_v15, %v570_v14 }
 0x171   : > { %v800_v52 = vpop.f32.mrf.mxu2  ;;  %v884_v55 = vpop.f32.mrf.mxu3 }
 0x172   : > { %1090 = vst.msk [vmem:[%s1736_s21] sm:$0xf] %vm1089_vm1, %v1081_v51  ;;  %v819_v62 = vadd.f32 %v800_v52, %v735_v53  ;;  %v719_v63 = vpop.f32.mrf.mxu1  ;;  %v1007_v0 = vsel %vm1006_vm2, %v998_v54, 0.0  ;;  %v1031_v1 = vmul.f32 %v998_v54, %v998_v54  ;;  %v971_v2 = vpop.f32.mrf.mxu0  ;;  %v487_v53 = vadd.f32 %v1710_v20, %v399_v50 }
 0x173   : > { %1008 = vadd.xlane.f32.xlu1 %v1007_v0  ;;  %v736_v29 = vadd.f32 %v719_v63, %v652_v9  ;;  %v402_v20 = vadd.f32 %v1714_v22, %v1684_v57 }
 0x174   : > { %v903_v4 = vadd.f32 %v884_v55, %v819_v62  ;;  %v1039_v5 = vsel %vm1006_vm2, %v1031_v1, 0.0  ;;  %v571_v18 = vadd.f32 %v1712_v21, %v487_v53 }
 0x175   : > { %1040 = vadd.xlane.f32.xlu2 %v1039_v5  ;;  %v488_v3 = vadd.f32 %v1718_v24, %v402_v20 }
 0x176   : > { %v987_v8 = vadd.f32 %v968_v44, %v903_v4  ;;  %v655_v5 = vadd.f32 %v1708_v19, %v571_v18  ;;  %v404_v19 = vadd.f32 %v1722_v26, %v1690_v61 }
 0x178   : > { %v1082_v28 = vpack.c.bf16 %v987_v8, %v987_v8  ;;  %v999_v32 = vmul.f32 %v1731_v47, %v987_v8 }
 0x179   : > { %v803_v33 = vpop.f32.mrf.mxu2  ;;  %v887_v34 = vpop.f32.mrf.mxu3 }
 0x17a   : > { %1091 = vst.msk [vmem:[%s1736_s21 + $0x4] sm:$0xf] %vm1089_vm1, %v1082_v28  ;;  %v820_v36 = vadd.f32 %v803_v33, %v736_v29  ;;  %v721_v58 = vpop.f32.mrf.mxu1  ;;  %v1032_v10 = vmul.f32 %v999_v32, %v999_v32  ;;  %v1010_v38 = vsel %vm1006_vm2, %v999_v32, 0.0  ;;  %v973_v39 = vpop.f32.mrf.mxu0  ;;  %v572_v29 = vadd.f32 %v1720_v25, %v488_v3 }
 0x17b   : > { %v737_v43 = vadd.f32 %v721_v58, %v653_v41  ;;  %v489_v58 = vadd.f32 %v1726_v30, %v404_v19 }
 0x17c   : > { %v904_v12 = vadd.f32 %v887_v34, %v820_v36  ;;  %v1042_v7 = vsel %vm1006_vm2, %v1032_v10, 0.0  ;;  %v656_v37 = vadd.f32 %v1716_v23, %v572_v29 }
 0x17d   : > { %1043 = vadd.xlane.f32.xlu0 %v1042_v7  ;;  %1011 = vadd.xlane.f32.xlu2 %v1010_v38 }
 0x17e   : > { %v988_v13 = vadd.f32 %v971_v2, %v904_v12 }
 0x180   : > { %v1083_v42 = vpack.c.bf16 %v988_v13, %v988_v13  ;;  %v1000_v44 = vmul.f32 %v1731_v47, %v988_v13  ;;  %v573_v13 = vadd.f32 %v1728_v31, %v489_v58 }
 0x181   : > { %v805_v45 = vpop.f32.mrf.mxu2  ;;  %v889_v56 = vpop.f32.mrf.mxu3 }
 0x182   : > { %1092 = vst.msk [vmem:[%s1736_s21 + $0x8] sm:$0xf] %vm1089_vm1, %v1083_v42  ;;  %v821_v46 = vadd.f32 %v805_v45, %v737_v43  ;;  %v724_v48 = vpop.f32.mrf.mxu1  ;;  %v1033_v49 = vmul.f32 %v1000_v44, %v1000_v44  ;;  %v1013_v51 = vsel %vm1006_vm2, %v1000_v44, 0.0  ;;  %v976_v52 = vpop.f32.mrf.mxu0  ;;  %v657_v45 = vadd.f32 %v1724_v27, %v573_v13 }
 0x183   : > { %v738_v59 = vadd.f32 %v724_v48, %v654_v17 }
 0x184   : > { %v905_v16 = vadd.f32 %v889_v56, %v821_v46  ;;  %v1045_v11 = vsel %vm1006_vm2, %v1033_v49, 0.0 }
 0x185   : > { %1046 = vadd.xlane.f32.xlu1 %v1045_v11  ;;  %1014 = vadd.xlane.f32.xlu0 %v1013_v51 }
 0x186   : > { %v989_v54 = vadd.f32 %v973_v39, %v905_v16 }
 0x188   : > { %v1084_v55 = vpack.c.bf16 %v989_v54, %v989_v54  ;;  %v1001_v62 = vmul.f32 %v1731_v47, %v989_v54 }
 0x189   : > { %v808_v63 = vpop.f32.mrf.mxu2  ;;  %v892_v60 = vpop.f32.mrf.mxu3 }
 0x18a   : > { %1093 = vst.msk [vmem:[%s1736_s21 + $0xc] sm:$0xf] %vm1089_vm1, %v1084_v55  ;;  %v822_v0 = vadd.f32 %v808_v63, %v738_v59  ;;  %v726_v1 = vpop.f32.mrf.mxu1  ;;  %v1016_v2 = vsel %vm1006_vm2, %v1001_v62, 0.0  ;;  %v1034_v6 = vmul.f32 %v1001_v62, %v1001_v62  ;;  %v978_v9 = vpop.f32.mrf.mxu0 }
 0x18b   : > { %1017 = vadd.xlane.f32.xlu2 %v1016_v2  ;;  %v739_v21 = vadd.f32 %v726_v1, %v655_v5 }
 0x18c   : > { %v906_v15 = vadd.f32 %v892_v60, %v822_v0  ;;  %v1048_v22 = vsel %vm1006_vm2, %v1034_v6, 0.0 }
 0x18e   : > { %v990_v4 = vadd.f32 %v976_v52, %v906_v15 }
 0x190   : > { %v1085_v8 = vpack.c.bf16 %v990_v4, %v990_v4  ;;  %v1002_v28 = vmul.f32 %v1731_v47, %v990_v4 }
 0x191   : > { %v810_v32 = vpop.f32.mrf.mxu2  ;;  %v894_v33 = vpop.f32.mrf.mxu3 }
 0x192   : > { %1094 = vst.msk [vmem:[%s1736_s21 + $0x10] sm:$0xf] %vm1089_vm1, %v1085_v8  ;;  %v823_v57 = vadd.f32 %v810_v32, %v739_v21  ;;  %v1019_v24 = vsel %vm1006_vm2, %v1002_v28, 0.0  ;;  %v1035_v34 = vmul.f32 %v1002_v28, %v1002_v28  ;;  %v729_v35 = vpop.f32.mrf.mxu1  ;;  %v981_v42 = vpop.f32.mrf.mxu0 }
 0x193   : > { %1049 = vadd.xlane.f32.xlu2 %v1048_v22  ;;  %1020 = vadd.xlane.f32.xlu1 %v1019_v24  ;;  %v740_v7 = vadd.f32 %v729_v35, %v656_v37 }
 0x194   : > { %v907_v36 = vadd.f32 %v894_v33, %v823_v57  ;;  %v1051_v25 = vsel %vm1006_vm2, %v1035_v34, 0.0 }
 0x195   : > { %1052 = vadd.xlane.f32.xlu0 %v1051_v25 }
 0x196   : > { %v991_v10 = vadd.f32 %v978_v9, %v907_v36 }
 0x198   : > { %v1086_v12 = vpack.c.bf16 %v991_v10, %v991_v10  ;;  %v1003_v38 = vmul.f32 %v1731_v47, %v991_v10 }
 0x199   : > { %v813_v39 = vpop.f32.mrf.mxu2  ;;  %v897_v40 = vpop.f32.mrf.mxu3 }
 0x19a   : > { %1095 = vst.msk [vmem:[%s1736_s21 + $0x14] sm:$0xf] %vm1089_vm1, %v1086_v12  ;;  %v824_v61 = vadd.f32 %v813_v39, %v740_v7  ;;  %v1022_v26 = vsel %vm1006_vm2, %v1003_v38, 0.0  ;;  %v1036_v41 = vmul.f32 %v1003_v38, %v1003_v38  ;;  %v731_v43 = vpop.f32.mrf.mxu1  ;;  %v983_v53 = vpop.f32.mrf.mxu0 }
 0x19b   : > { %1023 = vadd.xlane.f32.xlu2 %v1022_v26  ;;  %v741_v14 = vadd.f32 %v731_v43, %v657_v45 }
 0x19c   : > { %v908_v30 = vadd.f32 %v897_v40, %v824_v61  ;;  %v1054_v23 = vsel %vm1006_vm2, %v1036_v41, 0.0 }
 0x19e   : > { %v992_v44 = vadd.f32 %v981_v42, %v908_v30 }
 0x1a0   : > { %v1087_v56 = vpack.c.bf16 %v992_v44, %v992_v44  ;;  %v1004_v31 = vmul.f32 %v1731_v47, %v992_v44 }
 0x1a1   : > { %v815_v46 = vpop.f32.mrf.mxu2  ;;  %v899_v16 = vpop.f32.mrf.mxu3 }
 0x1a2   : > { %1096 = vst.msk [vmem:[%s1736_s21 + $0x18] sm:$0xf] %vm1089_vm1, %v1087_v56  ;;  %v825_v48 = vadd.f32 %v815_v46, %v741_v14  ;;  %v1025_v49 = vsel %vm1006_vm2, %v1004_v31, 0.0  ;;  %v1037_v50 = vmul.f32 %v1004_v31, %v1004_v31 }
 0x1a3   : > { %1026 = vadd.xlane.f32.xlu0 %v1025_v49 }
 0x1a4   : > { %v909_v11 = vadd.f32 %v899_v16, %v825_v48  ;;  %v1057_v51 = vsel %vm1006_vm2, %v1037_v50, 0.0 }
 0x1a5   : > { %1058 = vadd.xlane.f32.xlu2 %v1057_v51 }
 0x1a6   : > { %v993_v27 = vadd.f32 %v983_v53, %v909_v11 }
 0x1a8   : > { %v1088_v54 = vpack.c.bf16 %v993_v27, %v993_v27  ;;  %v1005_v17 = vmul.f32 %v1731_v47, %v993_v27 }
 0x1aa   : > { %1097 = vst.msk [vmem:[%s1736_s21 + $0x1c] sm:$0xf] %vm1089_vm1, %v1088_v54  ;;  %v1028_v52 = vsel %vm1006_vm2, %v1005_v17, 0.0  ;;  %v1038_v55 = vmul.f32 %v1005_v17, %v1005_v17 }
 0x1ab   : > { %1029 = vadd.xlane.f32.xlu1 %v1028_v52 }
 0x1ac   : > { %v1060_v59 = vsel %vm1006_vm2, %v1038_v55, 0.0 }
 0x1ad   : > { %1061 = vadd.xlane.f32.xlu0 %v1060_v59 }
 0x1b3   : > { %1055 = vadd.xlane.f32.xlu1 %v1054_v23 }
 0x1e6   : > { %v1009_v47 = vpop.xlane.xlu1 %1008 }
 0x1e8   : > { %v1041_v62 = vpop.xlane.xlu2 %1040 }
 0x1e9   : > { %v1064_v63 = vsel %vm1063_vm3, %v1009_v47, %v1041_v62 }
 0x1ea   : > { %1073 = vst.msk [vmem:[%s1806_s25] sm:$0xff] %vm1072_vm4, %v1064_v63 }
 0x1f0   : > { %v1044_v60 = vpop.xlane.xlu0 %1043  ;;  %v1012_v18 = vpop.xlane.xlu2 %1011 }
 0x1f1   : > { %v1065_v0 = vsel %vm1063_vm3, %v1012_v18, %v1044_v60 }
 0x1f2   : > { %1074 = vst.msk [vmem:[%s1806_s25 + $0x8] sm:$0xff] %vm1072_vm4, %v1065_v0 }
 0x1f8   : > { %v1047_v1 = vpop.xlane.xlu1 %1046  ;;  %v1015_v2 = vpop.xlane.xlu0 %1014 }
 0x1f9   : > { %v1066_v20 = vsel %vm1063_vm3, %v1015_v2, %v1047_v1 }
 0x1fa   : > { %1075 = vst.msk [vmem:[%s1806_s25 + $0x10] sm:$0xff] %vm1072_vm4, %v1066_v20 }
 0x1fe   : > { %v1018_v15 = vpop.xlane.xlu2 %1017 }
 0x206   : > { %v1050_v3 = vpop.xlane.xlu2 %1049  ;;  %v1021_v5 = vpop.xlane.xlu1 %1020 }
 0x207   : > { %v1067_v4 = vsel %vm1063_vm3, %v1018_v15, %v1050_v3 }
 0x208   : > { %1076 = vst.msk [vmem:[%s1806_s25 + $0x18] sm:$0xff] %vm1072_vm4, %v1067_v4  ;;  %v1053_v6 = vpop.xlane.xlu0 %1052 }
 0x209   : > { %v1068_v8 = vsel %vm1063_vm3, %v1021_v5, %v1053_v6 }
 0x20a   : > { %1077 = vst.msk [vmem:[%s1806_s25 + $0x20] sm:$0xff] %vm1072_vm4, %v1068_v8 }
 0x20e   : > { %v1024_v21 = vpop.xlane.xlu2 %1023 }
 0x216   : > { %v1027_v9 = vpop.xlane.xlu0 %1026 }
 0x218   : > { %v1059_v28 = vpop.xlane.xlu2 %1058 }
 0x219   : > { %v1070_v29 = vsel %vm1063_vm3, %v1027_v9, %v1059_v28 }
 0x21a   : > { %1079 = vst.msk [vmem:[%s1806_s25 + $0x30] sm:$0xff] %vm1072_vm4, %v1070_v29 }
 0x21e   : > { %v1030_v32 = vpop.xlane.xlu1 %1029 }
 0x220   : > { %v1062_v33 = vpop.xlane.xlu0 %1061 }
 0x221   : > { %v1071_v57 = vsel %vm1063_vm3, %v1030_v32, %v1062_v33 }
 0x222   : > { %1080 = vst.msk [vmem:[%s1806_s25 + $0x38] sm:$0xff] %vm1072_vm4, %v1071_v57 }
 0x226   : > { %v1056_v22 = vpop.xlane.xlu1 %1055 }
 0x227   : > { %v1069_v24 = vsel %vm1063_vm3, %v1024_v21, %v1056_v22 }
 0x228   : > { %1078 = vst.msk [vmem:[%s1806_s25 + $0x28] sm:$0xff] %vm1072_vm4, %v1069_v24 }
 0x229 PF: > { %s17_s15 = sadd.s32 1, %s1574_s15  }
 0x22a   : > { %p14_p7 = scmp.ge.s32.totalorder %s17_s15, 4  }
 0x22c   :  { %16 = sbr.rel (!%p14_p7) target bundleno = 2 (0x2), region = 91 }
 0x231   :  { %1135 = vsyncpa [#allocation3], 1 }
 0x232   :  { %1137 = vsyncpa [#allocation3 + $0x1], 1 }
 0x233   :  { %1138 = vsyncpa [#allocation5], 1 }

// kernel: _lambda_.5
= control target key start
LH: loop header
LB: loop body
LE: loop exit
PB: predicated region body
PF: predicated region fallthrough
CT: control target
= control target key end

     0   :  { %10 = vsyncpa [#allocation3], 0  ;;  %s1611_s0 = inlined_call_operand.hbm [shape: bf16[9,32,16], index: 0, kind: input, shape index: {}]   ;;  %s1612_s1 = inlined_call_operand.vmem [shape: bf16[2,16,384], index: 1, kind: input, shape index: {}]   ;;  %s1613_s2 = inlined_call_operand.hbm [shape: f32[1,256], index: 2, kind: input, shape index: {}]   ;;  %s1614_s3 = inlined_call_operand.vmem [shape: bf16[2,32,256], index: 3, kind: output, shape index: {0}]   ;;  %s1615_s4 = inlined_call_operand.vmem [shape: f32[2,32,2], index: 4, kind: output, shape index: {1}]  }
   0x1   :  { %11 = vsyncpa [#allocation5], 0  ;;  %s1446_s15 = smov 0  }
   0x2 LB: > { %s153_s18 = sshll.u32 %s1611_s0, 4  ;;  %s1122_s19 = sadd.s32 4294967295, %s1407_s15   ;;  %s1407_s15 = sphi %s1446_s15, %s17_s15   ;;  %s154_s18 = int_to_ptr.hbm [resolvable:$true] %s153_s18 }
   0x3   : > { %p1124_p0 = scmp.ge.s32.totalorder %s1407_s15, 1  ;;  %p142_p1 = scmp.lt.s32.totalorder %s1407_s15, 3 }
   0x4   : > { %p1309_p2 = scmp.eq.s32.totalorder %s1122_s19, 0  ;;  %s1409_s21 = smov [#allocation2]  }
   0x5   : > { %p1457_p3 = pnand %p1124_p0, %p142_p1  ;;  %s155_s22 = sshll.u32 %s1409_s21, 4  ;;  %s156_s22 = int_to_ptr.vmem [resolvable:$true] %s155_s22 }
   0x6   : > { %s168_s25 = sshll.u32 %s1613_s2, 4  ;;  %s1410_s26 = smov [#allocation4]   ;;  %s169_s25 = int_to_ptr.hbm [resolvable:$true] %s168_s25 }
   0x7   : > { %p1302_p4 = pneg %p1457_p3  ;;  %s170_s27 = sshll.u32 %s1410_s26, 4  ;;  %s171_s27 = int_to_ptr.vmem [resolvable:$true] %s170_s27 }
   0x8   : > { %s1411_s28 = smov 64   ;;  %s1412_s29 = smov 4  }
   0x9   : > { %p1303_p5 = pnand %p1309_p2, %p1302_p4  ;;  %191 = sbr.rel (%p1457_p3) target bundleno = 558 (0x22e), region = 32 }
   0xb   : > { %1305 = dma.hbm_to_vmem [thread:$0]  (!%p1303_p5), %s154_s18, 2304, %s156_s22, [#allocation3], %s1411_s28, %s1411_s28, %s1412_s29  }
   0xc   : > { %1308 = dma.hbm_to_vmem [thread:$0]  (!%p1303_p5), %s169_s25, 32, %s171_s27, [#allocation5]  }
   0xe   : > { %1398 = dma.done.wait (%p1309_p2), [#allocation3], 2304  }
   0xf   : > { %1400 = vsyncadd (%p1309_p2), [#allocation3], 4294964992 }
  0x10   : > { %1402 = dma.done.wait (%p1309_p2), [#allocation5], 32  }
  0x11   : > { %1404 = vsyncadd (%p1309_p2), [#allocation5], 4294967264  ;;  %p228_p6 = scmp.lt.s32.totalorder %s1122_s19, 1  ;;  %s1413_s8 = smov 127   ;;  %vm288_vm0 = vcmask 1039360   ;;  %v1275_v23 = vld [vmem:[#allocation2 + $0x10] sm:$0xff] }
  0x12   : > { %s1414_s9 = smov 126   ;;  %s1415_s10 = smov 112   ;;  %v1276_v24 = vld [vmem:[#allocation2 + $0x18] sm:$0xff]  ;;  %vm423_vm1 = vcmask 1031168   ;;  %vm293_vm2 = vcmask 130048   ;;  %vm501_vm3 = vcmask 916480  }
  0x13   : > { %s1618_s19 = smov (!%p228_p6, %s1122_s19), 1  ;;  %s1416_s11 = smov 111   ;;  %vm579_vm4 = vcmask 908288   ;;  %v1270_v34 = vld [vmem:[#allocation2] sm:$0xff]  ;;  %vm657_vm5 = vcmask 900096   ;;  %vm735_vm6 = vcmask 785408  }
  0x14   : > { %s1293_s30 = smul.u32 24, %s1618_s19  ;;  %s1417_s12 = smov 110   ;;  %v1277_v35 = vld [vmem:[#allocation2 + $0x20] sm:$0xff]  ;;  %v1271_v46 = vld [vmem:[#allocation2 + $0x8] sm:$0xff]  ;;  %v1279_v54 = vld [vmem:[#allocation2 + $0x30] sm:$0xff]  ;;  %vm813_vm7 = vcmask 777216  }
  0x15   : > { %s1418_s13 = smov 96   ;;  %s1419_s14 = smov 95   ;;  %v1278_v47 = vld [vmem:[#allocation2 + $0x28] sm:$0xff]  ;;  %v1281_v55 = vld [vmem:[#allocation2 + $0x40] sm:$0xff]  ;;  %vm891_vm8 = vcmask 769024   ;;  %v1280_v63 = vld [vmem:[#allocation2 + $0x38] sm:$0xff] }
  0x16   : > { %s1479_s7 = scalar_lea.vmem %s1612_s1, %s1293_s30  ;;  %s1420_s16 = smov 94   ;;  %vm994_vm9 = vcmask 7168   ;;  %vm999_vm10 = vcmask 15360  }
  0x17   : > { %v1146_v0 = vld [vmem:[%s1479_s7] sm:$0xf]  ;;  %v1273_v1 = vld [vmem:[%s1479_s7 + $0x8] sm:$0xf0]  ;;  %v1154_v2 = vld [vmem:[%s1479_s7 + $0x8] sm:$0xf] }
  0x18   : > { %v1147_v3 = vor.u32 %v1273_v1, %v1146_v0  ;;  %v1274_v4 = vld [vmem:[%s1479_s7 + $0x10] sm:$0xf0]  ;;  %v1272_v5 = vld [vmem:[%s1479_s7 + $0x4] sm:$0xf]  ;;  %v1148_v6 = vld [vmem:[%s1479_s7 + $0xc] sm:$0xf0] }
  0x19   : > { %v1155_v7 = vor.u32 %v1274_v4, %v1154_v2  ;;  %v1151_v8 = vor.u32 %v1272_v5, %v1148_v6  ;;  %v1170_v13 = vld [vmem:[%s1479_s7] sm:$0xf]  ;;  %v1269_v14 = vld [vmem:[%s1479_s7 + $0x8] sm:$0xf0]  ;;  %v1268_v15 = vld [vmem:[%s1479_s7 + $0x4] sm:$0xf] }
  0x1a   : > { %282 = vrot.lane.b32.xlu0 %v1147_v3, %s1413_s8  ;;  %v1172_v16 = vld [vmem:[%s1479_s7 + $0xc] sm:$0xf0]  ;;  %v1171_v18 = vor.u32 %v1269_v14, %v1170_v13  ;;  %v1282_v0 = vld [vmem:[#allocation2 + $0x48] sm:$0xff]  ;;  %v1285_v2 = vld [vmem:[#allocation2 + $0x60] sm:$0xff]  ;;  %s1266_s17 = sshll.u32 %s1618_s19, 5 }
  0x1b   : > { %286 = vrot.lane.b32.xlu1 %v1155_v7, %s1413_s8  ;;  %419 = vrot.lane.b32.xlu2 %v1151_v8, %s1414_s9  ;;  %v1175_v19 = vor.u32 %v1268_v15, %v1172_v16  ;;  %v1283_v1 = vld [vmem:[#allocation2 + $0x50] sm:$0xff]  ;;  %v1286_v4 = vld [vmem:[#allocation2 + $0x68] sm:$0xff]  ;;  %v1289_v6 = vld [vmem:[#allocation2 + $0x80] sm:$0xff]  ;;  %s1570_s21 = scalar_lea.vmem %s1614_s3, %s1266_s17  ;;  %s242_s24 = scalar_lea.vmem %s1615_s4, %s1266_s17 }
  0x1c   : > { %v1287_v5 = vld [vmem:[#allocation2 + $0x70] sm:$0xff] }
  0x22   : > { %284 = vrot.lane.b32.xlu0 %v1151_v8, %s1413_s8 }
  0x23   : > { %417 = vrot.lane.b32.xlu1 %v1147_v3, %s1414_s9  ;;  %421 = vrot.lane.b32.xlu2 %v1155_v7, %s1414_s9 }
  0x2a   : > { %495 = vrot.lane.b32.xlu0 %v1147_v3, %s1415_s10 }
  0x2b   : > { %497 = vrot.lane.b32.xlu1 %v1151_v8, %s1415_s10  ;;  %499 = vrot.lane.b32.xlu2 %v1155_v7, %s1415_s10 }
  0x32   : > { %573 = vrot.lane.b32.xlu0 %v1147_v3, %s1416_s11 }
  0x33   : > { %575 = vrot.lane.b32.xlu1 %v1151_v8, %s1416_s11  ;;  %577 = vrot.lane.b32.xlu2 %v1155_v7, %s1416_s11 }
  0x3a   : > { %651 = vrot.lane.b32.xlu0 %v1147_v3, %s1417_s12 }
  0x3b   : > { %653 = vrot.lane.b32.xlu1 %v1151_v8, %s1417_s12  ;;  %655 = vrot.lane.b32.xlu2 %v1155_v7, %s1417_s12 }
  0x42   : > { %729 = vrot.lane.b32.xlu0 %v1147_v3, %s1418_s13 }
  0x43   : > { %731 = vrot.lane.b32.xlu1 %v1151_v8, %s1418_s13  ;;  %733 = vrot.lane.b32.xlu2 %v1155_v7, %s1418_s13 }
  0x4a   : > { %807 = vrot.lane.b32.xlu0 %v1147_v3, %s1419_s14 }
  0x4b   : > { %809 = vrot.lane.b32.xlu1 %v1151_v8, %s1419_s14  ;;  %811 = vrot.lane.b32.xlu2 %v1155_v7, %s1419_s14 }
  0x52   : > { %885 = vrot.lane.b32.xlu0 %v1147_v3, %s1420_s16  ;;  %v1284_v3 = vld [vmem:[#allocation2 + $0x58] sm:$0xff] }
  0x53   : > { %887 = vrot.lane.b32.xlu1 %v1151_v8, %s1420_s16  ;;  %889 = vrot.lane.b32.xlu2 %v1155_v7, %s1420_s16  ;;  %v1288_v7 = vld [vmem:[#allocation2 + $0x78] sm:$0xff]  ;;  %v1290_v8 = vld [vmem:[#allocation2 + $0x88] sm:$0xff] }
  0x75   : > { %v420_v9 = vpop.permute.xlu2 %419 }
  0x7d   : > { %v422_v12 = vpop.permute.xlu2 %421 }
  0x7e   : > { %v425_v27 = vsel %vm423_vm1, %v420_v9, %v422_v12 }
  0x85   : > { %v500_v25 = vpop.permute.xlu2 %499 }
  0x8c   : > { %v283_v10 = vpop.permute.xlu0 %282 }
  0x8d   : > { %v287_v11 = vpop.permute.xlu1 %286  ;;  %v578_v32 = vpop.permute.xlu2 %577 }
  0x94   : > { %v285_v17 = vpop.permute.xlu0 %284 }
  0x95   : > { %v289_v20 = vsel %vm288_vm0, %v283_v10, %v285_v17  ;;  %v290_v21 = vsel %vm288_vm0, %v285_v17, %v287_v11  ;;  %v418_v22 = vpop.permute.xlu1 %417  ;;  %v656_v39 = vpop.permute.xlu2 %655 }
  0x96   : > { %307 = vmatpush.bf16.msra.mxu0 %v289_v20  ;;  %1291 = vmatpush.bf16.msra.mxu2 %v289_v20  ;;  %v424_v26 = vsel %vm423_vm1, %v418_v22, %v420_v9 }
  0x97   : > { %326 = vmatpush.bf16.msra.mxu1 %v290_v21  ;;  %1292 = vmatpush.bf16.msra.mxu3 %v290_v21 }
  0x99   : > { %1156 = vmatmul.msk.bf16.vlgmr.msra.gmra.mxu0 %vm293_vm2, %v1275_v23  ;;  %1157 = vmatmul.msk.bf16.vlgmr.msra.gmra.mxu2 %vm293_vm2, %v1276_v24 }
  0x9a   : > { %371 = vmatpush.bf16.msrb.mxu2 %v1171_v18  ;;  %1158 = vmatmul.msk.bf16.vlgmr.msra.gmra.mxu1 %vm293_vm2, %v1275_v23 }
  0x9b   : > { %390 = vmatpush.bf16.msrb.mxu3 %v1175_v19  ;;  %441 = vmatpush.bf16.msrb.mxu0 %v424_v26 }
  0x9c   : > { %1159 = vmatmul.msk.bf16.vlgmr.msra.gmra.mxu3 %vm293_vm2, %v1276_v24  ;;  %460 = vmatpush.bf16.msrb.mxu1 %v425_v27  ;;  %v496_v28 = vpop.permute.xlu0 %495 }
  0x9d   : > { %v498_v29 = vpop.permute.xlu1 %497  ;;  %v734_v44 = vpop.permute.xlu2 %733 }
  0x9e   : > { %v503_v30 = vsel %vm501_vm3, %v498_v29, %v500_v25  ;;  %v502_v31 = vsel %vm501_vm3, %v496_v28, %v498_v29 }
  0x9f   : > { %519 = vmatpush.bf16.msra.mxu2 %v502_v31  ;;  %538 = vmatpush.bf16.msra.mxu3 %v503_v30 }
  0xa4   : > { %v574_v33 = vpop.permute.xlu0 %573 }
  0xa5   : > { %v576_v36 = vpop.permute.xlu1 %575  ;;  %v812_v52 = vpop.permute.xlu2 %811 }
  0xa6   : > { %v581_v37 = vsel %vm579_vm4, %v576_v36, %v578_v32  ;;  %v580_v38 = vsel %vm579_vm4, %v574_v33, %v576_v36 }
  0xa7   : > { %597 = vmatpush.bf16.msra.mxu0 %v580_v38  ;;  %616 = vmatpush.bf16.msra.mxu1 %v581_v37 }
  0xa9   : > { %1176 = vmatmul.msk.bf16.vlgmr.msrb.gmra.mxu2 %vm293_vm2, %v1270_v34  ;;  %1188 = vmatmul.msk.bf16.vlgmr.msrb.gmra.mxu0 %vm293_vm2, %v1277_v35 }
  0xaa   : > { %1190 = vmatmul.msk.bf16.vlgmr.msrb.gmra.mxu1 %vm293_vm2, %v1277_v35 }
  0xac   : > { %1178 = vmatmul.msk.bf16.vlgmr.msrb.gmra.mxu3 %vm293_vm2, %v1270_v34  ;;  %v652_v40 = vpop.permute.xlu0 %651 }
  0xad   : > { %v654_v41 = vpop.permute.xlu1 %653  ;;  %v890_v59 = vpop.permute.xlu2 %889 }
  0xae   : > { %v659_v42 = vsel %vm657_vm5, %v654_v41, %v656_v39  ;;  %v658_v43 = vsel %vm657_vm5, %v652_v40, %v654_v41 }
  0xaf   : > { %675 = vmatpush.bf16.msrb.mxu2 %v658_v43  ;;  %694 = vmatpush.bf16.msrb.mxu3 %v659_v42 }
  0xb4   : > { %v730_v45 = vpop.permute.xlu0 %729 }
  0xb5   : > { %v732_v48 = vpop.permute.xlu1 %731 }
  0xb6   : > { %v737_v49 = vsel %vm735_vm6, %v732_v48, %v734_v44  ;;  %v736_v50 = vsel %vm735_vm6, %v730_v45, %v732_v48 }
  0xb7   : > { %753 = vmatpush.bf16.msrb.mxu0 %v736_v50  ;;  %772 = vmatpush.bf16.msrb.mxu1 %v737_v49 }
  0xb9   : > { %1177 = vmatmul.msk.bf16.gmra.mxu2 %vm293_vm2, %v1271_v46  ;;  %1189 = vmatmul.msk.bf16.gmra.mxu0 %vm293_vm2, %v1278_v47 }
  0xba   : > { %1191 = vmatmul.msk.bf16.gmra.mxu1 %vm293_vm2, %v1278_v47 }
  0xbc   : > { %1179 = vmatmul.msk.bf16.gmra.mxu3 %vm293_vm2, %v1271_v46  ;;  %v808_v53 = vpop.permute.xlu0 %807 }
  0xbd   : > { %v810_v51 = vpop.permute.xlu1 %809 }
  0xbe   : > { %v815_v56 = vsel %vm813_vm7, %v810_v51, %v812_v52  ;;  %v814_v57 = vsel %vm813_vm7, %v808_v53, %v810_v51 }
  0xc4   : > { %v886_v61 = vpop.permute.xlu0 %885 }
  0xc5   : > { %v888_v58 = vpop.permute.xlu1 %887 }
  0xc6   : > { %v893_v60 = vsel %vm891_vm8, %v888_v58, %v890_v59  ;;  %v892_v62 = vsel %vm891_vm8, %v886_v61, %v888_v58 }
  0xc9   : > { %1200 = vmatmul.msk.bf16.vlgmr.msra.gmra.mxu2 %vm293_vm2, %v1279_v54  ;;  %1212 = vmatmul.msk.bf16.vlgmr.msra.gmra.mxu0 %vm293_vm2, %v1281_v55 }
  0xca   : > { %1214 = vmatmul.msk.bf16.vlgmr.msra.gmra.mxu1 %vm293_vm2, %v1281_v55  ;;  %831 = vmatpush.bf16.msra.mxu2 %v814_v57 }
  0xcb   : > { %928 = vmatpush.bf16.msra.mxu1 %v893_v60  ;;  %909 = vmatpush.bf16.msra.mxu0 %v892_v62 }
  0xcc   : > { %1202 = vmatmul.msk.bf16.vlgmr.msra.gmra.mxu3 %vm293_vm2, %v1279_v54 }
  0xcd   : > { %850 = vmatpush.bf16.msra.mxu3 %v815_v56 }
  0xd9   : > { %1201 = vmatmul.msk.bf16.gmra.mxu2 %vm293_vm2, %v1280_v63  ;;  %1213 = vmatmul.msk.bf16.gmra.mxu0 %vm293_vm2, %v1282_v0 }
  0xda   : > { %1215 = vmatmul.msk.bf16.gmra.mxu1 %vm293_vm2, %v1282_v0 }
  0xdc   : > { %1203 = vmatmul.msk.bf16.gmra.mxu3 %vm293_vm2, %v1280_v63 }
  0xe9   : > { %1224 = vmatmul.msk.bf16.vlgmr.msrb.gmra.mxu2 %vm293_vm2, %v1283_v1  ;;  %1236 = vmatmul.msk.bf16.vlgmr.msrb.gmra.mxu0 %vm293_vm2, %v1285_v2 }
  0xea   : > { %1238 = vmatmul.msk.bf16.vlgmr.msrb.gmra.mxu1 %vm293_vm2, %v1285_v2 }
  0xec   : > { %1226 = vmatmul.msk.bf16.vlgmr.msrb.gmra.mxu3 %vm293_vm2, %v1283_v1 }
  0xf9   : > { %1225 = vmatmul.msk.bf16.gmra.mxu2 %vm293_vm2, %v1284_v3  ;;  %1237 = vmatmul.msk.bf16.gmra.mxu0 %vm293_vm2, %v1286_v4 }
  0xfa   : > { %1239 = vmatmul.msk.bf16.gmra.mxu1 %vm293_vm2, %v1286_v4 }
  0xfc   : > { %1227 = vmatmul.msk.bf16.gmra.mxu3 %vm293_vm2, %v1284_v3 }
 0x109   : > { %1248 = vmatmul.msk.bf16.vlgmr.msra.gmra.mxu2 %vm293_vm2, %v1287_v5  ;;  %1260 = vmatmul.msk.bf16.vlgmr.msra.gmra.mxu0 %vm293_vm2, %v1289_v6 }
 0x10a   : > { %1262 = vmatmul.msk.bf16.vlgmr.msra.gmra.mxu1 %vm293_vm2, %v1289_v6 }
 0x10c   : > { %1250 = vmatmul.msk.bf16.vlgmr.msra.gmra.mxu3 %vm293_vm2, %v1287_v5 }
 0x116   : > { %v309_v9 = vpop.f32.mrf.mxu0 }
 0x117   : > { %v328_v10 = vpop.f32.mrf.mxu1 }
 0x119   : > { %1249 = vmatmul.msk.bf16.gmra.mxu2 %vm293_vm2, %v1288_v7  ;;  %1261 = vmatmul.msk.bf16.gmra.mxu0 %vm293_vm2, %v1290_v8 }
 0x11a   : > { %1263 = vmatmul.msk.bf16.gmra.mxu1 %vm293_vm2, %v1290_v8 }
 0x11c   : > { %1251 = vmatmul.msk.bf16.gmra.mxu3 %vm293_vm2, %v1288_v7  ;;  %v314_v11 = vpop.f32.mrf.mxu2 }
 0x11e   : > { %v311_v13 = vpop.f32.mrf.mxu0 }
 0x11f   : > { %v333_v12 = vpop.f32.mrf.mxu3  ;;  %v330_v14 = vpop.f32.mrf.mxu1 }
 0x124   : > { %v316_v15 = vpop.f32.mrf.mxu2 }
 0x126   : > { %v443_v17 = vpop.f32.mrf.mxu0 }
 0x127   : > { %v335_v16 = vpop.f32.mrf.mxu3  ;;  %v462_v18 = vpop.f32.mrf.mxu1 }
 0x12c   : > { %v373_v19 = vpop.f32.mrf.mxu2 }
 0x12d   : > { %v374_v20 = vadd.f32 %v373_v19, %v309_v9 }
 0x12e   : > { %v445_v23 = vpop.f32.mrf.mxu0 }
 0x12f   : > { %v392_v21 = vpop.f32.mrf.mxu3  ;;  %v464_v24 = vpop.f32.mrf.mxu1  ;;  %v472_v25 = vadd.f32 %v443_v17, %v374_v20 }
 0x130   : > { %v393_v22 = vadd.f32 %v392_v21, %v328_v10 }
 0x132   : > { %v473_v26 = vadd.f32 %v462_v18, %v393_v22 }
 0x134   : > { %v375_v27 = vpop.f32.mrf.mxu2 }
 0x135   : > { %v376_v28 = vadd.f32 %v375_v27, %v311_v13 }
 0x136   : > { %v448_v31 = vpop.f32.mrf.mxu0 }
 0x137   : > { %v394_v29 = vpop.f32.mrf.mxu3  ;;  %v467_v32 = vpop.f32.mrf.mxu1  ;;  %v474_v33 = vadd.f32 %v445_v23, %v376_v28 }
 0x138   : > { %v395_v30 = vadd.f32 %v394_v29, %v330_v14  ;;  %v948_v29 = vld [vmem:[#allocation4] sm:$0x3] }
 0x13a   : > { %v475_v34 = vadd.f32 %v464_v24, %v395_v30 }
 0x13c   : > { %v378_v35 = vpop.f32.mrf.mxu2 }
 0x13d   : > { %v379_v36 = vadd.f32 %v378_v35, %v314_v11 }
 0x13e   : > { %v450_v39 = vpop.f32.mrf.mxu0 }
 0x13f   : > { %v397_v37 = vpop.f32.mrf.mxu3  ;;  %v469_v40 = vpop.f32.mrf.mxu1  ;;  %v1527_v41 = vadd.f32 %v448_v31, %v379_v36  ;;  %v1559_v36 = vperm.slane %v948_v29, 0 }
 0x140   : > { %v398_v38 = vadd.f32 %v397_v37, %v333_v12 }
 0x142   : > { %v1529_v42 = vadd.f32 %v467_v32, %v398_v38 }
 0x144   : > { %v380_v43 = vpop.f32.mrf.mxu2 }
 0x145   : > { %v381_v44 = vadd.f32 %v380_v43, %v316_v15 }
 0x146   : > { %v599_v47 = vpop.f32.mrf.mxu0 }
 0x147   : > { %v399_v45 = vpop.f32.mrf.mxu3  ;;  %v618_v48 = vpop.f32.mrf.mxu1  ;;  %v1531_v49 = vadd.f32 %v450_v39, %v381_v44  ;;  %v1562_v39 = vperm.slane %v948_v29, 1 }
 0x148   : > { %v400_v46 = vadd.f32 %v399_v45, %v335_v16 }
 0x14a   : > { %v1533_v50 = vadd.f32 %v469_v40, %v400_v46 }
 0x14c   : > { %v521_v51 = vpop.f32.mrf.mxu2 }
 0x14d   : > { %v550_v15 = vadd.f32 %v521_v51, %v472_v25 }
 0x14e   : > { %v601_v53 = vpop.f32.mrf.mxu0 }
 0x14f   : > { %v540_v52 = vpop.f32.mrf.mxu3  ;;  %v620_v54 = vpop.f32.mrf.mxu1  ;;  %v628_v18 = vadd.f32 %v599_v47, %v550_v15 }
 0x150   : > { %v551_v16 = vadd.f32 %v540_v52, %v473_v26 }
 0x152   : > { %v629_v20 = vadd.f32 %v618_v48, %v551_v16 }
 0x154   : > { %v523_v55 = vpop.f32.mrf.mxu2 }
 0x155   : > { %v552_v24 = vadd.f32 %v523_v55, %v474_v33 }
 0x156   : > { %v1535_v57 = vpop.f32.mrf.mxu0 }
 0x157   : > { %v542_v56 = vpop.f32.mrf.mxu3  ;;  %v1537_v58 = vpop.f32.mrf.mxu1  ;;  %v630_v25 = vadd.f32 %v601_v53, %v552_v24 }
 0x158   : > { %v553_v28 = vadd.f32 %v542_v56, %v475_v34 }
 0x15a   : > { %v631_v37 = vadd.f32 %v620_v54, %v553_v28 }
 0x15c   : > { %v526_v59 = vpop.f32.mrf.mxu2 }
 0x15d   : > { %v554_v34 = vadd.f32 %v526_v59, %v1527_v41 }
 0x15e   : > { %v1539_v61 = vpop.f32.mrf.mxu0 }
 0x15f   : > { %v545_v60 = vpop.f32.mrf.mxu3  ;;  %v1541_v62 = vpop.f32.mrf.mxu1 }
 0x160   : > { %v555_v46 = vadd.f32 %v545_v60, %v1529_v42 }
 0x164   : > { %v1543_v63 = vpop.f32.mrf.mxu2 }
 0x165   : > { %v556_v16 = vadd.f32 %v1543_v63, %v1531_v49 }
 0x166   : > { %v755_v1 = vpop.f32.mrf.mxu0 }
 0x167   : > { %v1545_v0 = vpop.f32.mrf.mxu3  ;;  %v774_v2 = vpop.f32.mrf.mxu1  ;;  %v634_v49 = vadd.f32 %v1539_v61, %v556_v16 }
 0x16c   : > { %v677_v3 = vpop.f32.mrf.mxu2 }
 0x16d   : > { %v706_v21 = vadd.f32 %v677_v3, %v628_v18 }
 0x16e   : > { %v757_v5 = vpop.f32.mrf.mxu0 }
 0x16f   : > { %v696_v4 = vpop.f32.mrf.mxu3  ;;  %v776_v6 = vpop.f32.mrf.mxu1  ;;  %v784_v30 = vadd.f32 %v755_v1, %v706_v21  ;;  %v632_v1 = vadd.f32 %v1535_v57, %v554_v34  ;;  %v557_v57 = vadd.f32 %v1545_v0, %v1533_v50 }
 0x170   : > { %v707_v22 = vadd.f32 %v696_v4, %v629_v20  ;;  %v633_v4 = vadd.f32 %v1537_v58, %v555_v46 }
 0x171   : > { %v635_v50 = vadd.f32 %v1541_v62, %v557_v57 }
 0x172   : > { %v785_v32 = vadd.f32 %v774_v2, %v707_v22 }
 0x174   : > { %v679_v7 = vpop.f32.mrf.mxu2 }
 0x175   : > { %v708_v40 = vadd.f32 %v679_v7, %v630_v25 }
 0x176   : > { %v1547_v9 = vpop.f32.mrf.mxu0 }
 0x177   : > { %v698_v8 = vpop.f32.mrf.mxu3  ;;  %v1549_v10 = vpop.f32.mrf.mxu1  ;;  %v786_v53 = vadd.f32 %v757_v5, %v708_v40 }
 0x178   : > { %v709_v33 = vadd.f32 %v698_v8, %v631_v37 }
 0x17a   : > { %v787_v55 = vadd.f32 %v776_v6, %v709_v33 }
 0x17c   : > { %v682_v11 = vpop.f32.mrf.mxu2 }
 0x17d   : > { %v710_v7 = vadd.f32 %v682_v11, %v632_v1 }
 0x17e   : > { %v1551_v13 = vpop.f32.mrf.mxu0 }
 0x17f   : > { %v701_v12 = vpop.f32.mrf.mxu3  ;;  %v1553_v14 = vpop.f32.mrf.mxu1  ;;  %v788_v58 = vadd.f32 %v1547_v9, %v710_v7 }
 0x180   : > { %v711_v15 = vadd.f32 %v701_v12, %v633_v4 }
 0x182   : > { %v789_v12 = vadd.f32 %v1549_v10, %v711_v15 }
 0x184   : > { %v1555_v17 = vpop.f32.mrf.mxu2 }
 0x185   : > { %v712_v29 = vadd.f32 %v1555_v17, %v634_v49 }
 0x186   : > { %v911_v23 = vpop.f32.mrf.mxu0 }
 0x187   : > { %v1557_v19 = vpop.f32.mrf.mxu3  ;;  %v930_v27 = vpop.f32.mrf.mxu1 }
 0x18c   : > { %v833_v31 = vpop.f32.mrf.mxu2 }
 0x18d   : > { %v862_v26 = vadd.f32 %v833_v31, %v784_v30  ;;  %v713_v31 = vadd.f32 %v1557_v19, %v635_v50 }
 0x18e   : > { %v913_v48 = vpop.f32.mrf.mxu0 }
 0x18f   : > { %v852_v35 = vpop.f32.mrf.mxu3  ;;  %v940_v43 = vadd.f32 %v911_v23, %v862_v26  ;;  %v932_v52 = vpop.f32.mrf.mxu1  ;;  %v790_v26 = vadd.f32 %v1551_v13, %v712_v29  ;;  %v791_v37 = vadd.f32 %v1553_v14, %v713_v31 }
 0x190   : > { %v863_v38 = vadd.f32 %v852_v35, %v785_v32 }
 0x191   : > { %v954_v45 = vmul.f32 %v1559_v36, %v940_v43 }
 0x192   : > { %v941_v44 = vadd.f32 %v930_v27, %v863_v38 }
 0x193   : > { %v974_v54 = vmul.f32 %v954_v45, %v954_v45 }
 0x194   : > { %v1004_v47 = vpack.c.bf16 %v941_v44, %v940_v43  ;;  %v955_v51 = vmul.f32 %v1562_v39, %v941_v44  ;;  %v835_v41 = vpop.f32.mrf.mxu2 }
 0x195   : > { %v864_v2 = vadd.f32 %v835_v41, %v786_v53 }
 0x196   : > { %1008 = vst [vmem:[%s1570_s21] sm:$0xff] %v1004_v47  ;;  %v962_v56 = vadd.f32 %v955_v51, %v954_v45  ;;  %v975_v59 = vmul.f32 %v955_v51, %v955_v51  ;;  %v916_v22 = vpop.f32.mrf.mxu0 }
 0x197   : > { %v854_v3 = vpop.f32.mrf.mxu3  ;;  %v942_v8 = vadd.f32 %v913_v48, %v864_v2  ;;  %v935_v63 = vpop.f32.mrf.mxu1 }
 0x198   : > { %v865_v42 = vadd.f32 %v854_v3, %v787_v55  ;;  %963 = vadd.xlane.f32.xlu0 %v962_v56  ;;  %v982_v60 = vadd.f32 %v975_v59, %v974_v54 }
 0x199   : > { %v956_v6 = vmul.f32 %v1559_v36, %v942_v8 }
 0x19a   : > { %v943_v5 = vadd.f32 %v932_v52, %v865_v42 }
 0x19b   : > { %v976_v21 = vmul.f32 %v956_v6, %v956_v6 }
 0x19c   : > { %v1005_v18 = vpack.c.bf16 %v943_v5, %v942_v8  ;;  %v957_v20 = vmul.f32 %v1562_v39, %v943_v5  ;;  %v838_v11 = vpop.f32.mrf.mxu2 }
 0x19d   : > { %v866_v27 = vadd.f32 %v838_v11, %v788_v58 }
 0x19e   : > { %1009 = vst [vmem:[%s1570_s21 + $0x8] sm:$0xff] %v1005_v18  ;;  %v965_v23 = vadd.f32 %v957_v20, %v956_v6  ;;  %v977_v24 = vmul.f32 %v957_v20, %v957_v20  ;;  %v918_v33 = vpop.f32.mrf.mxu0 }
 0x19f   : > { %v857_v28 = vpop.f32.mrf.mxu3  ;;  %v944_v30 = vadd.f32 %v916_v22, %v866_v27  ;;  %v937_v34 = vpop.f32.mrf.mxu1 }
 0x1a0   : > { %v867_v0 = vadd.f32 %v857_v28, %v789_v12  ;;  %966 = vadd.xlane.f32.xlu1 %v965_v23  ;;  %983 = vadd.xlane.f32.xlu0 %v982_v60  ;;  %v985_v9 = vadd.f32 %v977_v24, %v976_v21 }
 0x1a1   : > { %v958_v32 = vmul.f32 %v1559_v36, %v944_v30 }
 0x1a2   : > { %v945_v10 = vadd.f32 %v935_v63, %v867_v0 }
 0x1a3   : > { %v978_v35 = vmul.f32 %v958_v32, %v958_v32 }
 0x1a4   : > { %v1006_v25 = vpack.c.bf16 %v945_v10, %v944_v30  ;;  %v959_v61 = vmul.f32 %v1562_v39, %v945_v10  ;;  %v840_v62 = vpop.f32.mrf.mxu2 }
 0x1a5   : > { %v868_v17 = vadd.f32 %v840_v62, %v790_v26 }
 0x1a6   : > { %1010 = vst [vmem:[%s1570_s21 + $0x10] sm:$0xff] %v1006_v25  ;;  %v968_v38 = vadd.f32 %v959_v61, %v958_v32  ;;  %v979_v40 = vmul.f32 %v959_v61, %v959_v61 }
 0x1a7   : > { %v859_v43 = vpop.f32.mrf.mxu3  ;;  %v946_v45 = vadd.f32 %v918_v33, %v868_v17 }
 0x1a8   : > { %v869_v19 = vadd.f32 %v859_v43, %v791_v37  ;;  %969 = vadd.xlane.f32.xlu2 %v968_v38  ;;  %986 = vadd.xlane.f32.xlu1 %v985_v9  ;;  %v988_v44 = vadd.f32 %v979_v40, %v978_v35 }
 0x1a9   : > { %v960_v13 = vmul.f32 %v1559_v36, %v946_v45 }
 0x1aa   : > { %v947_v46 = vadd.f32 %v937_v34, %v869_v19 }
 0x1ab   : > { %v980_v14 = vmul.f32 %v960_v13, %v960_v13 }
 0x1ac   : > { %v1007_v47 = vpack.c.bf16 %v947_v46, %v946_v45  ;;  %v961_v48 = vmul.f32 %v1562_v39, %v947_v46 }
 0x1ae   : > { %1011 = vst [vmem:[%s1570_s21 + $0x18] sm:$0xff] %v1007_v47  ;;  %v971_v51 = vadd.f32 %v961_v48, %v960_v13  ;;  %v981_v52 = vmul.f32 %v961_v48, %v961_v48 }
 0x1b0   : > { %972 = vadd.xlane.f32.xlu2 %v971_v51  ;;  %v991_v53 = vadd.f32 %v981_v52, %v980_v14 }
 0x1b2   : > { %992 = vadd.xlane.f32.xlu0 %v991_v53 }
 0x1b8   : > { %989 = vadd.xlane.f32.xlu2 %v988_v44 }
 0x20b   : > { %v964_v54 = vpop.xlane.xlu0 %963 }
 0x213   : > { %v967_v36 = vpop.xlane.xlu1 %966  ;;  %v984_v41 = vpop.xlane.xlu0 %983 }
 0x214   : > { %v995_v39 = vsel %vm994_vm9, %v964_v54, %v984_v41 }
 0x215   : > { %1000 = vst.msk [vmem:[%s242_s24] sm:$0xff] %vm999_vm10, %v995_v39 }
 0x21b   : > { %v970_v55 = vpop.xlane.xlu2 %969  ;;  %v987_v56 = vpop.xlane.xlu1 %986 }
 0x21c   : > { %v996_v59 = vsel %vm994_vm9, %v967_v36, %v987_v56 }
 0x21d   : > { %1001 = vst.msk [vmem:[%s242_s24 + $0x8] sm:$0xff] %vm999_vm10, %v996_v59 }
 0x223   : > { %v973_v1 = vpop.xlane.xlu2 %972 }
 0x225   : > { %v993_v2 = vpop.xlane.xlu0 %992 }
 0x226   : > { %v998_v3 = vsel %vm994_vm9, %v973_v1, %v993_v2 }
 0x227   : > { %1003 = vst.msk [vmem:[%s242_s24 + $0x18] sm:$0xff] %vm999_vm10, %v998_v3 }
 0x22b   : > { %v990_v4 = vpop.xlane.xlu2 %989 }
 0x22c   : > { %v997_v42 = vsel %vm994_vm9, %v970_v55, %v990_v4 }
 0x22d   : > { %1002 = vst.msk [vmem:[%s242_s24 + $0x10] sm:$0xff] %vm999_vm10, %v997_v42 }
 0x22e PF: > { %s17_s15 = sadd.s32 1, %s1407_s15  }
 0x22f   : > { %p14_p7 = scmp.ge.s32.totalorder %s17_s15, 4  }
 0x231   :  { %16 = sbr.rel (!%p14_p7) target bundleno = 2 (0x2), region = 91 }
 0x236   :  { %1049 = vsyncpa [#allocation3], 1 }
 0x237   :  { %1051 = vsyncpa [#allocation3 + $0x1], 1 }
 0x238   :  { %1052 = vsyncpa [#allocation5], 1 }

// kernel: _lambda_.6
= control target key start
LH: loop header
LB: loop body
LE: loop exit
PB: predicated region body
PF: predicated region fallthrough
CT: control target
= control target key end

     0   :  { %10 = vsyncpa [#allocation3], 0  ;;  %s3035_s0 = inlined_call_operand.hbm [shape: bf16[9,16,8], index: 0, kind: input, shape index: {}]   ;;  %s3036_s1 = inlined_call_operand.vmem [shape: bf16[2,8,1024], index: 1, kind: input, shape index: {}]   ;;  %s3037_s2 = inlined_call_operand.hbm [shape: f32[1,900], index: 2, kind: input, shape index: {}]   ;;  %s3038_s3 = inlined_call_operand.vmem [shape: bf16[2,16,900], index: 3, kind: output, shape index: {0}]   ;;  %s3039_s4 = inlined_call_operand.vmem [shape: f32[2,16,2], index: 4, kind: output, shape index: {1}]  }
   0x1   :  { %11 = vsyncpa [#allocation5], 0  ;;  %s2410_s15 = smov 0  }
   0x2 LB: > { %s153_s18 = sshll.u32 %s3035_s0, 4  ;;  %s2121_s19 = sadd.s32 4294967295, %s2371_s15   ;;  %s2371_s15 = sphi %s2410_s15, %s17_s15   ;;  %s154_s18 = int_to_ptr.hbm [resolvable:$true] %s153_s18 }
   0x3   : > { %p2123_p0 = scmp.ge.s32.totalorder %s2371_s15, 1  ;;  %p142_p1 = scmp.lt.s32.totalorder %s2371_s15, 3 }
   0x4   : > { %p2273_p2 = scmp.eq.s32.totalorder %s2121_s19, 0  ;;  %s2373_s21 = smov [#allocation2]  }
   0x5   : > { %p2421_p3 = pnand %p2123_p0, %p142_p1  ;;  %s155_s22 = sshll.u32 %s2373_s21, 4  ;;  %s156_s22 = int_to_ptr.vmem [resolvable:$true] %s155_s22 }
   0x6   : > { %s168_s25 = sshll.u32 %s3037_s2, 4  ;;  %s2374_s26 = smov [#allocation4]   ;;  %s169_s25 = int_to_ptr.hbm [resolvable:$true] %s168_s25 }
   0x7   : > { %p2266_p4 = pneg %p2421_p3  ;;  %s170_s27 = sshll.u32 %s2374_s26, 4  ;;  %s171_s27 = int_to_ptr.vmem [resolvable:$true] %s170_s27 }
   0x8   : > { %s2375_s28 = smov 64   ;;  %s2376_s29 = smov 4  }
   0x9   : > { %p2267_p5 = pnand %p2273_p2, %p2266_p4  ;;  %191 = sbr.rel (%p2421_p3) target bundleno = 701 (0x2bd), region = 32 }
   0xb   : > { %2269 = dma.hbm_to_vmem [thread:$0]  (!%p2267_p5), %s154_s18, 1152, %s156_s22, [#allocation3], %s2375_s28, %s2375_s28, %s2376_s29  }
   0xc   : > { %2272 = dma.hbm_to_vmem [thread:$0]  (!%p2267_p5), %s169_s25, 128, %s171_s27, [#allocation5]  }
   0xe   : > { %2362 = dma.done.wait (%p2273_p2), [#allocation3], 1152  }
   0xf   : > { %2364 = vsyncadd (%p2273_p2), [#allocation3], 4294966144 }
  0x10   : > { %2366 = dma.done.wait (%p2273_p2), [#allocation5], 128  }
  0x11   : > { %2368 = vsyncadd (%p2273_p2), [#allocation5], 4294967168  ;;  %p228_p6 = scmp.lt.s32.totalorder %s2121_s19, 1  ;;  %s2377_s8 = smov 127   ;;  %vm294_vm0 = vcmask 1039360   ;;  %vm306_vm1 = vcmask 1043456  }
  0x12   : > { %s2378_s9 = smov 126   ;;  %s2379_s10 = smov 98   ;;  %v2250_v25 = vld [vmem:[#allocation2 + $0x8] sm:$0xff]  ;;  %vm302_vm2 = vcmask 64512   ;;  %vm611_vm3 = vcmask 1031168   ;;  %v2249_v57 = vld [vmem:[#allocation2] sm:$0xff] }
  0x13   : > { %s3044_s19 = smov (!%p228_p6, %s2121_s19), 1  ;;  %s2380_s11 = smov 97   ;;  %vm798_vm4 = vcmask 801792   ;;  %vm985_vm5 = vcmask 793600   ;;  %vm1172_vm6 = vcmask 785408   ;;  %vm1359_vm7 = vcmask 556032  }
  0x14   : > { %s2246_s30 = sshll.u32 %s3044_s19, 5  ;;  %s2381_s12 = smov 96   ;;  %vm1546_vm8 = vcmask 547840   ;;  %vm1733_vm9 = vcmask 539648   ;;  %vm2004_vm10 = vcmask 31748   ;;  %vm1936_vm12 = vcmask 31744  }
  0x15   : > { %s232_s7 = scalar_lea.vmem %s3036_s1, %s2246_s30  ;;  %s2382_s13 = smov 68   ;;  %vm3007_vm11 = vmor %vm2004_vm10, %vm306_vm1  ;;  %vm1987_vm13 = vcmask 7168   ;;  %vm1990_vm14 = vcmask 15360  }
  0x16   : > { %v246_v0 = vld [vmem:[%s232_s7 + $0x10] sm:$0xff]  ;;  %v245_v1 = vld [vmem:[%s232_s7 + $0x8] sm:$0xff]  ;;  %v244_v4 = vld [vmem:[%s232_s7] sm:$0xff]  ;;  %s2383_s14 = smov 67   ;;  %s2384_s16 = smov 66  }
  0x17   : > { %v266_v2 = vunpack.c.l.b16 %v246_v0  ;;  %v264_v3 = vunpack.c.l.b16 %v245_v1  ;;  %v263_v5 = vunpack.c.h.b16 %v244_v4  ;;  %v265_v9 = vunpack.c.h.b16 %v245_v1  ;;  %v247_v11 = vld [vmem:[%s232_s7 + $0x18] sm:$0xff]  ;;  %s2247_s17 = sshll.u32 %s3044_s19, 6  ;;  %s2248_s22 = sshll.u32 %s3044_s19, 4 }
  0x18   : > { %v262_v10 = vunpack.c.l.b16 %v244_v4  ;;  %v268_v12 = vunpack.c.l.b16 %v247_v11  ;;  %v269_v16 = vunpack.c.h.b16 %v247_v11  ;;  %v267_v17 = vunpack.c.h.b16 %v246_v0  ;;  %s2968_s21 = scalar_lea.vmem %s3038_s3, %s2247_s17  ;;  %s242_s25 = scalar_lea.vmem %s3039_s4, %s2248_s22 }
  0x19   : > { %v2443_v6 = vpack.c.b16 %v266_v2, %v266_v2  ;;  %v2445_v7 = vpack.c.b16 %v264_v3, %v264_v3  ;;  %v2447_v8 = vpack.c.b16 %v263_v5, %v263_v5  ;;  %v2452_v13 = vpack.c.b16 %v265_v9, %v265_v9 }
  0x1a   : > { %v2454_v14 = vpack.c.b16 %v262_v10, %v262_v10  ;;  %v2456_v15 = vpack.c.b16 %v268_v12, %v268_v12  ;;  %v2461_v18 = vpack.c.b16 %v269_v16, %v269_v16  ;;  %v2463_v19 = vpack.c.b16 %v267_v17, %v267_v17  ;;  %v2251_v17 = vld [vmem:[#allocation2 + $0x10] sm:$0xff] }
  0x1b   : > { %286 = vrot.lane.b32.xlu1 %v2443_v6, %s2377_s8  ;;  %282 = vrot.lane.b32.xlu0 %v2445_v7, %s2377_s8  ;;  %v455_v37 = vsel %vm306_vm1, %v2447_v8, 0  ;;  %v458_v38 = vsel %vm306_vm1, %v2445_v7, 0  ;;  %v461_v46 = vsel %vm306_vm1, %v2452_v13, 0  ;;  %v464_v53 = vsel %vm306_vm1, %v2443_v6, 0 }
  0x1c   : > { %280 = vrot.lane.b32.xlu2 %v2447_v8, %s2377_s8  ;;  %v452_v47 = vsel %vm306_vm1, %v2454_v14, 0  ;;  %v467_v48 = vsel %vm306_vm1, %v2463_v19, 0  ;;  %v470_v51 = vsel %vm306_vm1, %v2456_v15, 0  ;;  %v473_v52 = vsel %vm306_vm1, %v2461_v18, 0 }
  0x23   : > { %284 = vrot.lane.b32.xlu0 %v2452_v13, %s2377_s8  ;;  %278 = vrot.lane.b32.xlu1 %v2454_v14, %s2377_s8 }
  0x24   : > { %290 = vrot.lane.b32.xlu2 %v2456_v15, %s2377_s8 }
  0x2b   : > { %292 = vrot.lane.b32.xlu0 %v2461_v18, %s2377_s8  ;;  %288 = vrot.lane.b32.xlu1 %v2463_v19, %s2377_s8 }
  0x2c   : > { %599 = vrot.lane.b32.xlu2 %v2445_v7, %s2378_s9 }
  0x33   : > { %601 = vrot.lane.b32.xlu0 %v2452_v13, %s2378_s9  ;;  %603 = vrot.lane.b32.xlu1 %v2443_v6, %s2378_s9 }
  0x34   : > { %595 = vrot.lane.b32.xlu2 %v2454_v14, %s2378_s9 }
  0x3b   : > { %597 = vrot.lane.b32.xlu0 %v2447_v8, %s2378_s9  ;;  %607 = vrot.lane.b32.xlu1 %v2456_v15, %s2378_s9 }
  0x3c   : > { %609 = vrot.lane.b32.xlu2 %v2461_v18, %s2378_s9 }
  0x43   : > { %605 = vrot.lane.b32.xlu0 %v2463_v19, %s2378_s9  ;;  %786 = vrot.lane.b32.xlu1 %v2445_v7, %s2379_s10 }
  0x44   : > { %788 = vrot.lane.b32.xlu2 %v2452_v13, %s2379_s10 }
  0x4b   : > { %790 = vrot.lane.b32.xlu0 %v2443_v6, %s2379_s10  ;;  %782 = vrot.lane.b32.xlu1 %v2454_v14, %s2379_s10 }
  0x4c   : > { %784 = vrot.lane.b32.xlu2 %v2447_v8, %s2379_s10 }
  0x53   : > { %796 = vrot.lane.b32.xlu1 %v2461_v18, %s2379_s10  ;;  %794 = vrot.lane.b32.xlu0 %v2456_v15, %s2379_s10 }
  0x54   : > { %792 = vrot.lane.b32.xlu2 %v2463_v19, %s2379_s10 }
  0x5b   : > { %975 = vrot.lane.b32.xlu1 %v2452_v13, %s2380_s11  ;;  %973 = vrot.lane.b32.xlu0 %v2445_v7, %s2380_s11 }
  0x5c   : > { %977 = vrot.lane.b32.xlu2 %v2443_v6, %s2380_s11 }
  0x63   : > { %971 = vrot.lane.b32.xlu1 %v2447_v8, %s2380_s11  ;;  %969 = vrot.lane.b32.xlu0 %v2454_v14, %s2380_s11 }
  0x64   : > { %981 = vrot.lane.b32.xlu2 %v2456_v15, %s2380_s11 }
  0x6b   : > { %979 = vrot.lane.b32.xlu1 %v2463_v19, %s2380_s11  ;;  %983 = vrot.lane.b32.xlu0 %v2461_v18, %s2380_s11 }
  0x6c   : > { %1160 = vrot.lane.b32.xlu2 %v2445_v7, %s2381_s12 }
  0x73   : > { %1162 = vrot.lane.b32.xlu0 %v2452_v13, %s2381_s12  ;;  %1164 = vrot.lane.b32.xlu1 %v2443_v6, %s2381_s12 }
  0x74   : > { %1156 = vrot.lane.b32.xlu2 %v2454_v14, %s2381_s12 }
  0x76   : > { %v281_v20 = vpop.permute.xlu2 %280 }
  0x7b   : > { %1158 = vrot.lane.b32.xlu0 %v2447_v8, %s2381_s12  ;;  %1168 = vrot.lane.b32.xlu1 %v2456_v15, %s2381_s12 }
  0x7c   : > { %1170 = vrot.lane.b32.xlu2 %v2461_v18, %s2381_s12 }
  0x7e   : > { %v291_v34 = vpop.permute.xlu2 %290 }
  0x83   : > { %1166 = vrot.lane.b32.xlu0 %v2463_v19, %s2381_s12  ;;  %1347 = vrot.lane.b32.xlu1 %v2445_v7, %s2382_s13 }
  0x84   : > { %1349 = vrot.lane.b32.xlu2 %v2452_v13, %s2382_s13 }
  0x86   : > { %v600_v49 = vpop.permute.xlu2 %599 }
  0x8b   : > { %1351 = vrot.lane.b32.xlu0 %v2443_v6, %s2382_s13  ;;  %1343 = vrot.lane.b32.xlu1 %v2454_v14, %s2382_s13 }
  0x8c   : > { %1345 = vrot.lane.b32.xlu2 %v2447_v8, %s2382_s13 }
  0x8d   : > { %v287_v21 = vpop.permute.xlu1 %286  ;;  %v283_v22 = vpop.permute.xlu0 %282 }
  0x8e   : > { %v296_v23 = vsel %vm294_vm0, %v281_v20, %v283_v22  ;;  %v596_v55 = vpop.permute.xlu2 %595 }
  0x8f   : > { %v311_v24 = vsel %vm306_vm1, %v296_v23, 0 }
  0x90   : > { %352 = vmatpush.bf16.msra.mxu1 %v311_v24 }
  0x93   : > { %2141 = vmatmul.msk.bf16.vlgmr.msra.gmra.mxu1 %vm302_vm2, %v2250_v25  ;;  %1357 = vrot.lane.b32.xlu1 %v2461_v18, %s2382_s13 }
  0x94   : > { %1355 = vrot.lane.b32.xlu0 %v2456_v15, %s2382_s13  ;;  %1353 = vrot.lane.b32.xlu2 %v2463_v19, %s2382_s13 }
  0x95   : > { %v285_v26 = vpop.permute.xlu0 %284  ;;  %v279_v27 = vpop.permute.xlu1 %278 }
  0x96   : > { %v295_v28 = vsel %vm294_vm0, %v279_v27, %v281_v20  ;;  %v297_v29 = vsel %vm294_vm0, %v283_v22, %v285_v26  ;;  %v298_v30 = vsel %vm294_vm0, %v285_v26, %v287_v21  ;;  %v610_v63 = vpop.permute.xlu2 %609 }
  0x97   : > { %v308_v31 = vsel %vm306_vm1, %v295_v28, 0  ;;  %v314_v32 = vsel %vm306_vm1, %v297_v29, 0  ;;  %v317_v33 = vsel %vm306_vm1, %v298_v30, 0  ;;  %v644_v12 = vsel %vm306_vm1, %v610_v63, 0 }
  0x98   : > { %338 = vmatpush.bf16.msra.mxu0 %v308_v31  ;;  %366 = vmatpush.bf16.msra.mxu2 %v314_v32 }
  0x99   : > { %380 = vmatpush.bf16.msra.mxu3 %v317_v33 }
  0x9b   : > { %2142 = vmatmul.msk.bf16.vlgmr.msra.gmra.mxu2 %vm302_vm2, %v2250_v25  ;;  %2140 = vmatmul.msk.bf16.vlgmr.msra.gmra.mxu0 %vm302_vm2, %v2250_v25 }
  0x9c   : > { %2143 = vmatmul.msk.bf16.vlgmr.msra.gmra.mxu3 %vm302_vm2, %v2250_v25  ;;  %1536 = vrot.lane.b32.xlu1 %v2452_v13, %s2383_s14 }
  0x9d   : > { %v293_v35 = vpop.permute.xlu0 %292  ;;  %v289_v36 = vpop.permute.xlu1 %288  ;;  %1534 = vrot.lane.b32.xlu0 %v2445_v7, %s2383_s14  ;;  %1538 = vrot.lane.b32.xlu2 %v2443_v6, %s2383_s14 }
  0x9e   : > { %v329_v39 = vsel %vm306_vm1, %v293_v35, 0  ;;  %v299_v40 = vsel %vm294_vm0, %v287_v21, %v289_v36  ;;  %v300_v41 = vsel %vm294_vm0, %v289_v36, %v291_v34  ;;  %v301_v42 = vsel %vm294_vm0, %v291_v34, %v293_v35 }
  0x9f   : > { %436 = vmatpush.bf16.msrb.mxu3 %v329_v39  ;;  %v320_v43 = vsel %vm306_vm1, %v299_v40, 0  ;;  %v323_v44 = vsel %vm306_vm1, %v300_v41, 0  ;;  %v326_v45 = vsel %vm306_vm1, %v301_v42, 0  ;;  %v2252_v41 = vld [vmem:[#allocation2 + $0x18] sm:$0xff] }
  0xa0   : > { %394 = vmatpush.bf16.msrb.mxu0 %v320_v43  ;;  %408 = vmatpush.bf16.msrb.mxu1 %v323_v44 }
  0xa1   : > { %422 = vmatpush.bf16.msrb.mxu2 %v326_v45 }
  0xa3   : > { %524 = vmatpush.bf16.msra.mxu3 %v461_v46  ;;  %2145 = vmatmul.msk.bf16.vlgmr.msrb.gmra.mxu1 %vm302_vm2, %v2250_v25 }
  0xa4   : > { %496 = vmatpush.bf16.msra.mxu1 %v455_v37  ;;  %482 = vmatpush.bf16.msra.mxu0 %v452_v47 }
  0xa5   : > { %510 = vmatpush.bf16.msra.mxu2 %v458_v38  ;;  %1532 = vrot.lane.b32.xlu1 %v2447_v8, %s2383_s14  ;;  %v602_v50 = vpop.permute.xlu0 %601  ;;  %v604_v59 = vpop.permute.xlu1 %603 }
  0xa6   : > { %1530 = vrot.lane.b32.xlu0 %v2454_v14, %s2383_s14  ;;  %1542 = vrot.lane.b32.xlu2 %v2456_v15, %s2383_s14  ;;  %v614_v60 = vsel %vm611_vm3, %v600_v49, %v602_v50  ;;  %v615_v61 = vsel %vm611_vm3, %v602_v50, %v604_v59 }
  0xa7   : > { %v629_v0 = vsel %vm306_vm1, %v614_v60, 0  ;;  %v632_v1 = vsel %vm306_vm1, %v615_v61, 0 }
  0xa8   : > { %552 = vmatpush.bf16.msrb.mxu1 %v467_v48 }
  0xab   : > { %2144 = vmatmul.msk.bf16.vlgmr.msrb.gmra.mxu0 %vm302_vm2, %v2250_v25  ;;  %2146 = vmatmul.msk.bf16.vlgmr.msrb.gmra.mxu2 %vm302_vm2, %v2250_v25 }
  0xac   : > { %2147 = vmatmul.msk.bf16.vlgmr.msrb.gmra.mxu3 %vm302_vm2, %v2250_v25  ;;  %566 = vmatpush.bf16.msrb.mxu2 %v470_v51 }
  0xad   : > { %580 = vmatpush.bf16.msrb.mxu3 %v473_v52  ;;  %538 = vmatpush.bf16.msrb.mxu0 %v464_v53  ;;  %v598_v54 = vpop.permute.xlu0 %597  ;;  %v608_v3 = vpop.permute.xlu1 %607 }
  0xae   : > { %v613_v56 = vsel %vm611_vm3, %v598_v54, %v600_v49  ;;  %1540 = vrot.lane.b32.xlu1 %v2463_v19, %s2383_s14  ;;  %1544 = vrot.lane.b32.xlu0 %v2461_v18, %s2383_s14  ;;  %v612_v62 = vsel %vm611_vm3, %v596_v55, %v598_v54 }
  0xaf   : > { %1721 = vrot.lane.b32.xlu2 %v2445_v7, %s2384_s16  ;;  %v626_v58 = vsel %vm306_vm1, %v613_v56, 0  ;;  %v623_v2 = vsel %vm306_vm1, %v612_v62, 0  ;;  %v789_v7 = vpop.permute.xlu2 %788 }
  0xb3   : > { %2153 = vmatmul.msk.bf16.vlgmr.msra.gmra.mxu1 %vm302_vm2, %v2249_v57 }
  0xb4   : > { %667 = vmatpush.bf16.msra.mxu1 %v626_v58 }
  0xb5   : > { %v606_v4 = vpop.permute.xlu0 %605  ;;  %v787_v9 = vpop.permute.xlu1 %786 }
  0xb6   : > { %1723 = vrot.lane.b32.xlu0 %v2452_v13, %s2384_s16  ;;  %1725 = vrot.lane.b32.xlu1 %v2443_v6, %s2384_s16  ;;  %v617_v5 = vsel %vm611_vm3, %v606_v4, %v608_v3  ;;  %v616_v10 = vsel %vm611_vm3, %v604_v59, %v606_v4  ;;  %v801_v20 = vsel %vm798_vm4, %v787_v9, %v789_v7 }
  0xb7   : > { %1717 = vrot.lane.b32.xlu2 %v2454_v14, %s2384_s16  ;;  %v638_v6 = vsel %vm306_vm1, %v617_v5, 0  ;;  %v635_v11 = vsel %vm306_vm1, %v616_v10, 0  ;;  %v785_v14 = vpop.permute.xlu2 %784  ;;  %v816_v24 = vsel %vm306_vm1, %v801_v20, 0 }
  0xb8   : > { %v800_v16 = vsel %vm798_vm4, %v785_v14, %v787_v9 }
  0xbb   : > { %2152 = vmatmul.msk.bf16.vlgmr.msra.gmra.mxu0 %vm302_vm2, %v2249_v57  ;;  %2154 = vmatmul.msk.bf16.vlgmr.msra.gmra.mxu2 %vm302_vm2, %v2249_v57 }
  0xbc   : > { %2155 = vmatmul.msk.bf16.vlgmr.msra.gmra.mxu3 %vm302_vm2, %v2249_v57  ;;  %681 = vmatpush.bf16.msra.mxu2 %v629_v0 }
  0xbd   : > { %695 = vmatpush.bf16.msra.mxu3 %v632_v1  ;;  %653 = vmatpush.bf16.msra.mxu0 %v623_v2  ;;  %v2253_v1 = vld [vmem:[#allocation2 + $0x20] sm:$0xff] }
  0xbe   : > { %1719 = vrot.lane.b32.xlu0 %v2447_v8, %s2384_s16  ;;  %1729 = vrot.lane.b32.xlu1 %v2456_v15, %s2384_s16  ;;  %v618_v8 = vsel %vm611_vm3, %v608_v3, %v610_v63  ;;  %v783_v15 = vpop.permute.xlu1 %782 }
  0xbf   : > { %1731 = vrot.lane.b32.xlu2 %v2461_v18, %s2384_s16  ;;  %v641_v13 = vsel %vm306_vm1, %v618_v8, 0  ;;  %v813_v18 = vsel %vm306_vm1, %v800_v16, 0  ;;  %v799_v22 = vsel %vm798_vm4, %v783_v15, %v785_v14  ;;  %v793_v28 = vpop.permute.xlu2 %792 }
  0xc0   : > { %v810_v26 = vsel %vm306_vm1, %v799_v22, 0 }
  0xc3   : > { %2157 = vmatmul.msk.bf16.vlgmr.msrb.gmra.mxu1 %vm302_vm2, %v2249_v57 }
  0xc4   : > { %723 = vmatpush.bf16.msrb.mxu1 %v638_v6 }
  0xc6   : > { %1727 = vrot.lane.b32.xlu0 %v2463_v19, %s2384_s16  ;;  %v791_v19 = vpop.permute.xlu0 %790  ;;  %v797_v23 = vpop.permute.xlu1 %796 }
  0xc7   : > { %v802_v21 = vsel %vm798_vm4, %v789_v7, %v791_v19  ;;  %v803_v33 = vsel %vm798_vm4, %v791_v19, %v793_v28  ;;  %v831_v36 = vsel %vm306_vm1, %v797_v23, 0  ;;  %v978_v43 = vpop.permute.xlu2 %977 }
  0xc8   : > { %v819_v25 = vsel %vm306_vm1, %v802_v21, 0  ;;  %v822_v35 = vsel %vm306_vm1, %v803_v33, 0 }
  0xcb   : > { %2158 = vmatmul.msk.bf16.vlgmr.msrb.gmra.mxu2 %vm302_vm2, %v2249_v57  ;;  %2156 = vmatmul.msk.bf16.vlgmr.msrb.gmra.mxu0 %vm302_vm2, %v2249_v57 }
  0xcc   : > { %2159 = vmatmul.msk.bf16.vlgmr.msrb.gmra.mxu3 %vm302_vm2, %v2249_v57  ;;  %709 = vmatpush.bf16.msrb.mxu0 %v635_v11 }
  0xcd   : > { %751 = vmatpush.bf16.msrb.mxu3 %v644_v12  ;;  %737 = vmatpush.bf16.msrb.mxu2 %v641_v13 }
  0xce   : > { %v795_v27 = vpop.permute.xlu0 %794  ;;  %v976_v31 = vpop.permute.xlu1 %975 }
  0xcf   : > { %v804_v29 = vsel %vm798_vm4, %v793_v28, %v795_v27  ;;  %v805_v34 = vsel %vm798_vm4, %v795_v27, %v797_v23  ;;  %v989_v45 = vsel %vm985_vm5, %v976_v31, %v978_v43  ;;  %v982_v51 = vpop.permute.xlu2 %981 }
  0xd0   : > { %v825_v30 = vsel %vm306_vm1, %v804_v29, 0  ;;  %v828_v37 = vsel %vm306_vm1, %v805_v34, 0  ;;  %v1006_v49 = vsel %vm306_vm1, %v989_v45, 0 }
  0xd3   : > { %2165 = vmatmul.msk.bf16.vlgmr.msra.gmra.mxu1 %vm302_vm2, %v2251_v17 }
  0xd4   : > { %854 = vmatpush.bf16.msra.mxu1 %v813_v18 }
  0xd6   : > { %v974_v32 = vpop.permute.xlu0 %973  ;;  %v972_v38 = vpop.permute.xlu1 %971 }
  0xd7   : > { %v987_v40 = vsel %vm985_vm5, %v972_v38, %v974_v32  ;;  %v988_v44 = vsel %vm985_vm5, %v974_v32, %v976_v31  ;;  %v1161_v56 = vpop.permute.xlu2 %1160 }
  0xd8   : > { %v1000_v42 = vsel %vm306_vm1, %v987_v40, 0  ;;  %v1003_v48 = vsel %vm306_vm1, %v988_v44, 0 }
  0xdb   : > { %2166 = vmatmul.msk.bf16.vlgmr.msra.gmra.mxu2 %vm302_vm2, %v2251_v17  ;;  %2164 = vmatmul.msk.bf16.vlgmr.msra.gmra.mxu0 %vm302_vm2, %v2251_v17 }
  0xdc   : > { %2167 = vmatmul.msk.bf16.vlgmr.msra.gmra.mxu3 %vm302_vm2, %v2251_v17  ;;  %868 = vmatpush.bf16.msra.mxu2 %v816_v24 }
  0xdd   : > { %882 = vmatpush.bf16.msra.mxu3 %v819_v25  ;;  %840 = vmatpush.bf16.msra.mxu0 %v810_v26 }
  0xde   : > { %v970_v39 = vpop.permute.xlu0 %969  ;;  %v980_v52 = vpop.permute.xlu1 %979 }
  0xdf   : > { %v986_v46 = vsel %vm985_vm5, %v970_v39, %v972_v38  ;;  %v991_v53 = vsel %vm985_vm5, %v980_v52, %v982_v51  ;;  %v990_v57 = vsel %vm985_vm5, %v978_v43, %v980_v52  ;;  %v1157_v63 = vpop.permute.xlu2 %1156 }
  0xe0   : > { %v997_v50 = vsel %vm306_vm1, %v986_v46, 0  ;;  %v1012_v54 = vsel %vm306_vm1, %v991_v53, 0  ;;  %v1009_v59 = vsel %vm306_vm1, %v990_v57, 0 }
  0xe3   : > { %2169 = vmatmul.msk.bf16.vlgmr.msrb.gmra.mxu1 %vm302_vm2, %v2251_v17 }
  0xe4   : > { %910 = vmatpush.bf16.msrb.mxu1 %v825_v30 }
  0xe6   : > { %v984_v47 = vpop.permute.xlu0 %983  ;;  %v1165_v4 = vpop.permute.xlu1 %1164 }
  0xe7   : > { %v992_v58 = vsel %vm985_vm5, %v982_v51, %v984_v47  ;;  %v1018_v60 = vsel %vm306_vm1, %v984_v47, 0  ;;  %v1171_v9 = vpop.permute.xlu2 %1170 }
  0xe8   : > { %v1015_v61 = vsel %vm306_vm1, %v992_v58, 0  ;;  %v1205_v31 = vsel %vm306_vm1, %v1171_v9, 0 }
  0xeb   : > { %2168 = vmatmul.msk.bf16.vlgmr.msrb.gmra.mxu0 %vm302_vm2, %v2251_v17  ;;  %2170 = vmatmul.msk.bf16.vlgmr.msrb.gmra.mxu2 %vm302_vm2, %v2251_v17 }
  0xec   : > { %2171 = vmatmul.msk.bf16.vlgmr.msrb.gmra.mxu3 %vm302_vm2, %v2251_v17  ;;  %896 = vmatpush.bf16.msrb.mxu0 %v822_v35 }
  0xed   : > { %938 = vmatpush.bf16.msrb.mxu3 %v831_v36  ;;  %924 = vmatpush.bf16.msrb.mxu2 %v828_v37  ;;  %v2254_v37 = vld [vmem:[#allocation2 + $0x28] sm:$0xff] }
  0xee   : > { %v1163_v55 = vpop.permute.xlu0 %1162  ;;  %v1169_v14 = vpop.permute.xlu1 %1168 }
  0xef   : > { %v1175_v5 = vsel %vm1172_vm6, %v1161_v56, %v1163_v55  ;;  %v1176_v6 = vsel %vm1172_vm6, %v1163_v55, %v1165_v4  ;;  %v1350_v22 = vpop.permute.xlu2 %1349  ;;  %v1179_v27 = vsel %vm1172_vm6, %v1169_v14, %v1171_v9 }
  0xf0   : > { %v1190_v11 = vsel %vm306_vm1, %v1175_v5, 0  ;;  %v1193_v12 = vsel %vm306_vm1, %v1176_v6, 0  ;;  %v1202_v32 = vsel %vm306_vm1, %v1179_v27, 0 }
  0xf3   : > { %2177 = vmatmul.msk.bf16.vlgmr.msra.gmra.mxu1 %vm302_vm2, %v2252_v41 }
  0xf4   : > { %1041 = vmatpush.bf16.msra.mxu1 %v1000_v42 }
  0xf6   : > { %v1159_v62 = vpop.permute.xlu0 %1158  ;;  %v1348_v23 = vpop.permute.xlu1 %1347 }
  0xf7   : > { %v1174_v0 = vsel %vm1172_vm6, %v1159_v62, %v1161_v56  ;;  %v1173_v7 = vsel %vm1172_vm6, %v1157_v63, %v1159_v62  ;;  %v1346_v33 = vpop.permute.xlu2 %1345  ;;  %v1362_v45 = vsel %vm1359_vm7, %v1348_v23, %v1350_v22 }
  0xf8   : > { %v1187_v3 = vsel %vm306_vm1, %v1174_v0, 0  ;;  %v1184_v13 = vsel %vm306_vm1, %v1173_v7, 0  ;;  %v1361_v35 = vsel %vm1359_vm7, %v1346_v33, %v1348_v23  ;;  %v1377_v53 = vsel %vm306_vm1, %v1362_v45, 0 }
  0xf9   : > { %v1374_v42 = vsel %vm306_vm1, %v1361_v35, 0 }
  0xfb   : > { %2176 = vmatmul.msk.bf16.vlgmr.msra.gmra.mxu0 %vm302_vm2, %v2252_v41  ;;  %2178 = vmatmul.msk.bf16.vlgmr.msra.gmra.mxu2 %vm302_vm2, %v2252_v41 }
  0xfc   : > { %2179 = vmatmul.msk.bf16.vlgmr.msra.gmra.mxu3 %vm302_vm2, %v2252_v41  ;;  %1055 = vmatpush.bf16.msra.mxu2 %v1003_v48 }
  0xfd   : > { %1069 = vmatpush.bf16.msra.mxu3 %v1006_v49  ;;  %1027 = vmatpush.bf16.msra.mxu0 %v997_v50 }
  0xfe   : > { %v1167_v15 = vpop.permute.xlu0 %1166  ;;  %v1344_v38 = vpop.permute.xlu1 %1343 }
  0xff   : > { %v1178_v17 = vsel %vm1172_vm6, %v1167_v15, %v1169_v14  ;;  %v1177_v25 = vsel %vm1172_vm6, %v1165_v4, %v1167_v15  ;;  %v1360_v48 = vsel %vm1359_vm7, %v1344_v38, %v1346_v33  ;;  %v1354_v58 = vpop.permute.xlu2 %1353 }
 0x100   : > { %v1199_v21 = vsel %vm306_vm1, %v1178_v17, 0  ;;  %v1196_v30 = vsel %vm306_vm1, %v1177_v25, 0  ;;  %v1371_v56 = vsel %vm306_vm1, %v1360_v48, 0 }
 0x103   : > { %2181 = vmatmul.msk.bf16.vlgmr.msrb.gmra.mxu1 %vm302_vm2, %v2252_v41 }
 0x104   : > { %1097 = vmatpush.bf16.msrb.mxu1 %v1012_v54 }
 0x106   : > { %v1352_v43 = vpop.permute.xlu0 %1351  ;;  %v1358_v54 = vpop.permute.xlu1 %1357 }
 0x107   : > { %v1363_v47 = vsel %vm1359_vm7, %v1350_v22, %v1352_v43  ;;  %v1364_v9 = vsel %vm1359_vm7, %v1352_v43, %v1354_v58  ;;  %v1539_v33 = vpop.permute.xlu2 %1538 }
 0x108   : > { %v1380_v55 = vsel %vm306_vm1, %v1363_v47, 0  ;;  %v1383_v17 = vsel %vm306_vm1, %v1364_v9, 0 }
 0x10b   : > { %2180 = vmatmul.msk.bf16.vlgmr.msrb.gmra.mxu0 %vm302_vm2, %v2252_v41  ;;  %2182 = vmatmul.msk.bf16.vlgmr.msrb.gmra.mxu2 %vm302_vm2, %v2252_v41 }
 0x10c   : > { %2183 = vmatmul.msk.bf16.vlgmr.msrb.gmra.mxu3 %vm302_vm2, %v2252_v41  ;;  %1083 = vmatpush.bf16.msrb.mxu0 %v1009_v59 }
 0x10d   : > { %1125 = vmatpush.bf16.msrb.mxu3 %v1018_v60  ;;  %1111 = vmatpush.bf16.msrb.mxu2 %v1015_v61 }
 0x10e   : > { %v1356_v57 = vpop.permute.xlu0 %1355  ;;  %v1537_v5 = vpop.permute.xlu1 %1536 }
 0x10f   : > { %v1365_v60 = vsel %vm1359_vm7, %v1354_v58, %v1356_v57  ;;  %v1550_v38 = vsel %vm1546_vm8, %v1537_v5, %v1539_v33 }
 0x110   : > { %v354_v2 = vpop.f32.mrf.mxu1  ;;  %v1386_v4 = vsel %vm306_vm1, %v1365_v60, 0  ;;  %v1567_v48 = vsel %vm306_vm1, %v1550_v38, 0 }
 0x113   : > { %2189 = vmatmul.msk.bf16.vlgmr.msra.gmra.mxu1 %vm302_vm2, %v2253_v1 }
 0x114   : > { %1228 = vmatpush.bf16.msra.mxu1 %v1187_v3 }
 0x116   : > { %v1535_v6 = vpop.permute.xlu0 %1534 }
 0x117   : > { %v1549_v35 = vsel %vm1546_vm8, %v1535_v6, %v1537_v5 }
 0x118   : > { %v340_v10 = vpop.f32.mrf.mxu0  ;;  %v356_v8 = vpop.f32.mrf.mxu1 }
 0x11b   : > { %2188 = vmatmul.msk.bf16.vlgmr.msra.gmra.mxu0 %vm302_vm2, %v2253_v1  ;;  %2190 = vmatmul.msk.bf16.vlgmr.msra.gmra.mxu2 %vm302_vm2, %v2253_v1 }
 0x11c   : > { %2191 = vmatmul.msk.bf16.vlgmr.msra.gmra.mxu3 %vm302_vm2, %v2253_v1  ;;  %1242 = vmatpush.bf16.msra.mxu2 %v1190_v11  ;;  %v1366_v11 = vsel %vm1359_vm7, %v1356_v57, %v1358_v54 }
 0x11d   : > { %1256 = vmatpush.bf16.msra.mxu3 %v1193_v12  ;;  %1214 = vmatpush.bf16.msra.mxu0 %v1184_v13 }
 0x11e   : > { %v2659_v16 = vpop.f32.mrf.mxu2 }
 0x11f   : > { %v382_v18 = vpop.f32.mrf.mxu3 }
 0x120   : > { %v2662_v19 = vpop.f32.mrf.mxu0  ;;  %v2664_v20 = vpop.f32.mrf.mxu1 }
 0x123   : > { %2193 = vmatmul.msk.bf16.vlgmr.msrb.gmra.mxu1 %vm302_vm2, %v2253_v1 }
 0x124   : > { %1284 = vmatpush.bf16.msrb.mxu1 %v1199_v21  ;;  %v1531_v21 = vpop.permute.xlu0 %1530 }
 0x126   : > { %v2668_v24 = vpop.f32.mrf.mxu2 }
 0x127   : > { %v2671_v26 = vpop.f32.mrf.mxu3 }
 0x128   : > { %v2674_v28 = vpop.f32.mrf.mxu0  ;;  %v2676_v29 = vpop.f32.mrf.mxu1 }
 0x12b   : > { %2192 = vmatmul.msk.bf16.vlgmr.msrb.gmra.mxu0 %vm302_vm2, %v2253_v1  ;;  %2194 = vmatmul.msk.bf16.vlgmr.msrb.gmra.mxu2 %vm302_vm2, %v2253_v1 }
 0x12c   : > { %2195 = vmatmul.msk.bf16.vlgmr.msrb.gmra.mxu3 %vm302_vm2, %v2253_v1  ;;  %1270 = vmatpush.bf16.msrb.mxu0 %v1196_v30 }
 0x12d   : > { %1312 = vmatpush.bf16.msrb.mxu3 %v1205_v31  ;;  %1298 = vmatpush.bf16.msrb.mxu2 %v1202_v32 }
 0x12e   : > { %v2684_v34 = vpop.f32.mrf.mxu2 }
 0x12f   : > { %v2687_v36 = vpop.f32.mrf.mxu3 }
 0x130   : > { %v2689_v39 = vpop.f32.mrf.mxu0  ;;  %v498_v40 = vpop.f32.mrf.mxu1 }
 0x131   : > { %v2691_v41 = vadd.f32 %v498_v40, %v354_v2  ;;  %v1545_v40 = vpop.permute.xlu0 %1544 }
 0x133   : > { %2201 = vmatmul.msk.bf16.vlgmr.msra.gmra.mxu1 %vm302_vm2, %v2254_v37 }
 0x134   : > { %1415 = vmatpush.bf16.msra.mxu1 %v1374_v42 }
 0x136   : > { %v2695_v44 = vpop.f32.mrf.mxu2 }
 0x137   : > { %v2698_v46 = vpop.f32.mrf.mxu3 }
 0x138   : > { %v484_v49 = vpop.f32.mrf.mxu0  ;;  %v500_v50 = vpop.f32.mrf.mxu1 }
 0x139   : > { %v2702_v51 = vadd.f32 %v484_v49, %v340_v10  ;;  %v2704_v52 = vadd.f32 %v500_v50, %v356_v8 }
 0x13b   : > { %2200 = vmatmul.msk.bf16.vlgmr.msra.gmra.mxu0 %vm302_vm2, %v2254_v37  ;;  %2202 = vmatmul.msk.bf16.vlgmr.msra.gmra.mxu2 %vm302_vm2, %v2254_v37 }
 0x13c   : > { %2203 = vmatmul.msk.bf16.vlgmr.msra.gmra.mxu3 %vm302_vm2, %v2254_v37  ;;  %1429 = vmatpush.bf16.msra.mxu2 %v1377_v53 }
 0x13d   : > { %1443 = vmatpush.bf16.msra.mxu3 %v1380_v55  ;;  %1401 = vmatpush.bf16.msra.mxu0 %v1371_v56 }
 0x13e   : > { %v512_v59 = vpop.f32.mrf.mxu2 }
 0x13f   : > { %v2714_v61 = vadd.f32 %v512_v59, %v2659_v16  ;;  %v526_v62 = vpop.f32.mrf.mxu3 }
 0x140   : > { %v2716_v63 = vadd.f32 %v526_v62, %v382_v18  ;;  %v486_v0 = vpop.f32.mrf.mxu0  ;;  %v554_v1 = vpop.f32.mrf.mxu1  ;;  %v1392_v18 = vsel %vm306_vm1, %v1358_v54, 0 }
 0x141   : > { %v2719_v2 = vadd.f32 %v486_v0, %v2662_v19  ;;  %v2722_v3 = vadd.f32 %v554_v1, %v2664_v20  ;;  %v1389_v19 = vsel %vm306_vm1, %v1366_v11, 0  ;;  %v1533_v20 = vpop.permute.xlu1 %1532  ;;  %v1724_v62 = vpop.permute.xlu0 %1723 }
 0x142   : > { %v1548_v23 = vsel %vm1546_vm8, %v1533_v20, %v1535_v6 }
 0x143   : > { %2205 = vmatmul.msk.bf16.vlgmr.msrb.gmra.mxu1 %vm302_vm2, %v2254_v37  ;;  %v1561_v32 = vsel %vm306_vm1, %v1548_v23, 0 }
 0x144   : > { %1471 = vmatpush.bf16.msrb.mxu1 %v1386_v4 }
 0x146   : > { %v514_v7 = vpop.f32.mrf.mxu2 }
 0x147   : > { %v2728_v10 = vadd.f32 %v514_v7, %v2668_v24  ;;  %v528_v8 = vpop.f32.mrf.mxu3 }
 0x148   : > { %v2732_v12 = vadd.f32 %v528_v8, %v2671_v26  ;;  %v540_v13 = vpop.f32.mrf.mxu0  ;;  %v556_v14 = vpop.f32.mrf.mxu1  ;;  %v2750_v26 = vld [vmem:[#allocation2 + $0x30] sm:$0xff]  ;;  %v1579_v8 = vsel %vm306_vm1, %v1545_v40, 0 }
 0x149   : > { %v2735_v15 = vadd.f32 %v540_v13, %v2674_v28  ;;  %v2738_v16 = vadd.f32 %v556_v14, %v2676_v29  ;;  %v1541_v50 = vpop.permute.xlu1 %1540 }
 0x14a   : > { %v1551_v0 = vsel %vm1546_vm8, %v1539_v33, %v1541_v50 }
 0x14b   : > { %2204 = vmatmul.msk.bf16.vlgmr.msrb.gmra.mxu0 %vm302_vm2, %v2254_v37  ;;  %2206 = vmatmul.msk.bf16.vlgmr.msrb.gmra.mxu2 %vm302_vm2, %v2254_v37  ;;  %v1570_v9 = vsel %vm306_vm1, %v1551_v0, 0 }
 0x14c   : > { %2207 = vmatmul.msk.bf16.vlgmr.msrb.gmra.mxu3 %vm302_vm2, %v2254_v37  ;;  %1457 = vmatpush.bf16.msrb.mxu0 %v1383_v17  ;;  %v2256_v17 = vld [vmem:[#allocation2 + $0x38] sm:$0xff] }
 0x14d   : > { %1499 = vmatpush.bf16.msrb.mxu3 %v1392_v18  ;;  %1485 = vmatpush.bf16.msrb.mxu2 %v1389_v19 }
 0x14e   : > { %v568_v22 = vpop.f32.mrf.mxu2 }
 0x14f   : > { %v2748_v24 = vadd.f32 %v568_v22, %v2684_v34  ;;  %v582_v25 = vpop.f32.mrf.mxu3 }
 0x150   : > { %v2753_v27 = vadd.f32 %v582_v25, %v2687_v36  ;;  %v542_v28 = vpop.f32.mrf.mxu0  ;;  %v669_v29 = vpop.f32.mrf.mxu1 }
 0x151   : > { %v2756_v30 = vadd.f32 %v542_v28, %v2689_v39  ;;  %v2759_v31 = vadd.f32 %v669_v29, %v2691_v41  ;;  %v1547_v39 = vsel %vm1546_vm8, %v1531_v21, %v1533_v20  ;;  %v1726_v25 = vpop.permute.xlu1 %1725 }
 0x152   : > { %v1558_v49 = vsel %vm306_vm1, %v1547_v39, 0 }
 0x153   : > { %2213 = vmatmul.msk.bf16.vlgmr.msra.gmra.mxu1 %vm302_vm2, %v2750_v26 }
 0x154   : > { %1602 = vmatpush.bf16.msra.mxu1 %v1561_v32 }
 0x156   : > { %v570_v34 = vpop.f32.mrf.mxu2 }
 0x157   : > { %v2766_v36 = vadd.f32 %v570_v34, %v2695_v44  ;;  %v584_v37 = vpop.f32.mrf.mxu3  ;;  %v1564_v44 = vsel %vm306_vm1, %v1549_v35, 0 }
 0x158   : > { %v2771_v41 = vadd.f32 %v584_v37, %v2698_v46  ;;  %v655_v42 = vpop.f32.mrf.mxu0  ;;  %v671_v43 = vpop.f32.mrf.mxu1 }
 0x159   : > { %v2774_v45 = vadd.f32 %v655_v42, %v2702_v51  ;;  %v2777_v47 = vadd.f32 %v671_v43, %v2704_v52  ;;  %v1543_v46 = vpop.permute.xlu2 %1542 }
 0x15a   : > { %v1552_v52 = vsel %vm1546_vm8, %v1541_v50, %v1543_v46 }
 0x15b   : > { %2212 = vmatmul.msk.bf16.vlgmr.msra.gmra.mxu0 %vm302_vm2, %v2750_v26  ;;  %2214 = vmatmul.msk.bf16.vlgmr.msra.gmra.mxu2 %vm302_vm2, %v2750_v26  ;;  %v1573_v60 = vsel %vm306_vm1, %v1552_v52, 0 }
 0x15c   : > { %2215 = vmatmul.msk.bf16.vlgmr.msra.gmra.mxu3 %vm302_vm2, %v2750_v26  ;;  %1616 = vmatpush.bf16.msra.mxu2 %v1564_v44 }
 0x15d   : > { %1630 = vmatpush.bf16.msra.mxu3 %v1567_v48  ;;  %1588 = vmatpush.bf16.msra.mxu0 %v1558_v49 }
 0x15e   : > { %v683_v51 = vpop.f32.mrf.mxu2 }
 0x15f   : > { %v2790_v53 = vadd.f32 %v683_v51, %v2714_v61  ;;  %v697_v54 = vpop.f32.mrf.mxu3 }
 0x160   : > { %v2793_v55 = vadd.f32 %v697_v54, %v2716_v63  ;;  %v657_v56 = vpop.f32.mrf.mxu0  ;;  %v725_v57 = vpop.f32.mrf.mxu1 }
 0x161   : > { %v2796_v58 = vadd.f32 %v657_v56, %v2719_v2  ;;  %v2799_v59 = vadd.f32 %v725_v57, %v2722_v3  ;;  %v1553_v2 = vsel %vm1546_vm8, %v1543_v46, %v1545_v40  ;;  %v1722_v11 = vpop.permute.xlu2 %1721  ;;  %v1730_v40 = vpop.permute.xlu1 %1729 }
 0x162   : > { %v1736_v28 = vsel %vm1733_vm9, %v1722_v11, %v1724_v62 }
 0x163   : > { %2217 = vmatmul.msk.bf16.vlgmr.msrb.gmra.mxu1 %vm302_vm2, %v2750_v26  ;;  %v1751_v38 = vsel %vm306_vm1, %v1736_v28, 0 }
 0x164   : > { %1658 = vmatpush.bf16.msrb.mxu1 %v1573_v60 }
 0x166   : > { %v685_v61 = vpop.f32.mrf.mxu2 }
 0x167   : > { %v2806_v63 = vadd.f32 %v685_v61, %v2728_v10  ;;  %v699_v1 = vpop.f32.mrf.mxu3  ;;  %v1576_v10 = vsel %vm306_vm1, %v1553_v2, 0 }
 0x168   : > { %v2810_v4 = vadd.f32 %v699_v1, %v2732_v12  ;;  %v711_v3 = vpop.f32.mrf.mxu0  ;;  %v727_v5 = vpop.f32.mrf.mxu1 }
 0x169   : > { %v2813_v6 = vadd.f32 %v711_v3, %v2735_v15  ;;  %v2816_v7 = vadd.f32 %v727_v5, %v2738_v16  ;;  %v1720_v12 = vpop.permute.xlu0 %1719  ;;  %v2257_v5 = vld [vmem:[#allocation2 + $0x40] sm:$0xff] }
 0x16a   : > { %v1735_v14 = vsel %vm1733_vm9, %v1720_v12, %v1722_v11 }
 0x16b   : > { %2216 = vmatmul.msk.bf16.vlgmr.msrb.gmra.mxu0 %vm302_vm2, %v2750_v26  ;;  %2218 = vmatmul.msk.bf16.vlgmr.msrb.gmra.mxu2 %vm302_vm2, %v2750_v26  ;;  %v1748_v23 = vsel %vm306_vm1, %v1735_v14, 0 }
 0x16c   : > { %2219 = vmatmul.msk.bf16.vlgmr.msrb.gmra.mxu3 %vm302_vm2, %v2750_v26  ;;  %1644 = vmatpush.bf16.msrb.mxu0 %v1570_v9 }
 0x16d   : > { %1686 = vmatpush.bf16.msrb.mxu3 %v1579_v8  ;;  %1672 = vmatpush.bf16.msrb.mxu2 %v1576_v10 }
 0x16e   : > { %v739_v13 = vpop.f32.mrf.mxu2 }
 0x16f   : > { %v2829_v15 = vadd.f32 %v739_v13, %v2748_v24  ;;  %v753_v16 = vpop.f32.mrf.mxu3  ;;  %v1718_v24 = vpop.permute.xlu2 %1717 }
 0x170   : > { %v2832_v18 = vadd.f32 %v753_v16, %v2753_v27  ;;  %v713_v19 = vpop.f32.mrf.mxu0  ;;  %v856_v20 = vpop.f32.mrf.mxu1  ;;  %v1734_v32 = vsel %vm1733_vm9, %v1718_v24, %v1720_v12 }
 0x171   : > { %v2835_v21 = vadd.f32 %v713_v19, %v2756_v30  ;;  %v2838_v22 = vadd.f32 %v856_v20, %v2759_v31  ;;  %v1737_v30 = vsel %vm1733_vm9, %v1724_v62, %v1726_v25 }
 0x172   : > { %v1754_v39 = vsel %vm306_vm1, %v1737_v30, 0 }
 0x173   : > { %2225 = vmatmul.msk.bf16.vlgmr.msra.gmra.mxu1 %vm302_vm2, %v2256_v17 }
 0x174   : > { %1789 = vmatpush.bf16.msra.mxu1 %v1748_v23 }
 0x176   : > { %v741_v26 = vpop.f32.mrf.mxu2 }
 0x177   : > { %v2844_v27 = vadd.f32 %v741_v26, %v2766_v36  ;;  %v755_v29 = vpop.f32.mrf.mxu3  ;;  %v1745_v36 = vsel %vm306_vm1, %v1734_v32, 0  ;;  %v1732_v52 = vpop.permute.xlu2 %1731 }
 0x178   : > { %v773_v31 = vadd.f32 %v755_v29, %v2771_v41  ;;  %v842_v33 = vpop.f32.mrf.mxu0  ;;  %v858_v34 = vpop.f32.mrf.mxu1  ;;  %v1766_v1 = vsel %vm306_vm1, %v1732_v52, 0 }
 0x179   : > { %v945_v35 = vadd.f32 %v842_v33, %v2774_v45  ;;  %v954_v37 = vadd.f32 %v858_v34, %v2777_v47  ;;  %v1728_v41 = vpop.permute.xlu0 %1727 }
 0x17a   : > { %v1739_v43 = vsel %vm1733_vm9, %v1728_v41, %v1730_v40  ;;  %v1738_v56 = vsel %vm1733_vm9, %v1726_v25, %v1728_v41 }
 0x17b   : > { %2224 = vmatmul.msk.bf16.vlgmr.msra.gmra.mxu0 %vm302_vm2, %v2256_v17  ;;  %2226 = vmatmul.msk.bf16.vlgmr.msra.gmra.mxu2 %vm302_vm2, %v2256_v17  ;;  %v1760_v51 = vsel %vm306_vm1, %v1739_v43, 0  ;;  %v1757_v0 = vsel %vm306_vm1, %v1738_v56, 0 }
 0x17c   : > { %2227 = vmatmul.msk.bf16.vlgmr.msra.gmra.mxu3 %vm302_vm2, %v2256_v17  ;;  %1803 = vmatpush.bf16.msra.mxu2 %v1751_v38 }
 0x17d   : > { %1817 = vmatpush.bf16.msra.mxu3 %v1754_v39  ;;  %1775 = vmatpush.bf16.msra.mxu0 %v1745_v36 }
 0x17e   : > { %v870_v42 = vpop.f32.mrf.mxu2 }
 0x17f   : > { %v947_v45 = vadd.f32 %v870_v42, %v2790_v53  ;;  %v884_v47 = vpop.f32.mrf.mxu3 }
 0x180   : > { %v948_v44 = vadd.f32 %v884_v47, %v2793_v55  ;;  %v844_v48 = vpop.f32.mrf.mxu0  ;;  %v912_v49 = vpop.f32.mrf.mxu1  ;;  %v1740_v55 = vsel %vm1733_vm9, %v1730_v40, %v1732_v52 }
 0x181   : > { %v953_v46 = vadd.f32 %v844_v48, %v2796_v58  ;;  %v950_v50 = vadd.f32 %v912_v49, %v2799_v59  ;;  %v1763_v2 = vsel %vm306_vm1, %v1740_v55, 0 }
 0x183   : > { %2229 = vmatmul.msk.bf16.vlgmr.msrb.gmra.mxu1 %vm302_vm2, %v2256_v17 }
 0x184   : > { %1845 = vmatpush.bf16.msrb.mxu1 %v1760_v51 }
 0x186   : > { %v872_v54 = vpop.f32.mrf.mxu2 }
 0x187   : > { %v955_v53 = vadd.f32 %v872_v54, %v2806_v63  ;;  %v886_v57 = vpop.f32.mrf.mxu3 }
 0x188   : > { %v956_v60 = vadd.f32 %v886_v57, %v2810_v4  ;;  %v898_v62 = vpop.f32.mrf.mxu0  ;;  %v914_v58 = vpop.f32.mrf.mxu1 }
 0x189   : > { %v949_v59 = vadd.f32 %v898_v62, %v2813_v6  ;;  %v958_v61 = vadd.f32 %v914_v58, %v2816_v7 }
 0x18b   : > { %2228 = vmatmul.msk.bf16.vlgmr.msrb.gmra.mxu0 %vm302_vm2, %v2256_v17  ;;  %2230 = vmatmul.msk.bf16.vlgmr.msrb.gmra.mxu2 %vm302_vm2, %v2256_v17 }
 0x18c   : > { %2231 = vmatmul.msk.bf16.vlgmr.msrb.gmra.mxu3 %vm302_vm2, %v2256_v17  ;;  %1831 = vmatpush.bf16.msrb.mxu0 %v1757_v0 }
 0x18d   : > { %1873 = vmatpush.bf16.msrb.mxu3 %v1766_v1  ;;  %1859 = vmatpush.bf16.msrb.mxu2 %v1763_v2 }
 0x18e   : > { %v926_v63 = vpop.f32.mrf.mxu2 }
 0x18f   : > { %v951_v4 = vadd.f32 %v926_v63, %v2829_v15  ;;  %v940_v3 = vpop.f32.mrf.mxu3 }
 0x190   : > { %v952_v6 = vadd.f32 %v940_v3, %v2832_v18  ;;  %v900_v7 = vpop.f32.mrf.mxu0  ;;  %v1043_v9 = vpop.f32.mrf.mxu1 }
 0x191   : > { %v957_v8 = vadd.f32 %v900_v7, %v2835_v21  ;;  %v1133_v10 = vadd.f32 %v1043_v9, %v2838_v22 }
 0x193   : > { %2237 = vmatmul.msk.bf16.vlgmr.msra.gmra.mxu1 %vm302_vm2, %v2257_v5 }
 0x196   : > { %v928_v11 = vpop.f32.mrf.mxu2 }
 0x197   : > { %v959_v12 = vadd.f32 %v928_v11, %v2844_v27  ;;  %v942_v13 = vpop.f32.mrf.mxu3 }
 0x198   : > { %v960_v14 = vadd.f32 %v942_v13, %v773_v31  ;;  %v1029_v16 = vpop.f32.mrf.mxu0  ;;  %v1045_v17 = vpop.f32.mrf.mxu1 }
 0x199   : > { %v1132_v15 = vadd.f32 %v1029_v16, %v945_v35  ;;  %v1141_v19 = vadd.f32 %v1045_v17, %v954_v37 }
 0x19b   : > { %2236 = vmatmul.msk.bf16.vlgmr.msra.gmra.mxu0 %vm302_vm2, %v2257_v5  ;;  %2238 = vmatmul.msk.bf16.vlgmr.msra.gmra.mxu2 %vm302_vm2, %v2257_v5 }
 0x19c   : > { %2239 = vmatmul.msk.bf16.vlgmr.msra.gmra.mxu3 %vm302_vm2, %v2257_v5 }
 0x19e   : > { %v1057_v18 = vpop.f32.mrf.mxu2 }
 0x19f   : > { %v1134_v20 = vadd.f32 %v1057_v18, %v947_v45  ;;  %v1071_v21 = vpop.f32.mrf.mxu3 }
 0x1a0   : > { %v1135_v22 = vadd.f32 %v1071_v21, %v948_v44  ;;  %v1031_v23 = vpop.f32.mrf.mxu0  ;;  %v1099_v25 = vpop.f32.mrf.mxu1 }
 0x1a1   : > { %v1140_v24 = vadd.f32 %v1031_v23, %v953_v46  ;;  %v1137_v26 = vadd.f32 %v1099_v25, %v950_v50 }
 0x1a3   : > { %2241 = vmatmul.msk.bf16.vlgmr.msrb.gmra.mxu1 %vm302_vm2, %v2257_v5 }
 0x1a6   : > { %v1059_v28 = vpop.f32.mrf.mxu2 }
 0x1a7   : > { %v1142_v27 = vadd.f32 %v1059_v28, %v955_v53  ;;  %v1073_v29 = vpop.f32.mrf.mxu3 }
 0x1a8   : > { %v1143_v30 = vadd.f32 %v1073_v29, %v956_v60  ;;  %v1085_v32 = vpop.f32.mrf.mxu0  ;;  %v1101_v31 = vpop.f32.mrf.mxu1 }
 0x1a9   : > { %v1136_v33 = vadd.f32 %v1085_v32, %v949_v59  ;;  %v1145_v34 = vadd.f32 %v1101_v31, %v958_v61 }
 0x1ab   : > { %2240 = vmatmul.msk.bf16.vlgmr.msrb.gmra.mxu0 %vm302_vm2, %v2257_v5  ;;  %2242 = vmatmul.msk.bf16.vlgmr.msrb.gmra.mxu2 %vm302_vm2, %v2257_v5 }
 0x1ac   : > { %2243 = vmatmul.msk.bf16.vlgmr.msrb.gmra.mxu3 %vm302_vm2, %v2257_v5 }
 0x1ae   : > { %v1113_v35 = vpop.f32.mrf.mxu2 }
 0x1af   : > { %v1138_v37 = vadd.f32 %v1113_v35, %v951_v4  ;;  %v1127_v38 = vpop.f32.mrf.mxu3 }
 0x1b0   : > { %v1139_v39 = vadd.f32 %v1127_v38, %v952_v6  ;;  %v1087_v36 = vpop.f32.mrf.mxu0  ;;  %v1230_v40 = vpop.f32.mrf.mxu1 }
 0x1b1   : > { %v1144_v41 = vadd.f32 %v1087_v36, %v957_v8  ;;  %v2889_v42 = vadd.f32 %v1230_v40, %v1133_v10 }
 0x1b6   : > { %v1115_v43 = vpop.f32.mrf.mxu2 }
 0x1b7   : > { %v1146_v45 = vadd.f32 %v1115_v43, %v959_v12  ;;  %v1129_v47 = vpop.f32.mrf.mxu3 }
 0x1b8   : > { %v1147_v44 = vadd.f32 %v1129_v47, %v960_v14  ;;  %v1216_v48 = vpop.f32.mrf.mxu0  ;;  %v1232_v49 = vpop.f32.mrf.mxu1 }
 0x1b9   : > { %v1319_v46 = vadd.f32 %v1216_v48, %v1132_v15  ;;  %v2891_v50 = vadd.f32 %v1232_v49, %v1141_v19 }
 0x1be   : > { %v1244_v51 = vpop.f32.mrf.mxu2 }
 0x1bf   : > { %v2893_v52 = vadd.f32 %v1244_v51, %v1134_v20  ;;  %v1258_v54 = vpop.f32.mrf.mxu3 }
 0x1c0   : > { %v2895_v56 = vadd.f32 %v1258_v54, %v1135_v22  ;;  %v1218_v53 = vpop.f32.mrf.mxu0  ;;  %v1286_v57 = vpop.f32.mrf.mxu1 }
 0x1c1   : > { %v2897_v55 = vadd.f32 %v1218_v53, %v1140_v24  ;;  %v2899_v60 = vadd.f32 %v1286_v57, %v1137_v26 }
 0x1c6   : > { %v1246_v62 = vpop.f32.mrf.mxu2 }
 0x1c7   : > { %v2901_v58 = vadd.f32 %v1246_v62, %v1142_v27  ;;  %v1260_v59 = vpop.f32.mrf.mxu3 }
 0x1c8   : > { %v2903_v61 = vadd.f32 %v1260_v59, %v1143_v30  ;;  %v1272_v0 = vpop.f32.mrf.mxu0  ;;  %v1288_v1 = vpop.f32.mrf.mxu1 }
 0x1c9   : > { %v2905_v2 = vadd.f32 %v1272_v0, %v1136_v33  ;;  %v2907_v63 = vadd.f32 %v1288_v1, %v1145_v34 }
 0x1ce   : > { %v1300_v4 = vpop.f32.mrf.mxu2 }
 0x1cf   : > { %v2909_v3 = vadd.f32 %v1300_v4, %v1138_v37  ;;  %v1314_v5 = vpop.f32.mrf.mxu3 }
 0x1d0   : > { %v2911_v6 = vadd.f32 %v1314_v5, %v1139_v39  ;;  %v1274_v7 = vpop.f32.mrf.mxu0  ;;  %v1417_v9 = vpop.f32.mrf.mxu1 }
 0x1d1   : > { %v2913_v8 = vadd.f32 %v1274_v7, %v1144_v41  ;;  %v1507_v47 = vadd.f32 %v1417_v9, %v2889_v42 }
 0x1d6   : > { %v1302_v10 = vpop.f32.mrf.mxu2 }
 0x1d7   : > { %v2915_v11 = vadd.f32 %v1302_v10, %v1146_v45  ;;  %v1316_v12 = vpop.f32.mrf.mxu3 }
 0x1d8   : > { %v2917_v13 = vadd.f32 %v1316_v12, %v1147_v44  ;;  %v1403_v14 = vpop.f32.mrf.mxu0  ;;  %v1419_v16 = vpop.f32.mrf.mxu1  ;;  %v2954_v44 = vld [vmem:[#allocation4] sm:$0xff] }
 0x1d9   : > { %v1506_v49 = vadd.f32 %v1403_v14, %v1319_v46  ;;  %v1899_v54 = vperm.slane %v2954_v44, 1  ;;  %v1898_v59 = vperm.slane %v2954_v44, 0  ;;  %v1515_v0 = vadd.f32 %v1419_v16, %v2891_v50 }
 0x1de   : > { %v1431_v17 = vpop.f32.mrf.mxu2 }
 0x1df   : > { %v1445_v15 = vpop.f32.mrf.mxu3  ;;  %v1508_v7 = vadd.f32 %v1431_v17, %v2893_v52  ;;  %v1900_v52 = vperm.slane %v2954_v44, 2 }
 0x1e0   : > { %v1405_v19 = vpop.f32.mrf.mxu0  ;;  %v1473_v18 = vpop.f32.mrf.mxu1  ;;  %v1509_v12 = vadd.f32 %v1445_v15, %v2895_v56 }
 0x1e1   : > { %v1514_v14 = vadd.f32 %v1405_v19, %v2897_v55  ;;  %v1511_v56 = vadd.f32 %v1473_v18, %v2899_v60 }
 0x1e6   : > { %v2919_v20 = vpop.f32.mrf.mxu2 }
 0x1e7   : > { %v2921_v21 = vpop.f32.mrf.mxu3 }
 0x1e8   : > { %v2923_v22 = vpop.f32.mrf.mxu0  ;;  %v2925_v23 = vpop.f32.mrf.mxu1 }
 0x1ee   : > { %v2927_v25 = vpop.f32.mrf.mxu2 }
 0x1ef   : > { %v2929_v24 = vpop.f32.mrf.mxu3 }
 0x1f0   : > { %v2931_v26 = vpop.f32.mrf.mxu0  ;;  %v1604_v28 = vpop.f32.mrf.mxu1 }
 0x1f1   : > { %v1694_v48 = vadd.f32 %v1604_v28, %v1507_v47  ;;  %v1901_v47 = vperm.slane %v2954_v44, 3 }
 0x1f6   : > { %v2933_v27 = vpop.f32.mrf.mxu2 }
 0x1f7   : > { %v2935_v29 = vpop.f32.mrf.mxu3 }
 0x1f8   : > { %v1590_v30 = vpop.f32.mrf.mxu0  ;;  %v1606_v32 = vpop.f32.mrf.mxu1 }
 0x1f9   : > { %v1693_v57 = vadd.f32 %v1590_v30, %v1506_v49  ;;  %v1702_v46 = vadd.f32 %v1606_v32, %v1515_v0  ;;  %v1517_v0 = vadd.f32 %v2921_v21, %v2903_v61 }
 0x1fe   : > { %v1618_v31 = vpop.f32.mrf.mxu2 }
 0x1ff   : > { %v1632_v33 = vpop.f32.mrf.mxu3  ;;  %v1695_v50 = vadd.f32 %v1618_v31, %v1508_v7  ;;  %v1516_v31 = vadd.f32 %v2919_v20, %v2901_v58 }
 0x200   : > { %v1592_v34 = vpop.f32.mrf.mxu0  ;;  %v2937_v35 = vpop.f32.mrf.mxu1  ;;  %v1696_v17 = vadd.f32 %v1632_v33, %v1509_v12 }
 0x201   : > { %v1698_v20 = vadd.f32 %v2937_v35, %v1511_v56 }
 0x206   : > { %v2939_v37 = vpop.f32.mrf.mxu2 }
 0x207   : > { %v2941_v38 = vpop.f32.mrf.mxu3  ;;  %v1703_v61 = vadd.f32 %v2939_v37, %v1516_v31 }
 0x208   : > { %v2943_v39 = vpop.f32.mrf.mxu0  ;;  %v2945_v36 = vpop.f32.mrf.mxu1 }
 0x20e   : > { %v2947_v40 = vpop.f32.mrf.mxu2 }
 0x20f   : > { %v2949_v41 = vpop.f32.mrf.mxu3 }
 0x210   : > { %v2951_v43 = vpop.f32.mrf.mxu0  ;;  %v1791_v45 = vpop.f32.mrf.mxu1 }
 0x211   : > { %v1881_v51 = vadd.f32 %v1791_v45, %v1694_v48  ;;  %v1701_v48 = vadd.f32 %v1592_v34, %v1514_v14  ;;  %v1510_v34 = vadd.f32 %v2923_v22, %v2905_v2 }
 0x213   : > { %v1915_v42 = vmul.f32 %v1899_v54, %v1881_v51 }
 0x215   : > { %v1952_v28 = vmul.f32 %v1915_v42, %v1915_v42 }
 0x216   : > { %v2957_v53 = vpop.f32.mrf.mxu2 }
 0x217   : > { %v2959_v62 = vpop.f32.mrf.mxu3 }
 0x218   : > { %v1777_v1 = vpop.f32.mrf.mxu0  ;;  %v1793_v4 = vpop.f32.mrf.mxu1 }
 0x219   : > { %v1880_v5 = vadd.f32 %v1777_v1, %v1693_v57  ;;  %v1889_v16 = vadd.f32 %v1793_v4, %v1702_v46 }
 0x21b   : > { %v1914_v9 = vmul.f32 %v1898_v59, %v1880_v5  ;;  %v1993_v10 = vpack.c.bf16 %v1881_v51, %v1880_v5  ;;  %v1923_v15 = vmul.f32 %v1899_v54, %v1889_v16 }
 0x21d   : > { %v1930_v30 = vadd.f32 %v1915_v42, %v1914_v9  ;;  %v1951_v45 = vmul.f32 %v1914_v9, %v1914_v9  ;;  %2001 = vst [vmem:[%s2968_s21] sm:$0xff] %v1993_v10  ;;  %v1519_v42 = vadd.f32 %v2925_v23, %v2907_v63  ;;  %v1960_v21 = vmul.f32 %v1923_v15, %v1923_v15 }
 0x21e   : > { %v1805_v32 = vpop.f32.mrf.mxu2  ;;  %v1704_v63 = vadd.f32 %v2941_v38, %v1517_v0  ;;  %v1697_v23 = vadd.f32 %v2943_v39, %v1510_v34  ;;  %v1518_v39 = vadd.f32 %v2931_v26, %v2913_v8  ;;  %v1904_v8 = vperm.slane %v2954_v44, 6 }
 0x21f   : > { %v1967_v49 = vadd.f32 %v1952_v28, %v1951_v45  ;;  %v1882_v57 = vadd.f32 %v1805_v32, %v1695_v50  ;;  %v1819_v51 = vpop.f32.mrf.mxu3  ;;  %v1902_v28 = vperm.slane %v2954_v44, 4  ;;  %v1513_v45 = vadd.f32 %v2929_v24, %v2911_v6 }
 0x220   : > { %v1883_v55 = vadd.f32 %v1819_v51, %v1696_v17  ;;  %v1779_v19 = vpop.f32.mrf.mxu0  ;;  %v1847_v4 = vpop.f32.mrf.mxu1  ;;  %v1706_v32 = vadd.f32 %v2945_v36, %v1519_v42  ;;  %v1905_v26 = vperm.slane %v2954_v44, 7 }
 0x221   : > { %v1916_v33 = vmul.f32 %v1900_v52, %v1882_v57  ;;  %v1888_v1 = vadd.f32 %v1779_v19, %v1701_v48  ;;  %v1885_v12 = vadd.f32 %v1847_v4, %v1698_v20  ;;  %v1700_v19 = vadd.f32 %v2949_v41, %v1513_v45 }
 0x222   : > { %v1917_v60 = vmul.f32 %v1901_v47, %v1883_v55  ;;  %v1994_v18 = vpack.c.bf16 %v1883_v55, %v1882_v57  ;;  %v1520_v20 = vadd.f32 %v2933_v27, %v2915_v11 }
 0x223   : > { %v1931_v54 = vadd.f32 %v1930_v30, %v1916_v33  ;;  %v1953_v5 = vmul.f32 %v1916_v33, %v1916_v33  ;;  %v1922_v7 = vmul.f32 %v1898_v59, %v1888_v1  ;;  %v1997_v58 = vpack.c.bf16 %v1889_v16, %v1888_v1 }
 0x224   : > { %v1954_v46 = vmul.f32 %v1917_v60, %v1917_v60  ;;  %2002 = vst [vmem:[%s2968_s21 + $0x8] sm:$0xff] %v1994_v18  ;;  %v1903_v59 = vperm.slane %v2954_v44, 5  ;;  %v1512_v30 = vadd.f32 %v2927_v25, %v2909_v3 }
 0x225   : > { %v1968_v9 = vadd.f32 %v1967_v49, %v1953_v5  ;;  %v1932_v10 = vadd.f32 %v1931_v54, %v1917_v60  ;;  %v1941_v2 = vadd.f32 %v1923_v15, %v1922_v7  ;;  %v1959_v22 = vmul.f32 %v1922_v7, %v1922_v7  ;;  %2007 = vst [vmem:[%s2968_s21 + $0x20] sm:$0xff] %v1997_v58 }
 0x226   : > { %v1807_v14 = vpop.f32.mrf.mxu2  ;;  %v1699_v57 = vadd.f32 %v2947_v40, %v1512_v30  ;;  %v1919_v51 = vmul.f32 %v1903_v59, %v1885_v12 }
 0x227   : > { %v1969_v50 = vadd.f32 %v1968_v9, %v1954_v46  ;;  %v1977_v35 = vadd.f32 %v1960_v21, %v1959_v22  ;;  %v1890_v16 = vadd.f32 %v1807_v14, %v1703_v61  ;;  %v1821_v37 = vpop.f32.mrf.mxu3 }
 0x228   : > { %v1891_v17 = vadd.f32 %v1821_v37, %v1704_v63  ;;  %v1833_v38 = vpop.f32.mrf.mxu0  ;;  %v1849_v24 = vpop.f32.mrf.mxu1  ;;  %v1956_v33 = vmul.f32 %v1919_v51, %v1919_v51  ;;  %v1521_v63 = vadd.f32 %v2935_v29, %v2917_v13 }
 0x229   : > { %v1924_v48 = vmul.f32 %v1900_v52, %v1890_v16  ;;  %v1884_v49 = vadd.f32 %v1833_v38, %v1697_v23  ;;  %v1893_v1 = vadd.f32 %v1849_v24, %v1706_v32  ;;  %v1707_v23 = vadd.f32 %v2957_v53, %v1520_v20 }
 0x22a   : > { %v1925_v56 = vmul.f32 %v1901_v47, %v1891_v17  ;;  %v1998_v15 = vpack.c.bf16 %v1891_v17, %v1890_v16  ;;  %v1705_v47 = vadd.f32 %v2951_v43, %v1518_v39 }
 0x22b   : > { %v1942_v3 = vadd.f32 %v1941_v2, %v1924_v48  ;;  %v1961_v25 = vmul.f32 %v1924_v48, %v1924_v48  ;;  %v1918_v55 = vmul.f32 %v1902_v28, %v1884_v49  ;;  %v1995_v6 = vpack.c.bf16 %v1885_v12, %v1884_v49 }
 0x22c   : > { %v1962_v31 = vmul.f32 %v1925_v56, %v1925_v56  ;;  %2008 = vst [vmem:[%s2968_s21 + $0x28] sm:$0xff] %v1998_v15  ;;  %v1927_v61 = vmul.f32 %v1903_v59, %v1893_v1 }
 0x22d   : > { %v1978_v36 = vadd.f32 %v1977_v35, %v1961_v25  ;;  %v1943_v52 = vadd.f32 %v1942_v3, %v1925_v56  ;;  %v1933_v40 = vadd.f32 %v1932_v10, %v1918_v55  ;;  %v1955_v0 = vmul.f32 %v1918_v55, %v1918_v55  ;;  %2003 = vst [vmem:[%s2968_s21 + $0x10] sm:$0xff] %v1995_v6 }
 0x22e   : > { %v1861_v4 = vpop.f32.mrf.mxu2  ;;  %v1708_v35 = vadd.f32 %v2959_v62, %v1521_v63  ;;  %v1964_v16 = vmul.f32 %v1927_v61, %v1927_v61 }
 0x22f   : > { %v1979_v34 = vadd.f32 %v1978_v36, %v1962_v31  ;;  %v1970_v42 = vadd.f32 %v1969_v50, %v1955_v0  ;;  %v1886_v41 = vadd.f32 %v1861_v4, %v1699_v57  ;;  %v1875_v60 = vpop.f32.mrf.mxu3  ;;  %v1934_v18 = vadd.f32 %v1933_v40, %v1919_v51 }
 0x230   : > { %v1887_v54 = vadd.f32 %v1875_v60, %v1700_v19  ;;  %v1835_v5 = vpop.f32.mrf.mxu0 }
 0x231   : > { %v1920_v44 = vmul.f32 %v1904_v8, %v1886_v41  ;;  %v1892_v58 = vadd.f32 %v1835_v5, %v1705_v47  ;;  %v1971_v43 = vadd.f32 %v1970_v42, %v1956_v33 }
 0x232   : > { %v1921_v21 = vmul.f32 %v1905_v26, %v1887_v54  ;;  %v1996_v46 = vpack.c.bf16 %v1887_v54, %v1886_v41 }
 0x233   : > { %v1957_v9 = vmul.f32 %v1920_v44, %v1920_v44  ;;  %v1926_v10 = vmul.f32 %v1902_v28, %v1892_v58  ;;  %v1999_v2 = vpack.c.bf16 %v1893_v1, %v1892_v58  ;;  %v1935_v22 = vadd.f32 %v1934_v18, %v1920_v44 }
 0x234   : > { %2006 = vst.msk [vmem:[%s2968_s21 + $0x18] sm:$0xff] %vm3007_vm11, %v1996_v46  ;;  %v1937_v12 = vsel %vm1936_vm12, %v1921_v21, 0.0  ;;  %v1958_v14 = vmul.f32 %v1921_v21, %v1921_v21 }
 0x235   : > { %v1944_v50 = vadd.f32 %v1943_v52, %v1926_v10  ;;  %v1963_v11 = vmul.f32 %v1926_v10, %v1926_v10  ;;  %2009 = vst [vmem:[%s2968_s21 + $0x30] sm:$0xff] %v1999_v2  ;;  %v1938_v27 = vadd.f32 %v1937_v12, %v1935_v22  ;;  %v1972_v59 = vadd.f32 %v1971_v43, %v1957_v9 }
 0x236   : > { %v1863_v37 = vpop.f32.mrf.mxu2  ;;  %v1973_v13 = vsel %vm1936_vm12, %v1958_v14, 0.0 }
 0x237   : > { %v1980_v29 = vadd.f32 %v1979_v34, %v1963_v11  ;;  %v1894_v53 = vadd.f32 %v1863_v37, %v1707_v23  ;;  %v1877_v28 = vpop.f32.mrf.mxu3  ;;  %1939 = vadd.xlane.f32.xlu1 %v1938_v27  ;;  %v1974_v30 = vadd.f32 %v1973_v13, %v1972_v59  ;;  %v1945_v45 = vadd.f32 %v1944_v50, %v1927_v61 }
 0x238   : > { %v1895_v17 = vadd.f32 %v1877_v28, %v1708_v35 }
 0x239   : > { %v1928_v38 = vmul.f32 %v1904_v8, %v1894_v53  ;;  %1975 = vadd.xlane.f32.xlu0 %v1974_v30  ;;  %v1981_v39 = vadd.f32 %v1980_v29, %v1964_v16 }
 0x23a   : > { %v1929_v32 = vmul.f32 %v1905_v26, %v1895_v17  ;;  %v2000_v48 = vpack.c.bf16 %v1895_v17, %v1894_v53 }
 0x23b   : > { %v1965_v49 = vmul.f32 %v1928_v38, %v1928_v38  ;;  %v1946_v62 = vadd.f32 %v1945_v45, %v1928_v38 }
 0x23c   : > { %2010 = vst.msk [vmem:[%s2968_s21 + $0x38] sm:$0xff] %vm3007_vm11, %v2000_v48  ;;  %v1947_v57 = vsel %vm1936_vm12, %v1929_v32, 0.0  ;;  %v1966_v51 = vmul.f32 %v1929_v32, %v1929_v32 }
 0x23d   : > { %v1948_v56 = vadd.f32 %v1947_v57, %v1946_v62  ;;  %v1982_v15 = vadd.f32 %v1981_v39, %v1965_v49 }
 0x23e   : > { %v1983_v3 = vsel %vm1936_vm12, %v1966_v51, 0.0 }
 0x23f   : > { %1949 = vadd.xlane.f32.xlu2 %v1948_v56  ;;  %v1984_v25 = vadd.f32 %v1983_v3, %v1982_v15 }
 0x247   : > { %1985 = vadd.xlane.f32.xlu2 %v1984_v25 }
 0x2aa   : > { %v1940_v55 = vpop.xlane.xlu1 %1939 }
 0x2ac   : > { %v1976_v6 = vpop.xlane.xlu0 %1975 }
 0x2ad   : > { %v1988_v24 = vsel %vm1987_vm13, %v1940_v55, %v1976_v6 }
 0x2ae   : > { %1991 = vst.msk [vmem:[%s242_s25] sm:$0xff] %vm1990_vm14, %v1988_v24 }
 0x2b2   : > { %v1950_v19 = vpop.xlane.xlu2 %1949 }
 0x2ba   : > { %v1986_v31 = vpop.xlane.xlu2 %1985 }
 0x2bb   : > { %v1989_v8 = vsel %vm1987_vm13, %v1950_v19, %v1986_v31 }
 0x2bc   : > { %1992 = vst.msk [vmem:[%s242_s25 + $0x8] sm:$0xff] %vm1990_vm14, %v1989_v8 }
 0x2bd PF: > { %s17_s15 = sadd.s32 1, %s2371_s15  }
 0x2be   : > { %p14_p7 = scmp.ge.s32.totalorder %s17_s15, 4  }
 0x2c0   :  { %16 = sbr.rel (!%p14_p7) target bundleno = 2 (0x2), region = 91 }
 0x2c5   :  { %2048 = vsyncpa [#allocation3], 1 }
 0x2c6   :  { %2050 = vsyncpa [#allocation3 + $0x1], 1 }
 0x2c7   :  { %2051 = vsyncpa [#allocation5], 1 }

// kernel: _lambda_.7
= control target key start
LH: loop header
LB: loop body
LE: loop exit
PB: predicated region body
PF: predicated region fallthrough
CT: control target
= control target key end

     0   :  { %7 = vsyncpa [#allocation3], 0  ;;  %s6733_s9 = smov 0   ;;  %s9516_s0 = inlined_call_operand.hbm [shape: bf16[9,12,4], index: 0, kind: input, shape index: {}]   ;;  %s9517_s1 = inlined_call_operand.vmem [shape: bf16[2,4,3584], index: 1, kind: input, shape index: {}]   ;;  %s9518_s2 = inlined_call_operand.vmem [shape: f32[2,12,3364], index: 2, kind: output, shape index: {}]  }
   0x1 LB: > { %s102_s12 = sshll.u32 %s9516_s0, 4  ;;  %s6227_s13 = sadd.s32 4294967295, %s6705_s9   ;;  %s6705_s9 = sphi %s6733_s9, %s13_s9   ;;  %s103_s12 = int_to_ptr.hbm [resolvable:$true] %s102_s12 }
   0x2   : > { %p6229_p0 = scmp.ge.s32.totalorder %s6705_s9, 1  ;;  %p91_p1 = scmp.lt.s32.totalorder %s6705_s9, 3 }
   0x3   : > { %p6536_p2 = scmp.eq.s32.totalorder %s6227_s13, 0  ;;  %s6707_s14 = smov [#allocation2]  }
   0x4   : > { %p92_p3 = pnand %p6229_p0, %p91_p1  ;;  %s104_s15 = sshll.u32 %s6707_s14, 4  ;;  %s105_s15 = int_to_ptr.vmem [resolvable:$true] %s104_s15 }
   0x5   : > { %s6708_s16 = smov 64   ;;  %s6709_s17 = smov 4  }
   0x6   : > { %p6532_p4 = pneg %p92_p3  ;;  %128 = sbr.rel (%p92_p3) target bundleno = 1266 (0x4f2), region = 28 }
   0x8   : > { %p6533_p5 = pnand %p6536_p2, %p6532_p4 }
   0xa   : > { %6535 = dma.hbm_to_vmem [thread:$0]  (!%p6533_p5), %s103_s12, 1152, %s105_s15, [#allocation3], %s6708_s16, %s6708_s16, %s6709_s17  }
   0xb   : > { %6700 = dma.done.wait (%p6536_p2), [#allocation3], 1152  }
   0xc   : > { %6702 = vsyncadd (%p6536_p2), [#allocation3], 4294966144  ;;  %p151_p6 = scmp.lt.s32.totalorder %s6227_s13, 1  ;;  %s6710_s22 = smov 127   ;;  %v6238_v51 = vld [vmem:[#allocation2 + $0x8] sm:$0xf] }
   0xd   : > { %v6518_v52 = vld [vmem:[#allocation2 + $0x8] sm:$0x30]  ;;  %vm302_vm0 = vcmask 1039360   ;;  %vm333_vm1 = vcmask 1041408   ;;  %vm329_vm2 = vcmask 31744   ;;  %s6711_s23 = smov 126  }
   0xe   : > { %s9751_s13 = smov (!%p151_p6, %s6227_s13), 1  ;;  %v6836_v55 = vor.u32 %v6518_v52, %v6238_v51  ;;  %s6712_s24 = smov 70   ;;  %vm1406_vm3 = vcmask 1031168   ;;  %vm2087_vm4 = vcmask 572416   ;;  %vm2768_vm5 = vcmask 564224  }
   0xf   : > { %s6526_s18 = smul.u32 56, %s9751_s13  ;;  %s6713_s25 = smov 69   ;;  %vm3449_vm6 = vcmask 556032   ;;  %vm4134_vm7 = vcmask 97280   ;;  %vm4820_vm8 = vcmask 89088   ;;  %vm5506_vm9 = vcmask 80896  }
  0x10   : > { %s6714_s26 = smov 68   ;;  %s6715_s27 = smov 12   ;;  %vm6130_vm10 = vcmask 293888   ;;  %vm6158_vm11 = vcmask 289792  }
  0x11   : > { %s6750_s21 = scalar_lea.vmem %s9517_s1, %s6526_s18  ;;  %s6716_s28 = smov 11  }
  0x12   : > { %v6753_v0 = vld [vmem:[%s6750_s21] sm:$0xff]  ;;  %v6756_v1 = vld [vmem:[%s6750_s21 + $0x8] sm:$0xff]  ;;  %v6761_v2 = vld [vmem:[%s6750_s21 + $0x10] sm:$0xff]  ;;  %s6717_s29 = smov 10   ;;  %s6527_s30 = smul.u32 432, %s9751_s13 }
  0x13   : > { %180 = vst [vmem:[#allocation1] ss:$4 sm:$0xff] %v6753_v0  ;;  %v6766_v6 = vld [vmem:[%s6750_s21 + $0x18] sm:$0xff]  ;;  %v6774_v13 = vld [vmem:[%s6750_s21 + $0x20] sm:$0xff]  ;;  %v6781_v21 = vld [vmem:[%s6750_s21 + $0x28] sm:$0xff] }
  0x14   : > { %183 = vst [vmem:[#allocation1 + $0x20] ss:$4 sm:$0xff] %v6756_v1  ;;  %v6788_v26 = vld [vmem:[%s6750_s21 + $0x30] sm:$0x3f]  ;;  %s9405_s5 = scalar_lea.vmem %s9518_s2, %s6527_s30 }
  0x1a   : > { %v188_v3 = vld.sshfl [vmem:[#allocation1 + $0x10] sm:$0xff pattern:$0x73625140]  ;;  %v184_v4 = vld.sshfl [vmem:[#allocation1] sm:$0xff pattern:$0x73625140] }
  0x1b   : > { %252 = vrot.lane.b32.xlu0 %v188_v3, %s6710_s22  ;;  %248 = vrot.lane.b32.xlu1 %v184_v4, %s6710_s22  ;;  %v190_v5 = vld.sshfl [vmem:[#allocation1 + $0x18] sm:$0xff pattern:$0x73625140]  ;;  %v186_v7 = vld.sshfl [vmem:[#allocation1 + $0x8] sm:$0xff pattern:$0x73625140] }
  0x1c   : > { %v198_v8 = vld.sshfl [vmem:[#allocation1 + $0x38] sm:$0xff pattern:$0x73625140]  ;;  %v192_v9 = vld.sshfl [vmem:[#allocation1 + $0x20] sm:$0xff pattern:$0x73625140] }
  0x1d   : > { %201 = vst [vmem:[#allocation1] ss:$4 sm:$0xff] %v6761_v2  ;;  %v194_v10 = vld.sshfl [vmem:[#allocation1 + $0x28] sm:$0xff pattern:$0x73625140]  ;;  %256 = vrot.lane.b32.xlu2 %v192_v9, %s6710_s22 }
  0x1e   : > { %v196_v11 = vld.sshfl [vmem:[#allocation1 + $0x30] sm:$0xff pattern:$0x73625140] }
  0x1f   : > { %203 = vst [vmem:[#allocation1 + $0x20] ss:$4 sm:$0xff] %v6766_v6 }
  0x23   : > { %254 = vrot.lane.b32.xlu0 %v190_v5, %s6710_s22  ;;  %250 = vrot.lane.b32.xlu1 %v186_v7, %s6710_s22 }
  0x24   : > { %v206_v12 = vld.sshfl [vmem:[#allocation1 + $0x8] sm:$0xff pattern:$0x73625140]  ;;  %v204_v14 = vld.sshfl [vmem:[#allocation1] sm:$0xff pattern:$0x73625140] }
  0x25   : > { %v208_v15 = vld.sshfl [vmem:[#allocation1 + $0x10] sm:$0xff pattern:$0x73625140]  ;;  %260 = vrot.lane.b32.xlu2 %v196_v11, %s6710_s22  ;;  %v210_v16 = vld.sshfl [vmem:[#allocation1 + $0x18] sm:$0xff pattern:$0x73625140] }
  0x26   : > { %221 = vst [vmem:[#allocation1] ss:$4 sm:$0xff] %v6774_v13  ;;  %v212_v17 = vld.sshfl [vmem:[#allocation1 + $0x20] sm:$0xff pattern:$0x73625140] }
  0x27   : > { %v216_v18 = vld.sshfl [vmem:[#allocation1 + $0x30] sm:$0xff pattern:$0x73625140]  ;;  %v214_v19 = vld.sshfl [vmem:[#allocation1 + $0x28] sm:$0xff pattern:$0x73625140] }
  0x28   : > { %v218_v20 = vld.sshfl [vmem:[#allocation1 + $0x38] sm:$0xff pattern:$0x73625140] }
  0x29   : > { %223 = vst [vmem:[#allocation1 + $0x20] ss:$4 sm:$0xff] %v6781_v21 }
  0x2b   : > { %262 = vrot.lane.b32.xlu0 %v198_v8, %s6710_s22  ;;  %258 = vrot.lane.b32.xlu1 %v194_v10, %s6710_s22 }
  0x2d   : > { %264 = vrot.lane.b32.xlu2 %v204_v14, %s6710_s22  ;;  %v224_v22 = vld.sshfl [vmem:[#allocation1] sm:$0xff pattern:$0x73625140]  ;;  %v226_v23 = vld.sshfl [vmem:[#allocation1 + $0x8] sm:$0xff pattern:$0x73625140] }
  0x2e   : > { %v228_v24 = vld.sshfl [vmem:[#allocation1 + $0x10] sm:$0xff pattern:$0x73625140]  ;;  %v230_v25 = vld.sshfl [vmem:[#allocation1 + $0x18] sm:$0xff pattern:$0x73625140] }
  0x2f   : > { %241 = vst [vmem:[#allocation1] ss:$4 sm:$0xff] %v6788_v26 }
  0x30   : > { %v236_v27 = vld.sshfl [vmem:[#allocation1 + $0x30] sm:$0xff pattern:$0x73625140]  ;;  %v238_v28 = vld.sshfl [vmem:[#allocation1 + $0x38] sm:$0xff pattern:$0x73625140] }
  0x31   : > { %v232_v29 = vld.sshfl [vmem:[#allocation1 + $0x20] sm:$0xff pattern:$0x73625140]  ;;  %v234_v30 = vld.sshfl [vmem:[#allocation1 + $0x28] sm:$0xff pattern:$0x73625140] }
  0x32   : > { %800 = vst [vmem:[#allocation1 + $0x20] ss:$4 sm:$0xff] %v6756_v1 }
  0x33   : > { %268 = vrot.lane.b32.xlu0 %v208_v15, %s6710_s22  ;;  %270 = vrot.lane.b32.xlu1 %v210_v16, %s6710_s22 }
  0x35   : > { %266 = vrot.lane.b32.xlu2 %v206_v12, %s6710_s22 }
  0x36   : > { %v242_v31 = vld.sshfl [vmem:[#allocation1] sm:$0xff pattern:$0x73625140]  ;;  %v244_v32 = vld.sshfl [vmem:[#allocation1 + $0x8] sm:$0xff pattern:$0x73625140] }
  0x37   : > { %v246_v33 = vld.sshfl [vmem:[#allocation1 + $0x10] sm:$0xff pattern:$0x73625140] }
  0x38   : > { %798 = vst [vmem:[#allocation1] ss:$4 sm:$0xff] %v6753_v0 }
  0x39   : > { %v6799_v34 = vld.sshfl [vmem:[#allocation1 + $0x20] sm:$0xff pattern:$0x73625140]  ;;  %v6801_v35 = vld.sshfl [vmem:[#allocation1 + $0x28] sm:$0xff pattern:$0x73625140] }
  0x3a   : > { %v6813_v40 = vld.sshfl [vmem:[#allocation1 + $0x30] sm:$0xff pattern:$0x73625140]  ;;  %v6815_v41 = vld.sshfl [vmem:[#allocation1 + $0x38] sm:$0xff pattern:$0x73625140] }
  0x3b   : > { %272 = vrot.lane.b32.xlu0 %v212_v17, %s6710_s22  ;;  %276 = vrot.lane.b32.xlu1 %v216_v18, %s6710_s22  ;;  %810 = vst [vmem:[#allocation1 + $0x20] ss:$4 sm:$0xff] %v6766_v6 }
  0x3d   : > { %278 = vrot.lane.b32.xlu2 %v218_v20, %s6710_s22 }
  0x3f   : > { %v6803_v36 = vld.sshfl [vmem:[#allocation1] sm:$0xff pattern:$0x73625140]  ;;  %v6805_v37 = vld.sshfl [vmem:[#allocation1 + $0x8] sm:$0xff pattern:$0x73625140] }
  0x40   : > { %v6808_v38 = vld.sshfl [vmem:[#allocation1 + $0x10] sm:$0xff pattern:$0x73625140]  ;;  %v6810_v39 = vld.sshfl [vmem:[#allocation1 + $0x18] sm:$0xff pattern:$0x73625140] }
  0x41   : > { %809 = vst [vmem:[#allocation1] ss:$4 sm:$0xff] %v6761_v2 }
  0x42   : > { %v6821_v42 = vld.sshfl [vmem:[#allocation1 + $0x20] sm:$0xff pattern:$0x73625140]  ;;  %v6823_v43 = vld.sshfl [vmem:[#allocation1 + $0x28] sm:$0xff pattern:$0x73625140] }
  0x43   : > { %274 = vrot.lane.b32.xlu0 %v214_v19, %s6710_s22  ;;  %280 = vrot.lane.b32.xlu1 %v224_v22, %s6710_s22  ;;  %v6825_v44 = vld.sshfl [vmem:[#allocation1 + $0x30] sm:$0xff pattern:$0x73625140]  ;;  %v6827_v45 = vld.sshfl [vmem:[#allocation1 + $0x38] sm:$0xff pattern:$0x73625140] }
  0x44   : > { %820 = vst [vmem:[#allocation1 + $0x20] ss:$4 sm:$0xff] %v6781_v21 }
  0x45   : > { %284 = vrot.lane.b32.xlu2 %v228_v24, %s6710_s22 }
  0x4b   : > { %282 = vrot.lane.b32.xlu1 %v226_v23, %s6710_s22  ;;  %286 = vrot.lane.b32.xlu0 %v230_v25, %s6710_s22 }
  0x4d   : > { %288 = vrot.lane.b32.xlu2 %v232_v29, %s6710_s22 }
  0x53   : > { %292 = vrot.lane.b32.xlu0 %v236_v27, %s6710_s22  ;;  %294 = vrot.lane.b32.xlu1 %v238_v28, %s6710_s22 }
  0x55   : > { %290 = vrot.lane.b32.xlu2 %v234_v30, %s6710_s22 }
  0x5b   : > { %296 = vrot.lane.b32.xlu0 %v242_v31, %s6710_s22  ;;  %300 = vrot.lane.b32.xlu1 %v246_v33, %s6710_s22 }
  0x5d   : > { %298 = vrot.lane.b32.xlu2 %v244_v32, %s6710_s22 }
  0x77   : > { %v257_v46 = vpop.permute.xlu2 %256 }
  0x7f   : > { %v261_v47 = vpop.permute.xlu2 %260 }
  0x87   : > { %v265_v50 = vpop.permute.xlu2 %264 }
  0x8d   : > { %v253_v48 = vpop.permute.xlu0 %252  ;;  %v249_v49 = vpop.permute.xlu1 %248 }
  0x8f   : > { %v267_v3 = vpop.permute.xlu2 %266 }
  0x90   : > { %v311_v4 = vsel %vm302_vm0, %v265_v50, %v267_v3 }
  0x91   : > { %v359_v8 = vsel %vm333_vm1, %v311_v4, 0 }
  0x95   : > { %v255_v53 = vpop.permute.xlu0 %254  ;;  %v251_v54 = vpop.permute.xlu1 %250 }
  0x96   : > { %v303_v56 = vsel %vm302_vm0, %v249_v49, %v251_v54  ;;  %v304_v57 = vsel %vm302_vm0, %v251_v54, %v253_v48  ;;  %v305_v58 = vsel %vm302_vm0, %v253_v48, %v255_v53  ;;  %v306_v59 = vsel %vm302_vm0, %v255_v53, %v257_v46 }
  0x97   : > { %v335_v60 = vsel %vm333_vm1, %v303_v56, 0  ;;  %v338_v61 = vsel %vm333_vm1, %v304_v57, 0  ;;  %v341_v62 = vsel %vm333_vm1, %v305_v58, 0  ;;  %v344_v63 = vsel %vm333_vm1, %v306_v59, 0  ;;  %v279_v25 = vpop.permute.xlu2 %278 }
  0x98   : > { %422 = vmatpush.bf16.msra.mxu0 %v335_v60  ;;  %436 = vmatpush.bf16.msra.mxu1 %v338_v61  ;;  %v6890_v56 = vld.sshfl [vmem:[#allocation1] sm:$0xff pattern:$0x73625140]  ;;  %v6892_v57 = vld.sshfl [vmem:[#allocation1 + $0x8] sm:$0xff pattern:$0x73625140] }
  0x99   : > { %450 = vmatpush.bf16.msra.mxu2 %v341_v62  ;;  %464 = vmatpush.bf16.msra.mxu3 %v344_v63  ;;  %v6898_v58 = vld.sshfl [vmem:[#allocation1 + $0x10] sm:$0xff pattern:$0x73625140]  ;;  %v6900_v59 = vld.sshfl [vmem:[#allocation1 + $0x18] sm:$0xff pattern:$0x73625140] }
  0x9a   : > { %819 = vst [vmem:[#allocation1] ss:$4 sm:$0xff] %v6774_v13 }
  0x9b   : > { %6240 = vmatmul.msk.bf16.vlgmr.msra.gmra.mxu0 %vm329_vm2, %v6836_v55  ;;  %6241 = vmatmul.msk.bf16.vlgmr.msra.gmra.mxu1 %vm329_vm2, %v6836_v55 }
  0x9c   : > { %6242 = vmatmul.msk.bf16.vlgmr.msra.gmra.mxu2 %vm329_vm2, %v6836_v55  ;;  %6243 = vmatmul.msk.bf16.vlgmr.msra.gmra.mxu3 %vm329_vm2, %v6836_v55 }
  0x9d   : > { %v263_v5 = vpop.permute.xlu0 %262  ;;  %v259_v7 = vpop.permute.xlu1 %258 }
  0x9e   : > { %v307_v9 = vsel %vm302_vm0, %v257_v46, %v259_v7  ;;  %v308_v10 = vsel %vm302_vm0, %v259_v7, %v261_v47  ;;  %v309_v11 = vsel %vm302_vm0, %v261_v47, %v263_v5  ;;  %v310_v12 = vsel %vm302_vm0, %v263_v5, %v265_v50 }
  0x9f   : > { %v347_v14 = vsel %vm333_vm1, %v307_v9, 0  ;;  %v350_v15 = vsel %vm333_vm1, %v308_v10, 0  ;;  %v353_v16 = vsel %vm333_vm1, %v309_v11, 0  ;;  %v356_v17 = vsel %vm333_vm1, %v310_v12, 0  ;;  %v285_v33 = vpop.permute.xlu2 %284 }
  0xa0   : > { %478 = vmatpush.bf16.msrb.mxu0 %v347_v14  ;;  %492 = vmatpush.bf16.msrb.mxu1 %v350_v15 }
  0xa1   : > { %506 = vmatpush.bf16.msrb.mxu2 %v353_v16  ;;  %520 = vmatpush.bf16.msrb.mxu3 %v356_v17  ;;  %v6911_v11 = vld.sshfl [vmem:[#allocation1] sm:$0xff pattern:$0x73625140]  ;;  %v6913_v12 = vld.sshfl [vmem:[#allocation1 + $0x8] sm:$0xff pattern:$0x73625140] }
  0xa2   : > { %v6915_v16 = vld.sshfl [vmem:[#allocation1 + $0x10] sm:$0xff pattern:$0x73625140]  ;;  %v6917_v17 = vld.sshfl [vmem:[#allocation1 + $0x18] sm:$0xff pattern:$0x73625140] }
  0xa3   : > { %829 = vst [vmem:[#allocation1] ss:$4 sm:$0xff] %v6788_v26  ;;  %v6934_v26 = vld.sshfl [vmem:[#allocation1 + $0x20] sm:$0xff pattern:$0x73625140] }
  0xa4   : > { %534 = vmatpush.bf16.msra.mxu0 %v359_v8 }
  0xa5   : > { %v269_v18 = vpop.permute.xlu0 %268  ;;  %v271_v19 = vpop.permute.xlu1 %270 }
  0xa6   : > { %v312_v20 = vsel %vm302_vm0, %v267_v3, %v269_v18  ;;  %v313_v22 = vsel %vm302_vm0, %v269_v18, %v271_v19 }
  0xa7   : > { %v362_v23 = vsel %vm333_vm1, %v312_v20, 0  ;;  %v365_v24 = vsel %vm333_vm1, %v313_v22, 0  ;;  %v289_v54 = vpop.permute.xlu2 %288 }
  0xa8   : > { %548 = vmatpush.bf16.msra.mxu1 %v362_v23  ;;  %562 = vmatpush.bf16.msra.mxu2 %v365_v24 }
  0xab   : > { %6244 = vmatmul.msk.bf16.vlgmr.msrb.gmra.mxu0 %vm329_vm2, %v6836_v55  ;;  %6245 = vmatmul.msk.bf16.vlgmr.msrb.gmra.mxu1 %vm329_vm2, %v6836_v55 }
  0xac   : > { %6246 = vmatmul.msk.bf16.vlgmr.msrb.gmra.mxu2 %vm329_vm2, %v6836_v55  ;;  %6247 = vmatmul.msk.bf16.vlgmr.msrb.gmra.mxu3 %vm329_vm2, %v6836_v55 }
  0xad   : > { %v273_v27 = vpop.permute.xlu0 %272  ;;  %v277_v28 = vpop.permute.xlu1 %276 }
  0xae   : > { %v314_v29 = vsel %vm302_vm0, %v271_v19, %v273_v27  ;;  %v317_v30 = vsel %vm302_vm0, %v277_v28, %v279_v25 }
  0xaf   : > { %v368_v31 = vsel %vm333_vm1, %v314_v29, 0  ;;  %v377_v32 = vsel %vm333_vm1, %v317_v30, 0  ;;  %v291_v10 = vpop.permute.xlu2 %290  ;;  %v6941_v30 = vld.sshfl [vmem:[#allocation1 + $0x10] sm:$0xff pattern:$0x73625140] }
  0xb0   : > { %576 = vmatpush.bf16.msra.mxu3 %v368_v31  ;;  %618 = vmatpush.bf16.msrb.mxu2 %v377_v32  ;;  %v323_v18 = vsel %vm302_vm0, %v289_v54, %v291_v10  ;;  %v6943_v31 = vld.sshfl [vmem:[#allocation1 + $0x28] sm:$0xff pattern:$0x73625140] }
  0xb1   : > { %v395_v22 = vsel %vm333_vm1, %v323_v18, 0  ;;  %v850_v18 = vsel %vm333_vm1, %v6815_v41, 0 }
  0xb5   : > { %v275_v46 = vpop.permute.xlu0 %274  ;;  %v281_v47 = vpop.permute.xlu1 %280 }
  0xb6   : > { %v315_v48 = vsel %vm302_vm0, %v273_v27, %v275_v46  ;;  %v316_v49 = vsel %vm302_vm0, %v275_v46, %v277_v28  ;;  %v318_v50 = vsel %vm302_vm0, %v279_v25, %v281_v47  ;;  %v6936_v27 = vld.sshfl [vmem:[#allocation1] sm:$0xff pattern:$0x73625140]  ;;  %v6938_v28 = vld.sshfl [vmem:[#allocation1 + $0x8] sm:$0xff pattern:$0x73625140] }
  0xb7   : > { %v371_v51 = vsel %vm333_vm1, %v315_v48, 0  ;;  %v374_v52 = vsel %vm333_vm1, %v316_v49, 0  ;;  %v380_v53 = vsel %vm333_vm1, %v318_v50, 0  ;;  %1284 = vst [vmem:[#allocation1] ss:$4 sm:$0xff] %v6753_v0 }
  0xb8   : > { %590 = vmatpush.bf16.msrb.mxu0 %v371_v51  ;;  %604 = vmatpush.bf16.msrb.mxu1 %v374_v52  ;;  %v6949_v46 = vld.sshfl [vmem:[#allocation1 + $0x38] sm:$0xff pattern:$0x73625140] }
  0xb9   : > { %632 = vmatpush.bf16.msrb.mxu3 %v380_v53 }
  0xbb   : > { %6248 = vmatmul.msk.bf16.vlgmr.msra.gmra.mxu0 %vm329_vm2, %v6836_v55  ;;  %6249 = vmatmul.msk.bf16.vlgmr.msra.gmra.mxu1 %vm329_vm2, %v6836_v55 }
  0xbc   : > { %6250 = vmatmul.msk.bf16.vlgmr.msra.gmra.mxu2 %vm329_vm2, %v6836_v55  ;;  %6251 = vmatmul.msk.bf16.vlgmr.msra.gmra.mxu3 %vm329_vm2, %v6836_v55 }
  0xbd   : > { %v283_v60 = vpop.permute.xlu1 %282  ;;  %v287_v61 = vpop.permute.xlu0 %286 }
  0xbe   : > { %v319_v62 = vsel %vm302_vm0, %v281_v47, %v283_v60  ;;  %v320_v63 = vsel %vm302_vm0, %v283_v60, %v285_v33  ;;  %v321_v3 = vsel %vm302_vm0, %v285_v33, %v287_v61  ;;  %v322_v4 = vsel %vm302_vm0, %v287_v61, %v289_v54  ;;  %v6947_v33 = vld.sshfl [vmem:[#allocation1 + $0x30] sm:$0xff pattern:$0x73625140]  ;;  %v299_v47 = vpop.permute.xlu2 %298  ;;  %v1290_v49 = vld.sshfl [vmem:[#allocation1 + $0x8] sm:$0xff pattern:$0x73625140] }
  0xbf   : > { %v383_v5 = vsel %vm333_vm1, %v319_v62, 0  ;;  %v386_v7 = vsel %vm333_vm1, %v320_v63, 0  ;;  %v389_v8 = vsel %vm333_vm1, %v321_v3, 0  ;;  %v392_v9 = vsel %vm333_vm1, %v322_v4, 0  ;;  %1287 = vst [vmem:[#allocation1 + $0x20] ss:$4 sm:$0xff] %v6756_v1  ;;  %1354 = vrot.lane.b32.xlu1 %v1290_v49, %s6711_s23 }
  0xc0   : > { %646 = vmatpush.bf16.msra.mxu0 %v383_v5  ;;  %660 = vmatpush.bf16.msra.mxu1 %v386_v7  ;;  %v1288_v50 = vld.sshfl [vmem:[#allocation1] sm:$0xff pattern:$0x73625140]  ;;  %v1294_v60 = vld.sshfl [vmem:[#allocation1 + $0x18] sm:$0xff pattern:$0x73625140] }
  0xc1   : > { %674 = vmatpush.bf16.msra.mxu2 %v389_v8  ;;  %688 = vmatpush.bf16.msra.mxu3 %v392_v9  ;;  %v836_v62 = vsel %vm333_vm1, %v6803_v36, 0  ;;  %v1292_v5 = vld.sshfl [vmem:[#allocation1 + $0x10] sm:$0xff pattern:$0x73625140]  ;;  %v842_v8 = vsel %vm333_vm1, %v6810_v39, 0  ;;  %v838_v9 = vsel %vm333_vm1, %v6805_v37, 0 }
  0xc2   : > { %1352 = vrot.lane.b32.xlu0 %v1288_v50, %s6711_s23  ;;  %1305 = vst [vmem:[#allocation1] ss:$4 sm:$0xff] %v6761_v2  ;;  %1356 = vrot.lane.b32.xlu2 %v1292_v5, %s6711_s23  ;;  %v6269_v37 = vld [vmem:[#allocation2] sm:$0xf]  ;;  %v866_v49 = vsel %vm333_vm1, %v6827_v45, 0  ;;  %v864_v50 = vsel %vm333_vm1, %v6825_v44, 0 }
  0xc3   : > { %v870_v5 = vsel %vm333_vm1, %v6913_v12, 0 }
  0xc5   : > { %v293_v14 = vpop.permute.xlu0 %292  ;;  %v295_v15 = vpop.permute.xlu1 %294 }
  0xc6   : > { %v324_v19 = vsel %vm302_vm0, %v291_v10, %v293_v14  ;;  %v325_v20 = vsel %vm302_vm0, %v293_v14, %v295_v15  ;;  %v1296_v63 = vld.sshfl [vmem:[#allocation1 + $0x20] sm:$0xff pattern:$0x73625140]  ;;  %v1298_v3 = vld.sshfl [vmem:[#allocation1 + $0x28] sm:$0xff pattern:$0x73625140] }
  0xc7   : > { %v398_v23 = vsel %vm333_vm1, %v324_v19, 0  ;;  %v401_v24 = vsel %vm333_vm1, %v325_v20, 0  ;;  %v1300_v4 = vld.sshfl [vmem:[#allocation1 + $0x30] sm:$0xff pattern:$0x73625140]  ;;  %1362 = vrot.lane.b32.xlu1 %v1298_v3, %s6711_s23  ;;  %v840_v10 = vsel %vm333_vm1, %v6808_v38, 0 }
  0xc8   : > { %v1302_v7 = vld.sshfl [vmem:[#allocation1 + $0x38] sm:$0xff pattern:$0x73625140]  ;;  %v844_v14 = vsel %vm333_vm1, %v6799_v34, 0  ;;  %v6517_v38 = vld [vmem:[#allocation2] sm:$0x30] }
  0xc9   : > { %1307 = vst [vmem:[#allocation1 + $0x20] ss:$4 sm:$0xff] %v6766_v6  ;;  %v1308_v36 = vld.sshfl [vmem:[#allocation1] sm:$0xff pattern:$0x73625140]  ;;  %v846_v19 = vsel %vm333_vm1, %v6801_v35, 0 }
  0xca   : > { %1360 = vrot.lane.b32.xlu0 %v1296_v63, %s6711_s23  ;;  %1358 = vrot.lane.b32.xlu2 %v1294_v60, %s6711_s23  ;;  %v1312_v39 = vld.sshfl [vmem:[#allocation1 + $0x10] sm:$0xff pattern:$0x73625140]  ;;  %v1314_v34 = vld.sshfl [vmem:[#allocation1 + $0x18] sm:$0xff pattern:$0x73625140] }
  0xcb   : > { %6252 = vmatmul.msk.bf16.vlgmr.msrb.gmra.mxu0 %vm329_vm2, %v6836_v55  ;;  %6253 = vmatmul.msk.bf16.vlgmr.msrb.gmra.mxu1 %vm329_vm2, %v6836_v55  ;;  %v848_v20 = vsel %vm333_vm1, %v6813_v40, 0  ;;  %v1310_v35 = vld.sshfl [vmem:[#allocation1 + $0x8] sm:$0xff pattern:$0x73625140] }
  0xcc   : > { %6254 = vmatmul.msk.bf16.vlgmr.msrb.gmra.mxu2 %vm329_vm2, %v6836_v55  ;;  %6255 = vmatmul.msk.bf16.vlgmr.msrb.gmra.mxu3 %vm329_vm2, %v6836_v55  ;;  %1325 = vst [vmem:[#allocation1] ss:$4 sm:$0xff] %v6774_v13  ;;  %v860_v13 = vsel %vm333_vm1, %v6821_v42, 0 }
  0xcd   : > { %v297_v25 = vpop.permute.xlu0 %296  ;;  %702 = vmatpush.bf16.msrb.mxu0 %v395_v22  ;;  %716 = vmatpush.bf16.msrb.mxu1 %v398_v23  ;;  %v301_v48 = vpop.permute.xlu1 %300  ;;  %v852_v22 = vsel %vm333_vm1, %v6890_v56, 0  ;;  %v854_v56 = vsel %vm333_vm1, %v6892_v57, 0  ;;  %v856_v23 = vsel %vm333_vm1, %v6898_v58, 0 }
  0xce   : > { %v326_v29 = vsel %vm302_vm0, %v295_v15, %v297_v25  ;;  %730 = vmatpush.bf16.msrb.mxu2 %v401_v24  ;;  %v327_v51 = vsel %vm302_vm0, %v297_v25, %v299_v47  ;;  %v328_v52 = vsel %vm302_vm0, %v299_v47, %v301_v48  ;;  %v413_v54 = vsel %vm333_vm1, %v301_v48, 0 }
  0xcf   : > { %v404_v32 = vsel %vm333_vm1, %v326_v29, 0  ;;  %v407_v53 = vsel %vm333_vm1, %v327_v51, 0  ;;  %v410_v61 = vsel %vm333_vm1, %v328_v52, 0  ;;  %1368 = vrot.lane.b32.xlu1 %v1308_v36, %s6711_s23  ;;  %v6995_v15 = vor.u32 %v6517_v38, %v6269_v37 }
  0xd0   : > { %744 = vmatpush.bf16.msrb.mxu3 %v404_v32  ;;  %v1318_v41 = vld.sshfl [vmem:[#allocation1 + $0x28] sm:$0xff pattern:$0x73625140]  ;;  %v1320_v58 = vld.sshfl [vmem:[#allocation1 + $0x30] sm:$0xff pattern:$0x73625140] }
  0xd1   : > { %v1322_v42 = vld.sshfl [vmem:[#allocation1 + $0x38] sm:$0xff pattern:$0x73625140]  ;;  %v1274_v32 = vld [vmem:[%s6750_s21 + $0x30] sm:$0x3f]  ;;  %v868_v51 = vsel %vm333_vm1, %v6911_v11, 0 }
  0xd2   : > { %1364 = vrot.lane.b32.xlu0 %v1300_v4, %s6711_s23  ;;  %1370 = vrot.lane.b32.xlu2 %v1310_v35, %s6711_s23  ;;  %v874_v4 = vsel %vm333_vm1, %v6917_v17, 0  ;;  %v876_v36 = vsel %vm333_vm1, %v6934_v26, 0  ;;  %v882_v38 = vsel %vm333_vm1, %v6949_v46, 0 }
  0xd3   : > { %v1328_v40 = vld.sshfl [vmem:[#allocation1] sm:$0xff pattern:$0x73625140]  ;;  %v1330_v57 = vld.sshfl [vmem:[#allocation1 + $0x8] sm:$0xff pattern:$0x73625140] }
  0xd4   : > { %v1332_v24 = vld.sshfl [vmem:[#allocation1 + $0x10] sm:$0xff pattern:$0x73625140]  ;;  %v1334_v47 = vld.sshfl [vmem:[#allocation1 + $0x18] sm:$0xff pattern:$0x73625140] }
  0xd5   : > { %1345 = vst [vmem:[#allocation1] ss:$4 sm:$0xff] %v1274_v32  ;;  %v888_v32 = vsel %vm333_vm1, %v6941_v30, 0 }
  0xd7   : > { %1372 = vrot.lane.b32.xlu1 %v1312_v39, %s6711_s23 }
  0xda   : > { %1366 = vrot.lane.b32.xlu0 %v1302_v7, %s6711_s23  ;;  %v872_v7 = vsel %vm333_vm1, %v6915_v16, 0 }
  0xdb   : > { %6256 = vmatmul.msk.bf16.vlgmr.msra.gmra.mxu0 %vm329_vm2, %v6836_v55  ;;  %6257 = vmatmul.msk.bf16.vlgmr.msra.gmra.mxu1 %vm329_vm2, %v6836_v55 }
  0xdc   : > { %6258 = vmatmul.msk.bf16.vlgmr.msra.gmra.mxu2 %vm329_vm2, %v6836_v55  ;;  %6259 = vmatmul.msk.bf16.vlgmr.msra.gmra.mxu3 %vm329_vm2, %v6836_v55  ;;  %v1346_v63 = vld.sshfl [vmem:[#allocation1] sm:$0xff pattern:$0x73625140]  ;;  %v1350_v3 = vld.sshfl [vmem:[#allocation1 + $0x10] sm:$0xff pattern:$0x73625140] }
  0xdd   : > { %758 = vmatpush.bf16.msra.mxu0 %v407_v53  ;;  %786 = vmatpush.bf16.msra.mxu2 %v413_v54  ;;  %v1348_v12 = vld.sshfl [vmem:[#allocation1 + $0x8] sm:$0xff pattern:$0x73625140] }
  0xde   : > { %772 = vmatpush.bf16.msra.mxu1 %v410_v61  ;;  %897 = vmatpush.bf16.msra.mxu3 %v836_v62  ;;  %1965 = vst [vmem:[#allocation1] ss:$4 sm:$0xff] %v6753_v0 }
  0xdf   : > { %1374 = vrot.lane.b32.xlu1 %v1314_v34, %s6711_s23  ;;  %v880_v34 = vsel %vm333_vm1, %v6947_v33, 0 }
  0xe2   : > { %1378 = vrot.lane.b32.xlu0 %v1318_v41, %s6711_s23 }
  0xe5   : > { %v1973_v46 = vld.sshfl [vmem:[#allocation1 + $0x10] sm:$0xff pattern:$0x73625140] }
  0xe7   : > { %1386 = vrot.lane.b32.xlu1 %v1330_v57, %s6711_s23 }
  0xea   : > { %1384 = vrot.lane.b32.xlu0 %v1328_v40, %s6711_s23 }
  0xeb   : > { %6260 = vmatmul.msk.bf16.vlgmr.msrb.gmra.mxu0 %vm329_vm2, %v6836_v55  ;;  %6261 = vmatmul.msk.bf16.vlgmr.msrb.gmra.mxu1 %vm329_vm2, %v6836_v55 }
  0xec   : > { %6262 = vmatmul.msk.bf16.vlgmr.msrb.gmra.mxu2 %vm329_vm2, %v6836_v55  ;;  %6263 = vmatmul.msk.bf16.vlgmr.msrb.gmra.mxu3 %vm329_vm2, %v6836_v55 }
  0xed   : > { %939 = vmatpush.bf16.msrb.mxu2 %v842_v8  ;;  %911 = vmatpush.bf16.msrb.mxu0 %v838_v9 }
  0xee   : > { %925 = vmatpush.bf16.msrb.mxu1 %v840_v10  ;;  %953 = vmatpush.bf16.msrb.mxu3 %v844_v14  ;;  %v1971_v10 = vld.sshfl [vmem:[#allocation1 + $0x8] sm:$0xff pattern:$0x73625140] }
  0xf2   : > { %1388 = vrot.lane.b32.xlu0 %v1332_v24, %s6711_s23 }
  0xfa   : > { %1390 = vrot.lane.b32.xlu0 %v1334_v47, %s6711_s23 }
  0xfb   : > { %6264 = vmatmul.msk.bf16.vlgmr.msra.gmra.mxu0 %vm329_vm2, %v6836_v55  ;;  %6265 = vmatmul.msk.bf16.vlgmr.msra.gmra.mxu1 %vm329_vm2, %v6836_v55 }
  0xfc   : > { %6266 = vmatmul.msk.bf16.vlgmr.msra.gmra.mxu2 %vm329_vm2, %v6836_v55  ;;  %6271 = vmatmul.msk.bf16.vlgmr.msra.gmra.mxu3 %vm329_vm2, %v6995_v15  ;;  %v858_v55 = vsel %vm333_vm1, %v6900_v59, 0  ;;  %v1316_v59 = vld.sshfl [vmem:[#allocation1 + $0x20] sm:$0xff pattern:$0x73625140] }
  0xfd   : > { %995 = vmatpush.bf16.msra.mxu2 %v850_v18  ;;  %967 = vmatpush.bf16.msra.mxu0 %v846_v19  ;;  %1327 = vst [vmem:[#allocation1 + $0x20] ss:$4 sm:$0xff] %v6781_v21  ;;  %v862_v21 = vsel %vm333_vm1, %v6823_v43, 0  ;;  %v884_v18 = vsel %vm333_vm1, %v6936_v27, 0 }
  0xfe   : > { %981 = vmatpush.bf16.msra.mxu1 %v848_v20  ;;  %1009 = vmatpush.bf16.msra.mxu3 %v852_v22 }
  0xff   : > { %1376 = vrot.lane.b32.xlu2 %v1316_v59, %s6711_s23 }
 0x102   : > { %1402 = vrot.lane.b32.xlu0 %v1348_v12, %s6711_s23 }
 0x104   : > { %v1336_v48 = vld.sshfl [vmem:[#allocation1 + $0x20] sm:$0xff pattern:$0x73625140]  ;;  %v1340_v52 = vld.sshfl [vmem:[#allocation1 + $0x30] sm:$0xff pattern:$0x73625140] }
 0x105   : > { %1392 = vrot.lane.b32.xlu1 %v1336_v48, %s6711_s23  ;;  %v1342_v62 = vld.sshfl [vmem:[#allocation1 + $0x38] sm:$0xff pattern:$0x73625140]  ;;  %v1338_v9 = vld.sshfl [vmem:[#allocation1 + $0x28] sm:$0xff pattern:$0x73625140] }
 0x106   : > { %1968 = vst [vmem:[#allocation1 + $0x20] ss:$4 sm:$0xff] %v6756_v1  ;;  %v878_v1 = vsel %vm333_vm1, %v6943_v31, 0  ;;  %v1975_v31 = vld.sshfl [vmem:[#allocation1 + $0x18] sm:$0xff pattern:$0x73625140] }
 0x107   : > { %1380 = vrot.lane.b32.xlu2 %v1320_v58, %s6711_s23 }
 0x10a   : > { %2035 = vrot.lane.b32.xlu0 %v1971_v10, %s6712_s24 }
 0x10b   : > { %6272 = vmatmul.msk.bf16.vlgmr.msrb.gmra.mxu0 %vm329_vm2, %v6995_v15  ;;  %6273 = vmatmul.msk.bf16.vlgmr.msrb.gmra.mxu1 %vm329_vm2, %v6995_v15 }
 0x10c   : > { %6274 = vmatmul.msk.bf16.vlgmr.msrb.gmra.mxu2 %vm329_vm2, %v6995_v15  ;;  %6275 = vmatmul.msk.bf16.vlgmr.msrb.gmra.mxu3 %vm329_vm2, %v6995_v15 }
 0x10d   : > { %1051 = vmatpush.bf16.msrb.mxu2 %v858_v55  ;;  %1023 = vmatpush.bf16.msrb.mxu0 %v854_v56  ;;  %v1979_v22 = vld.sshfl [vmem:[#allocation1 + $0x28] sm:$0xff pattern:$0x73625140]  ;;  %v1983_v48 = vld.sshfl [vmem:[#allocation1 + $0x38] sm:$0xff pattern:$0x73625140] }
 0x10e   : > { %1037 = vmatpush.bf16.msrb.mxu1 %v856_v23  ;;  %1065 = vmatpush.bf16.msrb.mxu3 %v860_v13  ;;  %v1977_v23 = vld.sshfl [vmem:[#allocation1 + $0x20] sm:$0xff pattern:$0x73625140] }
 0x10f   : > { %1382 = vrot.lane.b32.xlu2 %v1322_v42, %s6711_s23  ;;  %1396 = vrot.lane.b32.xlu1 %v1340_v52, %s6711_s23  ;;  %v886_v42 = vsel %vm333_vm1, %v6938_v28, 0 }
 0x112   : > { %2039 = vrot.lane.b32.xlu0 %v1975_v31, %s6712_s24 }
 0x117   : > { %1398 = vrot.lane.b32.xlu1 %v1342_v62, %s6711_s23  ;;  %1394 = vrot.lane.b32.xlu2 %v1338_v9, %s6711_s23 }
 0x118   : > { %v7039_v25 = vpop.f32.mrf.mxu0  ;;  %v7041_v29 = vpop.f32.mrf.mxu1 }
 0x11a   : > { %2041 = vrot.lane.b32.xlu0 %v1977_v23, %s6712_s24 }
 0x11b   : > { %6276 = vmatmul.msk.bf16.vlgmr.msra.gmra.mxu0 %vm329_vm2, %v6995_v15  ;;  %6277 = vmatmul.msk.bf16.vlgmr.msra.gmra.mxu1 %vm329_vm2, %v6995_v15 }
 0x11c   : > { %6278 = vmatmul.msk.bf16.vlgmr.msra.gmra.mxu2 %vm329_vm2, %v6995_v15  ;;  %6279 = vmatmul.msk.bf16.vlgmr.msra.gmra.mxu3 %vm329_vm2, %v6995_v15  ;;  %v1357_v41 = vpop.permute.xlu2 %1356 }
 0x11d   : > { %1107 = vmatpush.bf16.msra.mxu2 %v866_v49  ;;  %1079 = vmatpush.bf16.msra.mxu0 %v862_v21 }
 0x11e   : > { %1093 = vmatpush.bf16.msra.mxu1 %v864_v50  ;;  %1121 = vmatpush.bf16.msra.mxu3 %v868_v51  ;;  %v1969_v50 = vld.sshfl [vmem:[#allocation1] sm:$0xff pattern:$0x73625140] }
 0x11f   : > { %v7062_v43 = vpop.f32.mrf.mxu2  ;;  %v7064_v45 = vpop.f32.mrf.mxu3  ;;  %1400 = vrot.lane.b32.xlu2 %v1346_v63, %s6711_s23  ;;  %2037 = vrot.lane.b32.xlu1 %v1973_v46, %s6712_s24  ;;  %1986 = vst [vmem:[#allocation1] ss:$4 sm:$0xff] %v6761_v2 }
 0x120   : > { %v7067_v44 = vpop.f32.mrf.mxu0  ;;  %v7069_v11 = vpop.f32.mrf.mxu1 }
 0x124   : > { %v1359_v62 = vpop.permute.xlu2 %1358 }
 0x126   : > { %v1989_v9 = vld.sshfl [vmem:[#allocation1] sm:$0xff pattern:$0x73625140]  ;;  %v1993_v31 = vld.sshfl [vmem:[#allocation1 + $0x10] sm:$0xff pattern:$0x73625140] }
 0x127   : > { %v7072_v53 = vpop.f32.mrf.mxu2  ;;  %v7074_v54 = vpop.f32.mrf.mxu3  ;;  %1404 = vrot.lane.b32.xlu2 %v1350_v3, %s6711_s23  ;;  %2043 = vrot.lane.b32.xlu1 %v1979_v22, %s6712_s24 }
 0x128   : > { %v7076_v60 = vpop.f32.mrf.mxu0  ;;  %v7078_v61 = vpop.f32.mrf.mxu1  ;;  %2053 = vrot.lane.b32.xlu0 %v1993_v31, %s6712_s24 }
 0x12b   : > { %6280 = vmatmul.msk.bf16.vlgmr.msrb.gmra.mxu0 %vm329_vm2, %v6995_v15  ;;  %6281 = vmatmul.msk.bf16.vlgmr.msrb.gmra.mxu1 %vm329_vm2, %v6995_v15 }
 0x12c   : > { %6282 = vmatmul.msk.bf16.vlgmr.msrb.gmra.mxu2 %vm329_vm2, %v6995_v15  ;;  %6283 = vmatmul.msk.bf16.vlgmr.msrb.gmra.mxu3 %vm329_vm2, %v6995_v15 }
 0x12d   : > { %1163 = vmatpush.bf16.msrb.mxu2 %v874_v4  ;;  %1135 = vmatpush.bf16.msrb.mxu0 %v870_v5  ;;  %v1409_v4 = vsel %vm1406_vm3, %v1357_v41, %v1359_v62 }
 0x12e   : > { %1149 = vmatpush.bf16.msrb.mxu1 %v872_v7  ;;  %1177 = vmatpush.bf16.msrb.mxu3 %v876_v36  ;;  %v1443_v10 = vsel %vm333_vm1, %v1409_v4, 0 }
 0x12f   : > { %v7098_v17 = vpop.f32.mrf.mxu2  ;;  %v7100_v8 = vpop.f32.mrf.mxu3  ;;  %2047 = vrot.lane.b32.xlu1 %v1983_v48, %s6712_s24  ;;  %2033 = vrot.lane.b32.xlu2 %v1969_v50, %s6712_s24 }
 0x130   : > { %v7103_v16 = vpop.f32.mrf.mxu0  ;;  %v7105_v26 = vpop.f32.mrf.mxu1 }
 0x131   : > { %v1355_v13 = vpop.permute.xlu1 %1354 }
 0x132   : > { %v1408_v59 = vsel %vm1406_vm3, %v1355_v13, %v1357_v41 }
 0x133   : > { %v1440_v58 = vsel %vm333_vm1, %v1408_v59, 0  ;;  %v1981_v59 = vld.sshfl [vmem:[#allocation1 + $0x30] sm:$0xff pattern:$0x73625140] }
 0x134   : > { %v1353_v57 = vpop.permute.xlu0 %1352  ;;  %1988 = vst [vmem:[#allocation1 + $0x20] ss:$4 sm:$0xff] %v6766_v6 }
 0x135   : > { %v1407_v24 = vsel %vm1406_vm3, %v1353_v57, %v1355_v13  ;;  %v1371_v57 = vpop.permute.xlu2 %1370 }
 0x136   : > { %v1437_v47 = vsel %vm333_vm1, %v1407_v24, 0 }
 0x137   : > { %v7109_v14 = vpop.f32.mrf.mxu2  ;;  %v7111_v0 = vpop.f32.mrf.mxu3  ;;  %2049 = vrot.lane.b32.xlu1 %v1989_v9, %s6712_s24  ;;  %2045 = vrot.lane.b32.xlu2 %v1981_v59, %s6712_s24 }
 0x138   : > { %v7114_v39 = vpop.f32.mrf.mxu0  ;;  %v7116_v37 = vpop.f32.mrf.mxu1 }
 0x139   : > { %v1363_v51 = vpop.permute.xlu1 %1362 }
 0x13b   : > { %6284 = vmatmul.msk.bf16.vlgmr.msra.gmra.mxu0 %vm329_vm2, %v6995_v15  ;;  %6285 = vmatmul.msk.bf16.vlgmr.msra.gmra.mxu1 %vm329_vm2, %v6995_v15 }
 0x13c   : > { %6286 = vmatmul.msk.bf16.vlgmr.msra.gmra.mxu2 %vm329_vm2, %v6995_v15  ;;  %6287 = vmatmul.msk.bf16.vlgmr.msra.gmra.mxu3 %vm329_vm2, %v6995_v15  ;;  %v1361_v52 = vpop.permute.xlu0 %1360 }
 0x13d   : > { %1219 = vmatpush.bf16.msra.mxu2 %v882_v38  ;;  %1191 = vmatpush.bf16.msra.mxu0 %v878_v1  ;;  %v1410_v5 = vsel %vm1406_vm3, %v1359_v62, %v1361_v52  ;;  %v1411_v12 = vsel %vm1406_vm3, %v1361_v52, %v1363_v51 }
 0x13e   : > { %1205 = vmatpush.bf16.msra.mxu1 %v880_v34  ;;  %1233 = vmatpush.bf16.msra.mxu3 %v884_v18  ;;  %v1446_v38 = vsel %vm333_vm1, %v1410_v5, 0  ;;  %v1449_v34 = vsel %vm333_vm1, %v1411_v12, 0  ;;  %v1999_v12 = vld.sshfl [vmem:[#allocation1 + $0x28] sm:$0xff pattern:$0x73625140] }
 0x13f   : > { %v7135_v19 = vpop.f32.mrf.mxu2  ;;  %v7137_v20 = vpop.f32.mrf.mxu3  ;;  %2059 = vrot.lane.b32.xlu0 %v1999_v12, %s6712_s24 }
 0x140   : > { %9522 = vst [vmem:[#allocation5_spill] sm:$0xff] %v7137_v20  ;;  %v7141_v27 = vpop.f32.mrf.mxu0  ;;  %v7143_v33 = vpop.f32.mrf.mxu1 }
 0x141   : > { %v1369_v18 = vpop.permute.xlu1 %1368 }
 0x142   : > { %v1415_v6 = vsel %vm1406_vm3, %v1369_v18, %v1371_v57 }
 0x144   : > { %v1365_v2 = vpop.permute.xlu0 %1364 }
 0x145   : > { %v1412_v1 = vsel %vm1406_vm3, %v1363_v51, %v1365_v2 }
 0x146   : > { %v1452_v46 = vsel %vm333_vm1, %v1412_v1, 0 }
 0x147   : > { %v7146_v35 = vpop.f32.mrf.mxu2  ;;  %v7148_v40 = vpop.f32.mrf.mxu3 }
 0x148   : > { %9523 = vst [vmem:[#allocation6_spill] sm:$0xff] %v7146_v35  ;;  %v7151_v55 = vpop.f32.mrf.mxu0  ;;  %v7153_v56 = vpop.f32.mrf.mxu1 }
 0x149   : > { %9524 = vst [vmem:[#allocation7_spill] sm:$0xff] %v7148_v40  ;;  %v7399_v40 = vld [vmem:[%s6750_s21 + $0x8] sm:$0xff] }
 0x14a   : > { %9525 = vst [vmem:[#allocation8_spill] sm:$0xff] %v7151_v55 }
 0x14b   : > { %9526 = vst [vmem:[#allocation9_spill] sm:$0xff] %v7153_v56  ;;  %6288 = vmatmul.msk.bf16.vlgmr.msrb.gmra.mxu0 %vm329_vm2, %v6995_v15  ;;  %6289 = vmatmul.msk.bf16.vlgmr.msrb.gmra.mxu1 %vm329_vm2, %v6995_v15 }
 0x14c   : > { %6290 = vmatmul.msk.bf16.vlgmr.msrb.gmra.mxu2 %vm329_vm2, %v6995_v15  ;;  %6291 = vmatmul.msk.bf16.vlgmr.msrb.gmra.mxu3 %vm329_vm2, %v6995_v15  ;;  %v1367_v24 = vpop.permute.xlu0 %1366 }
 0x14d   : > { %1524 = vmatpush.bf16.msrb.mxu2 %v1437_v47  ;;  %1538 = vmatpush.bf16.msrb.mxu3 %v1440_v58  ;;  %v6300_v58 = vld [vmem:[#allocation2 + $0x10] sm:$0xf]  ;;  %v1413_v50 = vsel %vm1406_vm3, %v1365_v2, %v1367_v24  ;;  %v1414_v51 = vsel %vm1406_vm3, %v1367_v24, %v1369_v18  ;;  %v1461_v2 = vsel %vm333_vm1, %v1415_v6, 0  ;;  %v2001_v18 = vld.sshfl [vmem:[#allocation1 + $0x30] sm:$0xff pattern:$0x73625140] }
 0x14e   : > { %1247 = vmatpush.bf16.msrb.mxu0 %v886_v42  ;;  %1261 = vmatpush.bf16.msrb.mxu1 %v888_v32  ;;  %v6519_v42 = vld [vmem:[#allocation2 + $0x10] sm:$0x30]  ;;  %v1373_v32 = vpop.permute.xlu1 %1372  ;;  %v1455_v9 = vsel %vm333_vm1, %v1413_v50, 0 }
 0x14f   : > { %v7172_v49 = vpop.f32.mrf.mxu2  ;;  %v7174_v21 = vpop.f32.mrf.mxu3  ;;  %v7229_v4 = vor.u32 %v6519_v42, %v6300_v58  ;;  %v1416_v5 = vsel %vm1406_vm3, %v1371_v57, %v1373_v32  ;;  %2061 = vrot.lane.b32.xlu1 %v2001_v18, %s6712_s24  ;;  %v1995_v58 = vld.sshfl [vmem:[#allocation1 + $0x18] sm:$0xff pattern:$0x73625140]  ;;  %v7258_v42 = vld [vmem:[%s6750_s21 + $0x20] sm:$0xff] }
 0x150   : > { %9527 = vst [vmem:[#allocation10_spill] sm:$0xff] %v7172_v49  ;;  %v7177_v28 = vpop.f32.mrf.mxu0  ;;  %v7179_v30 = vpop.f32.mrf.mxu1 }
 0x151   : > { %9528 = vst [vmem:[#allocation11_spill] sm:$0xff] %v7174_v21 }
 0x152   : > { %9529 = vst [vmem:[#allocation12_spill] sm:$0xff] %v7177_v28 }
 0x153   : > { %9530 = vst [vmem:[#allocation13_spill] sm:$0xff] %v7179_v30 }
 0x154   : > { %v1379_v24 = vpop.permute.xlu0 %1378 }
 0x156   : > { %v1375_v50 = vpop.permute.xlu1 %1374 }
 0x157   : > { %v7183_v63 = vpop.f32.mrf.mxu2  ;;  %v7185_v3 = vpop.f32.mrf.mxu3  ;;  %v1417_v12 = vsel %vm1406_vm3, %v1373_v32, %v1375_v50 }
 0x158   : > { %9531 = vst [vmem:[#allocation14_spill] sm:$0xff] %v7183_v63  ;;  %v7189_v7 = vpop.f32.mrf.mxu0  ;;  %v7191_v36 = vpop.f32.mrf.mxu1 }
 0x159   : > { %9532 = vst [vmem:[#allocation15_spill] sm:$0xff] %v7185_v3  ;;  %v1377_v1 = vpop.permute.xlu2 %1376 }
 0x15a   : > { %9533 = vst [vmem:[#allocation16_spill] sm:$0xff] %v7189_v7 }
 0x15b   : > { %9534 = vst [vmem:[#allocation17_spill] sm:$0xff] %v7191_v36  ;;  %6292 = vmatmul.msk.bf16.vlgmr.msra.gmra.mxu0 %vm329_vm2, %v6995_v15  ;;  %6293 = vmatmul.msk.bf16.vlgmr.msra.gmra.mxu1 %vm329_vm2, %v6995_v15 }
 0x15c   : > { %6294 = vmatmul.msk.bf16.vlgmr.msra.gmra.mxu2 %vm329_vm2, %v6995_v15  ;;  %6295 = vmatmul.msk.bf16.vlgmr.msra.gmra.mxu3 %vm329_vm2, %v6995_v15 }
 0x15d   : > { %1552 = vmatpush.bf16.msra.mxu0 %v1443_v10  ;;  %1566 = vmatpush.bf16.msra.mxu1 %v1446_v38  ;;  %v1458_v10 = vsel %vm333_vm1, %v1414_v51, 0  ;;  %v1464_v38 = vsel %vm333_vm1, %v1416_v5, 0 }
 0x15e   : > { %1580 = vmatpush.bf16.msra.mxu2 %v1449_v34  ;;  %1594 = vmatpush.bf16.msra.mxu3 %v1452_v46  ;;  %v1991_v34 = vld.sshfl [vmem:[#allocation1 + $0x8] sm:$0xff pattern:$0x73625140]  ;;  %v2003_v46 = vld.sshfl [vmem:[#allocation1 + $0x38] sm:$0xff pattern:$0x73625140] }
 0x15f   : > { %v7208_v22 = vpop.f32.mrf.mxu2  ;;  %v7210_v41 = vpop.f32.mrf.mxu3  ;;  %2051 = vrot.lane.b32.xlu2 %v1991_v34, %s6712_s24  ;;  %2063 = vrot.lane.b32.xlu0 %v2003_v46, %s6712_s24  ;;  %2006 = vst [vmem:[#allocation1] ss:$4 sm:$0xff] %v7258_v42 }
 0x160   : > { %9535 = vst [vmem:[#allocation18_spill] sm:$0xff] %v7208_v22  ;;  %v7213_v23 = vpop.f32.mrf.mxu0  ;;  %v7215_v13 = vpop.f32.mrf.mxu1 }
 0x161   : > { %9536 = vst [vmem:[#allocation19_spill] sm:$0xff] %v7210_v41  ;;  %v1381_v51 = vpop.permute.xlu2 %1380 }
 0x162   : > { %9537 = vst [vmem:[#allocation20_spill] sm:$0xff] %v7213_v23  ;;  %v1420_v34 = vsel %vm1406_vm3, %v1379_v24, %v1381_v51 }
 0x163   : > { %9538 = vst [vmem:[#allocation21_spill] sm:$0xff] %v7215_v13 }
 0x166   : > { %v2011_v18 = vld.sshfl [vmem:[#allocation1 + $0x8] sm:$0xff pattern:$0x73625140]  ;;  %v2009_v46 = vld.sshfl [vmem:[#allocation1] sm:$0xff pattern:$0x73625140] }
 0x167   : > { %v7219_v47 = vpop.f32.mrf.mxu2  ;;  %v7221_v48 = vpop.f32.mrf.mxu3  ;;  %2055 = vrot.lane.b32.xlu2 %v1995_v58, %s6712_s24  ;;  %2067 = vrot.lane.b32.xlu1 %v2011_v18, %s6712_s24 }
 0x168   : > { %9539 = vst [vmem:[#allocation22_spill] sm:$0xff] %v7219_v47  ;;  %v7225_v52 = vpop.f32.mrf.mxu0  ;;  %v7227_v62 = vpop.f32.mrf.mxu1  ;;  %2065 = vrot.lane.b32.xlu0 %v2009_v46, %s6712_s24 }
 0x169   : > { %9540 = vst [vmem:[#allocation23_spill] sm:$0xff] %v7221_v48  ;;  %v1387_v18 = vpop.permute.xlu1 %1386 }
 0x16a   : > { %9541 = vst [vmem:[#allocation24_spill] sm:$0xff] %v7225_v52  ;;  %v1955_v52 = vld [vmem:[%s6750_s21 + $0x30] sm:$0x3f] }
 0x16b   : > { %9542 = vst [vmem:[#allocation25_spill] sm:$0xff] %v7227_v62  ;;  %6296 = vmatmul.msk.bf16.vlgmr.msrb.gmra.mxu0 %vm329_vm2, %v6995_v15  ;;  %6297 = vmatmul.msk.bf16.vlgmr.msrb.gmra.mxu1 %vm329_vm2, %v6995_v15 }
 0x16c   : > { %6302 = vmatmul.msk.bf16.vlgmr.msrb.gmra.mxu2 %vm329_vm2, %v7229_v4  ;;  %6303 = vmatmul.msk.bf16.vlgmr.msrb.gmra.mxu3 %vm329_vm2, %v7229_v4 }
 0x16d   : > { %1608 = vmatpush.bf16.msrb.mxu0 %v1455_v9  ;;  %1622 = vmatpush.bf16.msrb.mxu1 %v1458_v10  ;;  %v1418_v9 = vsel %vm1406_vm3, %v1375_v50, %v1377_v1 }
 0x16e   : > { %1636 = vmatpush.bf16.msrb.mxu2 %v1461_v2  ;;  %1650 = vmatpush.bf16.msrb.mxu3 %v1464_v38  ;;  %v1419_v38 = vsel %vm1406_vm3, %v1377_v1, %v1379_v24  ;;  %v1476_v1 = vsel %vm333_vm1, %v1420_v34, 0  ;;  %v1385_v24 = vpop.permute.xlu0 %1384  ;;  %v1997_v34 = vld.sshfl [vmem:[#allocation1 + $0x20] sm:$0xff pattern:$0x73625140] }
 0x16f   : > { %v7246_v15 = vpop.f32.mrf.mxu2  ;;  %v7248_v31 = vpop.f32.mrf.mxu3  ;;  %v1473_v32 = vsel %vm333_vm1, %v1419_v38, 0  ;;  %2057 = vrot.lane.b32.xlu2 %v1997_v34, %s6712_s24 }
 0x170   : > { %9543 = vst [vmem:[#allocation26_spill] sm:$0xff] %v7246_v15  ;;  %v7252_v59 = vpop.f32.mrf.mxu0  ;;  %v7254_v57 = vpop.f32.mrf.mxu1 }
 0x171   : > { %9544 = vst [vmem:[#allocation27_spill] sm:$0xff] %v7248_v31 }
 0x172   : > { %9545 = vst [vmem:[#allocation28_spill] sm:$0xff] %v7252_v59 }
 0x173   : > { %9546 = vst [vmem:[#allocation29_spill] sm:$0xff] %v7254_v57 }
 0x177   : > { %v7261_v6 = vpop.f32.mrf.mxu2  ;;  %v7263_v5 = vpop.f32.mrf.mxu3 }
 0x178   : > { %9547 = vst [vmem:[#allocation30_spill] sm:$0xff] %v7261_v6  ;;  %v7268_v10 = vpop.f32.mrf.mxu0  ;;  %v7270_v2 = vpop.f32.mrf.mxu1  ;;  %v1467_v6 = vsel %vm333_vm1, %v1417_v12, 0  ;;  %v2015_v12 = vld.sshfl [vmem:[#allocation1 + $0x18] sm:$0xff pattern:$0x73625140] }
 0x179   : > { %9548 = vst [vmem:[#allocation31_spill] sm:$0xff] %v7263_v5  ;;  %v1470_v5 = vsel %vm333_vm1, %v1418_v9, 0  ;;  %2071 = vrot.lane.b32.xlu1 %v2015_v12, %s6712_s24 }
 0x17a   : > { %9549 = vst [vmem:[#allocation32_spill] sm:$0xff] %v7268_v10  ;;  %v7311_v10 = vld [vmem:[%s6750_s21 + $0x28] sm:$0xff] }
 0x17b   : > { %9550 = vst [vmem:[#allocation33_spill] sm:$0xff] %v7270_v2  ;;  %6304 = vmatmul.msk.bf16.vlgmr.msra.gmra.mxu0 %vm329_vm2, %v7229_v4  ;;  %6305 = vmatmul.msk.bf16.vlgmr.msra.gmra.mxu1 %vm329_vm2, %v7229_v4 }
 0x17c   : > { %6306 = vmatmul.msk.bf16.vlgmr.msra.gmra.mxu2 %vm329_vm2, %v7229_v4  ;;  %6307 = vmatmul.msk.bf16.vlgmr.msra.gmra.mxu3 %vm329_vm2, %v7229_v4  ;;  %2008 = vst [vmem:[#allocation1 + $0x20] ss:$4 sm:$0xff] %v7311_v10 }
 0x17d   : > { %1664 = vmatpush.bf16.msra.mxu0 %v1467_v6  ;;  %1678 = vmatpush.bf16.msra.mxu1 %v1470_v5  ;;  %v1383_v6 = vpop.permute.xlu2 %1382  ;;  %v1389_v5 = vpop.permute.xlu0 %1388 }
 0x17e   : > { %1692 = vmatpush.bf16.msra.mxu2 %v1473_v32  ;;  %1706 = vmatpush.bf16.msra.mxu3 %v1476_v1  ;;  %v1421_v1 = vsel %vm1406_vm3, %v1381_v51, %v1383_v6  ;;  %v1424_v12 = vsel %vm1406_vm3, %v1387_v18, %v1389_v5 }
 0x17f   : > { %v7288_v58 = vpop.f32.mrf.mxu2  ;;  %v7290_v50 = vpop.f32.mrf.mxu3  ;;  %v1479_v34 = vsel %vm333_vm1, %v1421_v1, 0 }
 0x180   : > { %9551 = vst [vmem:[#allocation34_spill] sm:$0xff] %v7288_v58  ;;  %v7292_v9 = vpop.f32.mrf.mxu0  ;;  %v7294_v38 = vpop.f32.mrf.mxu1  ;;  %v1422_v58 = vsel %vm1406_vm3, %v1383_v6, %v1385_v24 }
 0x181   : > { %9552 = vst [vmem:[#allocation35_spill] sm:$0xff] %v7292_v9 }
 0x182   : > { %9553 = vst [vmem:[#allocation36_spill] sm:$0xff] %v7294_v38  ;;  %v1423_v38 = vsel %vm1406_vm3, %v1385_v24, %v1387_v18  ;;  %v1488_v24 = vsel %vm333_vm1, %v1424_v12, 0  ;;  %v1393_v18 = vpop.permute.xlu1 %1392 }
 0x183   : > { %v1485_v51 = vsel %vm333_vm1, %v1423_v38, 0  ;;  %v2017_v12 = vld.sshfl [vmem:[#allocation1 + $0x20] sm:$0xff pattern:$0x73625140] }
 0x184   : > { %v2021_v31 = vld.sshfl [vmem:[#allocation1 + $0x30] sm:$0xff pattern:$0x73625140]  ;;  %2073 = vrot.lane.b32.xlu1 %v2017_v12, %s6712_s24 }
 0x185   : > { %v1395_v57 = vpop.permute.xlu2 %1394  ;;  %2077 = vrot.lane.b32.xlu0 %v2021_v31, %s6712_s24 }
 0x186   : > { %v1427_v12 = vsel %vm1406_vm3, %v1393_v18, %v1395_v57 }
 0x187   : > { %v7298_v46 = vpop.f32.mrf.mxu2  ;;  %v7300_v32 = vpop.f32.mrf.mxu3 }
 0x188   : > { %9554 = vst [vmem:[#allocation37_spill] sm:$0xff] %v7298_v46  ;;  %v7304_v9 = vpop.f32.mrf.mxu0  ;;  %v7306_v2 = vpop.f32.mrf.mxu1  ;;  %v1482_v46 = vsel %vm333_vm1, %v1422_v58, 0 }
 0x18b   : > { %6308 = vmatmul.msk.bf16.vlgmr.msrb.gmra.mxu0 %vm329_vm2, %v7229_v4  ;;  %6309 = vmatmul.msk.bf16.vlgmr.msrb.gmra.mxu1 %vm329_vm2, %v7229_v4 }
 0x18c   : > { %6310 = vmatmul.msk.bf16.vlgmr.msrb.gmra.mxu2 %vm329_vm2, %v7229_v4  ;;  %6311 = vmatmul.msk.bf16.vlgmr.msrb.gmra.mxu3 %vm329_vm2, %v7229_v4 }
 0x18d   : > { %1720 = vmatpush.bf16.msrb.mxu0 %v1479_v34  ;;  %1734 = vmatpush.bf16.msrb.mxu1 %v1482_v46  ;;  %v2013_v34 = vld.sshfl [vmem:[#allocation1 + $0x10] sm:$0xff pattern:$0x73625140]  ;;  %v1391_v46 = vpop.permute.xlu0 %1390  ;;  %v1401_v41 = vpop.permute.xlu2 %1400 }
 0x18e   : > { %1748 = vmatpush.bf16.msrb.mxu2 %v1485_v51  ;;  %1762 = vmatpush.bf16.msrb.mxu3 %v1488_v24  ;;  %v1397_v51 = vpop.permute.xlu1 %1396  ;;  %v1425_v59 = vsel %vm1406_vm3, %v1389_v5, %v1391_v46  ;;  %v1426_v48 = vsel %vm1406_vm3, %v1391_v46, %v1393_v18  ;;  %2026 = vst [vmem:[#allocation1] ss:$4 sm:$0xff] %v1955_v52  ;;  %v1497_v5 = vsel %vm333_vm1, %v1427_v12, 0 }
 0x18f   : > { %v7326_v58 = vpop.f32.mrf.mxu2  ;;  %v7328_v6 = vpop.f32.mrf.mxu3  ;;  %2069 = vrot.lane.b32.xlu2 %v2013_v34, %s6712_s24  ;;  %v1428_v31 = vsel %vm1406_vm3, %v1395_v57, %v1397_v51  ;;  %v1491_v34 = vsel %vm333_vm1, %v1425_v59, 0  ;;  %v1494_v13 = vsel %vm333_vm1, %v1426_v48, 0  ;;  %v2019_v59 = vld.sshfl [vmem:[#allocation1 + $0x28] sm:$0xff pattern:$0x73625140] }
 0x190   : > { %v7330_v1 = vpop.f32.mrf.mxu0  ;;  %v7332_v38 = vpop.f32.mrf.mxu1  ;;  %v1500_v46 = vsel %vm333_vm1, %v1428_v31, 0 }
 0x195   : > { %v2029_v12 = vld.sshfl [vmem:[#allocation1 + $0x8] sm:$0xff pattern:$0x73625140]  ;;  %v2031_v31 = vld.sshfl [vmem:[#allocation1 + $0x10] sm:$0xff pattern:$0x73625140]  ;;  %v1403_v22 = vpop.permute.xlu0 %1402  ;;  %v1405_v23 = vpop.permute.xlu2 %1404 }
 0x196   : > { %2083 = vrot.lane.b32.xlu0 %v2029_v12, %s6712_s24  ;;  %2085 = vrot.lane.b32.xlu1 %v2031_v31, %s6712_s24  ;;  %v1431_v7 = vsel %vm1406_vm3, %v1401_v41, %v1403_v22  ;;  %v1432_v21 = vsel %vm1406_vm3, %v1403_v22, %v1405_v23  ;;  %v1515_v55 = vsel %vm333_vm1, %v1405_v23, 0 }
 0x197   : > { %v7337_v24 = vpop.f32.mrf.mxu2  ;;  %v7339_v15 = vpop.f32.mrf.mxu3  ;;  %2075 = vrot.lane.b32.xlu2 %v2019_v59, %s6712_s24 }
 0x198   : > { %v7343_v47 = vpop.f32.mrf.mxu0  ;;  %v7345_v62 = vpop.f32.mrf.mxu1 }
 0x19b   : > { %6312 = vmatmul.msk.bf16.vlgmr.msra.gmra.mxu0 %vm329_vm2, %v7229_v4  ;;  %6313 = vmatmul.msk.bf16.vlgmr.msra.gmra.mxu1 %vm329_vm2, %v7229_v4 }
 0x19c   : > { %6314 = vmatmul.msk.bf16.vlgmr.msra.gmra.mxu2 %vm329_vm2, %v7229_v4  ;;  %6315 = vmatmul.msk.bf16.vlgmr.msra.gmra.mxu3 %vm329_vm2, %v7229_v4 }
 0x19d   : > { %1776 = vmatpush.bf16.msra.mxu0 %v1491_v34  ;;  %1790 = vmatpush.bf16.msra.mxu1 %v1494_v13  ;;  %v2027_v13 = vld.sshfl [vmem:[#allocation1] sm:$0xff pattern:$0x73625140]  ;;  %v2036_v28 = vpop.permute.xlu0 %2035 }
 0x19e   : > { %1804 = vmatpush.bf16.msra.mxu2 %v1497_v5  ;;  %1818 = vmatpush.bf16.msra.mxu3 %v1500_v46  ;;  %v7374_v34 = vld [vmem:[%s6750_s21] sm:$0xff]  ;;  %v1399_v5 = vpop.permute.xlu1 %1398  ;;  %v2023_v46 = vld.sshfl [vmem:[#allocation1 + $0x38] sm:$0xff pattern:$0x73625140] }
 0x19f   : > { %v7362_v48 = vpop.f32.mrf.mxu2  ;;  %v7364_v52 = vpop.f32.mrf.mxu3  ;;  %2646 = vst [vmem:[#allocation1] ss:$4 sm:$0xff] %v7374_v34  ;;  %v1429_v63 = vsel %vm1406_vm3, %v1397_v51, %v1399_v5  ;;  %v1430_v36 = vsel %vm1406_vm3, %v1399_v5, %v1401_v41  ;;  %2079 = vrot.lane.b32.xlu2 %v2023_v46, %s6712_s24  ;;  %v1509_v51 = vsel %vm333_vm1, %v1431_v7, 0  ;;  %v1512_v5 = vsel %vm333_vm1, %v1432_v21, 0 }
 0x1a0   : > { %v7367_v57 = vpop.f32.mrf.mxu0  ;;  %v7369_v18 = vpop.f32.mrf.mxu1  ;;  %v1503_v49 = vsel %vm333_vm1, %v1429_v63, 0  ;;  %v1506_v30 = vsel %vm333_vm1, %v1430_v36, 0  ;;  %2649 = vst [vmem:[#allocation1 + $0x20] ss:$4 sm:$0xff] %v7399_v40 }
 0x1a6   : > { %v2654_v46 = vld.sshfl [vmem:[#allocation1 + $0x10] sm:$0xff pattern:$0x73625140]  ;;  %v2656_v63 = vld.sshfl [vmem:[#allocation1 + $0x18] sm:$0xff pattern:$0x73625140]  ;;  %v2038_v41 = vpop.permute.xlu1 %2037 }
 0x1a7   : > { %v7377_v59 = vpop.f32.mrf.mxu2  ;;  %v7379_v3 = vpop.f32.mrf.mxu3  ;;  %2718 = vrot.lane.b32.xlu0 %v2654_v46, %s6713_s25  ;;  %2720 = vrot.lane.b32.xlu1 %v2656_v63, %s6713_s25  ;;  %v2664_v23 = vld.sshfl [vmem:[#allocation1 + $0x38] sm:$0xff pattern:$0x73625140] }
 0x1a8   : > { %v7384_v12 = vpop.f32.mrf.mxu0  ;;  %v7386_v31 = vpop.f32.mrf.mxu1  ;;  %2081 = vrot.lane.b32.xlu2 %v2027_v13, %s6712_s24  ;;  %v2089_v13 = vsel %vm2087_vm4, %v2036_v28, %v2038_v41 }
 0x1ab   : > { %6316 = vmatmul.msk.bf16.vlgmr.msrb.gmra.mxu0 %vm329_vm2, %v7229_v4  ;;  %6317 = vmatmul.msk.bf16.vlgmr.msrb.gmra.mxu1 %vm329_vm2, %v7229_v4 }
 0x1ac   : > { %6318 = vmatmul.msk.bf16.vlgmr.msrb.gmra.mxu2 %vm329_vm2, %v7229_v4  ;;  %6319 = vmatmul.msk.bf16.vlgmr.msrb.gmra.mxu3 %vm329_vm2, %v7229_v4 }
 0x1ad   : > { %1832 = vmatpush.bf16.msrb.mxu0 %v1503_v49  ;;  %1846 = vmatpush.bf16.msrb.mxu1 %v1506_v30  ;;  %v2652_v49 = vld.sshfl [vmem:[#allocation1 + $0x8] sm:$0xff pattern:$0x73625140]  ;;  %v2658_v30 = vld.sshfl [vmem:[#allocation1 + $0x20] sm:$0xff pattern:$0x73625140] }
 0x1ae   : > { %1860 = vmatpush.bf16.msrb.mxu2 %v1509_v51  ;;  %1874 = vmatpush.bf16.msrb.mxu3 %v1512_v5  ;;  %v2034_v51 = vpop.permute.xlu2 %2033  ;;  %v2040_v5 = vpop.permute.xlu0 %2039 }
 0x1af   : > { %v7406_v7 = vpop.f32.mrf.mxu2  ;;  %v7408_v21 = vpop.f32.mrf.mxu3  ;;  %2716 = vrot.lane.b32.xlu0 %v2652_v49, %s6713_s25  ;;  %2722 = vrot.lane.b32.xlu1 %v2658_v30, %s6713_s25  ;;  %v2088_v46 = vsel %vm2087_vm4, %v2034_v51, %v2036_v28  ;;  %v2121_v49 = vsel %vm333_vm1, %v2089_v13, 0  ;;  %v2660_v28 = vld.sshfl [vmem:[#allocation1 + $0x28] sm:$0xff pattern:$0x73625140] }
 0x1b0   : > { %9555 = vst [vmem:[#allocation38_spill] sm:$0xff] %v7406_v7  ;;  %v7412_v36 = vpop.f32.mrf.mxu0  ;;  %v7414_v22 = vpop.f32.mrf.mxu1  ;;  %v6520_v7 = vld [vmem:[#allocation2 + $0x18] sm:$0x30] }
 0x1b1   : > { %9556 = vst [vmem:[#allocation39_spill] sm:$0xff] %v7408_v21  ;;  %v2090_v21 = vsel %vm2087_vm4, %v2038_v41, %v2040_v5  ;;  %v2044_v51 = vpop.permute.xlu1 %2043 }
 0x1b2   : > { %9557 = vst [vmem:[#allocation40_spill] sm:$0xff] %v7414_v22  ;;  %v2124_v30 = vsel %vm333_vm1, %v2090_v21, 0 }
 0x1b7   : > { %v7417_v35 = vpop.f32.mrf.mxu2  ;;  %v7419_v56 = vpop.f32.mrf.mxu3  ;;  %2724 = vrot.lane.b32.xlu1 %v2660_v28, %s6713_s25  ;;  %2728 = vrot.lane.b32.xlu0 %v2664_v23, %s6713_s25 }
 0x1b8   : > { %9558 = vst [vmem:[#allocation41_spill] sm:$0xff] %v7417_v35  ;;  %v7424_v63 = vpop.f32.mrf.mxu0  ;;  %v7426_v22 = vpop.f32.mrf.mxu1  ;;  %v2118_v35 = vsel %vm333_vm1, %v2088_v46, 0 }
 0x1b9   : > { %9559 = vst [vmem:[#allocation42_spill] sm:$0xff] %v7419_v56  ;;  %v2650_v56 = vld.sshfl [vmem:[#allocation1] sm:$0xff pattern:$0x73625140] }
 0x1ba   : > { %9560 = vst [vmem:[#allocation43_spill] sm:$0xff] %v7424_v63  ;;  %v7453_v63 = vld [vmem:[%s6750_s21 + $0x10] sm:$0xff]  ;;  %2714 = vrot.lane.b32.xlu2 %v2650_v56, %s6713_s25 }
 0x1bb   : > { %9561 = vst [vmem:[#allocation44_spill] sm:$0xff] %v7426_v22  ;;  %6320 = vmatmul.msk.bf16.vlgmr.msra.gmra.mxu0 %vm329_vm2, %v7229_v4  ;;  %6321 = vmatmul.msk.bf16.vlgmr.msra.gmra.mxu1 %vm329_vm2, %v7229_v4  ;;  %v2046_v22 = vpop.permute.xlu2 %2045 }
 0x1bc   : > { %6322 = vmatmul.msk.bf16.vlgmr.msra.gmra.mxu2 %vm329_vm2, %v7229_v4  ;;  %6323 = vmatmul.msk.bf16.vlgmr.msra.gmra.mxu3 %vm329_vm2, %v7229_v4  ;;  %9566 = vst [vmem:[#allocation49_spill] sm:$0xff] %v7453_v63 }
 0x1bd   : > { %1888 = vmatpush.bf16.msra.mxu0 %v1515_v55  ;;  %2205 = vmatpush.bf16.msra.mxu1 %v2118_v35  ;;  %2667 = vst [vmem:[#allocation1] ss:$4 sm:$0xff] %v7453_v63  ;;  %v2042_v35 = vpop.permute.xlu0 %2041  ;;  %v2048_v55 = vpop.permute.xlu1 %2047 }
 0x1be   : > { %2219 = vmatpush.bf16.msra.mxu2 %v2121_v49  ;;  %2233 = vmatpush.bf16.msra.mxu3 %v2124_v30  ;;  %v2091_v28 = vsel %vm2087_vm4, %v2040_v5, %v2042_v35  ;;  %v2092_v23 = vsel %vm2087_vm4, %v2042_v35, %v2044_v51  ;;  %v2094_v56 = vsel %vm2087_vm4, %v2046_v22, %v2048_v55 }
 0x1bf   : > { %v7442_v41 = vpop.f32.mrf.mxu2  ;;  %v7444_v46 = vpop.f32.mrf.mxu3  ;;  %v2136_v35 = vsel %vm333_vm1, %v2094_v56, 0 }
 0x1c0   : > { %9562 = vst [vmem:[#allocation45_spill] sm:$0xff] %v7442_v41  ;;  %v7448_v21 = vpop.f32.mrf.mxu0  ;;  %v7450_v13 = vpop.f32.mrf.mxu1  ;;  %v2093_v41 = vsel %vm2087_vm4, %v2044_v51, %v2046_v22  ;;  %v7479_v22 = vld [vmem:[%s6750_s21 + $0x18] sm:$0xff] }
 0x1c1   : > { %9563 = vst [vmem:[#allocation46_spill] sm:$0xff] %v7444_v46  ;;  %v2133_v5 = vsel %vm333_vm1, %v2093_v41, 0 }
 0x1c2   : > { %9564 = vst [vmem:[#allocation47_spill] sm:$0xff] %v7448_v21  ;;  %v2127_v21 = vsel %vm333_vm1, %v2091_v28, 0 }
 0x1c3   : > { %9565 = vst [vmem:[#allocation48_spill] sm:$0xff] %v7450_v13  ;;  %v2052_v51 = vpop.permute.xlu2 %2051 }
 0x1c4   : > { %v2674_v63 = vld.sshfl [vmem:[#allocation1 + $0x10] sm:$0xff pattern:$0x73625140]  ;;  %9571 = vst [vmem:[#allocation54_spill] sm:$0xff] %v7479_v22 }
 0x1c5   : > { %2734 = vrot.lane.b32.xlu0 %v2674_v63, %s6713_s25  ;;  %v2676_v63 = vld.sshfl [vmem:[#allocation1 + $0x18] sm:$0xff pattern:$0x73625140] }
 0x1c6   : > { %2736 = vrot.lane.b32.xlu1 %v2676_v63, %s6713_s25 }
 0x1c7   : > { %v7457_v49 = vpop.f32.mrf.mxu2  ;;  %v7459_v30 = vpop.f32.mrf.mxu3 }
 0x1c8   : > { %9567 = vst [vmem:[#allocation50_spill] sm:$0xff] %v7457_v49  ;;  %v7463_v13 = vpop.f32.mrf.mxu0  ;;  %v7465_v46 = vpop.f32.mrf.mxu1  ;;  %v2130_v49 = vsel %vm333_vm1, %v2092_v23, 0 }
 0x1c9   : > { %9568 = vst [vmem:[#allocation51_spill] sm:$0xff] %v7459_v30  ;;  %v2054_v30 = vpop.permute.xlu0 %2053 }
 0x1ca   : > { %9569 = vst [vmem:[#allocation52_spill] sm:$0xff] %v7463_v13  ;;  %v6331_v13 = vld [vmem:[#allocation2 + $0x18] sm:$0xf]  ;;  %v2097_v20 = vsel %vm2087_vm4, %v2052_v51, %v2054_v30 }
 0x1cb   : > { %9570 = vst [vmem:[#allocation53_spill] sm:$0xff] %v7465_v46  ;;  %6324 = vmatmul.msk.bf16.vlgmr.msrb.gmra.mxu0 %vm329_vm2, %v7229_v4  ;;  %6325 = vmatmul.msk.bf16.vlgmr.msrb.gmra.mxu1 %vm329_vm2, %v7229_v4  ;;  %v2662_v46 = vld.sshfl [vmem:[#allocation1 + $0x30] sm:$0xff pattern:$0x73625140] }
 0x1cc   : > { %6326 = vmatmul.msk.bf16.vlgmr.msrb.gmra.mxu2 %vm329_vm2, %v7229_v4  ;;  %6327 = vmatmul.msk.bf16.vlgmr.msrb.gmra.mxu3 %vm329_vm2, %v7229_v4  ;;  %2669 = vst [vmem:[#allocation1 + $0x20] ss:$4 sm:$0xff] %v7479_v22 }
 0x1cd   : > { %2247 = vmatpush.bf16.msrb.mxu0 %v2127_v21  ;;  %2261 = vmatpush.bf16.msrb.mxu1 %v2130_v49  ;;  %v2050_v21 = vpop.permute.xlu1 %2049 }
 0x1ce   : > { %2275 = vmatpush.bf16.msrb.mxu2 %v2133_v5  ;;  %2289 = vmatpush.bf16.msrb.mxu3 %v2136_v35  ;;  %v2670_v5 = vld.sshfl [vmem:[#allocation1] sm:$0xff pattern:$0x73625140]  ;;  %v2056_v35 = vpop.permute.xlu2 %2055  ;;  %v2095_v63 = vsel %vm2087_vm4, %v2048_v55, %v2050_v21 }
 0x1cf   : > { %v7486_v41 = vpop.f32.mrf.mxu2  ;;  %v7488_v28 = vpop.f32.mrf.mxu3  ;;  %2726 = vrot.lane.b32.xlu2 %v2662_v46, %s6713_s25  ;;  %v7501_v46 = vor.u32 %v6520_v7, %v6331_v13  ;;  %v2145_v13 = vsel %vm333_vm1, %v2097_v20, 0 }
 0x1d0   : > { %9572 = vst [vmem:[#allocation55_spill] sm:$0xff] %v7486_v41  ;;  %v7492_v23 = vpop.f32.mrf.mxu0  ;;  %v7494_v56 = vpop.f32.mrf.mxu1 }
 0x1d1   : > { %9573 = vst [vmem:[#allocation56_spill] sm:$0xff] %v7488_v28 }
 0x1d2   : > { %9574 = vst [vmem:[#allocation57_spill] sm:$0xff] %v7492_v23 }
 0x1d3   : > { %9575 = vst [vmem:[#allocation58_spill] sm:$0xff] %v7494_v56  ;;  %v2678_v22 = vld.sshfl [vmem:[#allocation1 + $0x20] sm:$0xff pattern:$0x73625140]  ;;  %v2096_v56 = vsel %vm2087_vm4, %v2050_v21, %v2052_v51  ;;  %v2060_v21 = vpop.permute.xlu0 %2059 }
 0x1d4   : > { %2738 = vrot.lane.b32.xlu0 %v2678_v22, %s6713_s25  ;;  %v2682_v49 = vld.sshfl [vmem:[#allocation1 + $0x30] sm:$0xff pattern:$0x73625140]  ;;  %v2142_v7 = vsel %vm333_vm1, %v2096_v56, 0 }
 0x1d5   : > { %2742 = vrot.lane.b32.xlu1 %v2682_v49, %s6713_s25  ;;  %v2672_v49 = vld.sshfl [vmem:[#allocation1 + $0x8] sm:$0xff pattern:$0x73625140]  ;;  %v2062_v56 = vpop.permute.xlu1 %2061 }
 0x1d6   : > { %2687 = vst [vmem:[#allocation1] ss:$4 sm:$0xff] %v7258_v42 }
 0x1d7   : > { %v7497_v41 = vpop.f32.mrf.mxu2  ;;  %v7499_v28 = vpop.f32.mrf.mxu3  ;;  %2730 = vrot.lane.b32.xlu2 %v2670_v5, %s6713_s25 }
 0x1d8   : > { %9576 = vst [vmem:[#allocation59_spill] sm:$0xff] %v7497_v41  ;;  %v7507_v23 = vpop.f32.mrf.mxu0  ;;  %v7509_v22 = vpop.f32.mrf.mxu1  ;;  %v2098_v41 = vsel %vm2087_vm4, %v2054_v30, %v2056_v35  ;;  %v2680_v30 = vld.sshfl [vmem:[#allocation1 + $0x28] sm:$0xff pattern:$0x73625140] }
 0x1d9   : > { %9577 = vst [vmem:[#allocation60_spill] sm:$0xff] %v7499_v28  ;;  %v2139_v28 = vsel %vm333_vm1, %v2095_v63, 0  ;;  %v2148_v55 = vsel %vm333_vm1, %v2098_v41, 0  ;;  %v2058_v63 = vpop.permute.xlu2 %2057 }
 0x1db   : > { %6328 = vmatmul.msk.bf16.vlgmr.msra.gmra.mxu0 %vm329_vm2, %v7229_v4  ;;  %6333 = vmatmul.msk.bf16.vlgmr.msra.gmra.mxu1 %vm329_vm2, %v7501_v46  ;;  %v2064_v42 = vpop.permute.xlu0 %2063 }
 0x1dc   : > { %6334 = vmatmul.msk.bf16.vlgmr.msra.gmra.mxu2 %vm329_vm2, %v7501_v46  ;;  %6335 = vmatmul.msk.bf16.vlgmr.msra.gmra.mxu3 %vm329_vm2, %v7501_v46 }
 0x1dd   : > { %2303 = vmatpush.bf16.msra.mxu0 %v2139_v28  ;;  %2317 = vmatpush.bf16.msra.mxu1 %v2142_v7  ;;  %v2690_v5 = vld.sshfl [vmem:[#allocation1] sm:$0xff pattern:$0x73625140] }
 0x1de   : > { %2331 = vmatpush.bf16.msra.mxu2 %v2145_v13  ;;  %2345 = vmatpush.bf16.msra.mxu3 %v2148_v55  ;;  %v2099_v13 = vsel %vm2087_vm4, %v2056_v35, %v2058_v63  ;;  %v2100_v55 = vsel %vm2087_vm4, %v2058_v63, %v2060_v21 }
 0x1df   : > { %v7526_v4 = vpop.f32.mrf.mxu2  ;;  %v7528_v20 = vpop.f32.mrf.mxu3  ;;  %2740 = vrot.lane.b32.xlu0 %v2680_v30, %s6713_s25  ;;  %2732 = vrot.lane.b32.xlu2 %v2672_v49, %s6713_s25 }
 0x1e0   : > { %9578 = vst [vmem:[#allocation61_spill] sm:$0xff] %v7526_v4  ;;  %v7532_v51 = vpop.f32.mrf.mxu0  ;;  %v7534_v41 = vpop.f32.mrf.mxu1  ;;  %2746 = vrot.lane.b32.xlu1 %v2690_v5, %s6713_s25  ;;  %v2151_v4 = vsel %vm333_vm1, %v2099_v13, 0  ;;  %v2154_v5 = vsel %vm333_vm1, %v2100_v55, 0  ;;  %v2696_v13 = vld.sshfl [vmem:[#allocation1 + $0x18] sm:$0xff pattern:$0x73625140]  ;;  %v900_v55 = vadd.f32 %v7290_v50, %v7039_v25 }
 0x1e1   : > { %9579 = vst [vmem:[#allocation62_spill] sm:$0xff] %v7528_v20  ;;  %v2102_v20 = vsel %vm2087_vm4, %v2062_v56, %v2064_v42  ;;  %v2684_v50 = vld.sshfl [vmem:[#allocation1 + $0x38] sm:$0xff pattern:$0x73625140] }
 0x1e2   : > { %9580 = vst [vmem:[#allocation63_spill] sm:$0xff] %v7534_v41  ;;  %v2101_v41 = vsel %vm2087_vm4, %v2060_v21, %v2062_v56  ;;  %v2160_v63 = vsel %vm333_vm1, %v2102_v20, 0  ;;  %v2068_v21 = vpop.permute.xlu1 %2067  ;;  %v2692_v56 = vld.sshfl [vmem:[#allocation1 + $0x8] sm:$0xff pattern:$0x73625140] }
 0x1e3   : > { %v2157_v35 = vsel %vm333_vm1, %v2101_v41, 0  ;;  %2689 = vst [vmem:[#allocation1 + $0x20] ss:$4 sm:$0xff] %v7311_v10 }
 0x1e7   : > { %v7537_v28 = vpop.f32.mrf.mxu2  ;;  %v7539_v7 = vpop.f32.mrf.mxu3  ;;  %2752 = vrot.lane.b32.xlu0 %v2696_v13, %s6713_s25  ;;  %2744 = vrot.lane.b32.xlu2 %v2684_v50, %s6713_s25 }
 0x1e8   : > { %9581 = vst [vmem:[#allocation64_spill] sm:$0xff] %v7537_v28  ;;  %v7543_v30 = vpop.f32.mrf.mxu0  ;;  %v7545_v49 = vpop.f32.mrf.mxu1  ;;  %2748 = vrot.lane.b32.xlu1 %v2692_v56, %s6713_s25  ;;  %v942_v56 = vadd.f32 %v7326_v58, %v7064_v45 }
 0x1e9   : > { %9582 = vst [vmem:[#allocation65_spill] sm:$0xff] %v7539_v7  ;;  %v2070_v25 = vpop.permute.xlu2 %2069 }
 0x1ea   : > { %9583 = vst [vmem:[#allocation66_spill] sm:$0xff] %v7545_v49  ;;  %v914_v49 = vadd.f32 %v7304_v9, %v7041_v29  ;;  %v2066_v29 = vpop.permute.xlu0 %2065  ;;  %v2702_v58 = vld.sshfl [vmem:[#allocation1 + $0x30] sm:$0xff pattern:$0x73625140] }
 0x1eb   : > { %6336 = vmatmul.msk.bf16.vlgmr.msrb.gmra.mxu0 %vm329_vm2, %v7501_v46  ;;  %6337 = vmatmul.msk.bf16.vlgmr.msrb.gmra.mxu1 %vm329_vm2, %v7501_v46  ;;  %v7577_v9 = vpop.permute.xlu1 %2071  ;;  %v2104_v10 = vsel %vm2087_vm4, %v2066_v29, %v2068_v21 }
 0x1ec   : > { %6338 = vmatmul.msk.bf16.vlgmr.msrb.gmra.mxu2 %vm329_vm2, %v7501_v46  ;;  %6339 = vmatmul.msk.bf16.vlgmr.msrb.gmra.mxu3 %vm329_vm2, %v7501_v46 }
 0x1ed   : > { %2359 = vmatpush.bf16.msrb.mxu0 %v2151_v4  ;;  %2373 = vmatpush.bf16.msrb.mxu1 %v2154_v5 }
 0x1ee   : > { %2387 = vmatpush.bf16.msrb.mxu2 %v2157_v35  ;;  %2401 = vmatpush.bf16.msrb.mxu3 %v2160_v63  ;;  %v902_v35 = vadd.f32 %v7300_v32, %v7067_v44  ;;  %v916_v63 = vadd.f32 %v7330_v1, %v7069_v11  ;;  %v2106_v11 = vsel %vm2087_vm4, %v2070_v25, %v7577_v9 }
 0x1ef   : > { %v1526_v20 = vpop.f32.mrf.mxu2  ;;  %v1540_v41 = vpop.f32.mrf.mxu3  ;;  %2758 = vrot.lane.b32.xlu0 %v2702_v58, %s6713_s25  ;;  %v958_v58 = vadd.f32 %v7339_v15, %v7103_v16 }
 0x1f0   : > { %v7567_v7 = vadd.f32 %v1526_v20, %v900_v55  ;;  %v7569_v28 = vadd.f32 %v1540_v41, %v914_v49  ;;  %v7571_v4 = vpop.f32.mrf.mxu0  ;;  %v7573_v5 = vpop.f32.mrf.mxu1  ;;  %v928_v49 = vadd.f32 %v7306_v2, %v7062_v43  ;;  %v2103_v20 = vsel %vm2087_vm4, %v2064_v42, %v2066_v29 }
 0x1f1   : > { %v2105_v41 = vsel %vm2087_vm4, %v2068_v21, %v2070_v25  ;;  %v2163_v1 = vsel %vm333_vm1, %v2103_v20, 0  ;;  %v2166_v42 = vsel %vm333_vm1, %v2104_v10, 0  ;;  %v2172_v25 = vsel %vm333_vm1, %v2106_v11, 0  ;;  %v2076_v29 = vpop.permute.xlu2 %2075 }
 0x1f2   : > { %v2169_v21 = vsel %vm333_vm1, %v2105_v41, 0  ;;  %v944_v20 = vadd.f32 %v7337_v24, %v7074_v54  ;;  %v2698_v54 = vld.sshfl [vmem:[#allocation1 + $0x20] sm:$0xff pattern:$0x73625140] }
 0x1f7   : > { %v1528_v13 = vpop.f32.mrf.mxu2  ;;  %v1542_v55 = vpop.f32.mrf.mxu3 }
 0x1f8   : > { %v7590_v50 = vadd.f32 %v1528_v13, %v902_v35  ;;  %v7592_v44 = vadd.f32 %v1542_v55, %v916_v63  ;;  %v1554_v43 = vpop.f32.mrf.mxu0  ;;  %v1568_v2 = vpop.f32.mrf.mxu1  ;;  %v2694_v35 = vld.sshfl [vmem:[#allocation1 + $0x10] sm:$0xff pattern:$0x73625140]  ;;  %v2704_v63 = vld.sshfl [vmem:[#allocation1 + $0x38] sm:$0xff pattern:$0x73625140]  ;;  %v970_v13 = vadd.f32 %v7343_v47, %v7078_v61  ;;  %v930_v55 = vadd.f32 %v7332_v38, %v7072_v53 }
 0x1f9   : > { %v7596_v32 = vadd.f32 %v1554_v43, %v928_v49  ;;  %v7598_v45 = vadd.f32 %v1568_v2, %v942_v56  ;;  %v2636_v49 = vld [vmem:[%s6750_s21 + $0x30] sm:$0x3f]  ;;  %v956_v56 = vadd.f32 %v7328_v6, %v7076_v60  ;;  %2750 = vrot.lane.b32.xlu2 %v2694_v35, %s6713_s25  ;;  %2760 = vrot.lane.b32.xlu1 %v2704_v63, %s6713_s25  ;;  %v2074_v38 = vpop.permute.xlu1 %2073  ;;  %v7633_v24 = vpop.permute.xlu2 %2079 }
 0x1fa   : > { %2707 = vst [vmem:[#allocation1] ss:$4 sm:$0xff] %v2636_v49  ;;  %v2078_v11 = vpop.permute.xlu0 %2077  ;;  %v2107_v49 = vsel %vm2087_vm4, %v7577_v9, %v2074_v38  ;;  %v2108_v63 = vsel %vm2087_vm4, %v2074_v38, %v2076_v29 }
 0x1fb   : > { %6340 = vmatmul.msk.bf16.vlgmr.msra.gmra.mxu0 %vm329_vm2, %v7501_v46  ;;  %6341 = vmatmul.msk.bf16.vlgmr.msra.gmra.mxu1 %vm329_vm2, %v7501_v46  ;;  %v2175_v9 = vsel %vm333_vm1, %v2107_v49, 0 }
 0x1fc   : > { %6342 = vmatmul.msk.bf16.vlgmr.msra.gmra.mxu2 %vm329_vm2, %v7501_v46  ;;  %6343 = vmatmul.msk.bf16.vlgmr.msra.gmra.mxu3 %vm329_vm2, %v7501_v46 }
 0x1fd   : > { %2415 = vmatpush.bf16.msra.mxu0 %v2163_v1  ;;  %2429 = vmatpush.bf16.msra.mxu1 %v2166_v42  ;;  %v972_v1 = vadd.f32 %v7367_v57, %v7105_v26  ;;  %v984_v42 = vadd.f32 %v7345_v62, %v7098_v17  ;;  %v2109_v17 = vsel %vm2087_vm4, %v2076_v29, %v2078_v11 }
 0x1fe   : > { %2443 = vmatpush.bf16.msra.mxu2 %v2169_v21  ;;  %2457 = vmatpush.bf16.msra.mxu3 %v2172_v25  ;;  %v998_v21 = vadd.f32 %v7362_v48, %v7100_v8  ;;  %v2110_v8 = vsel %vm2087_vm4, %v2078_v11, %v7633_v24  ;;  %v2181_v29 = vsel %vm333_vm1, %v2109_v17, 0 }
 0x1ff   : > { %v1582_v10 = vpop.f32.mrf.mxu2  ;;  %v1596_v41 = vpop.f32.mrf.mxu3 }
 0x200   : > { %v7624_v43 = vadd.f32 %v1582_v10, %v956_v56  ;;  %v7626_v60 = vadd.f32 %v1596_v41, %v970_v13  ;;  %v1556_v6 = vpop.f32.mrf.mxu0  ;;  %v1570_v61 = vpop.f32.mrf.mxu1  ;;  %v2178_v13 = vsel %vm333_vm1, %v2108_v63, 0  ;;  %v1012_v10 = vadd.f32 %v7364_v52, %v7114_v39 }
 0x201   : > { %v7628_v47 = vadd.f32 %v1556_v6, %v930_v55  ;;  %v7630_v2 = vadd.f32 %v1570_v61, %v944_v20  ;;  %v2708_v53 = vld.sshfl [vmem:[#allocation1] sm:$0xff pattern:$0x73625140]  ;;  %2754 = vrot.lane.b32.xlu2 %v2698_v54, %s6713_s25  ;;  %v2712_v57 = vld.sshfl [vmem:[#allocation1 + $0x10] sm:$0xff pattern:$0x73625140]  ;;  %v1026_v41 = vadd.f32 %v7384_v12, %v7116_v37  ;;  %v986_v6 = vadd.f32 %v7369_v18, %v7109_v14 }
 0x202   : > { %2762 = vrot.lane.b32.xlu0 %v2708_v53, %s6713_s25  ;;  %2766 = vrot.lane.b32.xlu1 %v2712_v57, %s6713_s25  ;;  %v2184_v55 = vsel %vm333_vm1, %v2110_v8, 0  ;;  %v2710_v20 = vld.sshfl [vmem:[#allocation1 + $0x8] sm:$0xff pattern:$0x73625140]  ;;  %v1000_v61 = vadd.f32 %v7377_v59, %v7111_v0  ;;  %v2082_v0 = vpop.permute.xlu2 %2081  ;;  %v1014_v12 = vadd.f32 %v7379_v3, %v7141_v27 }
 0x203   : > { %3327 = vst [vmem:[#allocation1] ss:$4 sm:$0xff] %v7374_v34  ;;  %v2700_v37 = vld.sshfl [vmem:[#allocation1 + $0x28] sm:$0xff pattern:$0x73625140] }
 0x204   : > { %3330 = vst [vmem:[#allocation1 + $0x20] ss:$4 sm:$0xff] %v7399_v40  ;;  %v9584_v40 = vld [vmem:[#allocation5_spill] sm:$0xff] }
 0x207   : > { %v1584_v25 = vpop.f32.mrf.mxu2  ;;  %v1598_v35 = vpop.f32.mrf.mxu3 }
 0x208   : > { %v7647_v56 = vadd.f32 %v1584_v25, %v958_v58  ;;  %v7649_v16 = vadd.f32 %v1598_v35, %v972_v1  ;;  %v1610_v26 = vpop.f32.mrf.mxu0  ;;  %v1624_v15 = vpop.f32.mrf.mxu1  ;;  %v1028_v1 = vadd.f32 %v7412_v36, %v7143_v33  ;;  %v9585_v25 = vld [vmem:[#allocation38_spill] sm:$0xff] }
 0x209   : > { %v7654_v62 = vadd.f32 %v1610_v26, %v984_v42  ;;  %v7656_v48 = vadd.f32 %v1624_v15, %v998_v21  ;;  %2756 = vrot.lane.b32.xlu2 %v2700_v37, %s6713_s25  ;;  %v2086_v59 = vpop.permute.xlu1 %2085  ;;  %v2084_v42 = vpop.permute.xlu0 %2083  ;;  %v1040_v21 = vadd.f32 %v7386_v31, %v7135_v19  ;;  %v1054_v35 = vadd.f32 %v9585_v25, %v9584_v40  ;;  %v9592_v37 = vld [vmem:[#allocation7_spill] sm:$0xff] }
 0x20a   : > { %v3333_v14 = vld.sshfl [vmem:[#allocation1 + $0x8] sm:$0xff pattern:$0x73625140]  ;;  %v3331_v18 = vld.sshfl [vmem:[#allocation1] sm:$0xff pattern:$0x73625140]  ;;  %v2111_v26 = vsel %vm2087_vm4, %v7633_v24, %v2082_v0  ;;  %v2112_v33 = vsel %vm2087_vm4, %v2082_v0, %v2084_v42  ;;  %v2113_v36 = vsel %vm2087_vm4, %v2084_v42, %v2086_v59 }
 0x20b   : > { %6344 = vmatmul.msk.bf16.vlgmr.msrb.gmra.mxu0 %vm329_vm2, %v7501_v46  ;;  %6345 = vmatmul.msk.bf16.vlgmr.msrb.gmra.mxu1 %vm329_vm2, %v7501_v46  ;;  %v2187_v31 = vsel %vm333_vm1, %v2111_v26, 0  ;;  %v2196_v57 = vsel %vm333_vm1, %v2086_v59, 0  ;;  %v2190_v24 = vsel %vm333_vm1, %v2112_v33, 0  ;;  %v9594_v26 = vld [vmem:[#allocation12_spill] sm:$0xff]  ;;  %v9596_v33 = vld [vmem:[#allocation13_spill] sm:$0xff] }
 0x20c   : > { %6346 = vmatmul.msk.bf16.vlgmr.msrb.gmra.mxu2 %vm329_vm2, %v7501_v46  ;;  %6347 = vmatmul.msk.bf16.vlgmr.msrb.gmra.mxu3 %vm329_vm2, %v7501_v46 }
 0x20d   : > { %2471 = vmatpush.bf16.msrb.mxu0 %v2175_v9  ;;  %2485 = vmatpush.bf16.msrb.mxu1 %v2178_v13  ;;  %v2193_v9 = vsel %vm333_vm1, %v2113_v36, 0  ;;  %v3335_v13 = vld.sshfl [vmem:[#allocation1 + $0x10] sm:$0xff pattern:$0x73625140]  ;;  %v9597_v36 = vld [vmem:[#allocation47_spill] sm:$0xff] }
 0x20e   : > { %2499 = vmatpush.bf16.msrb.mxu2 %v2181_v29  ;;  %2513 = vmatpush.bf16.msrb.mxu3 %v2184_v55  ;;  %v3339_v29 = vld.sshfl [vmem:[#allocation1 + $0x20] sm:$0xff pattern:$0x73625140]  ;;  %v9586_v55 = vld [vmem:[#allocation8_spill] sm:$0xff] }
 0x20f   : > { %v1638_v53 = vpop.f32.mrf.mxu2  ;;  %v1652_v38 = vpop.f32.mrf.mxu3  ;;  %3397 = vrot.lane.b32.xlu1 %v3333_v14, %s6714_s26  ;;  %3395 = vrot.lane.b32.xlu0 %v3331_v18, %s6714_s26  ;;  %v9593_v14 = vld [vmem:[#allocation41_spill] sm:$0xff] }
 0x210   : > { %v7680_v54 = vadd.f32 %v1638_v53, %v1012_v10  ;;  %v7682_v34 = vadd.f32 %v1652_v38, %v1026_v41  ;;  %v1612_v11 = vpop.f32.mrf.mxu0  ;;  %v1626_v58 = vpop.f32.mrf.mxu1  ;;  %v9588_v41 = vld [vmem:[#allocation9_spill] sm:$0xff]  ;;  %v9590_v38 = vld [vmem:[#allocation6_spill] sm:$0xff]  ;;  %v1056_v18 = vadd.f32 %v9593_v14, %v9592_v37 }
 0x211   : > { %v7684_v39 = vadd.f32 %v1612_v11, %v986_v6  ;;  %v7686_v52 = vadd.f32 %v1626_v58, %v1000_v61  ;;  %2764 = vrot.lane.b32.xlu2 %v2710_v20, %s6713_s25  ;;  %v9587_v20 = vld [vmem:[#allocation39_spill] sm:$0xff]  ;;  %v9591_v11 = vld [vmem:[#allocation40_spill] sm:$0xff] }
 0x212   : > { %v1068_v10 = vadd.f32 %v9587_v20, %v9586_v55  ;;  %v9589_v6 = vld [vmem:[#allocation43_spill] sm:$0xff]  ;;  %v1042_v58 = vadd.f32 %v9591_v11, %v9590_v38 }
 0x213   : > { %v1082_v61 = vadd.f32 %v9589_v6, %v9588_v41 }
 0x214   : > { %v2715_v53 = vpop.permute.xlu2 %2714 }
 0x217   : > { %v1640_v49 = vpop.f32.mrf.mxu2  ;;  %v1654_v63 = vpop.f32.mrf.mxu3  ;;  %3399 = vrot.lane.b32.xlu1 %v3335_v13, %s6714_s26  ;;  %3403 = vrot.lane.b32.xlu0 %v3339_v29, %s6714_s26  ;;  %v9600_v13 = vld [vmem:[#allocation11_spill] sm:$0xff]  ;;  %v9601_v29 = vld [vmem:[#allocation45_spill] sm:$0xff] }
 0x218   : > { %v7702_v15 = vadd.f32 %v1640_v49, %v1014_v12  ;;  %v7704_v17 = vadd.f32 %v1654_v63, %v1028_v1  ;;  %v1666_v27 = vpop.f32.mrf.mxu0  ;;  %v1680_v3 = vpop.f32.mrf.mxu1  ;;  %v3345_v63 = vld.sshfl [vmem:[#allocation1 + $0x38] sm:$0xff pattern:$0x73625140]  ;;  %v1110_v55 = vadd.f32 %v9601_v29, %v9600_v13  ;;  %v9608_v13 = vld [vmem:[#allocation48_spill] sm:$0xff] }
 0x219   : > { %v7708_v8 = vadd.f32 %v1666_v27, %v1040_v21  ;;  %v7710_v19 = vadd.f32 %v1680_v3, %v1054_v35  ;;  %v2719_v35 = vpop.permute.xlu0 %2718  ;;  %v2721_v49 = vpop.permute.xlu1 %2720  ;;  %v9595_v27 = vld [vmem:[#allocation42_spill] sm:$0xff] }
 0x21a   : > { %v1070_v3 = vadd.f32 %v9595_v27, %v9594_v26  ;;  %v2771_v41 = vsel %vm2768_vm5, %v2719_v35, %v2721_v49 }
 0x21b   : > { %6348 = vmatmul.msk.bf16.vlgmr.msra.gmra.mxu0 %vm329_vm2, %v7501_v46  ;;  %6349 = vmatmul.msk.bf16.vlgmr.msra.gmra.mxu1 %vm329_vm2, %v7501_v46 }
 0x21c   : > { %6350 = vmatmul.msk.bf16.vlgmr.msra.gmra.mxu2 %vm329_vm2, %v7501_v46  ;;  %6351 = vmatmul.msk.bf16.vlgmr.msra.gmra.mxu3 %vm329_vm2, %v7501_v46 }
 0x21d   : > { %2527 = vmatpush.bf16.msra.mxu0 %v2187_v31  ;;  %2569 = vmatpush.bf16.msra.mxu3 %v2196_v57  ;;  %v1084_v31 = vadd.f32 %v9597_v36, %v9596_v33  ;;  %v9598_v57 = vld [vmem:[#allocation10_spill] sm:$0xff] }
 0x21e   : > { %2541 = vmatpush.bf16.msra.mxu1 %v2190_v24  ;;  %2555 = vmatpush.bf16.msra.mxu2 %v2193_v9  ;;  %v9599_v24 = vld [vmem:[#allocation44_spill] sm:$0xff]  ;;  %v3337_v33 = vld.sshfl [vmem:[#allocation1 + $0x18] sm:$0xff pattern:$0x73625140] }
 0x21f   : > { %v1694_v0 = vpop.f32.mrf.mxu2  ;;  %v1708_v59 = vpop.f32.mrf.mxu3  ;;  %v1096_v9 = vadd.f32 %v9599_v24, %v9598_v57  ;;  %3409 = vrot.lane.b32.xlu0 %v3345_v63, %s6714_s26  ;;  %v9606_v57 = vld [vmem:[#allocation52_spill] sm:$0xff]  ;;  %3401 = vrot.lane.b32.xlu2 %v3337_v33, %s6714_s26 }
 0x220   : > { %v7735_v12 = vadd.f32 %v1694_v0, %v1068_v10  ;;  %v7737_v1 = vadd.f32 %v1708_v59, %v1082_v61  ;;  %v1668_v42 = vpop.f32.mrf.mxu0  ;;  %v1682_v21 = vpop.f32.mrf.mxu1  ;;  %v2805_v0 = vsel %vm333_vm1, %v2771_v41, 0  ;;  %v9611_v33 = vld [vmem:[#allocation20_spill] sm:$0xff] }
 0x221   : > { %v7739_v40 = vadd.f32 %v1668_v42, %v1042_v58  ;;  %v7741_v25 = vadd.f32 %v1682_v21, %v1056_v18  ;;  %v2717_v14 = vpop.permute.xlu0 %2716  ;;  %v2723_v18 = vpop.permute.xlu1 %2722 }
 0x222   : > { %v2770_v59 = vsel %vm2768_vm5, %v2717_v14, %v2719_v35  ;;  %v2772_v42 = vsel %vm2768_vm5, %v2721_v49, %v2723_v18  ;;  %v2769_v21 = vsel %vm2768_vm5, %v2715_v53, %v2717_v14  ;;  %v9602_v53 = vld [vmem:[#allocation49_spill] sm:$0xff]  ;;  %v9603_v35 = vld [vmem:[#allocation16_spill] sm:$0xff]  ;;  %v9604_v49 = vld [vmem:[#allocation46_spill] sm:$0xff] }
 0x223   : > { %v2802_v26 = vsel %vm333_vm1, %v2770_v59, 0  ;;  %v2808_v27 = vsel %vm333_vm1, %v2772_v42, 0  ;;  %3348 = vst [vmem:[#allocation1] ss:$4 sm:$0xff] %v9602_v53  ;;  %v1124_v36 = vadd.f32 %v9604_v49, %v9603_v35 }
 0x224   : > { %v3341_v49 = vld.sshfl [vmem:[#allocation1 + $0x28] sm:$0xff pattern:$0x73625140] }
 0x227   : > { %v1696_v20 = vpop.f32.mrf.mxu2  ;;  %v1710_v10 = vpop.f32.mrf.mxu3  ;;  %3405 = vrot.lane.b32.xlu2 %v3341_v49, %s6714_s26 }
 0x228   : > { %v7753_v6 = vadd.f32 %v1696_v20, %v1070_v3  ;;  %v7755_v61 = vadd.f32 %v1710_v10, %v1084_v31  ;;  %v1722_v38 = vpop.f32.mrf.mxu0  ;;  %v1736_v11 = vpop.f32.mrf.mxu1  ;;  %v2799_v3 = vsel %vm333_vm1, %v2769_v21, 0  ;;  %v9605_v31 = vld [vmem:[#allocation17_spill] sm:$0xff]  ;;  %v9610_v20 = vld [vmem:[#allocation50_spill] sm:$0xff] }
 0x229   : > { %v7757_v58 = vadd.f32 %v1722_v38, %v1096_v9  ;;  %v7759_v37 = vadd.f32 %v1736_v11, %v1110_v55  ;;  %v2727_v63 = vpop.permute.xlu2 %2726  ;;  %v1138_v24 = vadd.f32 %v9606_v57, %v9605_v31  ;;  %v9607_v9 = vld [vmem:[#allocation14_spill] sm:$0xff]  ;;  %v9609_v55 = vld [vmem:[#allocation15_spill] sm:$0xff] }
 0x22a   : > { %v1098_v29 = vadd.f32 %v9608_v13, %v9607_v9  ;;  %v1112_v10 = vadd.f32 %v9610_v20, %v9609_v55  ;;  %v3351_v53 = vld.sshfl [vmem:[#allocation1] sm:$0xff pattern:$0x73625140]  ;;  %v9613_v57 = vld [vmem:[#allocation18_spill] sm:$0xff]  ;;  %v9617_v20 = vld [vmem:[#allocation21_spill] sm:$0xff] }
 0x22b   : > { %6352 = vmatmul.msk.bf16.vlgmr.msrb.gmra.mxu0 %vm329_vm2, %v7501_v46  ;;  %6353 = vmatmul.msk.bf16.vlgmr.msrb.gmra.mxu1 %vm329_vm2, %v7501_v46  ;;  %v9615_v13 = vld [vmem:[#allocation19_spill] sm:$0xff]  ;;  %v3357_v49 = vld.sshfl [vmem:[#allocation1 + $0x18] sm:$0xff pattern:$0x73625140] }
 0x22c   : > { %6354 = vmatmul.msk.bf16.vlgmr.msrb.gmra.mxu2 %vm329_vm2, %v7501_v46  ;;  %6355 = vmatmul.msk.bf16.vlgmr.msrb.gmra.mxu3 %vm329_vm2, %v7501_v46 }
 0x22d   : > { %2900 = vmatpush.bf16.msrb.mxu1 %v2802_v26  ;;  %2914 = vmatpush.bf16.msrb.mxu2 %v2805_v0  ;;  %v2729_v26 = vpop.permute.xlu0 %2728 }
 0x22e   : > { %2928 = vmatpush.bf16.msrb.mxu3 %v2808_v27  ;;  %2886 = vmatpush.bf16.msrb.mxu0 %v2799_v3  ;;  %v3353_v27 = vld.sshfl [vmem:[#allocation1 + $0x8] sm:$0xff pattern:$0x73625140]  ;;  %v2725_v3 = vpop.permute.xlu1 %2724 }
 0x22f   : > { %v1750_v41 = vpop.f32.mrf.mxu2  ;;  %v1764_v38 = vpop.f32.mrf.mxu3  ;;  %3413 = vrot.lane.b32.xlu0 %v3353_v27, %s6714_s26  ;;  %3411 = vrot.lane.b32.xlu1 %v3351_v53, %s6714_s26  ;;  %v2774_v27 = vsel %vm2768_vm5, %v2725_v3, %v2727_v63  ;;  %v2775_v53 = vsel %vm2768_vm5, %v2727_v63, %v2729_v26 }
 0x230   : > { %v7786_v11 = vadd.f32 %v1750_v41, %v1124_v36  ;;  %v7788_v14 = vadd.f32 %v1764_v38, %v1138_v24  ;;  %v1724_v0 = vpop.f32.mrf.mxu0  ;;  %v1738_v59 = vpop.f32.mrf.mxu1  ;;  %v9612_v36 = vld [vmem:[#allocation51_spill] sm:$0xff]  ;;  %v9614_v24 = vld [vmem:[#allocation53_spill] sm:$0xff]  ;;  %v2817_v63 = vsel %vm333_vm1, %v2775_v53, 0  ;;  %v9626_v53 = vld [vmem:[#allocation22_spill] sm:$0xff] }
 0x231   : > { %v7790_v42 = vadd.f32 %v1724_v0, %v1098_v29  ;;  %v7792_v21 = vadd.f32 %v1738_v59, %v1112_v10  ;;  %v7795_v35 = vpop.permute.xlu2 %2730  ;;  %v1126_v31 = vadd.f32 %v9612_v36, %v9611_v33  ;;  %v1152_v9 = vadd.f32 %v9614_v24, %v9613_v57  ;;  %v9616_v29 = vld [vmem:[#allocation55_spill] sm:$0xff]  ;;  %v9618_v10 = vld [vmem:[#allocation57_spill] sm:$0xff] }
 0x232   : > { %v1166_v55 = vadd.f32 %v9616_v29, %v9615_v13  ;;  %v1140_v41 = vadd.f32 %v9618_v10, %v9617_v20  ;;  %v2773_v59 = vsel %vm2768_vm5, %v2723_v18, %v2725_v3  ;;  %v2776_v33 = vsel %vm2768_vm5, %v2729_v26, %v7795_v35  ;;  %v9622_v10 = vld [vmem:[#allocation54_spill] sm:$0xff] }
 0x233   : > { %v2811_v18 = vsel %vm333_vm1, %v2773_v59, 0  ;;  %v2814_v3 = vsel %vm333_vm1, %v2774_v27, 0  ;;  %v2820_v26 = vsel %vm333_vm1, %v2776_v33, 0  ;;  %v9625_v59 = vld [vmem:[#allocation25_spill] sm:$0xff]  ;;  %v9627_v33 = vld [vmem:[#allocation58_spill] sm:$0xff] }
 0x234   : > { %v1194_v27 = vadd.f32 %v7507_v23, %v9625_v59 }
 0x237   : > { %v1752_v38 = vpop.f32.mrf.mxu2  ;;  %v1766_v0 = vpop.f32.mrf.mxu3  ;;  %3417 = vrot.lane.b32.xlu1 %v3357_v49, %s6714_s26  ;;  %v9633_v49 = vld [vmem:[#allocation28_spill] sm:$0xff] }
 0x238   : > { %v7812_v36 = vadd.f32 %v1752_v38, %v1126_v31  ;;  %v7814_v57 = vadd.f32 %v1766_v0, %v1140_v41  ;;  %v1778_v24 = vpop.f32.mrf.mxu0  ;;  %v1792_v13 = vpop.f32.mrf.mxu1  ;;  %v3343_v31 = vld.sshfl [vmem:[#allocation1 + $0x30] sm:$0xff pattern:$0x73625140]  ;;  %v9623_v41 = vld [vmem:[#allocation24_spill] sm:$0xff] }
 0x239   : > { %v7816_v29 = vadd.f32 %v1778_v24, %v1152_v9  ;;  %v7818_v20 = vadd.f32 %v1792_v13, %v1166_v55  ;;  %v2735_v9 = vpop.permute.xlu0 %2734  ;;  %v3355_v55 = vld.sshfl [vmem:[#allocation1 + $0x10] sm:$0xff pattern:$0x73625140]  ;;  %3350 = vst [vmem:[#allocation1 + $0x20] ss:$4 sm:$0xff] %v9622_v10  ;;  %v9624_v38 = vld [vmem:[#allocation56_spill] sm:$0xff]  ;;  %v1154_v24 = vadd.f32 %v9627_v33, %v9626_v53  ;;  %3407 = vrot.lane.b32.xlu2 %v3343_v31, %s6714_s26  ;;  %v2733_v59 = vpop.permute.xlu2 %2732 }
 0x23a   : > { %9619 = vst [vmem:[#allocation5_spill] sm:$0xff] %v7812_v36  ;;  %v1180_v0 = vadd.f32 %v9624_v38, %v9623_v41  ;;  %v9628_v13 = vld [vmem:[#allocation23_spill] sm:$0xff]  ;;  %3415 = vrot.lane.b32.xlu0 %v3355_v55, %s6714_s26  ;;  %v2737_v41 = vpop.permute.xlu1 %2736  ;;  %v6521_v38 = vld [vmem:[#allocation2 + $0x20] sm:$0x30] }
 0x23b   : > { %9620 = vst [vmem:[#allocation38_spill] sm:$0xff] %v7814_v57  ;;  %6356 = vmatmul.msk.bf16.vlgmr.msra.gmra.mxu0 %vm329_vm2, %v7501_v46  ;;  %6357 = vmatmul.msk.bf16.vlgmr.msra.gmra.mxu1 %vm329_vm2, %v7501_v46  ;;  %v9634_v33 = vld [vmem:[#allocation60_spill] sm:$0xff]  ;;  %v9637_v31 = vld [vmem:[#allocation27_spill] sm:$0xff] }
 0x23c   : > { %9621 = vst [vmem:[#allocation8_spill] sm:$0xff] %v7818_v20  ;;  %6358 = vmatmul.msk.bf16.vlgmr.msra.gmra.mxu2 %vm329_vm2, %v7501_v46  ;;  %6359 = vmatmul.msk.bf16.vlgmr.msra.gmra.mxu3 %vm329_vm2, %v7501_v46  ;;  %v9629_v20 = vld [vmem:[#allocation59_spill] sm:$0xff]  ;;  %v1182_v55 = vadd.f32 %v9634_v33, %v9633_v49 }
 0x23d   : > { %2942 = vmatpush.bf16.msra.mxu0 %v2811_v18  ;;  %2956 = vmatpush.bf16.msra.mxu1 %v2814_v3  ;;  %v1168_v46 = vadd.f32 %v9629_v20, %v9628_v13  ;;  %v6362_v20 = vld [vmem:[#allocation2 + $0x20] sm:$0xf] }
 0x23e   : > { %2970 = vmatpush.bf16.msra.mxu2 %v2817_v63  ;;  %2984 = vmatpush.bf16.msra.mxu3 %v2820_v26 }
 0x23f   : > { %v1806_v57 = vpop.f32.mrf.mxu2  ;;  %v1820_v36 = vpop.f32.mrf.mxu3 }
 0x240   : > { %v7843_v18 = vadd.f32 %v1806_v57, %v1180_v0  ;;  %v7845_v3 = vadd.f32 %v1820_v36, %v1194_v27  ;;  %v1780_v10 = vpop.f32.mrf.mxu0  ;;  %v1794_v23 = vpop.f32.mrf.mxu1  ;;  %v3361_v53 = vld.sshfl [vmem:[#allocation1 + $0x28] sm:$0xff pattern:$0x73625140]  ;;  %v9635_v57 = vld [vmem:[#allocation26_spill] sm:$0xff]  ;;  %v9636_v0 = vld [vmem:[#allocation29_spill] sm:$0xff] }
 0x241   : > { %v7848_v63 = vadd.f32 %v1780_v10, %v1154_v24  ;;  %v7850_v26 = vadd.f32 %v1794_v23, %v1168_v46  ;;  %v1208_v36 = vadd.f32 %v7509_v22, %v9635_v57  ;;  %v1196_v27 = vadd.f32 %v7532_v51, %v9636_v0  ;;  %v9638_v24 = vld [vmem:[#allocation61_spill] sm:$0xff]  ;;  %3421 = vrot.lane.b32.xlu1 %v3361_v53, %s6714_s26 }
 0x242   : > { %9630 = vst [vmem:[#allocation39_spill] sm:$0xff] %v7843_v18  ;;  %v1222_v10 = vadd.f32 %v9638_v24, %v9637_v31  ;;  %v2778_v18 = vsel %vm2768_vm5, %v2733_v59, %v2735_v9  ;;  %v2779_v57 = vsel %vm2768_vm5, %v2735_v9, %v2737_v41  ;;  %v9643_v31 = vld [vmem:[#allocation33_spill] sm:$0xff] }
 0x243   : > { %9631 = vst [vmem:[#allocation9_spill] sm:$0xff] %v7845_v3  ;;  %v2777_v3 = vsel %vm2768_vm5, %v7795_v35, %v2733_v59  ;;  %v2826_v59 = vsel %vm333_vm1, %v2778_v18, 0  ;;  %v2829_v53 = vsel %vm333_vm1, %v2779_v57, 0  ;;  %v3363_v18 = vld.sshfl [vmem:[#allocation1 + $0x30] sm:$0xff pattern:$0x73625140]  ;;  %v1250_v24 = vadd.f32 %v7543_v30, %v9643_v31 }
 0x244   : > { %9632 = vst [vmem:[#allocation43_spill] sm:$0xff] %v7850_v26  ;;  %v7860_v26 = vor.u32 %v6521_v38, %v6362_v20  ;;  %v2823_v35 = vsel %vm333_vm1, %v2777_v3, 0 }
 0x246   : > { %v2739_v13 = vpop.permute.xlu0 %2738 }
 0x247   : > { %v1808_v46 = vpop.f32.mrf.mxu2  ;;  %v1822_v23 = vpop.f32.mrf.mxu3  ;;  %v2780_v0 = vsel %vm2768_vm5, %v2737_v41, %v2739_v13  ;;  %v9641_v41 = vld [vmem:[#allocation32_spill] sm:$0xff] }
 0x248   : > { %v7866_v22 = vadd.f32 %v1808_v46, %v1182_v55  ;;  %v7868_v49 = vadd.f32 %v1822_v23, %v1196_v27  ;;  %v1834_v51 = vpop.f32.mrf.mxu0  ;;  %v1848_v33 = vpop.f32.mrf.mxu1  ;;  %v2832_v9 = vsel %vm333_vm1, %v2780_v0, 0  ;;  %v7885_v55 = vld [vmem:[%s6750_s21 + $0x20] sm:$0xff] }
 0x249   : > { %v7872_v20 = vadd.f32 %v1834_v51, %v1208_v36  ;;  %v7874_v38 = vadd.f32 %v1848_v33, %v1222_v10  ;;  %v2743_v3 = vpop.permute.xlu1 %2742  ;;  %3368 = vst [vmem:[#allocation1] ss:$4 sm:$0xff] %v7885_v55  ;;  %v9642_v36 = vld [vmem:[#allocation62_spill] sm:$0xff]  ;;  %v9645_v46 = vld [vmem:[#allocation63_spill] sm:$0xff]  ;;  %v9647_v33 = vld [vmem:[#allocation64_spill] sm:$0xff]  ;;  %3423 = vrot.lane.b32.xlu1 %v3363_v18, %s6714_s26 }
 0x24a   : > { %9639 = vst [vmem:[#allocation6_spill] sm:$0xff] %v7868_v49  ;;  %v1236_v27 = vadd.f32 %v9642_v36, %v9641_v41  ;;  %v9644_v10 = vld [vmem:[#allocation30_spill] sm:$0xff]  ;;  %v9646_v51 = vld [vmem:[#allocation31_spill] sm:$0xff]  ;;  %v9651_v18 = vld [vmem:[#allocation65_spill] sm:$0xff] }
 0x24b   : > { %9640 = vst [vmem:[#allocation40_spill] sm:$0xff] %v7874_v38  ;;  %6364 = vmatmul.msk.bf16.vlgmr.msrb.gmra.mxu0 %vm329_vm2, %v7860_v26  ;;  %6365 = vmatmul.msk.bf16.vlgmr.msrb.gmra.mxu1 %vm329_vm2, %v7860_v26  ;;  %v1210_v23 = vadd.f32 %v9645_v46, %v9644_v10  ;;  %v1224_v57 = vadd.f32 %v9647_v33, %v9646_v51  ;;  %v9650_v46 = vld [vmem:[#allocation35_spill] sm:$0xff]  ;;  %v9652_v51 = vld [vmem:[#allocation36_spill] sm:$0xff]  ;;  %v9653_v33 = vld [vmem:[#allocation34_spill] sm:$0xff] }
 0x24c   : > { %6366 = vmatmul.msk.bf16.vlgmr.msrb.gmra.mxu2 %vm329_vm2, %v7860_v26  ;;  %6367 = vmatmul.msk.bf16.vlgmr.msrb.gmra.mxu3 %vm329_vm2, %v7860_v26 }
 0x24d   : > { %2998 = vmatpush.bf16.msrb.mxu0 %v2823_v35  ;;  %3012 = vmatpush.bf16.msrb.mxu1 %v2826_v59 }
 0x24e   : > { %3026 = vmatpush.bf16.msrb.mxu2 %v2829_v53  ;;  %3040 = vmatpush.bf16.msrb.mxu3 %v2832_v9  ;;  %v2745_v53 = vpop.permute.xlu2 %2744  ;;  %v3359_v9 = vld.sshfl [vmem:[#allocation1 + $0x20] sm:$0xff pattern:$0x73625140] }
 0x24f   : > { %v1862_v0 = vpop.f32.mrf.mxu2  ;;  %v1876_v38 = vpop.f32.mrf.mxu3  ;;  %3419 = vrot.lane.b32.xlu2 %v3359_v9, %s6714_s26 }
 0x250   : > { %v7901_v35 = vadd.f32 %v1862_v0, %v1236_v27  ;;  %v7903_v59 = vadd.f32 %v1876_v38, %v1250_v24  ;;  %v1836_v41 = vpop.f32.mrf.mxu0  ;;  %v1850_v36 = vpop.f32.mrf.mxu1  ;;  %v3371_v31 = vld.sshfl [vmem:[#allocation1] sm:$0xff pattern:$0x73625140]  ;;  %v1238_v27 = vadd.f32 %v9651_v18, %v9650_v46  ;;  %v1252_v38 = vadd.f32 %v7571_v4, %v9652_v51 }
 0x251   : > { %v7905_v49 = vadd.f32 %v1836_v41, %v1210_v23  ;;  %v7907_v30 = vadd.f32 %v1850_v36, %v1224_v57  ;;  %v2741_v10 = vpop.permute.xlu0 %2740  ;;  %3427 = vrot.lane.b32.xlu0 %v3371_v31, %s6714_s26  ;;  %v9654_v23 = vld [vmem:[#allocation66_spill] sm:$0xff]  ;;  %v2783_v18 = vsel %vm2768_vm5, %v2743_v3, %v2745_v53 }
 0x252   : > { %9648 = vst [vmem:[#allocation7_spill] sm:$0xff] %v7903_v59  ;;  %v2747_v24 = vpop.permute.xlu1 %2746  ;;  %v1264_v0 = vadd.f32 %v9654_v23, %v9653_v33  ;;  %v2781_v36 = vsel %vm2768_vm5, %v2739_v13, %v2741_v10  ;;  %v2782_v9 = vsel %vm2768_vm5, %v2741_v10, %v2743_v3  ;;  %v9655_v23 = vld [vmem:[#allocation37_spill] sm:$0xff] }
 0x253   : > { %9649 = vst [vmem:[#allocation41_spill] sm:$0xff] %v7907_v30  ;;  %v2784_v4 = vsel %vm2768_vm5, %v2745_v53, %v2747_v24  ;;  %v2835_v13 = vsel %vm333_vm1, %v2781_v36, 0  ;;  %v2838_v10 = vsel %vm333_vm1, %v2782_v9, 0 }
 0x254   : > { %v2844_v3 = vsel %vm333_vm1, %v2784_v4, 0 }
 0x256   : > { %v2751_v53 = vpop.permute.xlu2 %2750 }
 0x257   : > { %v1864_v57 = vpop.f32.mrf.mxu2  ;;  %v1878_v41 = vpop.f32.mrf.mxu3 }
 0x258   : > { %v7919_v30 = vadd.f32 %v1864_v57, %v1238_v27  ;;  %v7921_v31 = vadd.f32 %v1878_v41, %v1252_v38  ;;  %v1890_v59 = vpop.f32.mrf.mxu0  ;;  %v2207_v46 = vpop.f32.mrf.mxu1  ;;  %v2841_v27 = vsel %vm333_vm1, %v2783_v18, 0  ;;  %v7939_v38 = vld [vmem:[%s6750_s21 + $0x28] sm:$0xff] }
 0x259   : > { %v7925_v51 = vadd.f32 %v1890_v59, %v1264_v0  ;;  %v7928_v33 = vadd.f32 %v2207_v46, %v7567_v7  ;;  %v3365_v59 = vld.sshfl [vmem:[#allocation1 + $0x38] sm:$0xff pattern:$0x73625140]  ;;  %v1266_v0 = vadd.f32 %v7573_v5, %v9655_v23  ;;  %v2753_v5 = vpop.permute.xlu0 %2752 }
 0x25a   : > { %v3377_v7 = vld.sshfl [vmem:[#allocation1 + $0x18] sm:$0xff pattern:$0x73625140]  ;;  %3370 = vst [vmem:[#allocation1 + $0x20] ss:$4 sm:$0xff] %v7939_v38  ;;  %3425 = vrot.lane.b32.xlu2 %v3365_v59, %s6714_s26 }
 0x25b   : > { %6368 = vmatmul.msk.bf16.vlgmr.msra.gmra.mxu0 %vm329_vm2, %v7860_v26  ;;  %6369 = vmatmul.msk.bf16.vlgmr.msra.gmra.mxu1 %vm329_vm2, %v7860_v26  ;;  %v3373_v59 = vld.sshfl [vmem:[#allocation1 + $0x8] sm:$0xff pattern:$0x73625140] }
 0x25c   : > { %6370 = vmatmul.msk.bf16.vlgmr.msra.gmra.mxu2 %vm329_vm2, %v7860_v26  ;;  %6371 = vmatmul.msk.bf16.vlgmr.msra.gmra.mxu3 %vm329_vm2, %v7860_v26 }
 0x25d   : > { %3054 = vmatpush.bf16.msra.mxu0 %v2835_v13  ;;  %3068 = vmatpush.bf16.msra.mxu1 %v2838_v10 }
 0x25e   : > { %3082 = vmatpush.bf16.msra.mxu2 %v2841_v27  ;;  %3096 = vmatpush.bf16.msra.mxu3 %v2844_v3  ;;  %v2749_v27 = vpop.permute.xlu1 %2748 }
 0x25f   : > { %v2221_v57 = vpop.f32.mrf.mxu2  ;;  %v2235_v41 = vpop.f32.mrf.mxu3  ;;  %3433 = vrot.lane.b32.xlu0 %v3377_v7, %s6714_s26 }
 0x260   : > { %v7951_v36 = vadd.f32 %v2221_v57, %v7569_v28  ;;  %v7954_v9 = vadd.f32 %v2235_v41, %v7596_v32  ;;  %v1892_v46 = vpop.f32.mrf.mxu0  ;;  %v2209_v18 = vpop.f32.mrf.mxu1  ;;  %v2785_v32 = vsel %vm2768_vm5, %v2747_v24, %v2749_v27  ;;  %v2786_v57 = vsel %vm2768_vm5, %v2749_v27, %v2751_v53 }
 0x261   : > { %v7956_v4 = vadd.f32 %v1892_v46, %v1266_v0  ;;  %v7959_v13 = vadd.f32 %v2209_v18, %v7590_v50  ;;  %v3379_v10 = vld.sshfl [vmem:[#allocation1 + $0x20] sm:$0xff pattern:$0x73625140]  ;;  %v3381_v3 = vld.sshfl [vmem:[#allocation1 + $0x28] sm:$0xff pattern:$0x73625140]  ;;  %v2755_v7 = vpop.permute.xlu2 %2754  ;;  %v2787_v0 = vsel %vm2768_vm5, %v2751_v53, %v2753_v5 }
 0x262   : > { %3435 = vrot.lane.b32.xlu1 %v3379_v10, %s6714_s26  ;;  %3429 = vrot.lane.b32.xlu2 %v3373_v59, %s6714_s26  ;;  %v2788_v10 = vsel %vm2768_vm5, %v2753_v5, %v2755_v7  ;;  %v2847_v53 = vsel %vm333_vm1, %v2785_v32, 0  ;;  %v3385_v59 = vld.sshfl [vmem:[#allocation1 + $0x38] sm:$0xff pattern:$0x73625140] }
 0x263   : > { %v3375_v5 = vld.sshfl [vmem:[#allocation1 + $0x10] sm:$0xff pattern:$0x73625140] }
 0x267   : > { %v2223_v28 = vpop.f32.mrf.mxu2  ;;  %v2237_v23 = vpop.f32.mrf.mxu3  ;;  %3437 = vrot.lane.b32.xlu0 %v3381_v3, %s6714_s26  ;;  %v2850_v3 = vsel %vm333_vm1, %v2786_v57, 0 }
 0x268   : > { %v7968_v50 = vadd.f32 %v2223_v28, %v7592_v44  ;;  %v7971_v41 = vadd.f32 %v2237_v23, %v7628_v47  ;;  %v2249_v46 = vpop.f32.mrf.mxu0  ;;  %v2263_v18 = vpop.f32.mrf.mxu1  ;;  %v2853_v44 = vsel %vm333_vm1, %v2787_v0, 0  ;;  %v2856_v47 = vsel %vm333_vm1, %v2788_v10, 0  ;;  %v3383_v28 = vld.sshfl [vmem:[#allocation1 + $0x30] sm:$0xff pattern:$0x73625140] }
 0x269   : > { %v7975_v24 = vadd.f32 %v2249_v46, %v7598_v45  ;;  %v7978_v27 = vadd.f32 %v2263_v18, %v7624_v43  ;;  %v3317_v45 = vld [vmem:[%s6750_s21 + $0x30] sm:$0x3f]  ;;  %v2759_v43 = vpop.permute.xlu0 %2758 }
 0x26a   : > { %3388 = vst [vmem:[#allocation1] ss:$4 sm:$0xff] %v3317_v45  ;;  %3441 = vrot.lane.b32.xlu1 %v3385_v59, %s6714_s26  ;;  %3431 = vrot.lane.b32.xlu2 %v3375_v5, %s6714_s26 }
 0x26b   : > { %6372 = vmatmul.msk.bf16.vlgmr.msrb.gmra.mxu0 %vm329_vm2, %v7860_v26  ;;  %6373 = vmatmul.msk.bf16.vlgmr.msrb.gmra.mxu1 %vm329_vm2, %v7860_v26 }
 0x26c   : > { %6374 = vmatmul.msk.bf16.vlgmr.msrb.gmra.mxu2 %vm329_vm2, %v7860_v26  ;;  %6375 = vmatmul.msk.bf16.vlgmr.msrb.gmra.mxu3 %vm329_vm2, %v7860_v26 }
 0x26d   : > { %3110 = vmatpush.bf16.msrb.mxu0 %v2847_v53  ;;  %3124 = vmatpush.bf16.msrb.mxu1 %v2850_v3  ;;  %v2761_v3 = vpop.permute.xlu1 %2760 }
 0x26e   : > { %3138 = vmatpush.bf16.msrb.mxu2 %v2853_v44  ;;  %3152 = vmatpush.bf16.msrb.mxu3 %v2856_v47  ;;  %v2757_v44 = vpop.permute.xlu2 %2756 }
 0x26f   : > { %v2277_v23 = vpop.f32.mrf.mxu2  ;;  %v2291_v32 = vpop.f32.mrf.mxu3  ;;  %3439 = vrot.lane.b32.xlu0 %v3383_v28, %s6714_s26  ;;  %v2789_v28 = vsel %vm2768_vm5, %v2755_v7, %v2757_v44 }
 0x270   : > { %v7996_v57 = vadd.f32 %v2277_v23, %v7626_v60  ;;  %v7999_v0 = vadd.f32 %v2291_v32, %v7654_v62  ;;  %v2251_v46 = vpop.f32.mrf.mxu0  ;;  %v2265_v18 = vpop.f32.mrf.mxu1  ;;  %v2790_v62 = vsel %vm2768_vm5, %v2757_v44, %v2759_v43  ;;  %v2791_v32 = vsel %vm2768_vm5, %v2759_v43, %v2761_v3 }
 0x271   : > { %v8003_v10 = vadd.f32 %v2251_v46, %v7630_v2  ;;  %v8006_v53 = vadd.f32 %v2265_v18, %v7647_v56  ;;  %v3391_v59 = vld.sshfl [vmem:[#allocation1 + $0x8] sm:$0xff pattern:$0x73625140]  ;;  %v3393_v44 = vld.sshfl [vmem:[#allocation1 + $0x10] sm:$0xff pattern:$0x73625140] }
 0x272   : > { %3445 = vrot.lane.b32.xlu1 %v3391_v59, %s6714_s26  ;;  %v2862_v59 = vsel %vm333_vm1, %v2790_v62, 0 }
 0x274   : > { %v2763_v47 = vpop.permute.xlu0 %2762 }
 0x275   : > { %v2792_v46 = vsel %vm2768_vm5, %v2761_v3, %v2763_v47  ;;  %v8034_v3 = vld [vmem:[%s6750_s21] sm:$0xff] }
 0x276   : > { %v2868_v43 = vsel %vm333_vm1, %v2792_v46, 0 }
 0x277   : > { %v2279_v45 = vpop.f32.mrf.mxu2  ;;  %v2293_v60 = vpop.f32.mrf.mxu3 }
 0x278   : > { %v8012_v5 = vadd.f32 %v2279_v45, %v7649_v16  ;;  %v8015_v2 = vadd.f32 %v2293_v60, %v7684_v39  ;;  %v2305_v56 = vpop.f32.mrf.mxu0  ;;  %v2319_v23 = vpop.f32.mrf.mxu1  ;;  %v2859_v16 = vsel %vm333_vm1, %v2789_v28, 0  ;;  %v2865_v39 = vsel %vm333_vm1, %v2791_v32, 0 }
 0x279   : > { %v8020_v18 = vadd.f32 %v2305_v56, %v7656_v48  ;;  %v8023_v7 = vadd.f32 %v2319_v23, %v7680_v54  ;;  %v3389_v48 = vld.sshfl [vmem:[#allocation1] sm:$0xff pattern:$0x73625140]  ;;  %v2767_v54 = vpop.permute.xlu1 %2766 }
 0x27a   : > { %4008 = vst [vmem:[#allocation1] ss:$4 sm:$0xff] %v8034_v3  ;;  %3447 = vrot.lane.b32.xlu1 %v3393_v44, %s6714_s26  ;;  %3443 = vrot.lane.b32.xlu2 %v3389_v48, %s6714_s26 }
 0x27b   : > { %6376 = vmatmul.msk.bf16.vlgmr.msra.gmra.mxu0 %vm329_vm2, %v7860_v26  ;;  %6377 = vmatmul.msk.bf16.vlgmr.msra.gmra.mxu1 %vm329_vm2, %v7860_v26 }
 0x27c   : > { %6378 = vmatmul.msk.bf16.vlgmr.msra.gmra.mxu2 %vm329_vm2, %v7860_v26  ;;  %6379 = vmatmul.msk.bf16.vlgmr.msra.gmra.mxu3 %vm329_vm2, %v7860_v26 }
 0x27d   : > { %3166 = vmatpush.bf16.msra.mxu0 %v2859_v16  ;;  %3180 = vmatpush.bf16.msra.mxu1 %v2862_v59  ;;  %v2765_v16 = vpop.permute.xlu2 %2764  ;;  %v8056_v59 = vld [vmem:[%s6750_s21 + $0x8] sm:$0xff] }
 0x27e   : > { %3194 = vmatpush.bf16.msra.mxu2 %v2865_v39  ;;  %3208 = vmatpush.bf16.msra.mxu3 %v2868_v43  ;;  %4011 = vst [vmem:[#allocation1 + $0x20] ss:$4 sm:$0xff] %v8056_v59 }
 0x27f   : > { %v2333_v45 = vpop.f32.mrf.mxu2  ;;  %v2347_v60 = vpop.f32.mrf.mxu3 }
 0x280   : > { %v8044_v28 = vadd.f32 %v2333_v45, %v7682_v34  ;;  %v8047_v62 = vadd.f32 %v2347_v60, %v7708_v8  ;;  %v2307_v56 = vpop.f32.mrf.mxu0  ;;  %v2321_v23 = vpop.f32.mrf.mxu1 }
 0x281   : > { %v8050_v32 = vadd.f32 %v2307_v56, %v7686_v52  ;;  %v8053_v46 = vadd.f32 %v2321_v23, %v7702_v15  ;;  %v4014_v44 = vld.sshfl [vmem:[#allocation1 + $0x8] sm:$0xff pattern:$0x73625140]  ;;  %v3398_v34 = vpop.permute.xlu1 %3397  ;;  %v3396_v8 = vpop.permute.xlu0 %3395  ;;  %v2793_v52 = vsel %vm2768_vm5, %v2763_v47, %v2765_v16  ;;  %v2794_v56 = vsel %vm2768_vm5, %v2765_v16, %v2767_v54 }
 0x282   : > { %4080 = vrot.lane.b32.xlu0 %v4014_v44, %s6715_s27  ;;  %v2877_v47 = vsel %vm333_vm1, %v2767_v54, 0 }
 0x283   : > { %9656 = vst [vmem:[#allocation12_spill] sm:$0xff] %v8053_v46  ;;  %v3450_v46 = vsel %vm3449_vm6, %v3396_v8, %v3398_v34  ;;  %v4012_v8 = vld.sshfl [vmem:[#allocation1] sm:$0xff pattern:$0x73625140] }
 0x284   : > { %4078 = vrot.lane.b32.xlu2 %v4012_v8, %s6715_s27 }
 0x285   : > { %v4020_v16 = vld.sshfl [vmem:[#allocation1 + $0x20] sm:$0xff pattern:$0x73625140]  ;;  %v4022_v54 = vld.sshfl [vmem:[#allocation1 + $0x28] sm:$0xff pattern:$0x73625140] }
 0x286   : > { %4088 = vrot.lane.b32.xlu1 %v4022_v54, %s6715_s27 }
 0x287   : > { %v2335_v39 = vpop.f32.mrf.mxu2  ;;  %v2349_v43 = vpop.f32.mrf.mxu3 }
 0x288   : > { %v8062_v48 = vadd.f32 %v2335_v39, %v7704_v17  ;;  %v8065_v15 = vadd.f32 %v2349_v43, %v7739_v40  ;;  %v2361_v45 = vpop.f32.mrf.mxu0  ;;  %v2375_v60 = vpop.f32.mrf.mxu1  ;;  %v2871_v17 = vsel %vm333_vm1, %v2793_v52, 0  ;;  %v2874_v40 = vsel %vm333_vm1, %v2794_v56, 0 }
 0x289   : > { %v8069_v23 = vadd.f32 %v2361_v45, %v7710_v19  ;;  %v8072_v44 = vadd.f32 %v2375_v60, %v7735_v12  ;;  %v3402_v19 = vpop.permute.xlu2 %3401  ;;  %v3480_v12 = vsel %vm333_vm1, %v3450_v46, 0 }
 0x28a   : > { %4086 = vrot.lane.b32.xlu0 %v4020_v16, %s6715_s27  ;;  %v3404_v16 = vpop.permute.xlu0 %3403 }
 0x28b   : > { %6380 = vmatmul.msk.bf16.vlgmr.msrb.gmra.mxu0 %vm329_vm2, %v7860_v26  ;;  %6381 = vmatmul.msk.bf16.vlgmr.msrb.gmra.mxu1 %vm329_vm2, %v7860_v26 }
 0x28c   : > { %6382 = vmatmul.msk.bf16.vlgmr.msrb.gmra.mxu2 %vm329_vm2, %v7860_v26  ;;  %6383 = vmatmul.msk.bf16.vlgmr.msrb.gmra.mxu3 %vm329_vm2, %v7860_v26 }
 0x28d   : > { %3222 = vmatpush.bf16.msrb.mxu0 %v2871_v17  ;;  %3250 = vmatpush.bf16.msrb.mxu2 %v2877_v47  ;;  %v4016_v17 = vld.sshfl [vmem:[#allocation1 + $0x10] sm:$0xff pattern:$0x73625140] }
 0x28e   : > { %3236 = vmatpush.bf16.msrb.mxu1 %v2874_v40  ;;  %3567 = vmatpush.bf16.msrb.mxu3 %v3480_v12  ;;  %v8103_v40 = vld [vmem:[%s6750_s21 + $0x10] sm:$0xff]  ;;  %v4018_v12 = vld.sshfl [vmem:[#allocation1 + $0x18] sm:$0xff pattern:$0x73625140] }
 0x28f   : > { %v2389_v39 = vpop.f32.mrf.mxu2  ;;  %v2403_v43 = vpop.f32.mrf.mxu3  ;;  %4029 = vst [vmem:[#allocation1] ss:$4 sm:$0xff] %v8103_v40  ;;  %4082 = vrot.lane.b32.xlu2 %v4016_v17, %s6715_s27 }
 0x290   : > { %v8090_v52 = vadd.f32 %v2389_v39, %v7737_v1  ;;  %v8093_v45 = vadd.f32 %v2403_v43, %v7757_v58  ;;  %v2363_v46 = vpop.f32.mrf.mxu0  ;;  %v2377_v60 = vpop.f32.mrf.mxu1  ;;  %v4024_v1 = vld.sshfl [vmem:[#allocation1 + $0x30] sm:$0xff pattern:$0x73625140] }
 0x291   : > { %v8097_v56 = vadd.f32 %v2363_v46, %v7741_v25  ;;  %v8100_v47 = vadd.f32 %v2377_v60, %v7753_v6  ;;  %v3400_v58 = vpop.permute.xlu1 %3399  ;;  %v3406_v54 = vpop.permute.xlu2 %3405 }
 0x292   : > { %9657 = vst [vmem:[#allocation42_spill] sm:$0xff] %v8090_v52  ;;  %4090 = vrot.lane.b32.xlu0 %v4024_v1, %s6715_s27  ;;  %v3451_v25 = vsel %vm3449_vm6, %v3398_v34, %v3400_v58  ;;  %v3452_v43 = vsel %vm3449_vm6, %v3400_v58, %v3402_v19  ;;  %v3454_v52 = vsel %vm3449_vm6, %v3404_v16, %v3406_v54 }
 0x293   : > { %9658 = vst [vmem:[#allocation13_spill] sm:$0xff] %v8093_v45  ;;  %v3453_v45 = vsel %vm3449_vm6, %v3402_v19, %v3404_v16  ;;  %v3486_v58 = vsel %vm333_vm1, %v3452_v43, 0  ;;  %v3492_v19 = vsel %vm333_vm1, %v3454_v52, 0  ;;  %v9662_v43 = vld [vmem:[#allocation5_spill] sm:$0xff] }
 0x294   : > { %9659 = vst [vmem:[#allocation47_spill] sm:$0xff] %v8100_v47 }
 0x297   : > { %v2391_v39 = vpop.f32.mrf.mxu2  ;;  %v2405_v8 = vpop.f32.mrf.mxu3  ;;  %4084 = vrot.lane.b32.xlu2 %v4018_v12, %s6715_s27  ;;  %v9664_v12 = vld [vmem:[#allocation38_spill] sm:$0xff] }
 0x298   : > { %v8110_v6 = vadd.f32 %v2391_v39, %v7755_v61  ;;  %v8113_v46 = vadd.f32 %v2405_v8, %v7790_v42  ;;  %v2417_v60 = vpop.f32.mrf.mxu0  ;;  %v2431_v47 = vpop.f32.mrf.mxu1  ;;  %v3483_v61 = vsel %vm333_vm1, %v3451_v25, 0  ;;  %v3489_v42 = vsel %vm333_vm1, %v3453_v45, 0 }
 0x299   : > { %v8119_v1 = vadd.f32 %v2417_v60, %v7759_v37  ;;  %v8122_v34 = vadd.f32 %v2431_v47, %v7786_v11  ;;  %v4032_v37 = vld.sshfl [vmem:[#allocation1] sm:$0xff pattern:$0x73625140]  ;;  %v3410_v11 = vpop.permute.xlu0 %3409  ;;  %v4026_v47 = vld.sshfl [vmem:[#allocation1 + $0x38] sm:$0xff pattern:$0x73625140] }
 0x29a   : > { %4094 = vrot.lane.b32.xlu1 %v4032_v37, %s6715_s27  ;;  %4092 = vrot.lane.b32.xlu0 %v4026_v47, %s6715_s27 }
 0x29b   : > { %6384 = vmatmul.msk.bf16.vlgmr.msra.gmra.mxu0 %vm329_vm2, %v7860_v26  ;;  %6385 = vmatmul.msk.bf16.vlgmr.msra.gmra.mxu1 %vm329_vm2, %v7860_v26 }
 0x29c   : > { %6386 = vmatmul.msk.bf16.vlgmr.msra.gmra.mxu2 %vm329_vm2, %v7860_v26  ;;  %6387 = vmatmul.msk.bf16.vlgmr.msra.gmra.mxu3 %vm329_vm2, %v7860_v26 }
 0x29d   : > { %3581 = vmatpush.bf16.msra.mxu0 %v3483_v61  ;;  %3595 = vmatpush.bf16.msra.mxu1 %v3486_v58  ;;  %v3408_v61 = vpop.permute.xlu2 %3407  ;;  %v4036_v58 = vld.sshfl [vmem:[#allocation1 + $0x10] sm:$0xff pattern:$0x73625140] }
 0x29e   : > { %3609 = vmatpush.bf16.msra.mxu2 %v3489_v42  ;;  %3623 = vmatpush.bf16.msra.mxu3 %v3492_v19  ;;  %v6393_v42 = vld [vmem:[#allocation2 + $0x28] sm:$0xf]  ;;  %v6522_v19 = vld [vmem:[#allocation2 + $0x28] sm:$0x30] }
 0x29f   : > { %v2445_v17 = vpop.f32.mrf.mxu2  ;;  %v2459_v16 = vpop.f32.mrf.mxu3 }
 0x2a0   : > { %v8139_v52 = vadd.f32 %v2445_v17, %v7788_v14  ;;  %v8142_v45 = vadd.f32 %v2459_v16, %v7816_v29  ;;  %v2419_v39 = vpop.f32.mrf.mxu0  ;;  %v2433_v8 = vpop.f32.mrf.mxu1  ;;  %v3455_v29 = vsel %vm3449_vm6, %v3406_v54, %v3408_v61  ;;  %v3456_v17 = vsel %vm3449_vm6, %v3408_v61, %v3410_v11 }
 0x2a1   : > { %v8146_v25 = vadd.f32 %v2419_v39, %v7792_v21  ;;  %v8149_v60 = vadd.f32 %v2433_v8, %v9662_v43  ;;  %v3414_v37 = vpop.permute.xlu0 %3413  ;;  %v8160_v43 = vor.u32 %v6522_v19, %v6393_v42  ;;  %v3412_v61 = vpop.permute.xlu1 %3411  ;;  %v8179_v42 = vld [vmem:[%s6750_s21 + $0x18] sm:$0xff] }
 0x2a2   : > { %9660 = vst [vmem:[#allocation10_spill] sm:$0xff] %v8139_v52  ;;  %4098 = vrot.lane.b32.xlu1 %v4036_v58, %s6715_s27  ;;  %v9666_v52 = vld [vmem:[#allocation39_spill] sm:$0xff]  ;;  %v3495_v58 = vsel %vm333_vm1, %v3455_v29, 0  ;;  %v9667_v29 = vld [vmem:[#allocation9_spill] sm:$0xff] }
 0x2a3   : > { %9661 = vst [vmem:[#allocation44_spill] sm:$0xff] %v8142_v45 }
 0x2a4   : > { %9663 = vst [vmem:[#allocation11_spill] sm:$0xff] %v8149_v60  ;;  %v9665_v60 = vld [vmem:[#allocation8_spill] sm:$0xff] }
 0x2a5   : > { %4031 = vst [vmem:[#allocation1 + $0x20] ss:$4 sm:$0xff] %v8179_v42 }
 0x2a7   : > { %v2447_v14 = vpop.f32.mrf.mxu2  ;;  %v2461_v47 = vpop.f32.mrf.mxu3 }
 0x2a8   : > { %v8155_v16 = vadd.f32 %v2447_v14, %v9664_v12  ;;  %v8158_v21 = vadd.f32 %v2461_v47, %v7848_v63  ;;  %v2473_v39 = vpop.f32.mrf.mxu0  ;;  %v2487_v8 = vpop.f32.mrf.mxu1  ;;  %v3498_v14 = vsel %vm333_vm1, %v3456_v17, 0  ;;  %v3457_v12 = vsel %vm3449_vm6, %v3410_v11, %v3412_v61  ;;  %v4038_v11 = vld.sshfl [vmem:[#allocation1 + $0x18] sm:$0xff pattern:$0x73625140] }
 0x2a9   : > { %v8163_v45 = vadd.f32 %v2473_v39, %v9665_v60  ;;  %v8166_v54 = vadd.f32 %v2487_v8, %v9666_v52  ;;  %v3458_v63 = vsel %vm3449_vm6, %v3412_v61, %v3414_v37  ;;  %v3501_v60 = vsel %vm333_vm1, %v3457_v12, 0  ;;  %v9670_v61 = vld [vmem:[#allocation43_spill] sm:$0xff] }
 0x2aa   : > { %v3504_v52 = vsel %vm333_vm1, %v3458_v63, 0  ;;  %4100 = vrot.lane.b32.xlu1 %v4038_v11, %s6715_s27  ;;  %v3420_v63 = vpop.permute.xlu2 %3419 }
 0x2ab   : > { %6388 = vmatmul.msk.bf16.vlgmr.msrb.gmra.mxu0 %vm329_vm2, %v7860_v26  ;;  %6389 = vmatmul.msk.bf16.vlgmr.msrb.gmra.mxu1 %vm329_vm2, %v7860_v26 }
 0x2ac   : > { %6390 = vmatmul.msk.bf16.vlgmr.msrb.gmra.mxu2 %vm329_vm2, %v7860_v26  ;;  %6395 = vmatmul.msk.bf16.vlgmr.msrb.gmra.mxu3 %vm329_vm2, %v8160_v43  ;;  %v3416_v11 = vpop.permute.xlu0 %3415 }
 0x2ad   : > { %3637 = vmatpush.bf16.msrb.mxu0 %v3495_v58  ;;  %3651 = vmatpush.bf16.msrb.mxu1 %v3498_v14  ;;  %v3418_v14 = vpop.permute.xlu1 %3417 }
 0x2ae   : > { %3665 = vmatpush.bf16.msrb.mxu2 %v3501_v60  ;;  %3679 = vmatpush.bf16.msrb.mxu3 %v3504_v52  ;;  %v4034_v60 = vld.sshfl [vmem:[#allocation1 + $0x8] sm:$0xff pattern:$0x73625140] }
 0x2af   : > { %v2501_v19 = vpop.f32.mrf.mxu2  ;;  %v2515_v47 = vpop.f32.mrf.mxu3  ;;  %4096 = vrot.lane.b32.xlu2 %v4034_v60, %s6715_s27  ;;  %4049 = vst [vmem:[#allocation1] ss:$4 sm:$0xff] %v7885_v55  ;;  %v4042_v52 = vld.sshfl [vmem:[#allocation1 + $0x28] sm:$0xff pattern:$0x73625140]  ;;  %v3461_v55 = vsel %vm3449_vm6, %v3418_v14, %v3420_v63 }
 0x2b0   : > { %v8188_v17 = vadd.f32 %v2501_v19, %v9667_v29  ;;  %v8191_v39 = vadd.f32 %v2515_v47, %v7872_v20  ;;  %v2475_v26 = vpop.f32.mrf.mxu0  ;;  %v2489_v8 = vpop.f32.mrf.mxu1  ;;  %4104 = vrot.lane.b32.xlu0 %v4042_v52, %s6715_s27  ;;  %v3459_v47 = vsel %vm3449_vm6, %v3414_v37, %v3416_v11  ;;  %v3460_v29 = vsel %vm3449_vm6, %v3416_v11, %v3418_v14 }
 0x2b1   : > { %v8194_v12 = vadd.f32 %v2475_v26, %v9670_v61  ;;  %v8197_v58 = vadd.f32 %v2489_v8, %v7866_v22  ;;  %v9672_v26 = vld [vmem:[#allocation6_spill] sm:$0xff]  ;;  %v3507_v37 = vsel %vm333_vm1, %v3459_v47, 0  ;;  %v3510_v11 = vsel %vm333_vm1, %v3460_v29, 0 }
 0x2b2   : > { %9668 = vst [vmem:[#allocation45_spill] sm:$0xff] %v8188_v17 }
 0x2b3   : > { %9669 = vst [vmem:[#allocation49_spill] sm:$0xff] %v8191_v39 }
 0x2b4   : > { %9671 = vst [vmem:[#allocation16_spill] sm:$0xff] %v8197_v58  ;;  %v9673_v58 = vld [vmem:[#allocation40_spill] sm:$0xff]  ;;  %v3426_v14 = vpop.permute.xlu2 %3425 }
 0x2b5   : > { %v3422_v17 = vpop.permute.xlu1 %3421 }
 0x2b7   : > { %v2503_v20 = vpop.f32.mrf.mxu2  ;;  %v2517_v19 = vpop.f32.mrf.mxu3 }
 0x2b8   : > { %v8205_v22 = vadd.f32 %v2503_v20, %v9672_v26  ;;  %v8208_v8 = vadd.f32 %v2517_v19, %v7905_v49  ;;  %v2529_v61 = vpop.f32.mrf.mxu0  ;;  %v2543_v60 = vpop.f32.mrf.mxu1  ;;  %v3462_v20 = vsel %vm3449_vm6, %v3420_v63, %v3422_v17  ;;  %v3513_v49 = vsel %vm333_vm1, %v3461_v55, 0  ;;  %v4040_v19 = vld.sshfl [vmem:[#allocation1 + $0x20] sm:$0xff pattern:$0x73625140] }
 0x2b9   : > { %v8212_v39 = vadd.f32 %v2529_v61, %v9673_v58  ;;  %v8215_v52 = vadd.f32 %v2543_v60, %v7901_v35  ;;  %v3516_v58 = vsel %vm333_vm1, %v3462_v20, 0  ;;  %v4052_v35 = vld.sshfl [vmem:[#allocation1] sm:$0xff pattern:$0x73625140]  ;;  %4102 = vrot.lane.b32.xlu2 %v4040_v19, %s6715_s27 }
 0x2ba   : > { %v4054_v63 = vld.sshfl [vmem:[#allocation1 + $0x8] sm:$0xff pattern:$0x73625140]  ;;  %4110 = vrot.lane.b32.xlu0 %v4052_v35, %s6715_s27  ;;  %v9674_v26 = vld [vmem:[#allocation7_spill] sm:$0xff] }
 0x2bb   : > { %6396 = vmatmul.msk.bf16.vlgmr.msra.gmra.mxu0 %vm329_vm2, %v8160_v43  ;;  %6397 = vmatmul.msk.bf16.vlgmr.msra.gmra.mxu1 %vm329_vm2, %v8160_v43  ;;  %v4046_v35 = vld.sshfl [vmem:[#allocation1 + $0x38] sm:$0xff pattern:$0x73625140] }
 0x2bc   : > { %6398 = vmatmul.msk.bf16.vlgmr.msra.gmra.mxu2 %vm329_vm2, %v8160_v43  ;;  %6399 = vmatmul.msk.bf16.vlgmr.msra.gmra.mxu3 %vm329_vm2, %v8160_v43 }
 0x2bd   : > { %3693 = vmatpush.bf16.msra.mxu0 %v3507_v37  ;;  %3707 = vmatpush.bf16.msra.mxu1 %v3510_v11  ;;  %v9677_v37 = vld [vmem:[#allocation41_spill] sm:$0xff]  ;;  %v3424_v19 = vpop.permute.xlu1 %3423 }
 0x2be   : > { %3721 = vmatpush.bf16.msra.mxu2 %v3513_v49  ;;  %3735 = vmatpush.bf16.msra.mxu3 %v3516_v58  ;;  %v4044_v58 = vld.sshfl [vmem:[#allocation1 + $0x30] sm:$0xff pattern:$0x73625140] }
 0x2bf   : > { %v2557_v47 = vpop.f32.mrf.mxu2  ;;  %v2571_v29 = vpop.f32.mrf.mxu3  ;;  %4112 = vrot.lane.b32.xlu1 %v4054_v63, %s6715_s27  ;;  %4051 = vst [vmem:[#allocation1 + $0x20] ss:$4 sm:$0xff] %v7939_v38  ;;  %v3464_v63 = vsel %vm3449_vm6, %v3424_v19, %v3426_v14 }
 0x2c0   : > { %v8233_v61 = vadd.f32 %v2557_v47, %v9674_v26  ;;  %v8236_v60 = vadd.f32 %v2571_v29, %v7925_v51  ;;  %v2531_v55 = vpop.f32.mrf.mxu0  ;;  %v2545_v20 = vpop.f32.mrf.mxu1  ;;  %v4056_v47 = vld.sshfl [vmem:[#allocation1 + $0x10] sm:$0xff pattern:$0x73625140] }
 0x2c1   : > { %v8240_v11 = vadd.f32 %v2531_v55, %v9677_v37  ;;  %v8243_v49 = vadd.f32 %v2545_v20, %v7919_v30  ;;  %v3430_v26 = vpop.permute.xlu2 %3429  ;;  %4106 = vrot.lane.b32.xlu2 %v4044_v58, %s6715_s27 }
 0x2c2   : > { %9675 = vst [vmem:[#allocation46_spill] sm:$0xff] %v8233_v61  ;;  %4114 = vrot.lane.b32.xlu0 %v4056_v47, %s6715_s27 }
 0x2c3   : > { %9676 = vst [vmem:[#allocation17_spill] sm:$0xff] %v8236_v60  ;;  %v3428_v61 = vpop.permute.xlu0 %3427  ;;  %v3463_v60 = vsel %vm3449_vm6, %v3422_v17, %v3424_v19 }
 0x2c4   : > { %9678 = vst [vmem:[#allocation52_spill] sm:$0xff] %v8243_v49  ;;  %v3465_v37 = vsel %vm3449_vm6, %v3426_v14, %v3428_v61  ;;  %v3466_v49 = vsel %vm3449_vm6, %v3428_v61, %v3430_v26  ;;  %v3519_v58 = vsel %vm333_vm1, %v3463_v60, 0 }
 0x2c6   : > { %v4060_v47 = vld.sshfl [vmem:[#allocation1 + $0x20] sm:$0xff pattern:$0x73625140]  ;;  %v4064_v60 = vld.sshfl [vmem:[#allocation1 + $0x30] sm:$0xff pattern:$0x73625140] }
 0x2c7   : > { %v2559_v51 = vpop.f32.mrf.mxu2  ;;  %v2573_v29 = vpop.f32.mrf.mxu3  ;;  %4118 = vrot.lane.b32.xlu1 %v4060_v47, %s6715_s27 }
 0x2c8   : > { %v8251_v30 = vadd.f32 %v2559_v51, %v7921_v31  ;;  %v8254_v55 = vadd.f32 %v2573_v29, %v7956_v4  ;;  %v2888_v38 = vpop.f32.mrf.mxu0  ;;  %v2902_v20 = vpop.f32.mrf.mxu1  ;;  %v3522_v31 = vsel %vm333_vm1, %v3464_v63, 0  ;;  %v3525_v4 = vsel %vm333_vm1, %v3465_v37, 0 }
 0x2c9   : > { %v8259_v17 = vadd.f32 %v2888_v38, %v7928_v33  ;;  %v8262_v19 = vadd.f32 %v2902_v20, %v7951_v36  ;;  %v3528_v33 = vsel %vm333_vm1, %v3466_v49, 0  ;;  %v4058_v36 = vld.sshfl [vmem:[#allocation1 + $0x18] sm:$0xff pattern:$0x73625140]  ;;  %4108 = vrot.lane.b32.xlu2 %v4046_v35, %s6715_s27  ;;  %v3432_v47 = vpop.permute.xlu2 %3431 }
 0x2ca   : > { %4116 = vrot.lane.b32.xlu0 %v4058_v36, %s6715_s27 }
 0x2cb   : > { %6400 = vmatmul.msk.bf16.vlgmr.msrb.gmra.mxu0 %vm329_vm2, %v8160_v43  ;;  %6401 = vmatmul.msk.bf16.vlgmr.msrb.gmra.mxu1 %vm329_vm2, %v8160_v43 }
 0x2cc   : > { %6402 = vmatmul.msk.bf16.vlgmr.msrb.gmra.mxu2 %vm329_vm2, %v8160_v43  ;;  %6403 = vmatmul.msk.bf16.vlgmr.msrb.gmra.mxu3 %vm329_vm2, %v8160_v43 }
 0x2cd   : > { %3749 = vmatpush.bf16.msrb.mxu0 %v3519_v58  ;;  %3763 = vmatpush.bf16.msrb.mxu1 %v3522_v31  ;;  %v3467_v31 = vsel %vm3449_vm6, %v3430_v26, %v3432_v47  ;;  %v4066_v26 = vld.sshfl [vmem:[#allocation1 + $0x38] sm:$0xff pattern:$0x73625140] }
 0x2ce   : > { %3777 = vmatpush.bf16.msrb.mxu2 %v3525_v4  ;;  %3791 = vmatpush.bf16.msrb.mxu3 %v3528_v33 }
 0x2cf   : > { %v2916_v14 = vpop.f32.mrf.mxu2  ;;  %v2930_v61 = vpop.f32.mrf.mxu3  ;;  %4122 = vrot.lane.b32.xlu1 %v4064_v60, %s6715_s27 }
 0x2d0   : > { %v8280_v49 = vadd.f32 %v2916_v14, %v7954_v9  ;;  %v8283_v51 = vadd.f32 %v2930_v61, %v7975_v24  ;;  %v2890_v29 = vpop.f32.mrf.mxu0  ;;  %v2904_v63 = vpop.f32.mrf.mxu1 }
 0x2d1   : > { %v8286_v38 = vadd.f32 %v2890_v29, %v7959_v13  ;;  %v8289_v20 = vadd.f32 %v2904_v63, %v7968_v50  ;;  %v3434_v37 = vpop.permute.xlu0 %3433  ;;  %v8308_v29 = vld [vmem:[%s6750_s21 + $0x30] sm:$0xff] }
 0x2d2   : > { %v3468_v24 = vsel %vm3449_vm6, %v3432_v47, %v3434_v37  ;;  %4069 = vst [vmem:[#allocation1] ss:$4 sm:$0xff] %v8308_v29 }
 0x2d3   : > { %v3534_v63 = vsel %vm333_vm1, %v3468_v24, 0 }
 0x2d4   : > { %v3436_v35 = vpop.permute.xlu1 %3435 }
 0x2d5   : > { %v3469_v36 = vsel %vm3449_vm6, %v3434_v37, %v3436_v35 }
 0x2d7   : > { %v2918_v58 = vpop.f32.mrf.mxu2  ;;  %v2932_v9 = vpop.f32.mrf.mxu3  ;;  %4124 = vrot.lane.b32.xlu1 %v4066_v26, %s6715_s27 }
 0x2d8   : > { %v8295_v4 = vadd.f32 %v2918_v58, %v7971_v41  ;;  %v8298_v13 = vadd.f32 %v2932_v9, %v8003_v10  ;;  %v2944_v50 = vpop.f32.mrf.mxu0  ;;  %v2958_v33 = vpop.f32.mrf.mxu1  ;;  %v3531_v41 = vsel %vm333_vm1, %v3467_v31, 0 }
 0x2d9   : > { %v8302_v14 = vadd.f32 %v2944_v50, %v7978_v27  ;;  %v8305_v61 = vadd.f32 %v2958_v33, %v7996_v57  ;;  %v3438_v60 = vpop.permute.xlu0 %3437  ;;  %v3537_v27 = vsel %vm333_vm1, %v3469_v36, 0  ;;  %v4072_v36 = vld.sshfl [vmem:[#allocation1 + $0x8] sm:$0xff pattern:$0x73625140]  ;;  %v3444_v26 = vpop.permute.xlu2 %3443 }
 0x2da   : > { %v3470_v10 = vsel %vm3449_vm6, %v3436_v35, %v3438_v60  ;;  %4128 = vrot.lane.b32.xlu0 %v4072_v36, %s6715_s27 }
 0x2db   : > { %6404 = vmatmul.msk.bf16.vlgmr.msra.gmra.mxu0 %vm329_vm2, %v8160_v43  ;;  %6405 = vmatmul.msk.bf16.vlgmr.msra.gmra.mxu1 %vm329_vm2, %v8160_v43  ;;  %v3540_v57 = vsel %vm333_vm1, %v3470_v10, 0  ;;  %v4062_v10 = vld.sshfl [vmem:[#allocation1 + $0x28] sm:$0xff pattern:$0x73625140] }
 0x2dc   : > { %6406 = vmatmul.msk.bf16.vlgmr.msra.gmra.mxu2 %vm329_vm2, %v8160_v43  ;;  %6407 = vmatmul.msk.bf16.vlgmr.msra.gmra.mxu3 %vm329_vm2, %v8160_v43  ;;  %v3442_v33 = vpop.permute.xlu1 %3441  ;;  %4697 = vst [vmem:[#allocation1 + $0x20] ss:$4 sm:$0xff] %v8056_v59 }
 0x2dd   : > { %3805 = vmatpush.bf16.msra.mxu0 %v3531_v41  ;;  %3819 = vmatpush.bf16.msra.mxu1 %v3534_v63  ;;  %v4070_v41 = vld.sshfl [vmem:[#allocation1] sm:$0xff pattern:$0x73625140]  ;;  %v8338_v63 = vld.sshfl [vmem:[#allocation1 + $0x10] sm:$0xff pattern:$0x73625140] }
 0x2de   : > { %3833 = vmatpush.bf16.msra.mxu2 %v3537_v27  ;;  %3847 = vmatpush.bf16.msra.mxu3 %v3540_v57 }
 0x2df   : > { %v2972_v37 = vpop.f32.mrf.mxu2  ;;  %v2986_v47 = vpop.f32.mrf.mxu3  ;;  %4120 = vrot.lane.b32.xlu2 %v4062_v10, %s6715_s27 }
 0x2e0   : > { %v8326_v35 = vadd.f32 %v2972_v37, %v7999_v0  ;;  %v8329_v58 = vadd.f32 %v2986_v47, %v8020_v18  ;;  %v2946_v9 = vpop.f32.mrf.mxu0  ;;  %v2960_v31 = vpop.f32.mrf.mxu1  ;;  %v8340_v0 = vld.sshfl [vmem:[#allocation1 + $0x18] sm:$0xff pattern:$0x73625140] }
 0x2e1   : > { %v8332_v24 = vadd.f32 %v2946_v9, %v8006_v53  ;;  %v8335_v50 = vadd.f32 %v2960_v31, %v8012_v5  ;;  %4694 = vst [vmem:[#allocation1] ss:$4 sm:$0xff] %v8034_v3  ;;  %v3440_v18 = vpop.permute.xlu0 %3439  ;;  %v3473_v31 = vsel %vm3449_vm6, %v3442_v33, %v3444_v26 }
 0x2e2   : > { %v3471_v27 = vsel %vm3449_vm6, %v3438_v60, %v3440_v18  ;;  %v3472_v57 = vsel %vm3449_vm6, %v3440_v18, %v3442_v33  ;;  %v4079_v33 = vpop.permute.xlu2 %4078 }
 0x2e3   : > { %v3543_v60 = vsel %vm333_vm1, %v3471_v27, 0  ;;  %v3546_v18 = vsel %vm333_vm1, %v3472_v57, 0 }
 0x2e4   : > { %v3446_v10 = vpop.permute.xlu1 %3445 }
 0x2e7   : > { %v2974_v53 = vpop.f32.mrf.mxu2  ;;  %v2988_v5 = vpop.f32.mrf.mxu3  ;;  %4126 = vrot.lane.b32.xlu2 %v4070_v41, %s6715_s27 }
 0x2e8   : > { %v8348_v37 = vadd.f32 %v2974_v53, %v8015_v2  ;;  %v8351_v47 = vadd.f32 %v2988_v5, %v8050_v32  ;;  %v3000_v9 = vpop.f32.mrf.mxu0  ;;  %v3014_v3 = vpop.f32.mrf.mxu1  ;;  %v3474_v2 = vsel %vm3449_vm6, %v3444_v26, %v3446_v10  ;;  %v4700_v53 = vld.sshfl [vmem:[#allocation1 + $0x8] sm:$0xff pattern:$0x73625140]  ;;  %v4698_v26 = vld.sshfl [vmem:[#allocation1] sm:$0xff pattern:$0x73625140] }
 0x2e9   : > { %v8355_v36 = vadd.f32 %v3000_v9, %v8023_v7  ;;  %v8358_v59 = vadd.f32 %v3014_v3, %v8044_v28  ;;  %v3549_v7 = vsel %vm333_vm1, %v3473_v31, 0  ;;  %v3552_v32 = vsel %vm333_vm1, %v3474_v2, 0  ;;  %v4702_v28 = vld.sshfl [vmem:[#allocation1 + $0x10] sm:$0xff pattern:$0x73625140]  ;;  %4766 = vrot.lane.b32.xlu0 %v4700_v53, %s6716_s28 }
 0x2ea   : > { %v4704_v5 = vld.sshfl [vmem:[#allocation1 + $0x18] sm:$0xff pattern:$0x73625140]  ;;  %4768 = vrot.lane.b32.xlu1 %v4702_v28, %s6716_s28  ;;  %v4083_v53 = vpop.permute.xlu2 %4082 }
 0x2eb   : > { %6408 = vmatmul.msk.bf16.vlgmr.msrb.gmra.mxu0 %vm329_vm2, %v8160_v43  ;;  %6409 = vmatmul.msk.bf16.vlgmr.msrb.gmra.mxu1 %vm329_vm2, %v8160_v43  ;;  %4715 = vst [vmem:[#allocation1] ss:$4 sm:$0xff] %v8103_v40  ;;  %v9679_v40 = vld [vmem:[#allocation12_spill] sm:$0xff] }
 0x2ec   : > { %6410 = vmatmul.msk.bf16.vlgmr.msrb.gmra.mxu2 %vm329_vm2, %v8160_v43  ;;  %6411 = vmatmul.msk.bf16.vlgmr.msrb.gmra.mxu3 %vm329_vm2, %v8160_v43 }
 0x2ed   : > { %3861 = vmatpush.bf16.msrb.mxu0 %v3543_v60  ;;  %3875 = vmatpush.bf16.msrb.mxu1 %v3546_v18 }
 0x2ee   : > { %3889 = vmatpush.bf16.msrb.mxu2 %v3549_v7  ;;  %3903 = vmatpush.bf16.msrb.mxu3 %v3552_v32  ;;  %v3448_v7 = vpop.permute.xlu1 %3447 }
 0x2ef   : > { %v3028_v27 = vpop.f32.mrf.mxu2  ;;  %v3042_v57 = vpop.f32.mrf.mxu3  ;;  %4130 = vrot.lane.b32.xlu2 %v8338_v63, %s6715_s27 }
 0x2f0   : > { %v8377_v9 = vadd.f32 %v3028_v27, %v8047_v62  ;;  %v8380_v3 = vadd.f32 %v3042_v57, %v8069_v23  ;;  %v3002_v31 = vpop.f32.mrf.mxu0  ;;  %v3016_v60 = vpop.f32.mrf.mxu1  ;;  %v3475_v23 = vsel %vm3449_vm6, %v3446_v10, %v3448_v7  ;;  %v9680_v10 = vld [vmem:[#allocation42_spill] sm:$0xff] }
 0x2f1   : > { %v8384_v18 = vadd.f32 %v3002_v31, %v9679_v40  ;;  %v8387_v2 = vadd.f32 %v3016_v60, %v8062_v48  ;;  %4764 = vrot.lane.b32.xlu0 %v4698_v26, %s6716_s28  ;;  %v4710_v40 = vld.sshfl [vmem:[#allocation1 + $0x30] sm:$0xff pattern:$0x73625140] }
 0x2f2   : > { %4770 = vrot.lane.b32.xlu1 %v4704_v5, %s6716_s28 }
 0x2f4   : > { %v4081_v32 = vpop.permute.xlu0 %4080 }
 0x2f5   : > { %v4135_v41 = vsel %vm4134_vm7, %v4079_v33, %v4081_v32  ;;  %v4136_v60 = vsel %vm4134_vm7, %v4081_v32, %v4083_v53  ;;  %v3555_v33 = vsel %vm333_vm1, %v3475_v23, 0 }
 0x2f6   : > { %v4169_v63 = vsel %vm333_vm1, %v4136_v60, 0 }
 0x2f7   : > { %v3030_v28 = vpop.f32.mrf.mxu2  ;;  %v3044_v62 = vpop.f32.mrf.mxu3  ;;  %4132 = vrot.lane.b32.xlu2 %v8340_v0, %s6715_s27 }
 0x2f8   : > { %v8394_v27 = vadd.f32 %v3030_v28, %v8065_v15  ;;  %v8397_v48 = vadd.f32 %v3044_v62, %v8097_v56  ;;  %v3056_v57 = vpop.f32.mrf.mxu0  ;;  %v3070_v31 = vpop.f32.mrf.mxu1  ;;  %v4166_v15 = vsel %vm333_vm1, %v4135_v41, 0  ;;  %v3558_v56 = vsel %vm333_vm1, %v3448_v7, 0  ;;  %v9681_v7 = vld [vmem:[#allocation13_spill] sm:$0xff] }
 0x2f9   : > { %v8403_v26 = vadd.f32 %v3056_v57, %v8072_v44  ;;  %v8406_v5 = vadd.f32 %v3070_v31, %v9680_v10  ;;  %v4706_v44 = vld.sshfl [vmem:[#allocation1 + $0x20] sm:$0xff pattern:$0x73625140]  ;;  %4776 = vrot.lane.b32.xlu0 %v4710_v40, %s6716_s28 }
 0x2fa   : > { %4772 = vrot.lane.b32.xlu1 %v4706_v44, %s6716_s28  ;;  %v9682_v31 = vld [vmem:[#allocation47_spill] sm:$0xff] }
 0x2fb   : > { %6412 = vmatmul.msk.bf16.vlgmr.msra.gmra.mxu0 %vm329_vm2, %v8160_v43  ;;  %6413 = vmatmul.msk.bf16.vlgmr.msra.gmra.mxu1 %vm329_vm2, %v8160_v43 }
 0x2fc   : > { %6414 = vmatmul.msk.bf16.vlgmr.msra.gmra.mxu2 %vm329_vm2, %v8160_v43  ;;  %6415 = vmatmul.msk.bf16.vlgmr.msra.gmra.mxu3 %vm329_vm2, %v8160_v43 }
 0x2fd   : > { %3917 = vmatpush.bf16.msra.mxu0 %v3555_v33  ;;  %4253 = vmatpush.bf16.msra.mxu2 %v4166_v15  ;;  %v4087_v33 = vpop.permute.xlu0 %4086  ;;  %v4085_v15 = vpop.permute.xlu2 %4084 }
 0x2fe   : > { %4267 = vmatpush.bf16.msra.mxu3 %v4169_v63  ;;  %3931 = vmatpush.bf16.msra.mxu1 %v3558_v56  ;;  %v4720_v56 = vld.sshfl [vmem:[#allocation1 + $0x8] sm:$0xff pattern:$0x73625140]  ;;  %v4089_v63 = vpop.permute.xlu1 %4088 }
 0x2ff   : > { %v3084_v32 = vpop.f32.mrf.mxu2  ;;  %v3098_v28 = vpop.f32.mrf.mxu3 }
 0x300   : > { %v8423_v62 = vadd.f32 %v3084_v32, %v9681_v7  ;;  %v8426_v23 = vadd.f32 %v3098_v28, %v8119_v1  ;;  %v3058_v41 = vpop.f32.mrf.mxu0  ;;  %v3072_v57 = vpop.f32.mrf.mxu1  ;;  %v4137_v1 = vsel %vm4134_vm7, %v4083_v53, %v4085_v15  ;;  %v4138_v32 = vsel %vm4134_vm7, %v4085_v15, %v4087_v33 }
 0x301   : > { %v8431_v60 = vadd.f32 %v3058_v41, %v9682_v31  ;;  %v8434_v10 = vadd.f32 %v3072_v57, %v8110_v6  ;;  %4782 = vrot.lane.b32.xlu0 %v4720_v56, %s6716_s28  ;;  %v4139_v41 = vsel %vm4134_vm7, %v4087_v33, %v4089_v63  ;;  %v9684_v31 = vld [vmem:[#allocation10_spill] sm:$0xff]  ;;  %v4172_v15 = vsel %vm333_vm1, %v4137_v1, 0  ;;  %v4708_v33 = vld.sshfl [vmem:[#allocation1 + $0x28] sm:$0xff pattern:$0x73625140] }
 0x302   : > { %v4175_v56 = vsel %vm333_vm1, %v4138_v32, 0  ;;  %4774 = vrot.lane.b32.xlu2 %v4708_v33, %s6716_s28  ;;  %v9686_v32 = vld [vmem:[#allocation44_spill] sm:$0xff]  ;;  %v4712_v33 = vld.sshfl [vmem:[#allocation1 + $0x38] sm:$0xff pattern:$0x73625140] }
 0x303   : > { %9683 = vst [vmem:[#allocation14_spill] sm:$0xff] %v8434_v10 }
 0x304   : > { %4717 = vst [vmem:[#allocation1 + $0x20] ss:$4 sm:$0xff] %v8179_v42 }
 0x305   : > { %v4091_v53 = vpop.permute.xlu0 %4090 }
 0x307   : > { %v3086_v44 = vpop.f32.mrf.mxu2  ;;  %v3100_v40 = vpop.f32.mrf.mxu3 }
 0x308   : > { %v8440_v0 = vadd.f32 %v3086_v44, %v8113_v46  ;;  %v8443_v28 = vadd.f32 %v3100_v40, %v8146_v25  ;;  %v3112_v6 = vpop.f32.mrf.mxu0  ;;  %v3126_v7 = vpop.f32.mrf.mxu1  ;;  %v4140_v46 = vsel %vm4134_vm7, %v4089_v63, %v4091_v53  ;;  %v4178_v25 = vsel %vm333_vm1, %v4139_v41, 0  ;;  %v4722_v44 = vld.sshfl [vmem:[#allocation1 + $0x10] sm:$0xff pattern:$0x73625140] }
 0x309   : > { %v8447_v57 = vadd.f32 %v3112_v6, %v8122_v34  ;;  %v8450_v10 = vadd.f32 %v3126_v7, %v9684_v31  ;;  %v4181_v34 = vsel %vm333_vm1, %v4140_v46, 0  ;;  %v4724_v63 = vld.sshfl [vmem:[#allocation1 + $0x18] sm:$0xff pattern:$0x73625140]  ;;  %4784 = vrot.lane.b32.xlu1 %v4722_v44, %s6716_s28 }
 0x30a   : > { %4786 = vrot.lane.b32.xlu0 %v4724_v63, %s6716_s28  ;;  %4778 = vrot.lane.b32.xlu2 %v4712_v33, %s6716_s28 }
 0x30b   : > { %9685 = vst [vmem:[#allocation48_spill] sm:$0xff] %v8450_v10  ;;  %6416 = vmatmul.msk.bf16.vlgmr.msrb.gmra.mxu0 %vm329_vm2, %v8160_v43  ;;  %6417 = vmatmul.msk.bf16.vlgmr.msrb.gmra.mxu1 %vm329_vm2, %v8160_v43  ;;  %v4728_v33 = vld.sshfl [vmem:[#allocation1 + $0x28] sm:$0xff pattern:$0x73625140] }
 0x30c   : > { %6418 = vmatmul.msk.bf16.vlgmr.msrb.gmra.mxu2 %vm329_vm2, %v8160_v43  ;;  %6419 = vmatmul.msk.bf16.vlgmr.msrb.gmra.mxu3 %vm329_vm2, %v8160_v43 }
 0x30d   : > { %4281 = vmatpush.bf16.msrb.mxu0 %v4172_v15  ;;  %4295 = vmatpush.bf16.msrb.mxu1 %v4175_v56  ;;  %v9689_v15 = vld [vmem:[#allocation11_spill] sm:$0xff]  ;;  %v4093_v44 = vpop.permute.xlu0 %4092 }
 0x30e   : > { %4309 = vmatpush.bf16.msrb.mxu2 %v4178_v25  ;;  %4323 = vmatpush.bf16.msrb.mxu3 %v4181_v34  ;;  %v4095_v25 = vpop.permute.xlu1 %4094  ;;  %v4097_v34 = vpop.permute.xlu2 %4096 }
 0x30f   : > { %v3140_v40 = vpop.f32.mrf.mxu2  ;;  %v3154_v1 = vpop.f32.mrf.mxu3  ;;  %v4142_v63 = vsel %vm4134_vm7, %v4093_v44, %v4095_v25 }
 0x310   : > { %v8468_v6 = vadd.f32 %v3140_v40, %v9686_v32  ;;  %v8471_v7 = vadd.f32 %v3154_v1, %v8163_v45  ;;  %v3114_v41 = vpop.f32.mrf.mxu0  ;;  %v3128_v31 = vpop.f32.mrf.mxu1  ;;  %v6424_v40 = vld [vmem:[#allocation2 + $0x30] sm:$0xf]  ;;  %v6523_v32 = vld [vmem:[#allocation2 + $0x30] sm:$0x30] }
 0x311   : > { %v8475_v56 = vadd.f32 %v3114_v41, %v9689_v15  ;;  %v8478_v46 = vadd.f32 %v3128_v31, %v8155_v16  ;;  %v8490_v42 = vor.u32 %v6523_v32, %v6424_v40  ;;  %4790 = vrot.lane.b32.xlu1 %v4728_v33, %s6716_s28  ;;  %v9693_v32 = vld [vmem:[#allocation49_spill] sm:$0xff]  ;;  %v4718_v33 = vld.sshfl [vmem:[#allocation1] sm:$0xff pattern:$0x73625140] }
 0x312   : > { %9687 = vst [vmem:[#allocation15_spill] sm:$0xff] %v8468_v6  ;;  %4780 = vrot.lane.b32.xlu2 %v4718_v33, %s6716_s28  ;;  %v9696_v33 = vld [vmem:[#allocation46_spill] sm:$0xff] }
 0x313   : > { %9688 = vst [vmem:[#allocation50_spill] sm:$0xff] %v8471_v7  ;;  %v4141_v7 = vsel %vm4134_vm7, %v4091_v53, %v4093_v44  ;;  %v9692_v53 = vld [vmem:[#allocation45_spill] sm:$0xff] }
 0x314   : > { %9690 = vst [vmem:[#allocation20_spill] sm:$0xff] %v8475_v56  ;;  %v4726_v56 = vld.sshfl [vmem:[#allocation1 + $0x20] sm:$0xff pattern:$0x73625140] }
 0x315   : > { %9691 = vst [vmem:[#allocation51_spill] sm:$0xff] %v8478_v46  ;;  %v4143_v46 = vsel %vm4134_vm7, %v4095_v25, %v4097_v34  ;;  %4788 = vrot.lane.b32.xlu0 %v4726_v56, %s6716_s28 }
 0x316   : > { %v4099_v44 = vpop.permute.xlu1 %4098  ;;  %v4103_v40 = vpop.permute.xlu2 %4102 }
 0x317   : > { %v3142_v45 = vpop.f32.mrf.mxu2  ;;  %v3156_v1 = vpop.f32.mrf.mxu3 }
 0x318   : > { %v8485_v41 = vadd.f32 %v3142_v45, %v8158_v21  ;;  %v8488_v16 = vadd.f32 %v3156_v1, %v8194_v12  ;;  %v3168_v31 = vpop.f32.mrf.mxu0  ;;  %v3182_v15 = vpop.f32.mrf.mxu1  ;;  %v4184_v21 = vsel %vm333_vm1, %v4141_v7, 0  ;;  %v4187_v12 = vsel %vm333_vm1, %v4142_v63, 0 }
 0x319   : > { %v8494_v6 = vadd.f32 %v3168_v31, %v8166_v54  ;;  %v8497_v10 = vadd.f32 %v3182_v15, %v9692_v53  ;;  %v4144_v45 = vsel %vm4134_vm7, %v4097_v34, %v4099_v44  ;;  %v4190_v54 = vsel %vm333_vm1, %v4143_v46, 0  ;;  %v4732_v34 = vld.sshfl [vmem:[#allocation1 + $0x38] sm:$0xff pattern:$0x73625140]  ;;  %v9694_v31 = vld [vmem:[#allocation16_spill] sm:$0xff] }
 0x31a   : > { %v4193_v25 = vsel %vm333_vm1, %v4144_v45, 0  ;;  %4794 = vrot.lane.b32.xlu1 %v4732_v34, %s6716_s28 }
 0x31b   : > { %6420 = vmatmul.msk.bf16.vlgmr.msra.gmra.mxu0 %vm329_vm2, %v8160_v43  ;;  %6421 = vmatmul.msk.bf16.vlgmr.msra.gmra.mxu1 %vm329_vm2, %v8160_v43 }
 0x31c   : > { %6426 = vmatmul.msk.bf16.vlgmr.msra.gmra.mxu2 %vm329_vm2, %v8490_v42  ;;  %6427 = vmatmul.msk.bf16.vlgmr.msra.gmra.mxu3 %vm329_vm2, %v8490_v42 }
 0x31d   : > { %4337 = vmatpush.bf16.msra.mxu0 %v4184_v21  ;;  %4351 = vmatpush.bf16.msra.mxu1 %v4187_v12 }
 0x31e   : > { %4365 = vmatpush.bf16.msra.mxu2 %v4190_v54  ;;  %4379 = vmatpush.bf16.msra.mxu3 %v4193_v25  ;;  %v4101_v21 = vpop.permute.xlu1 %4100  ;;  %v4107_v12 = vpop.permute.xlu2 %4106 }
 0x31f   : > { %v3196_v7 = vpop.f32.mrf.mxu2  ;;  %v3210_v56 = vpop.f32.mrf.mxu3  ;;  %v4145_v25 = vsel %vm4134_vm7, %v4099_v44, %v4101_v21  ;;  %v8545_v44 = vld [vmem:[%s6750_s21 + $0x20] sm:$0xff] }
 0x320   : > { %v8515_v43 = vadd.f32 %v3196_v7, %v9693_v32  ;;  %v8518_v46 = vadd.f32 %v3210_v56, %v8212_v39  ;;  %v3170_v1 = vpop.f32.mrf.mxu0  ;;  %v3184_v63 = vpop.f32.mrf.mxu1  ;;  %v4146_v7 = vsel %vm4134_vm7, %v4101_v21, %v4103_v40  ;;  %4735 = vst [vmem:[#allocation1] ss:$4 sm:$0xff] %v8545_v44 }
 0x321   : > { %v8521_v15 = vadd.f32 %v3170_v1, %v9694_v31  ;;  %v8524_v53 = vadd.f32 %v3184_v63, %v8205_v22  ;;  %v4199_v21 = vsel %vm333_vm1, %v4146_v7, 0 }
 0x322   : > { %v4105_v45 = vpop.permute.xlu0 %4104 }
 0x323   : > { %9695 = vst [vmem:[#allocation18_spill] sm:$0xff] %v8524_v53  ;;  %v4147_v1 = vsel %vm4134_vm7, %v4103_v40, %v4105_v45  ;;  %v4148_v63 = vsel %vm4134_vm7, %v4105_v45, %v4107_v12 }
 0x327   : > { %v3198_v54 = vpop.f32.mrf.mxu2  ;;  %v3212_v39 = vpop.f32.mrf.mxu3 }
 0x328   : > { %v8531_v56 = vadd.f32 %v3198_v54, %v8208_v8  ;;  %v8534_v22 = vadd.f32 %v3212_v39, %v8240_v11  ;;  %v3224_v32 = vpop.f32.mrf.mxu0  ;;  %v3238_v34 = vpop.f32.mrf.mxu1  ;;  %v4196_v8 = vsel %vm333_vm1, %v4145_v25, 0  ;;  %v4205_v11 = vsel %vm333_vm1, %v4148_v63, 0  ;;  %v9697_v54 = vld [vmem:[#allocation17_spill] sm:$0xff] }
 0x329   : > { %v8539_v31 = vadd.f32 %v3224_v32, %v8215_v52  ;;  %v8542_v53 = vadd.f32 %v3238_v34, %v9696_v33  ;;  %v4202_v52 = vsel %vm333_vm1, %v4147_v1, 0  ;;  %v9699_v34 = vld [vmem:[#allocation52_spill] sm:$0xff] }
 0x32b   : > { %6428 = vmatmul.msk.bf16.vlgmr.msrb.gmra.mxu0 %vm329_vm2, %v8490_v42  ;;  %6429 = vmatmul.msk.bf16.vlgmr.msrb.gmra.mxu1 %vm329_vm2, %v8490_v42 }
 0x32c   : > { %6430 = vmatmul.msk.bf16.vlgmr.msrb.gmra.mxu2 %vm329_vm2, %v8490_v42  ;;  %6431 = vmatmul.msk.bf16.vlgmr.msrb.gmra.mxu3 %vm329_vm2, %v8490_v42  ;;  %v4111_v33 = vpop.permute.xlu0 %4110 }
 0x32d   : > { %4393 = vmatpush.bf16.msrb.mxu0 %v4196_v8  ;;  %4407 = vmatpush.bf16.msrb.mxu1 %v4199_v21  ;;  %v4738_v8 = vld.sshfl [vmem:[#allocation1] sm:$0xff pattern:$0x73625140]  ;;  %v4742_v21 = vld.sshfl [vmem:[#allocation1 + $0x10] sm:$0xff pattern:$0x73625140] }
 0x32e   : > { %4421 = vmatpush.bf16.msrb.mxu2 %v4202_v52  ;;  %4435 = vmatpush.bf16.msrb.mxu3 %v4205_v11  ;;  %v4730_v11 = vld.sshfl [vmem:[#allocation1 + $0x30] sm:$0xff pattern:$0x73625140] }
 0x32f   : > { %v3252_v40 = vpop.f32.mrf.mxu2  ;;  %v3569_v45 = vpop.f32.mrf.mxu3  ;;  %4796 = vrot.lane.b32.xlu1 %v4738_v8, %s6716_s28  ;;  %4800 = vrot.lane.b32.xlu0 %v4742_v21, %s6716_s28 }
 0x330   : > { %v8561_v39 = vadd.f32 %v3252_v40, %v9697_v54  ;;  %v8564_v25 = vadd.f32 %v3569_v45, %v8259_v17  ;;  %v3226_v7 = vpop.f32.mrf.mxu0  ;;  %v3240_v32 = vpop.f32.mrf.mxu1  ;;  %v8575_v40 = vld [vmem:[%s6750_s21 + $0x28] sm:$0xff]  ;;  %4792 = vrot.lane.b32.xlu2 %v4730_v11, %s6716_s28 }
 0x331   : > { %v8567_v1 = vadd.f32 %v3226_v7, %v9699_v34  ;;  %v8570_v63 = vadd.f32 %v3240_v32, %v8251_v30  ;;  %v4113_v52 = vpop.permute.xlu1 %4112  ;;  %9701 = vst [vmem:[#allocation55_spill] sm:$0xff] %v8575_v40  ;;  %v4109_v17 = vpop.permute.xlu2 %4108 }
 0x332   : > { %9698 = vst [vmem:[#allocation53_spill] sm:$0xff] %v8564_v25  ;;  %v4149_v30 = vsel %vm4134_vm7, %v4107_v12, %v4109_v17  ;;  %v4150_v7 = vsel %vm4134_vm7, %v4109_v17, %v4111_v33 }
 0x333   : > { %9700 = vst [vmem:[#allocation19_spill] sm:$0xff] %v8570_v63  ;;  %v4151_v63 = vsel %vm4134_vm7, %v4111_v33, %v4113_v52  ;;  %v4208_v12 = vsel %vm333_vm1, %v4149_v30, 0  ;;  %v4211_v17 = vsel %vm333_vm1, %v4150_v7, 0 }
 0x334   : > { %4737 = vst [vmem:[#allocation1 + $0x20] ss:$4 sm:$0xff] %v8575_v40  ;;  %v4115_v40 = vpop.permute.xlu0 %4114 }
 0x337   : > { %v3254_v45 = vpop.f32.mrf.mxu2  ;;  %v3571_v54 = vpop.f32.mrf.mxu3 }
 0x338   : > { %v8582_v32 = vadd.f32 %v3254_v45, %v8254_v55  ;;  %v8585_v34 = vadd.f32 %v3571_v54, %v8286_v38  ;;  %v3583_v8 = vpop.f32.mrf.mxu0  ;;  %v3597_v21 = vpop.f32.mrf.mxu1  ;;  %v4152_v55 = vsel %vm4134_vm7, %v4113_v52, %v4115_v40  ;;  %v4214_v38 = vsel %vm333_vm1, %v4151_v63, 0  ;;  %v4740_v45 = vld.sshfl [vmem:[#allocation1 + $0x8] sm:$0xff pattern:$0x73625140] }
 0x339   : > { %v8589_v11 = vadd.f32 %v3583_v8, %v8262_v19  ;;  %v8592_v25 = vadd.f32 %v3597_v21, %v8280_v49  ;;  %v4217_v19 = vsel %vm333_vm1, %v4152_v55, 0  ;;  %v4119_v33 = vpop.permute.xlu1 %4118  ;;  %4798 = vrot.lane.b32.xlu2 %v4740_v45, %s6716_s28  ;;  %v4121_v55 = vpop.permute.xlu2 %4120 }
 0x33b   : > { %6432 = vmatmul.msk.bf16.vlgmr.msra.gmra.mxu0 %vm329_vm2, %v8490_v42  ;;  %6433 = vmatmul.msk.bf16.vlgmr.msra.gmra.mxu1 %vm329_vm2, %v8490_v42  ;;  %v4748_v49 = vld.sshfl [vmem:[#allocation1 + $0x28] sm:$0xff pattern:$0x73625140]  ;;  %v4750_v52 = vld.sshfl [vmem:[#allocation1 + $0x30] sm:$0xff pattern:$0x73625140] }
 0x33c   : > { %6434 = vmatmul.msk.bf16.vlgmr.msra.gmra.mxu2 %vm329_vm2, %v8490_v42  ;;  %6435 = vmatmul.msk.bf16.vlgmr.msra.gmra.mxu3 %vm329_vm2, %v8490_v42 }
 0x33d   : > { %4449 = vmatpush.bf16.msra.mxu0 %v4208_v12  ;;  %4463 = vmatpush.bf16.msra.mxu1 %v4211_v17 }
 0x33e   : > { %4477 = vmatpush.bf16.msra.mxu2 %v4214_v38  ;;  %4491 = vmatpush.bf16.msra.mxu3 %v4217_v19  ;;  %v4744_v38 = vld.sshfl [vmem:[#allocation1 + $0x18] sm:$0xff pattern:$0x73625140]  ;;  %v4117_v19 = vpop.permute.xlu0 %4116 }
 0x33f   : > { %v3611_v54 = vpop.f32.mrf.mxu2  ;;  %v3625_v30 = vpop.f32.mrf.mxu3  ;;  %4806 = vrot.lane.b32.xlu0 %v4748_v49, %s6716_s28  ;;  %4808 = vrot.lane.b32.xlu1 %v4750_v52, %s6716_s28  ;;  %4755 = vst [vmem:[#allocation1] ss:$4 sm:$0xff] %v8308_v29 }
 0x340   : > { %v8610_v63 = vadd.f32 %v3611_v54, %v8283_v51  ;;  %v8613_v7 = vadd.f32 %v3625_v30, %v8302_v14  ;;  %v3585_v8 = vpop.f32.mrf.mxu0  ;;  %v3599_v21 = vpop.f32.mrf.mxu1  ;;  %v4752_v51 = vld.sshfl [vmem:[#allocation1 + $0x38] sm:$0xff pattern:$0x73625140]  ;;  %v4153_v54 = vsel %vm4134_vm7, %v4115_v40, %v4117_v19  ;;  %v4154_v30 = vsel %vm4134_vm7, %v4117_v19, %v4119_v33 }
 0x341   : > { %v8617_v12 = vadd.f32 %v3585_v8, %v8289_v20  ;;  %v8620_v17 = vadd.f32 %v3599_v21, %v8295_v4  ;;  %v4123_v49 = vpop.permute.xlu1 %4122  ;;  %4802 = vrot.lane.b32.xlu2 %v4744_v38, %s6716_s28  ;;  %v4155_v8 = vsel %vm4134_vm7, %v4119_v33, %v4121_v55  ;;  %v4220_v38 = vsel %vm333_vm1, %v4153_v54, 0  ;;  %v4127_v33 = vpop.permute.xlu2 %4126 }
 0x342   : > { %v4156_v21 = vsel %vm4134_vm7, %v4121_v55, %v4123_v49 }
 0x347   : > { %v3613_v45 = vpop.f32.mrf.mxu2  ;;  %v3627_v14 = vpop.f32.mrf.mxu3  ;;  %4810 = vrot.lane.b32.xlu0 %v4752_v51, %s6716_s28  ;;  %v4758_v51 = vld.sshfl [vmem:[#allocation1 + $0x8] sm:$0xff pattern:$0x73625140] }
 0x348   : > { %v8628_v20 = vadd.f32 %v3613_v45, %v8298_v13  ;;  %v8631_v4 = vadd.f32 %v3627_v14, %v8332_v24  ;;  %v3639_v29 = vpop.f32.mrf.mxu0  ;;  %v3653_v52 = vpop.f32.mrf.mxu1  ;;  %v4223_v13 = vsel %vm333_vm1, %v4154_v30, 0  ;;  %4814 = vrot.lane.b32.xlu1 %v4758_v51, %s6716_s28  ;;  %v4226_v24 = vsel %vm333_vm1, %v4155_v8, 0  ;;  %v4762_v14 = vld.sshfl [vmem:[#allocation1 + $0x18] sm:$0xff pattern:$0x73625140] }
 0x349   : > { %v8636_v40 = vadd.f32 %v3639_v29, %v8305_v61  ;;  %v8639_v19 = vadd.f32 %v3653_v52, %v8326_v35  ;;  %v4229_v61 = vsel %vm333_vm1, %v4156_v21, 0  ;;  %v4756_v35 = vld.sshfl [vmem:[#allocation1] sm:$0xff pattern:$0x73625140] }
 0x34a   : > { %v4746_v51 = vld.sshfl [vmem:[#allocation1 + $0x20] sm:$0xff pattern:$0x73625140] }
 0x34b   : > { %6436 = vmatmul.msk.bf16.vlgmr.msrb.gmra.mxu0 %vm329_vm2, %v8490_v42  ;;  %6437 = vmatmul.msk.bf16.vlgmr.msrb.gmra.mxu1 %vm329_vm2, %v8490_v42 }
 0x34c   : > { %6438 = vmatmul.msk.bf16.vlgmr.msrb.gmra.mxu2 %vm329_vm2, %v8490_v42  ;;  %6439 = vmatmul.msk.bf16.vlgmr.msrb.gmra.mxu3 %vm329_vm2, %v8490_v42 }
 0x34d   : > { %4505 = vmatpush.bf16.msrb.mxu0 %v4220_v38  ;;  %4519 = vmatpush.bf16.msrb.mxu1 %v4223_v13  ;;  %v4760_v38 = vld.sshfl [vmem:[#allocation1 + $0x10] sm:$0xff pattern:$0x73625140]  ;;  %v5364_v13 = vld [vmem:[%s6750_s21] sm:$0xff] }
 0x34e   : > { %4533 = vmatpush.bf16.msrb.mxu2 %v4226_v24  ;;  %4547 = vmatpush.bf16.msrb.mxu3 %v4229_v61  ;;  %5380 = vst [vmem:[#allocation1] ss:$4 sm:$0xff] %v5364_v13  ;;  %v4131_v24 = vpop.permute.xlu2 %4130 }
 0x34f   : > { %v3667_v55 = vpop.f32.mrf.mxu2  ;;  %v3681_v45 = vpop.f32.mrf.mxu3  ;;  %4812 = vrot.lane.b32.xlu0 %v4756_v35, %s6716_s28  ;;  %4804 = vrot.lane.b32.xlu2 %v4746_v51, %s6716_s28 }
 0x350   : > { %v8656_v54 = vadd.f32 %v3667_v55, %v8329_v58  ;;  %v8659_v30 = vadd.f32 %v3681_v45, %v8355_v36  ;;  %v3641_v29 = vpop.f32.mrf.mxu0  ;;  %v3655_v52 = vpop.f32.mrf.mxu1  ;;  %4818 = vrot.lane.b32.xlu1 %v4762_v14, %s6716_s28 }
 0x351   : > { %v8662_v8 = vadd.f32 %v3641_v29, %v8335_v50  ;;  %v8665_v21 = vadd.f32 %v3655_v52, %v8348_v37  ;;  %v4125_v58 = vpop.permute.xlu1 %4124  ;;  %v4129_v36 = vpop.permute.xlu0 %4128 }
 0x352   : > { %v4157_v55 = vsel %vm4134_vm7, %v4123_v49, %v4125_v58  ;;  %v4158_v50 = vsel %vm4134_vm7, %v4125_v58, %v4127_v33  ;;  %v4159_v52 = vsel %vm4134_vm7, %v4127_v33, %v4129_v36  ;;  %v4160_v51 = vsel %vm4134_vm7, %v4129_v36, %v4131_v24  ;;  %v5365_v36 = vld [vmem:[%s6750_s21 + $0x8] sm:$0xff] }
 0x353   : > { %v4232_v58 = vsel %vm333_vm1, %v4157_v55, 0  ;;  %5383 = vst [vmem:[#allocation1 + $0x20] ss:$4 sm:$0xff] %v5365_v36 }
 0x355   : > { %v5390_v33 = vld.sshfl [vmem:[#allocation1 + $0x18] sm:$0xff pattern:$0x73625140] }
 0x357   : > { %v3669_v61 = vpop.f32.mrf.mxu2  ;;  %v3683_v35 = vpop.f32.mrf.mxu3  ;;  %4816 = vrot.lane.b32.xlu2 %v4760_v38, %s6716_s28  ;;  %5456 = vrot.lane.b32.xlu0 %v5390_v33, %s6717_s29 }
 0x358   : > { %v8673_v37 = vadd.f32 %v3669_v61, %v8351_v47  ;;  %v8676_v45 = vadd.f32 %v3683_v35, %v8384_v18  ;;  %v3695_v14 = vpop.f32.mrf.mxu0  ;;  %v3709_v29 = vpop.f32.mrf.mxu1  ;;  %v4235_v47 = vsel %vm333_vm1, %v4158_v50, 0  ;;  %v4238_v18 = vsel %vm333_vm1, %v4159_v52, 0 }
 0x359   : > { %v8681_v13 = vadd.f32 %v3695_v14, %v8358_v59  ;;  %v8684_v49 = vadd.f32 %v3709_v29, %v8377_v9  ;;  %v4241_v59 = vsel %vm333_vm1, %v4160_v51, 0  ;;  %v5384_v9 = vld.sshfl [vmem:[#allocation1] sm:$0xff pattern:$0x73625140] }
 0x35a   : > { %5450 = vrot.lane.b32.xlu1 %v5384_v9, %s6717_s29 }
 0x35b   : > { %6440 = vmatmul.msk.bf16.vlgmr.msra.gmra.mxu0 %vm329_vm2, %v8490_v42  ;;  %6441 = vmatmul.msk.bf16.vlgmr.msra.gmra.mxu1 %vm329_vm2, %v8490_v42  ;;  %v4767_v51 = vpop.permute.xlu0 %4766 }
 0x35c   : > { %6442 = vmatmul.msk.bf16.vlgmr.msra.gmra.mxu2 %vm329_vm2, %v8490_v42  ;;  %6443 = vmatmul.msk.bf16.vlgmr.msra.gmra.mxu3 %vm329_vm2, %v8490_v42 }
 0x35d   : > { %4561 = vmatpush.bf16.msra.mxu0 %v4232_v58  ;;  %4575 = vmatpush.bf16.msra.mxu1 %v4235_v47  ;;  %v4769_v58 = vpop.permute.xlu1 %4768  ;;  %v4133_v47 = vpop.permute.xlu2 %4132 }
 0x35e   : > { %4589 = vmatpush.bf16.msra.mxu2 %v4238_v18  ;;  %4603 = vmatpush.bf16.msra.mxu3 %v4241_v59  ;;  %v5392_v18 = vld.sshfl [vmem:[#allocation1 + $0x20] sm:$0xff pattern:$0x73625140]  ;;  %v5396_v59 = vld.sshfl [vmem:[#allocation1 + $0x30] sm:$0xff pattern:$0x73625140]  ;;  %v4822_v36 = vsel %vm4820_vm8, %v4767_v51, %v4769_v58 }
 0x35f   : > { %v3723_v38 = vpop.f32.mrf.mxu2  ;;  %v3737_v61 = vpop.f32.mrf.mxu3  ;;  %5458 = vrot.lane.b32.xlu0 %v5392_v18, %s6717_s29  ;;  %v4855_v18 = vsel %vm333_vm1, %v4822_v36, 0  ;;  %v5386_v36 = vld.sshfl [vmem:[#allocation1 + $0x8] sm:$0xff pattern:$0x73625140] }
 0x360   : > { %v8703_v35 = vadd.f32 %v3723_v38, %v8380_v3  ;;  %v8706_v55 = vadd.f32 %v3737_v61, %v8403_v26  ;;  %v3697_v50 = vpop.f32.mrf.mxu0  ;;  %v3711_v14 = vpop.f32.mrf.mxu1  ;;  %v4161_v26 = vsel %vm4134_vm7, %v4131_v24, %v4133_v47  ;;  %v5388_v47 = vld.sshfl [vmem:[#allocation1 + $0x10] sm:$0xff pattern:$0x73625140] }
 0x361   : > { %v8709_v29 = vadd.f32 %v3697_v50, %v8387_v2  ;;  %v8712_v52 = vadd.f32 %v3711_v14, %v8394_v27  ;;  %5454 = vrot.lane.b32.xlu2 %v5388_v47, %s6717_s29 }
 0x362   : > { %5462 = vrot.lane.b32.xlu1 %v5396_v59, %s6717_s29 }
 0x363   : > { %v4765_v24 = vpop.permute.xlu0 %4764 }
 0x364   : > { %v4821_v59 = vsel %vm4820_vm8, %v4765_v24, %v4767_v51  ;;  %v5394_v51 = vld.sshfl [vmem:[#allocation1 + $0x28] sm:$0xff pattern:$0x73625140] }
 0x365   : > { %v4771_v14 = vpop.permute.xlu1 %4770 }
 0x367   : > { %v3725_v33 = vpop.f32.mrf.mxu2  ;;  %v3739_v3 = vpop.f32.mrf.mxu3  ;;  %5460 = vrot.lane.b32.xlu0 %v5394_v51, %s6717_s29 }
 0x368   : > { %v8719_v2 = vadd.f32 %v3725_v33, %v8397_v48  ;;  %v8722_v27 = vadd.f32 %v3739_v3, %v8431_v60  ;;  %v3751_v9 = vpop.f32.mrf.mxu0  ;;  %v3765_v38 = vpop.f32.mrf.mxu1  ;;  %v4244_v48 = vsel %vm333_vm1, %v4161_v26, 0  ;;  %v4823_v60 = vsel %vm4820_vm8, %v4769_v58, %v4771_v14  ;;  %v5366_v3 = vld [vmem:[%s6750_s21 + $0x10] sm:$0xff] }
 0x369   : > { %v8725_v61 = vadd.f32 %v3751_v9, %v8406_v5  ;;  %v8728_v50 = vadd.f32 %v3765_v38, %v8423_v62  ;;  %v4852_v5 = vsel %vm333_vm1, %v4821_v59, 0  ;;  %v4858_v62 = vsel %vm333_vm1, %v4823_v60, 0  ;;  %v4775_v33 = vpop.permute.xlu2 %4774  ;;  %5401 = vst [vmem:[#allocation1] ss:$4 sm:$0xff] %v5366_v3  ;;  %v9705_v59 = vld [vmem:[#allocation14_spill] sm:$0xff]  ;;  %5452 = vrot.lane.b32.xlu2 %v5386_v36, %s6717_s29 }
 0x36b   : > { %9702 = vst [vmem:[#allocation21_spill] sm:$0xff] %v8728_v50  ;;  %6444 = vmatmul.msk.bf16.vlgmr.msrb.gmra.mxu0 %vm329_vm2, %v8490_v42  ;;  %6445 = vmatmul.msk.bf16.vlgmr.msrb.gmra.mxu1 %vm329_vm2, %v8490_v42 }
 0x36c   : > { %6446 = vmatmul.msk.bf16.vlgmr.msrb.gmra.mxu2 %vm329_vm2, %v8490_v42  ;;  %6447 = vmatmul.msk.bf16.vlgmr.msrb.gmra.mxu3 %vm329_vm2, %v8490_v42 }
 0x36d   : > { %4617 = vmatpush.bf16.msrb.mxu0 %v4244_v48  ;;  %4939 = vmatpush.bf16.msrb.mxu1 %v4852_v5 }
 0x36e   : > { %4953 = vmatpush.bf16.msrb.mxu2 %v4855_v18  ;;  %4967 = vmatpush.bf16.msrb.mxu3 %v4858_v62  ;;  %v4777_v18 = vpop.permute.xlu0 %4776  ;;  %v4773_v62 = vpop.permute.xlu1 %4772 }
 0x36f   : > { %v3779_v58 = vpop.f32.mrf.mxu2  ;;  %v3793_v26 = vpop.f32.mrf.mxu3  ;;  %v4826_v36 = vsel %vm4820_vm8, %v4775_v33, %v4777_v18 }
 0x370   : > { %v8748_v9 = vadd.f32 %v3779_v58, %v8426_v23  ;;  %v8751_v38 = vadd.f32 %v3793_v26, %v8447_v57  ;;  %v3753_v24 = vpop.f32.mrf.mxu0  ;;  %v3767_v47 = vpop.f32.mrf.mxu1  ;;  %v5404_v5 = vld.sshfl [vmem:[#allocation1] sm:$0xff pattern:$0x73625140]  ;;  %v4824_v57 = vsel %vm4820_vm8, %v4771_v14, %v4773_v62  ;;  %v4825_v58 = vsel %vm4820_vm8, %v4773_v62, %v4775_v33 }
 0x371   : > { %v8754_v60 = vadd.f32 %v3753_v24, %v9705_v59  ;;  %v8757_v48 = vadd.f32 %v3767_v47, %v8440_v0  ;;  %5466 = vrot.lane.b32.xlu1 %v5404_v5, %s6717_s29  ;;  %v4779_v23 = vpop.permute.xlu2 %4778  ;;  %v9707_v24 = vld [vmem:[#allocation20_spill] sm:$0xff]  ;;  %v4861_v14 = vsel %vm333_vm1, %v4824_v57, 0  ;;  %v4867_v33 = vsel %vm333_vm1, %v4826_v36, 0  ;;  %v9714_v36 = vld [vmem:[#allocation51_spill] sm:$0xff] }
 0x372   : > { %9703 = vst [vmem:[#allocation57_spill] sm:$0xff] %v8748_v9  ;;  %v9708_v5 = vld [vmem:[#allocation48_spill] sm:$0xff]  ;;  %v9709_v9 = vld [vmem:[#allocation15_spill] sm:$0xff] }
 0x373   : > { %9704 = vst [vmem:[#allocation54_spill] sm:$0xff] %v8751_v38 }
 0x374   : > { %9706 = vst [vmem:[#allocation24_spill] sm:$0xff] %v8757_v48  ;;  %v4827_v48 = vsel %vm4820_vm8, %v4777_v18, %v4779_v23 }
 0x375   : > { %v4870_v18 = vsel %vm333_vm1, %v4827_v48, 0  ;;  %v9711_v48 = vld [vmem:[#allocation50_spill] sm:$0xff] }
 0x376   : > { %v4783_v62 = vpop.permute.xlu0 %4782 }
 0x377   : > { %v3781_v3 = vpop.f32.mrf.mxu2  ;;  %v3795_v51 = vpop.f32.mrf.mxu3 }
 0x378   : > { %v8764_v26 = vadd.f32 %v3781_v3, %v8443_v28  ;;  %v8767_v0 = vadd.f32 %v3795_v51, %v9707_v24  ;;  %v3807_v47 = vpop.f32.mrf.mxu0  ;;  %v3821_v59 = vpop.f32.mrf.mxu1  ;;  %v4864_v28 = vsel %vm333_vm1, %v4825_v58, 0  ;;  %v5410_v3 = vld.sshfl [vmem:[#allocation1 + $0x18] sm:$0xff pattern:$0x73625140] }
 0x379   : > { %v8772_v38 = vadd.f32 %v3807_v47, %v9708_v5  ;;  %v8775_v50 = vadd.f32 %v3821_v59, %v9709_v9  ;;  %v5406_v9 = vld.sshfl [vmem:[#allocation1 + $0x8] sm:$0xff pattern:$0x73625140]  ;;  %5472 = vrot.lane.b32.xlu0 %v5410_v3, %s6717_s29  ;;  %v6524_v3 = vld [vmem:[#allocation2 + $0x38] sm:$0x30] }
 0x37a   : > { %5468 = vrot.lane.b32.xlu1 %v5406_v9, %s6717_s29  ;;  %v6455_v9 = vld [vmem:[#allocation2 + $0x38] sm:$0xf] }
 0x37b   : > { %9710 = vst [vmem:[#allocation56_spill] sm:$0xff] %v8775_v50  ;;  %6448 = vmatmul.msk.bf16.vlgmr.msra.gmra.mxu0 %vm329_vm2, %v8490_v42  ;;  %6449 = vmatmul.msk.bf16.vlgmr.msra.gmra.mxu1 %vm329_vm2, %v8490_v42 }
 0x37c   : > { %6450 = vmatmul.msk.bf16.vlgmr.msra.gmra.mxu2 %vm329_vm2, %v8490_v42  ;;  %6451 = vmatmul.msk.bf16.vlgmr.msra.gmra.mxu3 %vm329_vm2, %v8490_v42 }
 0x37d   : > { %4981 = vmatpush.bf16.msra.mxu0 %v4861_v14  ;;  %4995 = vmatpush.bf16.msra.mxu1 %v4864_v28  ;;  %v5398_v28 = vld.sshfl [vmem:[#allocation1 + $0x38] sm:$0xff pattern:$0x73625140] }
 0x37e   : > { %5009 = vmatpush.bf16.msra.mxu2 %v4867_v33  ;;  %5023 = vmatpush.bf16.msra.mxu3 %v4870_v18  ;;  %v5367_v33 = vld [vmem:[%s6750_s21 + $0x18] sm:$0xff]  ;;  %v4785_v18 = vpop.permute.xlu1 %4784 }
 0x37f   : > { %v3835_v51 = vpop.f32.mrf.mxu2  ;;  %v3849_v57 = vpop.f32.mrf.mxu3  ;;  %5464 = vrot.lane.b32.xlu2 %v5398_v28, %s6717_s29  ;;  %5403 = vst [vmem:[#allocation1 + $0x20] ss:$4 sm:$0xff] %v5367_v33 }
 0x380   : > { %v8792_v58 = vadd.f32 %v3835_v51, %v9711_v48  ;;  %v8795_v24 = vadd.f32 %v3849_v57, %v8494_v6  ;;  %v3809_v47 = vpop.f32.mrf.mxu0  ;;  %v3823_v59 = vpop.f32.mrf.mxu1 }
 0x381   : > { %v8798_v5 = vadd.f32 %v3809_v47, %v9714_v36  ;;  %v8801_v14 = vadd.f32 %v3823_v59, %v8485_v41  ;;  %v4781_v51 = vpop.permute.xlu2 %4780  ;;  %v4787_v48 = vpop.permute.xlu0 %4786 }
 0x382   : > { %9712 = vst [vmem:[#allocation25_spill] sm:$0xff] %v8792_v58  ;;  %v4828_v47 = vsel %vm4820_vm8, %v4779_v23, %v4781_v51  ;;  %v4829_v36 = vsel %vm4820_vm8, %v4781_v51, %v4783_v62  ;;  %v4831_v58 = vsel %vm4820_vm8, %v4785_v18, %v4787_v48 }
 0x383   : > { %9713 = vst [vmem:[#allocation22_spill] sm:$0xff] %v8795_v24  ;;  %v8805_v24 = vor.u32 %v6524_v3, %v6455_v9  ;;  %v4873_v3 = vsel %vm333_vm1, %v4828_v47, 0  ;;  %v9716_v47 = vld [vmem:[#allocation18_spill] sm:$0xff] }
 0x384   : > { %9715 = vst [vmem:[#allocation58_spill] sm:$0xff] %v8801_v14  ;;  %v4830_v14 = vsel %vm4820_vm8, %v4783_v62, %v4785_v18  ;;  %v5408_v62 = vld.sshfl [vmem:[#allocation1 + $0x10] sm:$0xff pattern:$0x73625140] }
 0x385   : > { %5421 = vst [vmem:[#allocation1] ss:$4 sm:$0xff] %v8545_v44 }
 0x386   : > { %v5416_v23 = vld.sshfl [vmem:[#allocation1 + $0x30] sm:$0xff pattern:$0x73625140]  ;;  %v5418_v18 = vld.sshfl [vmem:[#allocation1 + $0x38] sm:$0xff pattern:$0x73625140] }
 0x387   : > { %v3837_v6 = vpop.f32.mrf.mxu2  ;;  %v3851_v57 = vpop.f32.mrf.mxu3  ;;  %5478 = vrot.lane.b32.xlu0 %v5416_v23, %s6717_s29  ;;  %5470 = vrot.lane.b32.xlu2 %v5408_v62, %s6717_s29 }
 0x388   : > { %v8810_v41 = vadd.f32 %v3837_v6, %v8488_v16  ;;  %v8813_v59 = vadd.f32 %v3851_v57, %v8521_v15  ;;  %v3863_v28 = vpop.f32.mrf.mxu0  ;;  %v3877_v33 = vpop.f32.mrf.mxu1  ;;  %v4876_v16 = vsel %vm333_vm1, %v4829_v36, 0  ;;  %v4879_v15 = vsel %vm333_vm1, %v4830_v14, 0  ;;  %5480 = vrot.lane.b32.xlu1 %v5418_v18, %s6717_s29 }
 0x389   : > { %v8818_v50 = vadd.f32 %v3863_v28, %v8497_v10  ;;  %v8821_v9 = vadd.f32 %v3877_v33, %v8515_v43  ;;  %v4882_v10 = vsel %vm333_vm1, %v4831_v58, 0  ;;  %v4791_v43 = vpop.permute.xlu1 %4790  ;;  %v4789_v23 = vpop.permute.xlu0 %4788 }
 0x38a   : > { %v4793_v28 = vpop.permute.xlu2 %4792  ;;  %v4833_v62 = vsel %vm4820_vm8, %v4789_v23, %v4791_v43 }
 0x38b   : > { %6452 = vmatmul.msk.bf16.vlgmr.msrb.gmra.mxu0 %vm329_vm2, %v8490_v42  ;;  %6457 = vmatmul.msk.bf16.vlgmr.msrb.gmra.mxu1 %vm329_vm2, %v8805_v24 }
 0x38c   : > { %6458 = vmatmul.msk.bf16.vlgmr.msrb.gmra.mxu2 %vm329_vm2, %v8805_v24  ;;  %6459 = vmatmul.msk.bf16.vlgmr.msrb.gmra.mxu3 %vm329_vm2, %v8805_v24  ;;  %v5424_v33 = vld.sshfl [vmem:[#allocation1] sm:$0xff pattern:$0x73625140] }
 0x38d   : > { %5037 = vmatpush.bf16.msrb.mxu0 %v4873_v3  ;;  %5051 = vmatpush.bf16.msrb.mxu1 %v4876_v16  ;;  %v5412_v3 = vld.sshfl [vmem:[#allocation1 + $0x20] sm:$0xff pattern:$0x73625140]  ;;  %v5428_v16 = vld.sshfl [vmem:[#allocation1 + $0x10] sm:$0xff pattern:$0x73625140] }
 0x38e   : > { %5065 = vmatpush.bf16.msrb.mxu2 %v4879_v15  ;;  %5079 = vmatpush.bf16.msrb.mxu3 %v4882_v10 }
 0x38f   : > { %v3891_v42 = vpop.f32.mrf.mxu2  ;;  %v3905_v51 = vpop.f32.mrf.mxu3  ;;  %5482 = vrot.lane.b32.xlu0 %v5424_v33, %s6717_s29  ;;  %5474 = vrot.lane.b32.xlu2 %v5412_v3, %s6717_s29 }
 0x390   : > { %v8840_v58 = vadd.f32 %v3891_v42, %v8518_v46  ;;  %v8843_v14 = vadd.f32 %v3905_v51, %v8539_v31  ;;  %v3865_v6 = vpop.f32.mrf.mxu0  ;;  %v3879_v57 = vpop.f32.mrf.mxu1  ;;  %v4832_v31 = vsel %vm4820_vm8, %v4787_v48, %v4789_v23  ;;  %5486 = vrot.lane.b32.xlu1 %v5428_v16, %s6717_s29  ;;  %v9717_v23 = vld [vmem:[#allocation55_spill] sm:$0xff] }
 0x391   : > { %v8846_v44 = vadd.f32 %v3865_v6, %v9716_v47  ;;  %v8849_v36 = vadd.f32 %v3879_v57, %v8531_v56  ;;  %v4795_v46 = vpop.permute.xlu1 %4794  ;;  %v4834_v6 = vsel %vm4820_vm8, %v4791_v43, %v4793_v28  ;;  %v4885_v33 = vsel %vm333_vm1, %v4832_v31, 0 }
 0x392   : > { %v4835_v57 = vsel %vm4820_vm8, %v4793_v28, %v4795_v46 }
 0x393   : > { %v4894_v43 = vsel %vm333_vm1, %v4835_v57, 0  ;;  %v4799_v28 = vpop.permute.xlu2 %4798 }
 0x397   : > { %v3893_v15 = vpop.f32.mrf.mxu2  ;;  %v3907_v10 = vpop.f32.mrf.mxu3 }
 0x398   : > { %v8857_v56 = vadd.f32 %v3893_v15, %v8534_v22  ;;  %v8860_v18 = vadd.f32 %v3907_v10, %v8567_v1  ;;  %v3919_v42 = vpop.f32.mrf.mxu0  ;;  %v3933_v51 = vpop.f32.mrf.mxu1  ;;  %v4888_v22 = vsel %vm333_vm1, %v4833_v62, 0  ;;  %v4891_v1 = vsel %vm333_vm1, %v4834_v6, 0  ;;  %v9718_v15 = vld [vmem:[#allocation53_spill] sm:$0xff] }
 0x399   : > { %v8865_v48 = vadd.f32 %v3919_v42, %v8542_v53  ;;  %v8868_v47 = vadd.f32 %v3933_v51, %v8561_v39  ;;  %v5414_v53 = vld.sshfl [vmem:[#allocation1 + $0x28] sm:$0xff pattern:$0x73625140]  ;;  %v9719_v51 = vld [vmem:[#allocation19_spill] sm:$0xff] }
 0x39a   : > { %v5426_v39 = vld.sshfl [vmem:[#allocation1 + $0x8] sm:$0xff pattern:$0x73625140]  ;;  %5423 = vst [vmem:[#allocation1 + $0x20] ss:$4 sm:$0xff] %v9717_v23  ;;  %5476 = vrot.lane.b32.xlu2 %v5414_v53, %s6717_s29 }
 0x39b   : > { %6460 = vmatmul.msk.bf16.vlgmr.msra.gmra.mxu0 %vm329_vm2, %v8805_v24  ;;  %6461 = vmatmul.msk.bf16.vlgmr.msra.gmra.mxu1 %vm329_vm2, %v8805_v24 }
 0x39c   : > { %6462 = vmatmul.msk.bf16.vlgmr.msra.gmra.mxu2 %vm329_vm2, %v8805_v24  ;;  %6463 = vmatmul.msk.bf16.vlgmr.msra.gmra.mxu3 %vm329_vm2, %v8805_v24 }
 0x39d   : > { %5093 = vmatpush.bf16.msra.mxu0 %v4885_v33  ;;  %5107 = vmatpush.bf16.msra.mxu1 %v4888_v22 }
 0x39e   : > { %5121 = vmatpush.bf16.msra.mxu2 %v4891_v1  ;;  %5135 = vmatpush.bf16.msra.mxu3 %v4894_v43  ;;  %v4803_v43 = vpop.permute.xlu2 %4802 }
 0x39f   : > { %v4255_v3 = vpop.f32.mrf.mxu2  ;;  %v4269_v16 = vpop.f32.mrf.mxu3  ;;  %5484 = vrot.lane.b32.xlu0 %v5426_v39, %s6717_s29 }
 0x3a0   : > { %v8886_v10 = vadd.f32 %v4255_v3, %v9718_v15  ;;  %v8889_v31 = vadd.f32 %v4269_v16, %v8589_v11  ;;  %v3921_v62 = vpop.f32.mrf.mxu0  ;;  %v3935_v42 = vpop.f32.mrf.mxu1 }
 0x3a1   : > { %v8892_v6 = vadd.f32 %v3921_v62, %v9719_v51  ;;  %v8895_v57 = vadd.f32 %v3935_v42, %v8582_v32  ;;  %v5432_v33 = vld.sshfl [vmem:[#allocation1 + $0x20] sm:$0xff pattern:$0x73625140]  ;;  %v4797_v22 = vpop.permute.xlu1 %4796  ;;  %v4801_v1 = vpop.permute.xlu0 %4800 }
 0x3a2   : > { %5490 = vrot.lane.b32.xlu1 %v5432_v33, %s6717_s29  ;;  %v4836_v23 = vsel %vm4820_vm8, %v4795_v46, %v4797_v22  ;;  %v4837_v11 = vsel %vm4820_vm8, %v4797_v22, %v4799_v28  ;;  %v4838_v62 = vsel %vm4820_vm8, %v4799_v28, %v4801_v1  ;;  %v4839_v42 = vsel %vm4820_vm8, %v4801_v1, %v4803_v43 }
 0x3a3   : > { %v4897_v46 = vsel %vm333_vm1, %v4836_v23, 0  ;;  %v4906_v28 = vsel %vm333_vm1, %v4839_v42, 0  ;;  %v5430_v42 = vld.sshfl [vmem:[#allocation1 + $0x18] sm:$0xff pattern:$0x73625140] }
 0x3a4   : > { %5488 = vrot.lane.b32.xlu2 %v5430_v42, %s6717_s29 }
 0x3a7   : > { %v4257_v53 = vpop.f32.mrf.mxu2  ;;  %v4271_v39 = vpop.f32.mrf.mxu3 }
 0x3a8   : > { %v8901_v3 = vadd.f32 %v4257_v53, %v8585_v34  ;;  %v8904_v16 = vadd.f32 %v4271_v39, %v8617_v12  ;;  %v4283_v32 = vpop.f32.mrf.mxu0  ;;  %v4297_v15 = vpop.f32.mrf.mxu1  ;;  %v4900_v34 = vsel %vm333_vm1, %v4837_v11, 0  ;;  %v4903_v12 = vsel %vm333_vm1, %v4838_v62, 0 }
 0x3a9   : > { %v8909_v51 = vadd.f32 %v4283_v32, %v8592_v25  ;;  %v8912_v33 = vadd.f32 %v4297_v15, %v8610_v63  ;;  %v5434_v25 = vld.sshfl [vmem:[#allocation1 + $0x28] sm:$0xff pattern:$0x73625140]  ;;  %v5438_v63 = vld.sshfl [vmem:[#allocation1 + $0x38] sm:$0xff pattern:$0x73625140] }
 0x3aa   : > { %5492 = vrot.lane.b32.xlu1 %v5434_v25, %s6717_s29  ;;  %5496 = vrot.lane.b32.xlu0 %v5438_v63, %s6717_s29 }
 0x3ab   : > { %6464 = vmatmul.msk.bf16.vlgmr.msrb.gmra.mxu0 %vm329_vm2, %v8805_v24  ;;  %6465 = vmatmul.msk.bf16.vlgmr.msrb.gmra.mxu1 %vm329_vm2, %v8805_v24 }
 0x3ac   : > { %6466 = vmatmul.msk.bf16.vlgmr.msrb.gmra.mxu2 %vm329_vm2, %v8805_v24  ;;  %6467 = vmatmul.msk.bf16.vlgmr.msrb.gmra.mxu3 %vm329_vm2, %v8805_v24 }
 0x3ad   : > { %5149 = vmatpush.bf16.msrb.mxu0 %v4897_v46  ;;  %5163 = vmatpush.bf16.msrb.mxu1 %v4900_v34  ;;  %v4805_v34 = vpop.permute.xlu2 %4804 }
 0x3ae   : > { %5177 = vmatpush.bf16.msrb.mxu2 %v4903_v12  ;;  %5191 = vmatpush.bf16.msrb.mxu3 %v4906_v28  ;;  %v4840_v28 = vsel %vm4820_vm8, %v4803_v43, %v4805_v34 }
 0x3af   : > { %v4311_v22 = vpop.f32.mrf.mxu2  ;;  %v4325_v1 = vpop.f32.mrf.mxu3 }
 0x3b0   : > { %v8929_v53 = vadd.f32 %v4311_v22, %v8613_v7  ;;  %v8932_v39 = vadd.f32 %v4325_v1, %v8636_v40  ;;  %v4285_v23 = vpop.f32.mrf.mxu0  ;;  %v4299_v11 = vpop.f32.mrf.mxu1 }
 0x3b1   : > { %v8935_v32 = vadd.f32 %v4285_v23, %v8620_v17  ;;  %v8938_v15 = vadd.f32 %v4299_v11, %v8628_v20  ;;  %v4807_v62 = vpop.permute.xlu0 %4806  ;;  %v4809_v46 = vpop.permute.xlu1 %4808  ;;  %v4909_v11 = vsel %vm333_vm1, %v4840_v28, 0 }
 0x3b2   : > { %v4841_v40 = vsel %vm4820_vm8, %v4805_v34, %v4807_v62  ;;  %v4842_v22 = vsel %vm4820_vm8, %v4807_v62, %v4809_v46  ;;  %v5370_v62 = vld [vmem:[%s6750_s21 + $0x30] sm:$0xff] }
 0x3b3   : > { %v4912_v42 = vsel %vm333_vm1, %v4841_v40, 0  ;;  %v5436_v34 = vld.sshfl [vmem:[#allocation1 + $0x30] sm:$0xff pattern:$0x73625140]  ;;  %5441 = vst [vmem:[#allocation1] ss:$4 sm:$0xff] %v5370_v62 }
 0x3b4   : > { %5494 = vrot.lane.b32.xlu2 %v5436_v34, %s6717_s29 }
 0x3b7   : > { %v4313_v12 = vpop.f32.mrf.mxu2  ;;  %v4327_v7 = vpop.f32.mrf.mxu3 }
 0x3b8   : > { %v8944_v25 = vadd.f32 %v4313_v12, %v8631_v4  ;;  %v8947_v17 = vadd.f32 %v4327_v7, %v8662_v8  ;;  %v4339_v20 = vpop.f32.mrf.mxu0  ;;  %v4353_v63 = vpop.f32.mrf.mxu1  ;;  %v4915_v8 = vsel %vm333_vm1, %v4842_v22, 0 }
 0x3b9   : > { %v8951_v1 = vadd.f32 %v4339_v20, %v8639_v19  ;;  %v8954_v23 = vadd.f32 %v4353_v63, %v8656_v54  ;;  %v4811_v43 = vpop.permute.xlu0 %4810 }
 0x3ba   : > { %v4843_v4 = vsel %vm4820_vm8, %v4809_v46, %v4811_v43  ;;  %v4815_v54 = vpop.permute.xlu1 %4814  ;;  %v4817_v46 = vpop.permute.xlu2 %4816 }
 0x3bb   : > { %6468 = vmatmul.msk.bf16.vlgmr.msra.gmra.mxu0 %vm329_vm2, %v8805_v24  ;;  %6469 = vmatmul.msk.bf16.vlgmr.msra.gmra.mxu1 %vm329_vm2, %v8805_v24  ;;  %v4918_v19 = vsel %vm333_vm1, %v4843_v4, 0 }
 0x3bc   : > { %6470 = vmatmul.msk.bf16.vlgmr.msra.gmra.mxu2 %vm329_vm2, %v8805_v24  ;;  %6471 = vmatmul.msk.bf16.vlgmr.msra.gmra.mxu3 %vm329_vm2, %v8805_v24 }
 0x3bd   : > { %5205 = vmatpush.bf16.msra.mxu0 %v4909_v11  ;;  %5219 = vmatpush.bf16.msra.mxu1 %v4912_v42  ;;  %v5448_v42 = vld.sshfl [vmem:[#allocation1 + $0x18] sm:$0xff pattern:$0x73625140] }
 0x3be   : > { %5233 = vmatpush.bf16.msra.mxu2 %v4915_v8  ;;  %5247 = vmatpush.bf16.msra.mxu3 %v4918_v19  ;;  %v5446_v8 = vld.sshfl [vmem:[#allocation1 + $0x10] sm:$0xff pattern:$0x73625140]  ;;  %v5442_v19 = vld.sshfl [vmem:[#allocation1] sm:$0xff pattern:$0x73625140] }
 0x3bf   : > { %v4367_v12 = vpop.f32.mrf.mxu2  ;;  %v4381_v7 = vpop.f32.mrf.mxu3  ;;  %5504 = vrot.lane.b32.xlu1 %v5448_v42, %s6717_s29  ;;  %5502 = vrot.lane.b32.xlu0 %v5446_v8, %s6717_s29 }
 0x3c0   : > { %v8972_v28 = vadd.f32 %v4367_v12, %v8659_v30  ;;  %v8975_v40 = vadd.f32 %v4381_v7, %v8681_v13  ;;  %v4341_v20 = vpop.f32.mrf.mxu0  ;;  %v4355_v63 = vpop.f32.mrf.mxu1  ;;  %5498 = vrot.lane.b32.xlu2 %v5442_v19, %s6717_s29 }
 0x3c1   : > { %v8978_v22 = vadd.f32 %v4341_v20, %v8665_v21  ;;  %v8981_v11 = vadd.f32 %v4355_v63, %v8673_v37  ;;  %v4813_v4 = vpop.permute.xlu0 %4812  ;;  %v4846_v63 = vsel %vm4820_vm8, %v4815_v54, %v4817_v46 }
 0x3c2   : > { %v4819_v30 = vpop.permute.xlu1 %4818  ;;  %v4844_v34 = vsel %vm4820_vm8, %v4811_v43, %v4813_v4  ;;  %v4845_v12 = vsel %vm4820_vm8, %v4813_v4, %v4815_v54  ;;  %v5455_v19 = vpop.permute.xlu2 %5454 }
 0x3c3   : > { %v4847_v42 = vsel %vm4820_vm8, %v4817_v46, %v4819_v30  ;;  %v4921_v4 = vsel %vm333_vm1, %v4844_v34, 0 }
 0x3c4   : > { %v4930_v54 = vsel %vm333_vm1, %v4847_v42, 0 }
 0x3c7   : > { %v4369_v62 = vpop.f32.mrf.mxu2  ;;  %v4383_v13 = vpop.f32.mrf.mxu3 }
 0x3c8   : > { %v8989_v21 = vadd.f32 %v4369_v62, %v8676_v45  ;;  %v8992_v37 = vadd.f32 %v4383_v13, %v8709_v29  ;;  %v4395_v7 = vpop.f32.mrf.mxu0  ;;  %v4409_v20 = vpop.f32.mrf.mxu1  ;;  %v4924_v45 = vsel %vm333_vm1, %v4845_v12, 0  ;;  %v4927_v29 = vsel %vm333_vm1, %v4846_v63, 0 }
 0x3c9   : > { %v8997_v8 = vadd.f32 %v4395_v7, %v8684_v49  ;;  %v9000_v43 = vadd.f32 %v4409_v20, %v8703_v35  ;;  %v5457_v7 = vpop.permute.xlu0 %5456  ;;  %v5444_v20 = vld.sshfl [vmem:[#allocation1 + $0x8] sm:$0xff pattern:$0x73625140] }
 0x3ca   : > { %5500 = vrot.lane.b32.xlu2 %v5444_v20, %s6717_s29  ;;  %v5453_v42 = vpop.permute.xlu2 %5452 }
 0x3cb   : > { %6472 = vmatmul.msk.bf16.vlgmr.msrb.gmra.mxu0 %vm329_vm2, %v8805_v24  ;;  %6473 = vmatmul.msk.bf16.vlgmr.msrb.gmra.mxu1 %vm329_vm2, %v8805_v24 }
 0x3cc   : > { %6474 = vmatmul.msk.bf16.vlgmr.msrb.gmra.mxu2 %vm329_vm2, %v8805_v24  ;;  %6475 = vmatmul.msk.bf16.vlgmr.msrb.gmra.mxu3 %vm329_vm2, %v8805_v24  ;;  %v5451_v63 = vpop.permute.xlu1 %5450 }
 0x3cd   : > { %5261 = vmatpush.bf16.msrb.mxu0 %v4921_v4  ;;  %5275 = vmatpush.bf16.msrb.mxu1 %v4924_v45  ;;  %v5508_v45 = vsel %vm5506_vm9, %v5453_v42, %v5455_v19 }
 0x3ce   : > { %5289 = vmatpush.bf16.msrb.mxu2 %v4927_v29  ;;  %5303 = vmatpush.bf16.msrb.mxu3 %v4930_v54 }
 0x3cf   : > { %v4423_v49 = vpop.f32.mrf.mxu2  ;;  %v4437_v35 = vpop.f32.mrf.mxu3 }
 0x3d0   : > { %v9015_v46 = vadd.f32 %v4423_v49, %v8706_v55  ;;  %v9018_v30 = vadd.f32 %v4437_v35, %v8725_v61  ;;  %v4397_v62 = vpop.f32.mrf.mxu0  ;;  %v4411_v13 = vpop.f32.mrf.mxu1  ;;  %v5509_v61 = vsel %vm5506_vm9, %v5455_v19, %v5457_v7  ;;  %v5507_v49 = vsel %vm5506_vm9, %v5451_v63, %v5453_v42  ;;  %v9722_v35 = vld [vmem:[#allocation21_spill] sm:$0xff] }
 0x3d1   : > { %v9021_v34 = vadd.f32 %v4397_v62, %v8712_v52  ;;  %v9024_v12 = vadd.f32 %v4411_v13, %v8719_v2  ;;  %v9723_v13 = vld [vmem:[#allocation57_spill] sm:$0xff]  ;;  %v5541_v19 = vsel %vm333_vm1, %v5508_v45, 0  ;;  %v5538_v63 = vsel %vm333_vm1, %v5507_v49, 0  ;;  %v9728_v49 = vld [vmem:[#allocation24_spill] sm:$0xff] }
 0x3d2   : > { %9720 = vst [vmem:[#allocation23_spill] sm:$0xff] %v9018_v30  ;;  %v5544_v30 = vsel %vm333_vm1, %v5509_v61, 0 }
 0x3d3   : > { %9721 = vst [vmem:[#allocation59_spill] sm:$0xff] %v9024_v12  ;;  %v5459_v12 = vpop.permute.xlu0 %5458 }
 0x3d4   : > { %v5463_v42 = vpop.permute.xlu1 %5462 }
 0x3d7   : > { %v4425_v55 = vpop.f32.mrf.mxu2  ;;  %v4439_v4 = vpop.f32.mrf.mxu3 }
 0x3d8   : > { %v9030_v29 = vadd.f32 %v4425_v55, %v8722_v27  ;;  %v9033_v52 = vadd.f32 %v4439_v4, %v8754_v60  ;;  %v4451_v2 = vpop.f32.mrf.mxu0  ;;  %v4465_v54 = vpop.f32.mrf.mxu1  ;;  %v5510_v27 = vsel %vm5506_vm9, %v5457_v7, %v5459_v12  ;;  %v9725_v4 = vld [vmem:[#allocation54_spill] sm:$0xff] }
 0x3d9   : > { %v9037_v62 = vadd.f32 %v4451_v2, %v9722_v35  ;;  %v9040_v20 = vadd.f32 %v4465_v54, %v9723_v13  ;;  %v5547_v60 = vsel %vm333_vm1, %v5510_v27, 0 }
 0x3db   : > { %9724 = vst [vmem:[#allocation28_spill] sm:$0xff] %v9040_v20  ;;  %6476 = vmatmul.msk.bf16.vlgmr.msra.gmra.mxu0 %vm329_vm2, %v8805_v24  ;;  %6477 = vmatmul.msk.bf16.vlgmr.msra.gmra.mxu1 %vm329_vm2, %v8805_v24 }
 0x3dc   : > { %6478 = vmatmul.msk.bf16.vlgmr.msra.gmra.mxu2 %vm329_vm2, %v8805_v24  ;;  %6479 = vmatmul.msk.bf16.vlgmr.msra.gmra.mxu3 %vm329_vm2, %v8805_v24 }
 0x3dd   : > { %5639 = vmatpush.bf16.msra.mxu1 %v5541_v19  ;;  %5653 = vmatpush.bf16.msra.mxu2 %v5544_v30  ;;  %v5465_v19 = vpop.permute.xlu2 %5464  ;;  %v5461_v30 = vpop.permute.xlu0 %5460 }
 0x3de   : > { %5667 = vmatpush.bf16.msra.mxu3 %v5547_v60  ;;  %5625 = vmatpush.bf16.msra.mxu0 %v5538_v63  ;;  %v5511_v20 = vsel %vm5506_vm9, %v5459_v12, %v5461_v30 }
 0x3df   : > { %v4479_v7 = vpop.f32.mrf.mxu2  ;;  %v4493_v55 = vpop.f32.mrf.mxu3  ;;  %v5550_v12 = vsel %vm333_vm1, %v5511_v20, 0 }
 0x3e0   : > { %v9056_v61 = vadd.f32 %v4479_v7, %v9725_v4  ;;  %v9059_v45 = vadd.f32 %v4493_v55, %v8772_v38  ;;  %v4453_v2 = vpop.f32.mrf.mxu0  ;;  %v4467_v54 = vpop.f32.mrf.mxu1  ;;  %v5512_v7 = vsel %vm5506_vm9, %v5461_v30, %v5463_v42  ;;  %v9733_v30 = vld [vmem:[#allocation22_spill] sm:$0xff] }
 0x3e1   : > { %v9062_v35 = vadd.f32 %v4453_v2, %v9728_v49  ;;  %v9065_v13 = vadd.f32 %v4467_v54, %v8764_v26  ;;  %v5513_v26 = vsel %vm5506_vm9, %v5463_v42, %v5465_v19  ;;  %v9730_v49 = vld [vmem:[#allocation56_spill] sm:$0xff] }
 0x3e2   : > { %9726 = vst [vmem:[#allocation60_spill] sm:$0xff] %v9056_v61 }
 0x3e3   : > { %9727 = vst [vmem:[#allocation26_spill] sm:$0xff] %v9059_v45  ;;  %v5467_v27 = vpop.permute.xlu1 %5466  ;;  %v9731_v45 = vld [vmem:[#allocation25_spill] sm:$0xff] }
 0x3e4   : > { %9729 = vst [vmem:[#allocation29_spill] sm:$0xff] %v9065_v13  ;;  %v5514_v54 = vsel %vm5506_vm9, %v5465_v19, %v5467_v27 }
 0x3e5   : > { %v5559_v42 = vsel %vm333_vm1, %v5514_v54, 0  ;;  %v5471_v19 = vpop.permute.xlu2 %5470 }
 0x3e7   : > { %v4481_v60 = vpop.f32.mrf.mxu2  ;;  %v4495_v63 = vpop.f32.mrf.mxu3 }
 0x3e8   : > { %v9070_v38 = vadd.f32 %v4481_v60, %v8767_v0  ;;  %v9073_v55 = vadd.f32 %v4495_v63, %v8798_v5  ;;  %v4507_v4 = vpop.f32.mrf.mxu0  ;;  %v4521_v2 = vpop.f32.mrf.mxu1  ;;  %v5553_v0 = vsel %vm333_vm1, %v5512_v7, 0  ;;  %v5556_v5 = vsel %vm333_vm1, %v5513_v26, 0 }
 0x3e9   : > { %v9078_v13 = vadd.f32 %v4507_v4, %v9730_v49  ;;  %v9081_v61 = vadd.f32 %v4521_v2, %v9731_v45  ;;  %v9735_v2 = vld [vmem:[#allocation58_spill] sm:$0xff]  ;;  %v6486_v49 = vld [vmem:[#allocation2 + $0x40] sm:$0xf] }
 0x3eb   : > { %9732 = vst [vmem:[#allocation27_spill] sm:$0xff] %v9081_v61  ;;  %6480 = vmatmul.msk.bf16.vlgmr.msrb.gmra.mxu0 %vm329_vm2, %v8805_v24  ;;  %6481 = vmatmul.msk.bf16.vlgmr.msrb.gmra.mxu1 %vm329_vm2, %v8805_v24 }
 0x3ec   : > { %6482 = vmatmul.msk.bf16.vlgmr.msrb.gmra.mxu2 %vm329_vm2, %v8805_v24  ;;  %6483 = vmatmul.msk.bf16.vlgmr.msrb.gmra.mxu3 %vm329_vm2, %v8805_v24  ;;  %v5473_v24 = vpop.permute.xlu0 %5472 }
 0x3ed   : > { %5681 = vmatpush.bf16.msrb.mxu0 %v5550_v12  ;;  %5695 = vmatpush.bf16.msrb.mxu1 %v5553_v0  ;;  %v6525_v12 = vld [vmem:[#allocation2 + $0x40] sm:$0x30]  ;;  %v5469_v0 = vpop.permute.xlu1 %5468 }
 0x3ee   : > { %5709 = vmatpush.bf16.msrb.mxu2 %v5556_v5  ;;  %5723 = vmatpush.bf16.msrb.mxu3 %v5559_v42  ;;  %v5475_v5 = vpop.permute.xlu2 %5474 }
 0x3ef   : > { %v4535_v20 = vpop.f32.mrf.mxu2  ;;  %v4549_v45 = vpop.f32.mrf.mxu3 }
 0x3f0   : > { %v9096_v60 = vadd.f32 %v4535_v20, %v9733_v30  ;;  %v9099_v63 = vadd.f32 %v4549_v45, %v8818_v50  ;;  %v4509_v7 = vpop.f32.mrf.mxu0  ;;  %v4523_v4 = vpop.f32.mrf.mxu1  ;;  %v9107_v20 = vor.u32 %v6525_v12, %v6486_v49  ;;  %v5515_v50 = vsel %vm5506_vm9, %v5467_v27, %v5469_v0 }
 0x3f1   : > { %v9102_v26 = vadd.f32 %v4509_v7, %v9735_v2  ;;  %v9105_v54 = vadd.f32 %v4523_v4, %v8810_v41  ;;  %v5516_v45 = vsel %vm5506_vm9, %v5469_v0, %v5471_v19  ;;  %v5517_v2 = vsel %vm5506_vm9, %v5471_v19, %v5473_v24 }
 0x3f2   : > { %9734 = vst [vmem:[#allocation61_spill] sm:$0xff] %v9099_v63  ;;  %v5562_v27 = vsel %vm333_vm1, %v5515_v50, 0 }
 0x3f3   : > { %9736 = vst [vmem:[#allocation32_spill] sm:$0xff] %v9105_v54  ;;  %v5518_v54 = vsel %vm5506_vm9, %v5473_v24, %v5475_v5 }
 0x3f7   : > { %v4537_v42 = vpop.f32.mrf.mxu2  ;;  %v4551_v61 = vpop.f32.mrf.mxu3 }
 0x3f8   : > { %v9112_v30 = vadd.f32 %v4537_v42, %v8813_v59  ;;  %v9115_v7 = vadd.f32 %v4551_v61, %v8846_v44  ;;  %v4563_v41 = vpop.f32.mrf.mxu0  ;;  %v4577_v4 = vpop.f32.mrf.mxu1  ;;  %v5565_v59 = vsel %vm333_vm1, %v5516_v45, 0  ;;  %v5568_v44 = vsel %vm333_vm1, %v5517_v2, 0 }
 0x3f9   : > { %v9120_v63 = vadd.f32 %v4563_v41, %v8821_v9  ;;  %v9123_v49 = vadd.f32 %v4577_v4, %v8840_v58  ;;  %v5571_v61 = vsel %vm333_vm1, %v5518_v54, 0  ;;  %v5479_v9 = vpop.permute.xlu0 %5478  ;;  %v5477_v41 = vpop.permute.xlu2 %5476 }
 0x3fa   : > { %v5481_v45 = vpop.permute.xlu1 %5480 }
 0x3fb   : > { %6488 = vmatmul.msk.bf16.vlgmr.msra.gmra.mxu0 %vm329_vm2, %v9107_v20  ;;  %6489 = vmatmul.msk.bf16.vlgmr.msra.gmra.mxu1 %vm329_vm2, %v9107_v20 }
 0x3fc   : > { %6490 = vmatmul.msk.bf16.vlgmr.msra.gmra.mxu2 %vm329_vm2, %v9107_v20  ;;  %6491 = vmatmul.msk.bf16.vlgmr.msra.gmra.mxu3 %vm329_vm2, %v9107_v20 }
 0x3fd   : > { %5737 = vmatpush.bf16.msra.mxu0 %v5562_v27  ;;  %5751 = vmatpush.bf16.msra.mxu1 %v5565_v59  ;;  %v5519_v59 = vsel %vm5506_vm9, %v5475_v5, %v5477_v41 }
 0x3fe   : > { %5765 = vmatpush.bf16.msra.mxu2 %v5568_v44  ;;  %5779 = vmatpush.bf16.msra.mxu3 %v5571_v61  ;;  %v5574_v5 = vsel %vm333_vm1, %v5519_v59, 0 }
 0x3ff   : > { %v4591_v58 = vpop.f32.mrf.mxu2  ;;  %v4605_v19 = vpop.f32.mrf.mxu3 }
 0x400   : > { %v9138_v24 = vadd.f32 %v4591_v58, %v8843_v14  ;;  %v9141_v12 = vadd.f32 %v4605_v19, %v8865_v48  ;;  %v4565_v54 = vpop.f32.mrf.mxu0  ;;  %v4579_v0 = vpop.f32.mrf.mxu1  ;;  %v5520_v14 = vsel %vm5506_vm9, %v5477_v41, %v5479_v9 }
 0x401   : > { %v9144_v42 = vadd.f32 %v4565_v54, %v8849_v36  ;;  %v9147_v50 = vadd.f32 %v4579_v0, %v8857_v56  ;;  %v5483_v4 = vpop.permute.xlu0 %5482  ;;  %v5521_v56 = vsel %vm5506_vm9, %v5479_v9, %v5481_v45 }
 0x402   : > { %v5522_v58 = vsel %vm5506_vm9, %v5481_v45, %v5483_v4 }
 0x403   : > { %v5583_v9 = vsel %vm333_vm1, %v5522_v58, 0 }
 0x407   : > { %v4593_v2 = vpop.f32.mrf.mxu2  ;;  %v4607_v27 = vpop.f32.mrf.mxu3 }
 0x408   : > { %v9152_v48 = vadd.f32 %v4593_v2, %v8860_v18  ;;  %v9155_v44 = vadd.f32 %v4607_v27, %v8892_v6  ;;  %v4619_v36 = vpop.f32.mrf.mxu0  ;;  %v4941_v61 = vpop.f32.mrf.mxu1  ;;  %v5577_v18 = vsel %vm333_vm1, %v5520_v14, 0  ;;  %v5580_v6 = vsel %vm333_vm1, %v5521_v56, 0 }
 0x409   : > { %v9160_v19 = vadd.f32 %v4619_v36, %v8868_v47  ;;  %v9163_v54 = vadd.f32 %v4941_v61, %v8886_v10  ;;  %v5487_v47 = vpop.permute.xlu1 %5486  ;;  %v5489_v36 = vpop.permute.xlu2 %5488 }
 0x40b   : > { %6492 = vmatmul.msk.bf16.vlgmr.msrb.gmra.mxu0 %vm329_vm2, %v9107_v20  ;;  %6493 = vmatmul.msk.bf16.vlgmr.msrb.gmra.mxu1 %vm329_vm2, %v9107_v20 }
 0x40c   : > { %6494 = vmatmul.msk.bf16.vlgmr.msrb.gmra.mxu2 %vm329_vm2, %v9107_v20  ;;  %6495 = vmatmul.msk.bf16.vlgmr.msrb.gmra.mxu3 %vm329_vm2, %v9107_v20 }
 0x40d   : > { %5793 = vmatpush.bf16.msrb.mxu0 %v5574_v5  ;;  %5807 = vmatpush.bf16.msrb.mxu1 %v5577_v18 }
 0x40e   : > { %5821 = vmatpush.bf16.msrb.mxu2 %v5580_v6  ;;  %5835 = vmatpush.bf16.msrb.mxu3 %v5583_v9 }
 0x40f   : > { %v4955_v10 = vpop.f32.mrf.mxu2  ;;  %v4969_v0 = vpop.f32.mrf.mxu3 }
 0x410   : > { %v9178_v45 = vadd.f32 %v4955_v10, %v8889_v31  ;;  %v9181_v41 = vadd.f32 %v4969_v0, %v8909_v51  ;;  %v4621_v2 = vpop.f32.mrf.mxu0  ;;  %v4943_v27 = vpop.f32.mrf.mxu1 }
 0x411   : > { %v9184_v59 = vadd.f32 %v4621_v2, %v8895_v57  ;;  %v9187_v14 = vadd.f32 %v4943_v27, %v8901_v3  ;;  %v5485_v61 = vpop.permute.xlu0 %5484  ;;  %v5525_v3 = vsel %vm5506_vm9, %v5487_v47, %v5489_v36  ;;  %v5495_v27 = vpop.permute.xlu2 %5494 }
 0x412   : > { %v5523_v18 = vsel %vm5506_vm9, %v5483_v4, %v5485_v61  ;;  %v5524_v31 = vsel %vm5506_vm9, %v5485_v61, %v5487_v47 }
 0x413   : > { %v5586_v4 = vsel %vm333_vm1, %v5523_v18, 0 }
 0x414   : > { %v5491_v56 = vpop.permute.xlu1 %5490 }
 0x415   : > { %v5526_v10 = vsel %vm5506_vm9, %v5489_v36, %v5491_v56 }
 0x416   : > { %v5595_v47 = vsel %vm333_vm1, %v5526_v10, 0 }
 0x417   : > { %v4957_v58 = vpop.f32.mrf.mxu2  ;;  %v4971_v5 = vpop.f32.mrf.mxu3 }
 0x418   : > { %v9192_v51 = vadd.f32 %v4957_v58, %v8904_v16  ;;  %v9195_v6 = vadd.f32 %v4971_v5, %v8935_v32  ;;  %v4983_v57 = vpop.f32.mrf.mxu0  ;;  %v4997_v9 = vpop.f32.mrf.mxu1  ;;  %v5589_v16 = vsel %vm333_vm1, %v5524_v31, 0  ;;  %v5592_v32 = vsel %vm333_vm1, %v5525_v3, 0 }
 0x419   : > { %v9200_v0 = vadd.f32 %v4983_v57, %v8912_v33  ;;  %v9203_v2 = vadd.f32 %v4997_v9, %v8929_v53 }
 0x41a   : > { %v5499_v3 = vpop.permute.xlu2 %5498 }
 0x41b   : > { %6496 = vmatmul.msk.bf16.vlgmr.msra.gmra.mxu0 %vm329_vm2, %v9107_v20  ;;  %6497 = vmatmul.msk.bf16.vlgmr.msra.gmra.mxu1 %vm329_vm2, %v9107_v20 }
 0x41c   : > { %6498 = vmatmul.msk.bf16.vlgmr.msra.gmra.mxu2 %vm329_vm2, %v9107_v20  ;;  %6499 = vmatmul.msk.bf16.vlgmr.msra.gmra.mxu3 %vm329_vm2, %v9107_v20  ;;  %v5493_v57 = vpop.permute.xlu1 %5492  ;;  %v5497_v9 = vpop.permute.xlu0 %5496 }
 0x41d   : > { %5849 = vmatpush.bf16.msra.mxu0 %v5586_v4  ;;  %5863 = vmatpush.bf16.msra.mxu1 %v5589_v16  ;;  %v5527_v16 = vsel %vm5506_vm9, %v5491_v56, %v5493_v57 }
 0x41e   : > { %5877 = vmatpush.bf16.msra.mxu2 %v5592_v32  ;;  %5891 = vmatpush.bf16.msra.mxu3 %v5595_v47  ;;  %v5598_v56 = vsel %vm333_vm1, %v5527_v16, 0 }
 0x41f   : > { %v5011_v33 = vpop.f32.mrf.mxu2  ;;  %v5025_v53 = vpop.f32.mrf.mxu3 }
 0x420   : > { %v9218_v36 = vadd.f32 %v5011_v33, %v8932_v39  ;;  %v9221_v61 = vadd.f32 %v5025_v53, %v8951_v1  ;;  %v4985_v58 = vpop.f32.mrf.mxu0  ;;  %v4999_v5 = vpop.f32.mrf.mxu1  ;;  %v5528_v39 = vsel %vm5506_vm9, %v5493_v57, %v5495_v27  ;;  %v5530_v33 = vsel %vm5506_vm9, %v5497_v9, %v5499_v3 }
 0x421   : > { %v9224_v18 = vadd.f32 %v4985_v58, %v8938_v15  ;;  %v9227_v31 = vadd.f32 %v4999_v5, %v8944_v25  ;;  %v5529_v25 = vsel %vm5506_vm9, %v5495_v27, %v5497_v9  ;;  %v5607_v27 = vsel %vm333_vm1, %v5530_v33, 0 }
 0x427   : > { %v5013_v10 = vpop.f32.mrf.mxu2  ;;  %v5027_v4 = vpop.f32.mrf.mxu3 }
 0x428   : > { %v9232_v1 = vadd.f32 %v5013_v10, %v8947_v17  ;;  %v9235_v32 = vadd.f32 %v5027_v4, %v8978_v22  ;;  %v5039_v15 = vpop.f32.mrf.mxu0  ;;  %v5053_v47 = vpop.f32.mrf.mxu1  ;;  %v5601_v17 = vsel %vm333_vm1, %v5528_v39, 0  ;;  %v5604_v22 = vsel %vm333_vm1, %v5529_v25, 0 }
 0x429   : > { %v9240_v53 = vadd.f32 %v5039_v15, %v8954_v23  ;;  %v9243_v58 = vadd.f32 %v5053_v47, %v8972_v28  ;;  %v5501_v39 = vpop.permute.xlu2 %5500 }
 0x42a   : > { %v5531_v33 = vsel %vm5506_vm9, %v5499_v3, %v5501_v39 }
 0x42b   : > { %6500 = vmatmul.msk.bf16.vlgmr.msrb.gmra.mxu0 %vm329_vm2, %v9107_v20  ;;  %6501 = vmatmul.msk.bf16.vlgmr.msrb.gmra.mxu1 %vm329_vm2, %v9107_v20 }
 0x42c   : > { %6502 = vmatmul.msk.bf16.vlgmr.msrb.gmra.mxu2 %vm329_vm2, %v9107_v20  ;;  %6503 = vmatmul.msk.bf16.vlgmr.msrb.gmra.mxu3 %vm329_vm2, %v9107_v20 }
 0x42d   : > { %5905 = vmatpush.bf16.msrb.mxu0 %v5598_v56  ;;  %5919 = vmatpush.bf16.msrb.mxu1 %v5601_v17 }
 0x42e   : > { %5933 = vmatpush.bf16.msrb.mxu2 %v5604_v22  ;;  %5947 = vmatpush.bf16.msrb.mxu3 %v5607_v27  ;;  %v5610_v27 = vsel %vm333_vm1, %v5531_v33, 0 }
 0x42f   : > { %v5067_v23 = vpop.f32.mrf.mxu2  ;;  %v5081_v28 = vpop.f32.mrf.mxu3 }
 0x430   : > { %v9258_v5 = vadd.f32 %v5067_v23, %v8975_v40  ;;  %v9261_v57 = vadd.f32 %v5081_v28, %v8997_v8  ;;  %v5041_v9 = vpop.f32.mrf.mxu0  ;;  %v5055_v10 = vpop.f32.mrf.mxu1  ;;  %v9737_v28 = vld [vmem:[#allocation23_spill] sm:$0xff] }
 0x431   : > { %v9264_v4 = vadd.f32 %v5041_v9, %v8981_v11  ;;  %v9267_v16 = vadd.f32 %v5055_v10, %v8989_v21  ;;  %v5505_v15 = vpop.permute.xlu1 %5504  ;;  %v5503_v22 = vpop.permute.xlu0 %5502 }
 0x432   : > { %v5532_v23 = vsel %vm5506_vm9, %v5501_v39, %v5503_v22  ;;  %v5533_v3 = vsel %vm5506_vm9, %v5503_v22, %v5505_v15 }
 0x437   : > { %v5069_v47 = vpop.f32.mrf.mxu2  ;;  %v5083_v25 = vpop.f32.mrf.mxu3 }
 0x438   : > { %v9271_v40 = vadd.f32 %v5069_v47, %v8992_v37  ;;  %v9274_v8 = vadd.f32 %v5083_v25, %v9021_v34  ;;  %v5095_v56 = vpop.f32.mrf.mxu0  ;;  %v5109_v17 = vpop.f32.mrf.mxu1  ;;  %v5613_v37 = vsel %vm333_vm1, %v5532_v23, 0  ;;  %v9738_v47 = vld [vmem:[#allocation59_spill] sm:$0xff] }
 0x439   : > { %v9277_v11 = vadd.f32 %v5095_v56, %v9000_v43  ;;  %v9280_v21 = vadd.f32 %v5109_v17, %v9015_v46  ;;  %v5616_v43 = vsel %vm333_vm1, %v5533_v3, 0 }
 0x43b   : > { %6504 = vmatmul.msk.bf16.vlgmr.msra.gmra.mxu0 %vm329_vm2, %v9107_v20  ;;  %6505 = vmatmul.msk.bf16.vlgmr.msra.gmra.mxu1 %vm329_vm2, %v9107_v20 }
 0x43c   : > { %6506 = vmatmul.msk.bf16.vlgmr.msra.gmra.mxu2 %vm329_vm2, %v9107_v20  ;;  %6507 = vmatmul.msk.bf16.vlgmr.msra.gmra.mxu3 %vm329_vm2, %v9107_v20 }
 0x43d   : > { %5961 = vmatpush.bf16.msra.mxu0 %v5610_v27  ;;  %5975 = vmatpush.bf16.msra.mxu1 %v5613_v37 }
 0x43e   : > { %5989 = vmatpush.bf16.msra.mxu2 %v5616_v43  ;;  %v9740_v43 = vld [vmem:[#allocation60_spill] sm:$0xff] }
 0x43f   : > { %v5123_v46 = vpop.f32.mrf.mxu2  ;;  %v5137_v34 = vpop.f32.mrf.mxu3 }
 0x440   : > { %v9296_v9 = vadd.f32 %v5123_v46, %v9737_v28  ;;  %v9299_v10 = vadd.f32 %v5137_v34, %v9037_v62  ;;  %v5097_v39 = vpop.f32.mrf.mxu0  ;;  %v5111_v15 = vpop.f32.mrf.mxu1  ;;  %v9739_v62 = vld [vmem:[#allocation28_spill] sm:$0xff] }
 0x441   : > { %v9302_v25 = vadd.f32 %v5097_v39, %v9738_v47  ;;  %v9305_v33 = vadd.f32 %v5111_v15, %v9030_v29  ;;  %v9743_v47 = vld [vmem:[#allocation29_spill] sm:$0xff] }
 0x447   : > { %v5125_v56 = vpop.f32.mrf.mxu2  ;;  %v5139_v17 = vpop.f32.mrf.mxu3 }
 0x448   : > { %v9308_v22 = vadd.f32 %v5125_v56, %v9033_v52  ;;  %v9311_v27 = vadd.f32 %v5139_v17, %v9062_v35  ;;  %v5151_v23 = vpop.f32.mrf.mxu0  ;;  %v5165_v3 = vpop.f32.mrf.mxu1  ;;  %v9741_v35 = vld [vmem:[#allocation26_spill] sm:$0xff] }
 0x449   : > { %v9314_v37 = vadd.f32 %v5151_v23, %v9739_v62  ;;  %v9317_v46 = vadd.f32 %v5165_v3, %v9740_v43 }
 0x44b   : > { %6508 = vmatmul.msk.bf16.vlgmr.msrb.gmra.mxu0 %vm329_vm2, %v9107_v20  ;;  %6509 = vmatmul.msk.bf16.vlgmr.msrb.gmra.mxu1 %vm329_vm2, %v9107_v20 }
 0x44c   : > { %6510 = vmatmul.msk.bf16.vlgmr.msrb.gmra.mxu2 %vm329_vm2, %v9107_v20  ;;  %6511 = vmatmul.msk.bf16.vlgmr.msrb.gmra.mxu3 %vm329_vm2, %v9107_v20 }
 0x44f   : > { %v5179_v29 = vpop.f32.mrf.mxu2  ;;  %v5193_v52 = vpop.f32.mrf.mxu3 }
 0x450   : > { %v9328_v34 = vadd.f32 %v5179_v29, %v9741_v35  ;;  %v9331_v28 = vadd.f32 %v5193_v52, %v9078_v13  ;;  %v5153_v39 = vpop.f32.mrf.mxu0  ;;  %v5167_v15 = vpop.f32.mrf.mxu1  ;;  %v9744_v13 = vld [vmem:[#allocation27_spill] sm:$0xff] }
 0x451   : > { %v9334_v56 = vadd.f32 %v5153_v39, %v9743_v47  ;;  %v9337_v17 = vadd.f32 %v5167_v15, %v9070_v38 }
 0x452   : > { %9742 = vst [vmem:[#allocation62_spill] sm:$0xff] %v9331_v28 }
 0x457   : > { %v5181_v23 = vpop.f32.mrf.mxu2  ;;  %v5195_v3 = vpop.f32.mrf.mxu3 }
 0x458   : > { %v9340_v62 = vadd.f32 %v5181_v23, %v9073_v55  ;;  %v9343_v43 = vadd.f32 %v5195_v3, %v9102_v26  ;;  %v5207_v29 = vpop.f32.mrf.mxu0  ;;  %v5221_v35 = vpop.f32.mrf.mxu1  ;;  %v9746_v26 = vld [vmem:[#allocation61_spill] sm:$0xff]  ;;  %v9747_v23 = vld [vmem:[#allocation32_spill] sm:$0xff] }
 0x459   : > { %v9346_v52 = vadd.f32 %v5207_v29, %v9744_v13  ;;  %v9349_v28 = vadd.f32 %v5221_v35, %v9096_v60 }
 0x45b   : > { %9745 = vst [vmem:[#allocation33_spill] sm:$0xff] %v9349_v28  ;;  %6512 = vmatmul.msk.bf16.vlgmr.msra.gmra.mxu0 %vm329_vm2, %v9107_v20  ;;  %6513 = vmatmul.msk.bf16.vlgmr.msra.gmra.mxu1 %vm329_vm2, %v9107_v20 }
 0x45c   : > { %6514 = vmatmul.msk.bf16.vlgmr.msra.gmra.mxu2 %vm329_vm2, %v9107_v20 }
 0x45f   : > { %v5235_v38 = vpop.f32.mrf.mxu2  ;;  %v5249_v55 = vpop.f32.mrf.mxu3 }
 0x460   : > { %v9358_v39 = vadd.f32 %v5235_v38, %v9746_v26  ;;  %v9361_v15 = vadd.f32 %v5249_v55, %v9120_v63  ;;  %v5209_v47 = vpop.f32.mrf.mxu0  ;;  %v5223_v60 = vpop.f32.mrf.mxu1 }
 0x461   : > { %v9364_v3 = vadd.f32 %v5209_v47, %v9747_v23  ;;  %v9367_v29 = vadd.f32 %v5223_v60, %v9112_v30 }
 0x467   : > { %v5237_v35 = vpop.f32.mrf.mxu2  ;;  %v5251_v13 = vpop.f32.mrf.mxu3 }
 0x468   : > { %v9370_v20 = vadd.f32 %v5237_v35, %v9115_v7  ;;  %v9373_v28 = vadd.f32 %v5251_v13, %v9144_v42  ;;  %v5263_v38 = vpop.f32.mrf.mxu0  ;;  %v5277_v26 = vpop.f32.mrf.mxu1 }
 0x469   : > { %v9376_v63 = vadd.f32 %v5263_v38, %v9123_v49  ;;  %v9379_v55 = vadd.f32 %v5277_v26, %v9138_v24 }
 0x46f   : > { %v5291_v47 = vpop.f32.mrf.mxu2  ;;  %v5305_v30 = vpop.f32.mrf.mxu3 }
 0x470   : > { %v9382_v60 = vadd.f32 %v5291_v47, %v9141_v12  ;;  %v9385_v7 = vadd.f32 %v5305_v30, %v9160_v19  ;;  %v5265_v23 = vpop.f32.mrf.mxu0  ;;  %v5279_v42 = vpop.f32.mrf.mxu1 }
 0x471   : > { %v9388_v35 = vadd.f32 %v5265_v23, %v9147_v50  ;;  %v9391_v49 = vadd.f32 %v5279_v42, %v9152_v48 }
 0x477   : > { %v5293_v13 = vpop.f32.mrf.mxu2  ;;  %v5307_v24 = vpop.f32.mrf.mxu3 }
 0x478   : > { %v9394_v38 = vadd.f32 %v5293_v13, %v9155_v44  ;;  %v9397_v26 = vadd.f32 %v5307_v24, %v9184_v59  ;;  %v5627_v12 = vpop.f32.mrf.mxu0  ;;  %v5641_v47 = vpop.f32.mrf.mxu1 }
 0x479   : > { %v5996_v19 = vadd.f32 %v5627_v12, %v9163_v54  ;;  %v5997_v30 = vadd.f32 %v5641_v47, %v9178_v45 }
 0x47b   : > { %6557 = vtanh.f32 %v5996_v19 }
 0x47c   : > { %6559 = vtanh.f32 %v5997_v30 }
 0x47f   : > { %v5655_v50 = vpop.f32.mrf.mxu2  ;;  %v5669_v48 = vpop.f32.mrf.mxu3 }
 0x480   : > { %v5998_v44 = vadd.f32 %v5655_v50, %v9181_v41  ;;  %v5999_v59 = vadd.f32 %v5669_v48, %v9200_v0  ;;  %v5629_v23 = vpop.f32.mrf.mxu0  ;;  %v5643_v54 = vpop.f32.mrf.mxu1 }
 0x481   : > { %v6558_v42 = vpop.eup %6557  ;;  %v6023_v45 = vadd.f32 %v5629_v23, %v9187_v14  ;;  %v6024_v13 = vadd.f32 %v5643_v54, %v9192_v51 }
 0x482   : > { %v6560_v24 = vpop.eup %6559  ;;  %6104 = vst [vmem:[%s9405_s5] sm:$0xff] %v6558_v42  ;;  %6561 = vtanh.f32 %v5998_v44 }
 0x483   : > { %6105 = vst [vmem:[%s9405_s5 + $0x8] sm:$0xff] %v6560_v24  ;;  %6563 = vtanh.f32 %v5999_v59 }
 0x484   : > { %6565 = vtanh.f32 %v6023_v45 }
 0x485   : > { %6567 = vtanh.f32 %v6024_v13 }
 0x487   : > { %v5657_v41 = vpop.f32.mrf.mxu2  ;;  %v5671_v12 = vpop.f32.mrf.mxu3 }
 0x488   : > { %v6562_v0 = vpop.eup %6561  ;;  %v6025_v47 = vadd.f32 %v5657_v41, %v9195_v6  ;;  %v6026_v14 = vadd.f32 %v5671_v12, %v9224_v18  ;;  %v5683_v19 = vpop.f32.mrf.mxu0 }
 0x489   : > { %v5697_v51 = vpop.f32.mrf.mxu1  ;;  %v6564_v30 = vpop.eup %6563  ;;  %6106 = vst [vmem:[%s9405_s5 + $0x10] sm:$0xff] %v6562_v0  ;;  %v6000_v50 = vadd.f32 %v5683_v19, %v9203_v2 }
 0x48a   : > { %v6001_v48 = vadd.f32 %v5697_v51, %v9218_v36  ;;  %v6566_v44 = vpop.eup %6565  ;;  %6107 = vst [vmem:[%s9405_s5 + $0x18] sm:$0xff] %v6564_v30  ;;  %6569 = vtanh.f32 %v6025_v47 }
 0x48b   : > { %v6568_v59 = vpop.eup %6567  ;;  %6132 = vst [vmem:[%s9405_s5 + $0xd8] sm:$0xf] %v6566_v44  ;;  %6571 = vtanh.f32 %v6026_v14 }
 0x48c   : > { %6133 = vst [vmem:[%s9405_s5 + $0xe0] sm:$0xf] %v6568_v59  ;;  %6573 = vtanh.f32 %v6000_v50 }
 0x48d   : > { %6575 = vtanh.f32 %v6001_v48 }
 0x48f   : > { %v5711_v6 = vpop.f32.mrf.mxu2  ;;  %v5725_v18 = vpop.f32.mrf.mxu3 }
 0x490   : > { %v6570_v23 = vpop.eup %6569  ;;  %v6002_v2 = vadd.f32 %v5711_v6, %v9221_v61  ;;  %v6003_v36 = vadd.f32 %v5725_v18, %v9240_v53  ;;  %v5685_v54 = vpop.f32.mrf.mxu0 }
 0x491   : > { %v5699_v42 = vpop.f32.mrf.mxu1  ;;  %v6572_v45 = vpop.eup %6571  ;;  %6134 = vst [vmem:[%s9405_s5 + $0xe8] sm:$0xf] %v6570_v23  ;;  %v6027_v13 = vadd.f32 %v5685_v54, %v9227_v31 }
 0x492   : > { %v6028_v24 = vadd.f32 %v5699_v42, %v9232_v1  ;;  %v6574_v41 = vpop.eup %6573  ;;  %6135 = vst [vmem:[%s9405_s5 + $0xf0] sm:$0xf] %v6572_v45  ;;  %6577 = vtanh.f32 %v6002_v2 }
 0x493   : > { %v6576_v12 = vpop.eup %6575  ;;  %6108 = vst [vmem:[%s9405_s5 + $0x20] sm:$0xff] %v6574_v41  ;;  %6579 = vtanh.f32 %v6003_v36 }
 0x494   : > { %6109 = vst [vmem:[%s9405_s5 + $0x28] sm:$0xff] %v6576_v12  ;;  %6581 = vtanh.f32 %v6027_v13 }
 0x495   : > { %6583 = vtanh.f32 %v6028_v24 }
 0x497   : > { %v5713_v61 = vpop.f32.mrf.mxu2  ;;  %v5727_v53 = vpop.f32.mrf.mxu3 }
 0x498   : > { %v6578_v0 = vpop.eup %6577  ;;  %v6029_v31 = vadd.f32 %v5713_v61, %v9235_v32  ;;  %v6030_v1 = vadd.f32 %v5727_v53, %v9264_v4  ;;  %v5739_v47 = vpop.f32.mrf.mxu0 }
 0x499   : > { %v5753_v14 = vpop.f32.mrf.mxu1  ;;  %v6580_v19 = vpop.eup %6579  ;;  %6110 = vst [vmem:[%s9405_s5 + $0x30] sm:$0xff] %v6578_v0  ;;  %v6004_v51 = vadd.f32 %v5739_v47, %v9243_v58 }
 0x49a   : > { %v6005_v30 = vadd.f32 %v5753_v14, %v9258_v5  ;;  %v6582_v50 = vpop.eup %6581  ;;  %6111 = vst [vmem:[%s9405_s5 + $0x38] sm:$0xff] %v6580_v19  ;;  %6585 = vtanh.f32 %v6029_v31 }
 0x49b   : > { %v6584_v48 = vpop.eup %6583  ;;  %6136 = vst [vmem:[%s9405_s5 + $0xf8] sm:$0xf] %v6582_v50  ;;  %6587 = vtanh.f32 %v6030_v1 }
 0x49c   : > { %6137 = vst [vmem:[%s9405_s5 + $0x100] sm:$0xf] %v6584_v48  ;;  %6589 = vtanh.f32 %v6004_v51 }
 0x49d   : > { %6591 = vtanh.f32 %v6005_v30 }
 0x49f   : > { %v5767_v32 = vpop.f32.mrf.mxu2  ;;  %v5781_v4 = vpop.f32.mrf.mxu3 }
 0x4a0   : > { %v6586_v44 = vpop.eup %6585  ;;  %v6006_v58 = vadd.f32 %v5767_v32, %v9261_v57  ;;  %v6007_v5 = vadd.f32 %v5781_v4, %v9277_v11  ;;  %v5741_v59 = vpop.f32.mrf.mxu0 }
 0x4a1   : > { %v5755_v6 = vpop.f32.mrf.mxu1  ;;  %v6588_v18 = vpop.eup %6587  ;;  %6138 = vst [vmem:[%s9405_s5 + $0x108] sm:$0xf] %v6586_v44  ;;  %v6031_v23 = vadd.f32 %v5741_v59, %v9267_v16 }
 0x4a2   : > { %v6032_v2 = vadd.f32 %v5755_v6, %v9271_v40  ;;  %v6590_v36 = vpop.eup %6589  ;;  %6139 = vst [vmem:[%s9405_s5 + $0x110] sm:$0xf] %v6588_v18  ;;  %6593 = vtanh.f32 %v6006_v58  ;;  %v9748_v18 = vld [vmem:[#allocation62_spill] sm:$0xff] }
 0x4a3   : > { %v6592_v54 = vpop.eup %6591  ;;  %6112 = vst [vmem:[%s9405_s5 + $0x40] sm:$0xff] %v6590_v36  ;;  %6595 = vtanh.f32 %v6007_v5 }
 0x4a4   : > { %6113 = vst [vmem:[%s9405_s5 + $0x48] sm:$0xff] %v6592_v54  ;;  %6597 = vtanh.f32 %v6031_v23 }
 0x4a5   : > { %6599 = vtanh.f32 %v6032_v2 }
 0x4a7   : > { %v5769_v57 = vpop.f32.mrf.mxu2  ;;  %v5783_v11 = vpop.f32.mrf.mxu3 }
 0x4a8   : > { %v6594_v42 = vpop.eup %6593  ;;  %v6033_v16 = vadd.f32 %v5769_v57, %v9274_v8  ;;  %v6034_v40 = vadd.f32 %v5783_v11, %v9302_v25  ;;  %v5795_v45 = vpop.f32.mrf.mxu0 }
 0x4a9   : > { %v5809_v13 = vpop.f32.mrf.mxu1  ;;  %v6596_v24 = vpop.eup %6595  ;;  %6114 = vst [vmem:[%s9405_s5 + $0x50] sm:$0xff] %v6594_v42  ;;  %v6008_v41 = vadd.f32 %v5795_v45, %v9280_v21 }
 0x4aa   : > { %v6009_v12 = vadd.f32 %v5809_v13, %v9296_v9  ;;  %v6598_v61 = vpop.eup %6597  ;;  %6115 = vst [vmem:[%s9405_s5 + $0x58] sm:$0xff] %v6596_v24  ;;  %6601 = vtanh.f32 %v6033_v16 }
 0x4ab   : > { %v6600_v53 = vpop.eup %6599  ;;  %6140 = vst [vmem:[%s9405_s5 + $0x118] sm:$0xf] %v6598_v61  ;;  %6603 = vtanh.f32 %v6034_v40 }
 0x4ac   : > { %6141 = vst [vmem:[%s9405_s5 + $0x120] sm:$0xf] %v6600_v53  ;;  %6605 = vtanh.f32 %v6008_v41  ;;  %v9749_v41 = vld [vmem:[#allocation33_spill] sm:$0xff] }
 0x4ad   : > { %6607 = vtanh.f32 %v6009_v12 }
 0x4af   : > { %v5823_v8 = vpop.f32.mrf.mxu2  ;;  %v5837_v25 = vpop.f32.mrf.mxu3 }
 0x4b0   : > { %v6602_v0 = vpop.eup %6601  ;;  %v6010_v21 = vadd.f32 %v5823_v8, %v9299_v10  ;;  %v6011_v9 = vadd.f32 %v5837_v25, %v9314_v37  ;;  %v5797_v31 = vpop.f32.mrf.mxu0 }
 0x4b1   : > { %v5811_v1 = vpop.f32.mrf.mxu1  ;;  %v6604_v47 = vpop.eup %6603  ;;  %6142 = vst [vmem:[%s9405_s5 + $0x128] sm:$0xf] %v6602_v0  ;;  %v6035_v14 = vadd.f32 %v5797_v31, %v9305_v33 }
 0x4b2   : > { %v6036_v19 = vadd.f32 %v5811_v1, %v9308_v22  ;;  %v6606_v51 = vpop.eup %6605  ;;  %6143 = vst [vmem:[%s9405_s5 + $0x130] sm:$0xf] %v6604_v47  ;;  %6609 = vtanh.f32 %v6010_v21 }
 0x4b3   : > { %v6608_v30 = vpop.eup %6607  ;;  %6116 = vst [vmem:[%s9405_s5 + $0x60] sm:$0xff] %v6606_v51  ;;  %6611 = vtanh.f32 %v6011_v9 }
 0x4b4   : > { %6117 = vst [vmem:[%s9405_s5 + $0x68] sm:$0xff] %v6608_v30  ;;  %6613 = vtanh.f32 %v6035_v14 }
 0x4b5   : > { %6615 = vtanh.f32 %v6036_v19 }
 0x4b7   : > { %v5825_v10 = vpop.f32.mrf.mxu2  ;;  %v5839_v37 = vpop.f32.mrf.mxu3 }
 0x4b8   : > { %v6610_v50 = vpop.eup %6609  ;;  %v6037_v33 = vadd.f32 %v5825_v10, %v9311_v27  ;;  %v6038_v22 = vadd.f32 %v5839_v37, %v9334_v56  ;;  %v5851_v48 = vpop.f32.mrf.mxu0 }
 0x4b9   : > { %v5865_v32 = vpop.f32.mrf.mxu1  ;;  %v6612_v4 = vpop.eup %6611  ;;  %6118 = vst [vmem:[%s9405_s5 + $0x70] sm:$0xff] %v6610_v50  ;;  %v6012_v44 = vadd.f32 %v5851_v48, %v9317_v46 }
 0x4ba   : > { %v6013_v58 = vadd.f32 %v5865_v32, %v9328_v34  ;;  %v6614_v5 = vpop.eup %6613  ;;  %6119 = vst [vmem:[%s9405_s5 + $0x78] sm:$0xff] %v6612_v4  ;;  %6617 = vtanh.f32 %v6037_v33 }
 0x4bb   : > { %v6616_v59 = vpop.eup %6615  ;;  %6144 = vst [vmem:[%s9405_s5 + $0x138] sm:$0xf] %v6614_v5  ;;  %6619 = vtanh.f32 %v6038_v22 }
 0x4bc   : > { %6145 = vst [vmem:[%s9405_s5 + $0x140] sm:$0xf] %v6616_v59  ;;  %6621 = vtanh.f32 %v6012_v44 }
 0x4bd   : > { %6623 = vtanh.f32 %v6013_v58 }
 0x4bf   : > { %v5879_v27 = vpop.f32.mrf.mxu2  ;;  %v5893_v56 = vpop.f32.mrf.mxu3 }
 0x4c0   : > { %v6618_v6 = vpop.eup %6617  ;;  %v6014_v46 = vadd.f32 %v5879_v27, %v9748_v18  ;;  %v6015_v34 = vadd.f32 %v5893_v56, %v9346_v52  ;;  %v5853_v23 = vpop.f32.mrf.mxu0 }
 0x4c1   : > { %v5867_v2 = vpop.f32.mrf.mxu1  ;;  %v6620_v36 = vpop.eup %6619  ;;  %6146 = vst [vmem:[%s9405_s5 + $0x148] sm:$0xf] %v6618_v6  ;;  %v6039_v54 = vadd.f32 %v5853_v23, %v9337_v17 }
 0x4c2   : > { %v6040_v57 = vadd.f32 %v5867_v2, %v9340_v62  ;;  %v6622_v11 = vpop.eup %6621  ;;  %6147 = vst [vmem:[%s9405_s5 + $0x150] sm:$0xf] %v6620_v36  ;;  %6625 = vtanh.f32 %v6014_v46 }
 0x4c3   : > { %v6624_v42 = vpop.eup %6623  ;;  %6120 = vst [vmem:[%s9405_s5 + $0x80] sm:$0xff] %v6622_v11  ;;  %6627 = vtanh.f32 %v6015_v34 }
 0x4c4   : > { %6121 = vst [vmem:[%s9405_s5 + $0x88] sm:$0xff] %v6624_v42  ;;  %6629 = vtanh.f32 %v6039_v54 }
 0x4c5   : > { %6631 = vtanh.f32 %v6040_v57 }
 0x4c7   : > { %v5881_v52 = vpop.f32.mrf.mxu2  ;;  %v5895_v16 = vpop.f32.mrf.mxu3 }
 0x4c8   : > { %v6626_v40 = vpop.eup %6625  ;;  %v6041_v17 = vadd.f32 %v5881_v52, %v9343_v43  ;;  %v6042_v62 = vadd.f32 %v5895_v16, %v9364_v3  ;;  %v5907_v45 = vpop.f32.mrf.mxu0 }
 0x4c9   : > { %v5921_v13 = vpop.f32.mrf.mxu1  ;;  %v6628_v24 = vpop.eup %6627  ;;  %6122 = vst [vmem:[%s9405_s5 + $0x90] sm:$0xff] %v6626_v40  ;;  %v6016_v12 = vadd.f32 %v5907_v45, %v9749_v41 }
 0x4ca   : > { %v6017_v61 = vadd.f32 %v5921_v13, %v9358_v39  ;;  %v6630_v53 = vpop.eup %6629  ;;  %6123 = vst [vmem:[%s9405_s5 + $0x98] sm:$0xff] %v6628_v24  ;;  %6633 = vtanh.f32 %v6041_v17 }
 0x4cb   : > { %v6632_v8 = vpop.eup %6631  ;;  %6148 = vst [vmem:[%s9405_s5 + $0x158] sm:$0xf] %v6630_v53  ;;  %6635 = vtanh.f32 %v6042_v62 }
 0x4cc   : > { %6149 = vst [vmem:[%s9405_s5 + $0x160] sm:$0xf] %v6632_v8  ;;  %6637 = vtanh.f32 %v6016_v12 }
 0x4cd   : > { %6639 = vtanh.f32 %v6017_v61 }
 0x4cf   : > { %v5935_v43 = vpop.f32.mrf.mxu2  ;;  %v5949_v3 = vpop.f32.mrf.mxu3 }
 0x4d0   : > { %v6634_v25 = vpop.eup %6633  ;;  %v6018_v0 = vadd.f32 %v5935_v43, %v9361_v15  ;;  %v6019_v39 = vadd.f32 %v5949_v3, %v9376_v63  ;;  %v5909_v21 = vpop.f32.mrf.mxu0 }
 0x4d1   : > { %v5923_v9 = vpop.f32.mrf.mxu1  ;;  %v6636_v31 = vpop.eup %6635  ;;  %6150 = vst [vmem:[%s9405_s5 + $0x168] sm:$0xf] %v6634_v25  ;;  %v6043_v1 = vadd.f32 %v5909_v21, %v9367_v29 }
 0x4d2   : > { %v6044_v47 = vadd.f32 %v5923_v9, %v9370_v20  ;;  %v6638_v14 = vpop.eup %6637  ;;  %6151 = vst [vmem:[%s9405_s5 + $0x170] sm:$0xf] %v6636_v31  ;;  %6641 = vtanh.f32 %v6018_v0 }
 0x4d3   : > { %v6640_v19 = vpop.eup %6639  ;;  %6124 = vst [vmem:[%s9405_s5 + $0xa0] sm:$0xff] %v6638_v14  ;;  %6643 = vtanh.f32 %v6019_v39 }
 0x4d4   : > { %6125 = vst [vmem:[%s9405_s5 + $0xa8] sm:$0xff] %v6640_v19  ;;  %6645 = vtanh.f32 %v6043_v1 }
 0x4d5   : > { %6647 = vtanh.f32 %v6044_v47 }
 0x4d7   : > { %v5937_v15 = vpop.f32.mrf.mxu2  ;;  %v5951_v63 = vpop.f32.mrf.mxu3 }
 0x4d8   : > { %v6642_v51 = vpop.eup %6641  ;;  %v6045_v29 = vadd.f32 %v5937_v15, %v9373_v28  ;;  %v6046_v20 = vadd.f32 %v5951_v63, %v9388_v35  ;;  %v5963_v30 = vpop.f32.mrf.mxu0 }
 0x4d9   : > { %v5977_v10 = vpop.f32.mrf.mxu1  ;;  %v6644_v37 = vpop.eup %6643  ;;  %6126 = vst [vmem:[%s9405_s5 + $0xb0] sm:$0xff] %v6642_v51  ;;  %v6020_v50 = vadd.f32 %v5963_v30, %v9379_v55 }
 0x4da   : > { %v6021_v33 = vadd.f32 %v5977_v10, %v9382_v60  ;;  %v6646_v22 = vpop.eup %6645  ;;  %6127 = vst [vmem:[%s9405_s5 + $0xb8] sm:$0xff] %v6644_v37  ;;  %6649 = vtanh.f32 %v6045_v29 }
 0x4db   : > { %v6648_v48 = vpop.eup %6647  ;;  %6152 = vst [vmem:[%s9405_s5 + $0x178] sm:$0xf] %v6646_v22  ;;  %6651 = vtanh.f32 %v6046_v20 }
 0x4dc   : > { %6153 = vst [vmem:[%s9405_s5 + $0x180] sm:$0xf] %v6648_v48  ;;  %6653 = vtanh.f32 %v6020_v50 }
 0x4dd   : > { %6655 = vtanh.f32 %v6021_v33 }
 0x4df   : > { %v5991_v28 = vpop.f32.mrf.mxu2 }
 0x4e0   : > { %v6650_v35 = vpop.eup %6649  ;;  %v6022_v32 = vadd.f32 %v5991_v28, %v9385_v7  ;;  %v5965_v55 = vpop.f32.mrf.mxu0 }
 0x4e1   : > { %v5979_v4 = vpop.f32.mrf.mxu1  ;;  %v6652_v60 = vpop.eup %6651  ;;  %6154 = vst [vmem:[%s9405_s5 + $0x188] sm:$0xf] %v6650_v35  ;;  %v6047_v44 = vadd.f32 %v5965_v55, %v9391_v49 }
 0x4e2   : > { %v6048_v58 = vadd.f32 %v5979_v4, %v9394_v38  ;;  %v6654_v5 = vpop.eup %6653  ;;  %6155 = vst [vmem:[%s9405_s5 + $0x190] sm:$0xf] %v6652_v60  ;;  %6657 = vtanh.f32 %v6022_v32 }
 0x4e3   : > { %v6656_v59 = vpop.eup %6655  ;;  %6128 = vst [vmem:[%s9405_s5 + $0xc0] sm:$0xff] %v6654_v5  ;;  %6659 = vtanh.f32 %v6047_v44 }
 0x4e4   : > { %6129 = vst [vmem:[%s9405_s5 + $0xc8] sm:$0xff] %v6656_v59  ;;  %6661 = vtanh.f32 %v6048_v58 }
 0x4e7   : > { %v5993_v7 = vpop.f32.mrf.mxu2 }
 0x4e8   : > { %v6658_v27 = vpop.eup %6657  ;;  %v6049_v56 = vadd.f32 %v5993_v7, %v9397_v26 }
 0x4e9   : > { %v6660_v6 = vpop.eup %6659  ;;  %6131 = vst.msk [vmem:[%s9405_s5 + $0xd0] sm:$0xff] %vm6130_vm10, %v6658_v27 }
 0x4ea   : > { %v6662_v49 = vpop.eup %6661  ;;  %6156 = vst [vmem:[%s9405_s5 + $0x198] sm:$0xf] %v6660_v6  ;;  %6663 = vtanh.f32 %v6049_v56 }
 0x4eb   : > { %6157 = vst [vmem:[%s9405_s5 + $0x1a0] sm:$0xf] %v6662_v49 }
 0x4f0   : > { %v6664_v38 = vpop.eup %6663 }
 0x4f1   : > { %6159 = vst.msk [vmem:[%s9405_s5 + $0x1a8] sm:$0xf] %vm6158_vm11, %v6664_v38 }
 0x4f2 PF: > { %s13_s9 = sadd.s32 1, %s6705_s9  }
 0x4f3   : > { %p10_p7 = scmp.ge.s32.totalorder %s13_s9, 4  }
 0x4f5   :  { %12 = sbr.rel (!%p10_p7) target bundleno = 1 (0x1), region = 80 }
 0x4fa   :  { %6181 = vsyncpa [#allocation3], 1 }
 0x4fb   :  { %6183 = vsyncpa [#allocation3 + $0x1], 1 }

</bundles_post_ra>
